<compile_context>
chip_gen: v6e
topology: v6e:2x2x1
jax: 0.10.0
libtpu: 0.0.40
codegen_flags: <defaults>
</compile_context>

<pallas_src>
import jax
import jax.numpy as jnp
from jax.experimental import pallas as pl
from jax.experimental.pallas import tpu as pltpu


_LAYER_DIMS = [(3072, 1024), (1024, 512), (512, 256), (256, 128), (128, 10)]
_PADDED_LAST_OUT = 128  # pad fc5 output 10 -> 128 for lane-dense stores


def _round_up(x, m):
    return ((x + m - 1) // m) * m


def _mlp_fused_kernel(x_ref,
                      w1_ref, b1_ref,
                      w2_ref, b2_ref,
                      w3_ref, b3_ref,
                      w4_ref, b4_ref,
                      w5_ref, b5_ref,
                      o_ref):
    """One batch tile through all 5 layers; activations stay in VMEM/vregs."""

    def layer(h, w_ref, b_ref, relu):
        # bf16 x bf16 -> f32 accumulate on the MXU.
        y = jnp.dot(h, w_ref[...], preferred_element_type=jnp.float32)
        y = y + b_ref[...]          # bias is (1, out) f32, broadcast over rows
        if relu:
            y = jnp.maximum(y, 0.0)
        return y

    h = x_ref[...]                                   # (tile_n, 3072) bf16
    h = layer(h, w1_ref, b1_ref, True).astype(jnp.bfloat16)
    h = layer(h, w2_ref, b2_ref, True).astype(jnp.bfloat16)
    h = layer(h, w3_ref, b3_ref, True).astype(jnp.bfloat16)
    h = layer(h, w4_ref, b4_ref, True).astype(jnp.bfloat16)
    o_ref[...] = layer(h, w5_ref, b5_ref, False)     # (tile_n, 128) f32


def init_mlp_params(key):
    """PyTorch-Linear-style uniform init; weights stored (in, out) in bf16."""
    params = []
    for li, (fan_in, fan_out) in enumerate(_LAYER_DIMS):
        key, kw, kb = jax.random.split(key, 3)
        bound = 1.0 / (fan_in ** 0.5)
        w = jax.random.uniform(kw, (fan_in, fan_out), jnp.float32, -bound, bound)
        b = jax.random.uniform(kb, (1, fan_out), jnp.float32, -bound, bound)
        if li == len(_LAYER_DIMS) - 1:
            # Pad the 10-wide final layer to 128 lanes (zeros -> logits unchanged).
            w = jnp.pad(w, ((0, 0), (0, _PADDED_LAST_OUT - fan_out)))
            b = jnp.pad(b, ((0, 0), (0, _PADDED_LAST_OUT - fan_out)))
        params.append((w.astype(jnp.bfloat16), b))   # bias kept in f32
    return params


def mlp_forward(params, x_nchw, *, tile_n=256):
    """Fused 5-layer MLP forward. x_nchw: (N, 3, 32, 32) -> (N, 10) f32 logits."""
    x = x_nchw.reshape(-1, 3072).astype(jnp.bfloat16)   # x.view(-1, 3072)
    n = x.shape[0]

    # Batch tile: MXU-friendly 256 rows, shrunk (to a multiple of 8) for tiny N.
    tile = min(tile_n, _round_up(n, 8))
    n_pad = _round_up(n, tile)
    if n_pad != n:
        x = jnp.pad(x, ((0, n_pad - n), (0, 0)))

    # Flatten params for pallas_call.
    flat_args = []
    in_specs = [pl.BlockSpec((tile, 3072), lambda i: (i, 0))]
    for (w, b) in params:
        flat_args.append(w)
        flat_args.append(b)
        in_specs.append(pl.BlockSpec(w.shape, lambda i: (0, 0)))  # full weight
        in_specs.append(pl.BlockSpec(b.shape, lambda i: (0, 0)))  # full bias

    out = pl.pallas_call(
        _mlp_fused_kernel,
        out_shape=jax.ShapeDtypeStruct((n_pad, _PADDED_LAST_OUT), jnp.float32),
        grid=(n_pad // tile,),
        in_specs=in_specs,
        out_specs=pl.BlockSpec((tile, _PADDED_LAST_OUT), lambda i: (i, 0)),
        compiler_params=pltpu.CompilerParams(
            dimension_semantics=("parallel",),   # both TCs on v7x
            vmem_limit_bytes=48 << 20,           # headroom on v7x's 64 MiB VMEM
        ),
    )(x, *flat_args)

    return out[:n, :10]   # strip batch padding + the 10->128 lane padding


if __name__ == "__main__":
    key = jax.random.PRNGKey(0)
    pkey, xkey = jax.random.split(key)

    params = init_mlp_params(pkey)

    # Small batch of CIFAR-10-shaped inputs (NCHW), as in the PyTorch spec.
    x = jax.random.normal(xkey, (2, 3, 32, 32), dtype=jnp.float32)

    y = mlp_forward(params, x)
    jax.block_until_ready(y)
    assert y.shape == (2, 10) and y.dtype == jnp.float32
    print("KERNEL_OK")
</pallas_src>

<mosaic_0001>
module attributes {stable_mosaic.version = 11 : i64} {
  func.func @_mlp_fused_kernel(%arg0: i32, %arg1: memref<8x3072xbf16, #tpu.memory_space<vmem>>, %arg2: memref<3072x1024xbf16, #tpu.memory_space<vmem>>, %arg3: memref<1x1024xf32, #tpu.memory_space<vmem>>, %arg4: memref<1024x512xbf16, #tpu.memory_space<vmem>>, %arg5: memref<1x512xf32, #tpu.memory_space<vmem>>, %arg6: memref<512x256xbf16, #tpu.memory_space<vmem>>, %arg7: memref<1x256xf32, #tpu.memory_space<vmem>>, %arg8: memref<256x128xbf16, #tpu.memory_space<vmem>>, %arg9: memref<1x128xf32, #tpu.memory_space<vmem>>, %arg10: memref<128x128xbf16, #tpu.memory_space<vmem>>, %arg11: memref<1x128xf32, #tpu.memory_space<vmem>>, %arg12: memref<8x128xf32, #tpu.memory_space<vmem>>) attributes {dimension_semantics = [#tpu.dimension_semantics<parallel>], iteration_bounds = array<i64: 1>, scalar_prefetch = 0 : i64, scratch_operands = 0 : i64, tpu.core_type = #tpu.core_type<tc>, window_params = [{transform_indices = @transform_0, window_bounds = array<i64: 8, 3072>}, {pipeline_mode = #tpu.pipeline_mode<synchronous>, transform_indices = @transform_1, window_bounds = array<i64: 3072, 1024>}, {pipeline_mode = #tpu.pipeline_mode<synchronous>, transform_indices = @transform_2, window_bounds = array<i64: 1, 1024>}, {pipeline_mode = #tpu.pipeline_mode<synchronous>, transform_indices = @transform_3, window_bounds = array<i64: 1024, 512>}, {pipeline_mode = #tpu.pipeline_mode<synchronous>, transform_indices = @transform_4, window_bounds = array<i64: 1, 512>}, {pipeline_mode = #tpu.pipeline_mode<synchronous>, transform_indices = @transform_5, window_bounds = array<i64: 512, 256>}, {pipeline_mode = #tpu.pipeline_mode<synchronous>, transform_indices = @transform_6, window_bounds = array<i64: 1, 256>}, {pipeline_mode = #tpu.pipeline_mode<synchronous>, transform_indices = @transform_7, window_bounds = array<i64: 256, 128>}, {pipeline_mode = #tpu.pipeline_mode<synchronous>, transform_indices = @transform_8, window_bounds = array<i64: 1, 128>}, {pipeline_mode = #tpu.pipeline_mode<synchronous>, transform_indices = @transform_9, window_bounds = array<i64: 128, 128>}, {pipeline_mode = #tpu.pipeline_mode<synchronous>, transform_indices = @transform_10, window_bounds = array<i64: 1, 128>}, {transform_indices = @transform_11, window_bounds = array<i64: 8, 128>}]} {
    %c0 = arith.constant 0 : index
    %c0_0 = arith.constant 0 : index
    %0 = vector.load %arg1[%c0, %c0_0] : memref<8x3072xbf16, #tpu.memory_space<vmem>>, vector<8x3072xbf16>
    %c0_1 = arith.constant 0 : index
    %c0_2 = arith.constant 0 : index
    %1 = vector.load %arg2[%c0_1, %c0_2] : memref<3072x1024xbf16, #tpu.memory_space<vmem>>, vector<3072x1024xbf16>
    %cst = arith.constant dense<0.000000e+00> : vector<8x1024xf32>
    %2 = tpu.matmul %0, %1, %cst {dimension_numbers = #tpu.dot_dimension_numbers<[1], [0], [0], [1], [0, 0, 1, 1], [], []>} : vector<8x3072xbf16>, vector<3072x1024xbf16>, vector<8x1024xf32> -> vector<8x1024xf32>
    %c0_3 = arith.constant 0 : index
    %c0_4 = arith.constant 0 : index
    %3 = vector.load %arg3[%c0_3, %c0_4] : memref<1x1024xf32, #tpu.memory_space<vmem>>, vector<1x1024xf32>
    %4 = vector.broadcast %3 : vector<1x1024xf32> to vector<8x1024xf32>
    %5 = arith.addf %2, %4 : vector<8x1024xf32>
    %cst_5 = arith.constant 0.000000e+00 : f32
    %6 = vector.broadcast %cst_5 : f32 to vector<8x1024xf32>
    %7 = arith.maximumf %5, %6 : vector<8x1024xf32>
    %8 = arith.truncf %7 : vector<8x1024xf32> to vector<8x1024xbf16>
    %c0_6 = arith.constant 0 : index
    %c0_7 = arith.constant 0 : index
    %9 = vector.load %arg4[%c0_6, %c0_7] : memref<1024x512xbf16, #tpu.memory_space<vmem>>, vector<1024x512xbf16>
    %cst_8 = arith.constant dense<0.000000e+00> : vector<8x512xf32>
    %10 = tpu.matmul %8, %9, %cst_8 {dimension_numbers = #tpu.dot_dimension_numbers<[1], [0], [0], [1], [0, 0, 1, 1], [], []>} : vector<8x1024xbf16>, vector<1024x512xbf16>, vector<8x512xf32> -> vector<8x512xf32>
    %c0_9 = arith.constant 0 : index
    %c0_10 = arith.constant 0 : index
    %11 = vector.load %arg5[%c0_9, %c0_10] : memref<1x512xf32, #tpu.memory_space<vmem>>, vector<1x512xf32>
    %12 = vector.broadcast %11 : vector<1x512xf32> to vector<8x512xf32>
    %13 = arith.addf %10, %12 : vector<8x512xf32>
    %cst_11 = arith.constant 0.000000e+00 : f32
    %14 = vector.broadcast %cst_11 : f32 to vector<8x512xf32>
    %15 = arith.maximumf %13, %14 : vector<8x512xf32>
    %16 = arith.truncf %15 : vector<8x512xf32> to vector<8x512xbf16>
    %c0_12 = arith.constant 0 : index
    %c0_13 = arith.constant 0 : index
    %17 = vector.load %arg6[%c0_12, %c0_13] : memref<512x256xbf16, #tpu.memory_space<vmem>>, vector<512x256xbf16>
    %cst_14 = arith.constant dense<0.000000e+00> : vector<8x256xf32>
    %18 = tpu.matmul %16, %17, %cst_14 {dimension_numbers = #tpu.dot_dimension_numbers<[1], [0], [0], [1], [0, 0, 1, 1], [], []>} : vector<8x512xbf16>, vector<512x256xbf16>, vector<8x256xf32> -> vector<8x256xf32>
    %c0_15 = arith.constant 0 : index
    %c0_16 = arith.constant 0 : index
    %19 = vector.load %arg7[%c0_15, %c0_16] : memref<1x256xf32, #tpu.memory_space<vmem>>, vector<1x256xf32>
    %20 = vector.broadcast %19 : vector<1x256xf32> to vector<8x256xf32>
    %21 = arith.addf %18, %20 : vector<8x256xf32>
    %cst_17 = arith.constant 0.000000e+00 : f32
    %22 = vector.broadcast %cst_17 : f32 to vector<8x256xf32>
    %23 = arith.maximumf %21, %22 : vector<8x256xf32>
    %24 = arith.truncf %23 : vector<8x256xf32> to vector<8x256xbf16>
    %c0_18 = arith.constant 0 : index
    %c0_19 = arith.constant 0 : index
    %25 = vector.load %arg8[%c0_18, %c0_19] : memref<256x128xbf16, #tpu.memory_space<vmem>>, vector<256x128xbf16>
    %cst_20 = arith.constant dense<0.000000e+00> : vector<8x128xf32>
    %26 = tpu.matmul %24, %25, %cst_20 {dimension_numbers = #tpu.dot_dimension_numbers<[1], [0], [0], [1], [0, 0, 1, 1], [], []>} : vector<8x256xbf16>, vector<256x128xbf16>, vector<8x128xf32> -> vector<8x128xf32>
    %c0_21 = arith.constant 0 : index
    %c0_22 = arith.constant 0 : index
    %27 = vector.load %arg9[%c0_21, %c0_22] : memref<1x128xf32, #tpu.memory_space<vmem>>, vector<1x128xf32>
    %28 = vector.broadcast %27 : vector<1x128xf32> to vector<8x128xf32>
    %29 = arith.addf %26, %28 : vector<8x128xf32>
    %cst_23 = arith.constant 0.000000e+00 : f32
    %30 = vector.broadcast %cst_23 : f32 to vector<8x128xf32>
    %31 = arith.maximumf %29, %30 : vector<8x128xf32>
    %32 = arith.truncf %31 : vector<8x128xf32> to vector<8x128xbf16>
    %c0_24 = arith.constant 0 : index
    %c0_25 = arith.constant 0 : index
    %33 = vector.load %arg10[%c0_24, %c0_25] : memref<128x128xbf16, #tpu.memory_space<vmem>>, vector<128x128xbf16>
    %cst_26 = arith.constant dense<0.000000e+00> : vector<8x128xf32>
    %34 = tpu.matmul %32, %33, %cst_26 {dimension_numbers = #tpu.dot_dimension_numbers<[1], [0], [0], [1], [0, 0, 1, 1], [], []>} : vector<8x128xbf16>, vector<128x128xbf16>, vector<8x128xf32> -> vector<8x128xf32>
    %c0_27 = arith.constant 0 : index
    %c0_28 = arith.constant 0 : index
    %35 = vector.load %arg11[%c0_27, %c0_28] : memref<1x128xf32, #tpu.memory_space<vmem>>, vector<1x128xf32>
    %36 = vector.broadcast %35 : vector<1x128xf32> to vector<8x128xf32>
    %37 = arith.addf %34, %36 : vector<8x128xf32>
    %c0_29 = arith.constant 0 : index
    %c0_30 = arith.constant 0 : index
    %38 = vector.load %arg12[%c0_29, %c0_30] : memref<8x128xf32, #tpu.memory_space<vmem>>, vector<8x128xf32>
    tpu.vector_store %arg12[%c0_29, %c0_30], %37 {strides = array<i32>} : memref<8x128xf32, #tpu.memory_space<vmem>>, vector<8x128xf32>,
    return
  }
  func.func @transform_0(%arg0: i32) -> (i32, i32) {
    %c0_i32 = arith.constant 0 : i32
    %c0_i32_0 = arith.constant 0 : i32
    return %arg0, %c0_i32 : i32, i32
  }
  func.func @transform_1(%arg0: i32) -> (i32, i32) {
    %c0_i32 = arith.constant 0 : i32
    %c0_i32_0 = arith.constant 0 : i32
    %c0_i32_1 = arith.constant 0 : i32
    return %c0_i32, %c0_i32_0 : i32, i32
  }
  func.func @transform_2(%arg0: i32) -> (i32, i32) {
    %c0_i32 = arith.constant 0 : i32
    %c0_i32_0 = arith.constant 0 : i32
    %c0_i32_1 = arith.constant 0 : i32
    return %c0_i32, %c0_i32_0 : i32, i32
  }
  func.func @transform_3(%arg0: i32) -> (i32, i32) {
    %c0_i32 = arith.constant 0 : i32
    %c0_i32_0 = arith.constant 0 : i32
    %c0_i32_1 = arith.constant 0 : i32
    return %c0_i32, %c0_i32_0 : i32, i32
  }
  func.func @transform_4(%arg0: i32) -> (i32, i32) {
    %c0_i32 = arith.constant 0 : i32
    %c0_i32_0 = arith.constant 0 : i32
    %c0_i32_1 = arith.constant 0 : i32
    return %c0_i32, %c0_i32_0 : i32, i32
  }
  func.func @transform_5(%arg0: i32) -> (i32, i32) {
    %c0_i32 = arith.constant 0 : i32
    %c0_i32_0 = arith.constant 0 : i32
    %c0_i32_1 = arith.constant 0 : i32
    return %c0_i32, %c0_i32_0 : i32, i32
  }
  func.func @transform_6(%arg0: i32) -> (i32, i32) {
    %c0_i32 = arith.constant 0 : i32
    %c0_i32_0 = arith.constant 0 : i32
    %c0_i32_1 = arith.constant 0 : i32
    return %c0_i32, %c0_i32_0 : i32, i32
  }
  func.func @transform_7(%arg0: i32) -> (i32, i32) {
    %c0_i32 = arith.constant 0 : i32
    %c0_i32_0 = arith.constant 0 : i32
    %c0_i32_1 = arith.constant 0 : i32
    return %c0_i32, %c0_i32_0 : i32, i32
  }
  func.func @transform_8(%arg0: i32) -> (i32, i32) {
    %c0_i32 = arith.constant 0 : i32
    %c0_i32_0 = arith.constant 0 : i32
    %c0_i32_1 = arith.constant 0 : i32
    return %c0_i32, %c0_i32_0 : i32, i32
  }
  func.func @transform_9(%arg0: i32) -> (i32, i32) {
    %c0_i32 = arith.constant 0 : i32
    %c0_i32_0 = arith.constant 0 : i32
    %c0_i32_1 = arith.constant 0 : i32
    return %c0_i32, %c0_i32_0 : i32, i32
  }
  func.func @transform_10(%arg0: i32) -> (i32, i32) {
    %c0_i32 = arith.constant 0 : i32
    %c0_i32_0 = arith.constant 0 : i32
    %c0_i32_1 = arith.constant 0 : i32
    return %c0_i32, %c0_i32_0 : i32, i32
  }
  func.func @transform_11(%arg0: i32) -> (i32, i32) {
    %c0_i32 = arith.constant 0 : i32
    %c0_i32_0 = arith.constant 0 : i32
    return %arg0, %c0_i32 : i32, i32
  }
}

</mosaic_0001>

<bundles_post_ra>
// kernel: tpu_custom_call.1
= control target key start
LH: loop header
LB: loop body
LE: loop exit
PB: predicated region body
PF: predicated region fallthrough
CT: control target
= control target key end

     0   :  { %16 = vsyncpa [#allocation3], 0  ;;  %s17517_s0 = inlined_call_operand.hbm [shape: bf16[8,3072], index: 0, kind: input, shape index: {}]   ;;  %s17518_s1 = inlined_call_operand.hbm [shape: bf16[3072,1024], index: 1, kind: input, shape index: {}]   ;;  %s17519_s2 = inlined_call_operand.hbm [shape: f32[1,1024], index: 2, kind: input, shape index: {}]   ;;  %s17520_s3 = inlined_call_operand.hbm [shape: bf16[1024,512], index: 3, kind: input, shape index: {}]   ;;  %s17521_s4 = inlined_call_operand.hbm [shape: f32[1,512], index: 4, kind: input, shape index: {}]   ;;  %s17522_s5 = inlined_call_operand.hbm [shape: bf16[512,256], index: 5, kind: input, shape index: {}]   ;;  %s17523_s6 = inlined_call_operand.hbm [shape: f32[1,256], index: 6, kind: input, shape index: {}]   ;;  %s17524_s7 = inlined_call_operand.hbm [shape: bf16[256,128], index: 7, kind: input, shape index: {}]   ;;  %s17525_s8 = inlined_call_operand.hbm [shape: f32[1,128], index: 8, kind: input, shape index: {}]   ;;  %s17526_s9 = inlined_call_operand.hbm [shape: bf16[128,128], index: 9, kind: input, shape index: {}]   ;;  %s17527_s10 = inlined_call_operand.hbm [shape: f32[1,128], index: 10, kind: input, shape index: {}]   ;;  %s17528_s11 = inlined_call_operand.hbm [shape: f32[8,128], index: 11, kind: output, shape index: {}]  }
   0x1   :  { %17 = vsyncpa [#allocation6], 0 }
   0x2   :  { %18 = vsyncpa [#allocation9], 0 }
   0x3   :  { %19 = vsyncpa [#allocation12], 0 }
   0x4   :  { %20 = vsyncpa [#allocation15], 0 }
   0x5   :  { %21 = vsyncpa [#allocation18], 0 }
   0x6   :  { %22 = vsyncpa [#allocation4], 0  ;;  %s16964_s17 = smov [#allocation5]  }
   0x7   :  { %s38_s18 = sshll.u32 %s16964_s17, 4  ;;  %s39_s18 = int_to_ptr.vmem [resolvable:$true] %s38_s18 }
   0x8   :  { %s16718_s19 = scalar_lea.vmem %s39_s18, 196608  ;;  %p16723_p1 = scmp.lt.s32.totalorder %s39_s18, %s39_s18 }
   0x9   :  { %p16719_p0 = scmp.ne.s32.totalorder %s39_s18, %s16718_s19  ;;  %p16724_p2 = scmp.lt.s32.totalorder %s16718_s19, %s16718_s19 }
   0xb   :  { %p16725_p3 = por %p16724_p2, %p16723_p1 }
   0xd   :  { %p16726_p4 = pnand %p16725_p3, %p16719_p0 }
   0xf   :  { %16729 = shalt.err (!%p16726_p4)
}
  0x10   :  { %s16965_s20 = smov 512   ;;  %s16966_s21 = smov 32  }
  0x11   :  { %44 = dma.hbm_to_vmem [thread:$0]  %s17518_s1, 196608, %s39_s18, [#allocation6], %s16965_s20, %s16965_s20, %s16966_s21  }
  0x12   :  { %s16967_s24 = smov [#allocation8]  }
  0x13   :  { %s60_s25 = sshll.u32 %s16967_s24, 4  ;;  %s61_s25 = int_to_ptr.vmem [resolvable:$true] %s60_s25 }
  0x14   :  { %s16738_s26 = scalar_lea.vmem %s61_s25, 32768  ;;  %p16743_p6 = scmp.lt.s32.totalorder %s61_s25, %s61_s25 }
  0x15   :  { %p16739_p5 = scmp.ne.s32.totalorder %s61_s25, %s16738_s26  ;;  %p16744_p7 = scmp.lt.s32.totalorder %s16738_s26, %s16738_s26 }
  0x17   :  { %p16745_p8 = por %p16744_p7, %p16743_p6 }
  0x19   :  { %p16746_p9 = pnand %p16745_p8, %p16739_p5 }
  0x1b   :  { %16749 = shalt.err (!%p16746_p9)
}
  0x1c   :  { %s16968_s27 = smov 256   ;;  %s16969_s28 = smov 16  }
  0x1d   :  { %66 = dma.hbm_to_vmem [thread:$0]  %s17520_s3, 32768, %s61_s25, [#allocation9], %s16968_s27, %s16968_s27, %s16969_s28  }
  0x1e   :  { %s16970_s12 = smov [#allocation11]  }
  0x1f   :  { %s82_s13 = sshll.u32 %s16970_s12, 4  ;;  %s83_s13 = int_to_ptr.vmem [resolvable:$true] %s82_s13 }
  0x20   :  { %s16758_s1 = scalar_lea.vmem %s83_s13, 8192  ;;  %p16763_p11 = scmp.lt.s32.totalorder %s83_s13, %s83_s13 }
  0x21   :  { %p16759_p10 = scmp.ne.s32.totalorder %s83_s13, %s16758_s1  ;;  %p16764_p12 = scmp.lt.s32.totalorder %s16758_s1, %s16758_s1 }
  0x23   :  { %p16765_p13 = por %p16764_p12, %p16763_p11 }
  0x25   :  { %p16766_p0 = pnand %p16765_p13, %p16759_p10 }
  0x27   :  { %16769 = shalt.err (!%p16766_p0)
}
  0x28   :  { %s16971_s14 = smov 128   ;;  %s16972_s15 = smov 8  }
  0x29   :  { %88 = dma.hbm_to_vmem [thread:$0]  %s17522_s5, 8192, %s83_s13, [#allocation12], %s16971_s14, %s16971_s14, %s16972_s15  }
  0x2a   :  { %s16973_s18 = smov [#allocation14]  }
  0x2b   :  { %s104_s19 = sshll.u32 %s16973_s18, 4  ;;  %s105_s19 = int_to_ptr.vmem [resolvable:$true] %s104_s19 }
  0x2c   :  { %s16778_s3 = scalar_lea.vmem %s105_s19, 2048  ;;  %p16783_p2 = scmp.lt.s32.totalorder %s105_s19, %s105_s19 }
  0x2d   :  { %p16779_p1 = scmp.ne.s32.totalorder %s105_s19, %s16778_s3  ;;  %p16784_p3 = scmp.lt.s32.totalorder %s16778_s3, %s16778_s3 }
  0x2f   :  { %p16785_p4 = por %p16784_p3, %p16783_p2 }
  0x31   :  { %p16786_p5 = pnand %p16785_p4, %p16779_p1 }
  0x33   :  { %16789 = shalt.err (!%p16786_p5)
}
  0x34   :  { %s16974_s20 = smov 64   ;;  %s16975_s21 = smov 4  }
  0x35   :  { %110 = dma.hbm_to_vmem [thread:$0]  %s17524_s7, 2048, %s105_s19, [#allocation15], %s16974_s20, %s16974_s20, %s16975_s21  }
  0x36   :  { %s16976_s24 = smov [#allocation17]   ;;  %s16977_s26 = smov [#allocation2]  }
  0x37   :  { %s126_s25 = sshll.u32 %s16976_s24, 4  ;;  %s29_s5 = sshll.u32 %s16977_s26, 4  ;;  %s127_s25 = int_to_ptr.vmem [resolvable:$true] %s126_s25  ;;  %s30_s5 = int_to_ptr.vmem [resolvable:$true] %s29_s5 }
  0x38   :  { %s16798_s27 = scalar_lea.vmem %s127_s25, 1024  ;;  %p16803_p7 = scmp.lt.s32.totalorder %s127_s25, %s127_s25 }
  0x39   :  { %p16799_p6 = scmp.ne.s32.totalorder %s127_s25, %s16798_s27  ;;  %p16804_p8 = scmp.lt.s32.totalorder %s16798_s27, %s16798_s27 }
  0x3b   :  { %p16805_p9 = por %p16804_p8, %p16803_p7 }
  0x3d   :  { %p16806_p10 = pnand %p16805_p9, %p16799_p6 }
  0x3f   :  { %16809 = shalt.err (!%p16806_p10)
}
  0x40   :  { %132 = dma.hbm_to_vmem [thread:$0]  %s17526_s9, 1024, %s127_s25, [#allocation18], %s16974_s20, %s16974_s20, %s16975_s21  }
  0x41   :  { %s16818_s30 = scalar_lea.vmem %s30_s5, 1536  ;;  %p16823_p12 = scmp.lt.s32.totalorder %s30_s5, %s30_s5 }
  0x42   :  { %p16819_p11 = scmp.ne.s32.totalorder %s30_s5, %s16818_s30  ;;  %p16824_p13 = scmp.lt.s32.totalorder %s16818_s30, %s16818_s30 }
  0x44   :  { %p16825_p0 = por %p16824_p13, %p16823_p12 }
  0x46   :  { %p16826_p1 = pnand %p16825_p0, %p16819_p11 }
  0x48   :  { %16829 = shalt.err (!%p16826_p1)
}
  0x49   :  { %32 = dma.hbm_to_vmem [thread:$0]  %s17517_s0, 1536, %s30_s5, [#allocation3]  }
  0x4a   :  { %s16978_s13 = smov [#allocation7]   ;;  %s16979_s14 = smov [#allocation10]  }
  0x4b   :  { %s51_s1 = sshll.u32 %s16978_s13, 4  ;;  %s73_s15 = sshll.u32 %s16979_s14, 4  ;;  %s52_s1 = int_to_ptr.vmem [resolvable:$true] %s51_s1  ;;  %s74_s15 = int_to_ptr.vmem [resolvable:$true] %s73_s15 }
  0x4c   :  { %s16838_s16 = scalar_lea.vmem %s52_s1, 128  ;;  %p16843_p3 = scmp.lt.s32.totalorder %s52_s1, %s52_s1 }
  0x4d   :  { %p16839_p2 = scmp.ne.s32.totalorder %s52_s1, %s16838_s16  ;;  %p16844_p4 = scmp.lt.s32.totalorder %s16838_s16, %s16838_s16 }
  0x4f   :  { %p16845_p5 = por %p16844_p4, %p16843_p3 }
  0x51   :  { %p16846_p6 = pnand %p16845_p5, %p16839_p2 }
  0x53   :  { %16849 = shalt.err (!%p16846_p6)
}
  0x54   :  { %54 = dma.hbm_to_vmem [thread:$0]  %s17519_s2, 128, %s52_s1, [#allocation6]  }
  0x55   :  { %s16858_s18 = scalar_lea.vmem %s74_s15, 64  ;;  %p16863_p8 = scmp.lt.s32.totalorder %s74_s15, %s74_s15 }
  0x56   :  { %p16859_p7 = scmp.ne.s32.totalorder %s74_s15, %s16858_s18  ;;  %p16864_p9 = scmp.lt.s32.totalorder %s16858_s18, %s16858_s18 }
  0x58   :  { %p16865_p10 = por %p16864_p9, %p16863_p8 }
  0x5a   :  { %p16866_p11 = pnand %p16865_p10, %p16859_p7 }
  0x5c   :  { %16869 = shalt.err (!%p16866_p11)
}
  0x5d   :  { %76 = dma.hbm_to_vmem [thread:$0]  %s17521_s4, 64, %s74_s15, [#allocation9]  }
  0x5e   :  { %s16980_s3 = smov [#allocation13]   ;;  %s16981_s21 = smov [#allocation16]  }
  0x5f   :  { %s95_s20 = sshll.u32 %s16980_s3, 4  ;;  %s117_s22 = sshll.u32 %s16981_s21, 4  ;;  %s96_s20 = int_to_ptr.vmem [resolvable:$true] %s95_s20  ;;  %s118_s22 = int_to_ptr.vmem [resolvable:$true] %s117_s22 }
  0x60   :  { %s16878_s23 = scalar_lea.vmem %s96_s20, 32  ;;  %p16883_p13 = scmp.lt.s32.totalorder %s96_s20, %s96_s20 }
  0x61   :  { %p16879_p12 = scmp.ne.s32.totalorder %s96_s20, %s16878_s23  ;;  %p16884_p0 = scmp.lt.s32.totalorder %s16878_s23, %s16878_s23 }
  0x63   :  { %p16885_p1 = por %p16884_p0, %p16883_p13 }
  0x65   :  { %p16886_p2 = pnand %p16885_p1, %p16879_p12 }
  0x67   :  { %16889 = shalt.err (!%p16886_p2)
}
  0x68   :  { %98 = dma.hbm_to_vmem [thread:$0]  %s17523_s6, 32, %s96_s20, [#allocation12]  }
  0x69   :  { %s16898_s25 = scalar_lea.vmem %s118_s22, 16  ;;  %s16902_s4 = scalar_lea.vmem %s118_s22, 32 }
  0x6a   :  { %p16899_p3 = scmp.ne.s32.totalorder %s118_s22, %s16898_s25  ;;  %p16903_p4 = scmp.lt.s32.totalorder %s118_s22, %s118_s22 }
  0x6b   :  { %p16904_p5 = scmp.lt.s32.totalorder %s16902_s4, %s16898_s25 }
  0x6d   :  { %p16905_p6 = por %p16904_p5, %p16903_p4 }
  0x6f   :  { %p16906_p7 = pnand %p16905_p6, %p16899_p3 }
  0x71   :  { %16909 = shalt.err (!%p16906_p7)
}
  0x72   :  { %120 = dma.hbm_to_vmem [thread:$0]  %s17525_s8, 16, %s118_s22, [#allocation15]  }
  0x73   :  { %s16982_s27 = smov [#allocation19]  }
  0x74   :  { %s139_s28 = sshll.u32 %s16982_s27, 4  ;;  %s140_s28 = int_to_ptr.vmem [resolvable:$true] %s139_s28 }
  0x75   :  { %s16918_s29 = scalar_lea.vmem %s140_s28, 16  ;;  %s16922_s30 = scalar_lea.vmem %s140_s28, 32 }
  0x76   :  { %p16919_p8 = scmp.ne.s32.totalorder %s140_s28, %s16918_s29  ;;  %p16923_p9 = scmp.lt.s32.totalorder %s140_s28, %s140_s28 }
  0x77   :  { %p16924_p10 = scmp.lt.s32.totalorder %s16922_s30, %s16918_s29 }
  0x79   :  { %p16925_p11 = por %p16924_p10, %p16923_p9 }
  0x7b   :  { %p16926_p12 = pnand %p16925_p11, %p16919_p8 }
  0x7d   :  { %16929 = shalt.err (!%p16926_p12)
}
  0x7e   :  { %142 = dma.hbm_to_vmem [thread:$0]  %s17527_s10, 16, %s140_s28, [#allocation18]  }
  0x7f   :  { %16950 = dma.done.wait [#allocation3], 1536  }
  0x80   :  { %16951 = vsyncadd [#allocation3], 4294965760 }
  0x81   :  { %16952 = dma.done.wait [#allocation6], 196736  }
  0x82   :  { %16953 = vsyncadd [#allocation6], 4294770560 }
  0x83   :  { %16954 = dma.done.wait [#allocation9], 32832  }
  0x84   :  { %16955 = vsyncadd [#allocation9], 4294934464 }
  0x85   :  { %16956 = dma.done.wait [#allocation12], 8224  }
  0x86   :  { %16957 = vsyncadd [#allocation12], 4294959072 }
  0x87   :  { %16958 = dma.done.wait [#allocation15], 2064  }
  0x88   :  { %16959 = vsyncadd [#allocation15], 4294965232 }
  0x89   :  { %16960 = dma.done.wait [#allocation18], 1040  }
  0x8a   :  { %16961 = vsyncadd [#allocation18], 4294966256  ;;  %v245_v0 = vld [vmem:[#allocation5 + $0x1c0] sm:$0xff]  ;;  %v17081_v54 = vld [vmem:[#allocation2 + $0x8] sm:$0xff]  ;;  %vm16984_vm0 = vmmov 0   ;;  %s16985_s8 = smov [#allocation20]  }
  0x8b   :  { %v249_v1 = vld [vmem:[#allocation5 + $0x1e0] sm:$0xff]  ;;  %v17089_v59 = vcombine.high %v17081_v54, %v17081_v54  ;;  %s14186_s10 = sshll.u32 %s16985_s8, 4  ;;  %s14187_s10 = int_to_ptr.vmem [resolvable:$true] %s14186_s10 }
  0x8c   :  { %v373_v2 = vld [vmem:[#allocation5 + $0x5c0] sm:$0xff]  ;;  %v14281_v3 = vcombine.high %v245_v0, %v249_v1  ;;  %v14280_v5 = vcombine.low %v245_v0, %v249_v1  ;;  %s16930_s12 = scalar_lea.vmem %s14187_s10, 128  ;;  %p16935_p0 = scmp.lt.s32.totalorder %s14187_s10, %s14187_s10 }
  0x8d   :  { %v377_v4 = vld [vmem:[#allocation5 + $0x5e0] sm:$0xff]  ;;  %9604 = vmatprep.mubr.bf16.mxu1 %v17089_v59  ;;  %p16931_p13 = scmp.ne.s32.totalorder %s14187_s10, %s16930_s12  ;;  %p16936_p1 = scmp.lt.s32.totalorder %s16930_s12, %s16930_s12 }
  0x8e   :  { %v237_v6 = vld [vmem:[#allocation5 + $0x180] sm:$0xff]  ;;  %v14409_v8 = vcombine.high %v373_v2, %v377_v4  ;;  %v14408_v9 = vcombine.low %v373_v2, %v377_v4  ;;  %9531 = vmatprep.subr.bf16.mxu0 %v14281_v3 }
  0x8f   :  { %v241_v7 = vld [vmem:[#allocation5 + $0x1a0] sm:$0xff]  ;;  %9532 = vmatpush1.bf16.msra.mxu0 %v14280_v5  ;;  %p16937_p2 = por %p16936_p1, %p16935_p0 }
  0x90   :  { %v14273_v10 = vcombine.high %v237_v6, %v241_v7  ;;  %v365_v11 = vld [vmem:[#allocation5 + $0x580] sm:$0xff]  ;;  %9572 = vmatprep.subr.bf16.mxu1 %v14409_v8  ;;  %v14272_v18 = vcombine.low %v237_v6, %v241_v7 }
  0x91   :  { %v369_v12 = vld [vmem:[#allocation5 + $0x5a0] sm:$0xff]  ;;  %9573 = vmatpush1.bf16.msra.mxu1 %v14408_v9  ;;  %p16938_p3 = pnand %p16937_p2, %p16931_p13 }
  0x92   :  { %v229_v13 = vld [vmem:[#allocation5 + $0x140] sm:$0xff]  ;;  %v14401_v14 = vcombine.high %v365_v11, %v369_v12  ;;  %9533 = vmatprep.subr.bf16.mxu0 %v14273_v10  ;;  %v14400_v19 = vcombine.low %v365_v11, %v369_v12 }
  0x93   :  { %v233_v15 = vld [vmem:[#allocation5 + $0x160] sm:$0xff]  ;;  %9534 = vmatpush1.bf16.msra.mxu0 %v14272_v18 }
  0x94   :  { %v357_v16 = vld [vmem:[#allocation5 + $0x540] sm:$0xff]  ;;  %v14265_v20 = vcombine.high %v229_v13, %v233_v15  ;;  %9574 = vmatprep.subr.bf16.mxu1 %v14401_v14  ;;  %v14264_v26 = vcombine.low %v229_v13, %v233_v15 }
  0x95   :  { %v361_v17 = vld [vmem:[#allocation5 + $0x560] sm:$0xff]  ;;  %9575 = vmatpush1.bf16.msra.mxu1 %v14400_v19 }
  0x96   :  { %v14393_v21 = vcombine.high %v357_v16, %v361_v17  ;;  %v221_v22 = vld [vmem:[#allocation5 + $0x100] sm:$0xff]  ;;  %9535 = vmatprep.subr.bf16.mxu0 %v14265_v20  ;;  %v14392_v27 = vcombine.low %v357_v16, %v361_v17 }
  0x97   :  { %v225_v23 = vld [vmem:[#allocation5 + $0x120] sm:$0xff]  ;;  %9536 = vmatpush1.bf16.msra.mxu0 %v14264_v26 }
  0x98   :  { %v349_v24 = vld [vmem:[#allocation5 + $0x500] sm:$0xff]  ;;  %v14257_v28 = vcombine.high %v221_v22, %v225_v23  ;;  %9576 = vmatprep.subr.bf16.mxu1 %v14393_v21  ;;  %v14256_v34 = vcombine.low %v221_v22, %v225_v23 }
  0x99   :  { %v353_v25 = vld [vmem:[#allocation5 + $0x520] sm:$0xff]  ;;  %9577 = vmatpush1.bf16.msra.mxu1 %v14392_v27 }
  0x9a   :  { %v14385_v29 = vcombine.high %v349_v24, %v353_v25  ;;  %v213_v30 = vld [vmem:[#allocation5 + $0xc0] sm:$0xff]  ;;  %9537 = vmatprep.subr.bf16.mxu0 %v14257_v28  ;;  %v14384_v35 = vcombine.low %v349_v24, %v353_v25 }
  0x9b   :  { %v217_v31 = vld [vmem:[#allocation5 + $0xe0] sm:$0xff]  ;;  %9538 = vmatpush1.bf16.msra.mxu0 %v14256_v34 }
  0x9c   :  { %v341_v32 = vld [vmem:[#allocation5 + $0x4c0] sm:$0xff]  ;;  %v14249_v36 = vcombine.high %v213_v30, %v217_v31  ;;  %9578 = vmatprep.subr.bf16.mxu1 %v14385_v29  ;;  %v14248_v42 = vcombine.low %v213_v30, %v217_v31 }
  0x9d   :  { %v345_v33 = vld [vmem:[#allocation5 + $0x4e0] sm:$0xff]  ;;  %9579 = vmatpush1.bf16.msra.mxu1 %v14384_v35 }
  0x9e   :  { %v14377_v37 = vcombine.high %v341_v32, %v345_v33  ;;  %v205_v38 = vld [vmem:[#allocation5 + $0x80] sm:$0xff]  ;;  %9539 = vmatprep.subr.bf16.mxu0 %v14249_v36  ;;  %v14376_v43 = vcombine.low %v341_v32, %v345_v33 }
  0x9f   :  { %v209_v39 = vld [vmem:[#allocation5 + $0xa0] sm:$0xff]  ;;  %9540 = vmatpush1.bf16.msra.mxu0 %v14248_v42 }
  0xa0   :  { %v333_v40 = vld [vmem:[#allocation5 + $0x480] sm:$0xff]  ;;  %v14241_v44 = vcombine.high %v205_v38, %v209_v39  ;;  %9580 = vmatprep.subr.bf16.mxu1 %v14377_v37  ;;  %v14240_v50 = vcombine.low %v205_v38, %v209_v39 }
  0xa1   :  { %v337_v41 = vld [vmem:[#allocation5 + $0x4a0] sm:$0xff]  ;;  %9581 = vmatpush1.bf16.msra.mxu1 %v14376_v43 }
  0xa2   :  { %v14369_v45 = vcombine.high %v333_v40, %v337_v41  ;;  %v197_v46 = vld [vmem:[#allocation5 + $0x40] sm:$0xff]  ;;  %9541 = vmatprep.subr.bf16.mxu0 %v14241_v44  ;;  %v14368_v51 = vcombine.low %v333_v40, %v337_v41 }
  0xa3   :  { %v201_v47 = vld [vmem:[#allocation5 + $0x60] sm:$0xff]  ;;  %9542 = vmatpush1.bf16.msra.mxu0 %v14240_v50 }
  0xa4   :  { %v325_v48 = vld [vmem:[#allocation5 + $0x440] sm:$0xff]  ;;  %v14233_v52 = vcombine.high %v197_v46, %v201_v47  ;;  %9582 = vmatprep.subr.bf16.mxu1 %v14369_v45  ;;  %v14232_v62 = vcombine.low %v197_v46, %v201_v47 }
  0xa5   :  { %v329_v49 = vld [vmem:[#allocation5 + $0x460] sm:$0xff]  ;;  %9583 = vmatpush1.bf16.msra.mxu1 %v14368_v51 }
  0xa6   :  { %v17079_v53 = vld [vmem:[#allocation2] sm:$0xff]  ;;  %v14361_v55 = vcombine.high %v325_v48, %v329_v49  ;;  %9543 = vmatprep.subr.bf16.mxu0 %v14233_v52  ;;  %v14360_v63 = vcombine.low %v325_v48, %v329_v49 }
  0xa7   :  { %v189_v56 = vld [vmem:[#allocation5] sm:$0xff]  ;;  %v17085_v58 = vcombine.high %v17079_v53, %v17079_v53  ;;  %9544 = vmatpush1.bf16.msra.mxu0 %v14232_v62 }
  0xa8   :  { %v193_v57 = vld [vmem:[#allocation5 + $0x20] sm:$0xff]  ;;  %9584 = vmatprep.subr.bf16.mxu1 %v14361_v55 }
  0xa9   :  { %v317_v60 = vld [vmem:[#allocation5 + $0x400] sm:$0xff]  ;;  %9563 = vmatprep.mubr.bf16.mxu0 %v17085_v58  ;;  %v14225_v0 = vcombine.high %v189_v56, %v193_v57  ;;  %v14224_v6 = vcombine.low %v189_v56, %v193_v57  ;;  %9585 = vmatpush1.bf16.msra.mxu1 %v14360_v63 }
  0xaa   :  { %v321_v61 = vld [vmem:[#allocation5 + $0x420] sm:$0xff] }
  0xab   :  { %v14353_v1 = vcombine.high %v317_v60, %v321_v61  ;;  %v309_v2 = vld [vmem:[#allocation5 + $0x3c0] sm:$0xff]  ;;  %9545 = vmatprep.subr.bf16.mxu0 %v14225_v0  ;;  %v14352_v7 = vcombine.low %v317_v60, %v321_v61 }
  0xac   :  { %v313_v3 = vld [vmem:[#allocation5 + $0x3e0] sm:$0xff]  ;;  %9546 = vmatpush1.bf16.msra.mxu0 %v14224_v6 }
  0xad   :  { %v437_v4 = vld [vmem:[#allocation5 + $0x7c0] sm:$0xff]  ;;  %v14345_v8 = vcombine.high %v309_v2, %v313_v3  ;;  %9586 = vmatprep.subr.bf16.mxu1 %v14353_v1  ;;  %v14344_v14 = vcombine.low %v309_v2, %v313_v3 }
  0xae   :  { %v441_v5 = vld [vmem:[#allocation5 + $0x7e0] sm:$0xff]  ;;  %9587 = vmatpush1.bf16.msra.mxu1 %v14352_v7 }
  0xaf   :  { %v14473_v9 = vcombine.high %v437_v4, %v441_v5  ;;  %v301_v10 = vld [vmem:[#allocation5 + $0x380] sm:$0xff]  ;;  %9547 = vmatprep.subr.bf16.mxu0 %v14345_v8  ;;  %v14472_v15 = vcombine.low %v437_v4, %v441_v5 }
  0xb0   :  { %v305_v11 = vld [vmem:[#allocation5 + $0x3a0] sm:$0xff]  ;;  %9548 = vmatpush2.bf16.msra.mxu0 %v14344_v14 }
  0xb1   :  { %v429_v12 = vld [vmem:[#allocation5 + $0x780] sm:$0xff]  ;;  %v14337_v16 = vcombine.high %v301_v10, %v305_v11  ;;  %9588 = vmatprep.subr.bf16.mxu1 %v14473_v9  ;;  %v14336_v22 = vcombine.low %v301_v10, %v305_v11 }
  0xb2   :  { %v433_v13 = vld [vmem:[#allocation5 + $0x7a0] sm:$0xff]  ;;  %9589 = vmatpush2.bf16.msra.mxu1 %v14472_v15 }
  0xb3   :  { %v14465_v17 = vcombine.high %v429_v12, %v433_v13  ;;  %v293_v18 = vld [vmem:[#allocation5 + $0x340] sm:$0xff]  ;;  %9549 = vmatprep.subr.bf16.mxu0 %v14337_v16  ;;  %v14464_v23 = vcombine.low %v429_v12, %v433_v13  ;;  %v17095_v16 = vcombine.low %v17079_v53, %v17079_v53 }
  0xb4   :  { %v297_v19 = vld [vmem:[#allocation5 + $0x360] sm:$0xff]  ;;  %9550 = vmatpush2.bf16.msra.mxu0 %v14336_v22  ;;  %v17103_v22 = vld [vmem:[#allocation2 + $0x18] sm:$0xff] }
  0xb5   :  { %v421_v20 = vld [vmem:[#allocation5 + $0x740] sm:$0xff]  ;;  %v14329_v24 = vcombine.high %v293_v18, %v297_v19  ;;  %9590 = vmatprep.subr.bf16.mxu1 %v14465_v17  ;;  %v14328_v30 = vcombine.low %v293_v18, %v297_v19  ;;  %v17097_v19 = vld [vmem:[#allocation2 + $0x10] sm:$0xff] }
  0xb6   :  { %v425_v21 = vld [vmem:[#allocation5 + $0x760] sm:$0xff]  ;;  %9591 = vmatpush2.bf16.msra.mxu1 %v14464_v23 }
  0xb7   :  { %v14457_v25 = vcombine.high %v421_v20, %v425_v21  ;;  %v285_v26 = vld [vmem:[#allocation5 + $0x300] sm:$0xff]  ;;  %9551 = vmatprep.subr.bf16.mxu0 %v14329_v24  ;;  %v14456_v31 = vcombine.low %v421_v20, %v425_v21  ;;  %v17101_v20 = vcombine.low %v17081_v54, %v17081_v54 }
  0xb8   :  { %v289_v27 = vld [vmem:[#allocation5 + $0x320] sm:$0xff]  ;;  %9552 = vmatpush2.bf16.msra.mxu0 %v14328_v30 }
  0xb9   :  { %v413_v28 = vld [vmem:[#allocation5 + $0x700] sm:$0xff]  ;;  %v14321_v32 = vcombine.high %v285_v26, %v289_v27  ;;  %9592 = vmatprep.subr.bf16.mxu1 %v14457_v25  ;;  %v14320_v38 = vcombine.low %v285_v26, %v289_v27 }
  0xba   :  { %v417_v29 = vld [vmem:[#allocation5 + $0x720] sm:$0xff]  ;;  %9593 = vmatpush2.bf16.msra.mxu1 %v14456_v31 }
  0xbb   :  { %v14449_v33 = vcombine.high %v413_v28, %v417_v29  ;;  %v277_v34 = vld [vmem:[#allocation5 + $0x2c0] sm:$0xff]  ;;  %9553 = vmatprep.subr.bf16.mxu0 %v14321_v32  ;;  %v14448_v39 = vcombine.low %v413_v28, %v417_v29  ;;  %v17107_v28 = vcombine.high %v17097_v19, %v17097_v19  ;;  %v17112_v29 = vcombine.high %v17103_v22, %v17103_v22 }
  0xbc   :  { %v281_v35 = vld [vmem:[#allocation5 + $0x2e0] sm:$0xff]  ;;  %9554 = vmatpush2.bf16.msra.mxu0 %v14320_v38 }
  0xbd   :  { %v405_v36 = vld [vmem:[#allocation5 + $0x6c0] sm:$0xff]  ;;  %v14313_v40 = vcombine.high %v277_v34, %v281_v35  ;;  %9594 = vmatprep.subr.bf16.mxu1 %v14449_v33  ;;  %v14312_v46 = vcombine.low %v277_v34, %v281_v35 }
  0xbe   :  { %v409_v37 = vld [vmem:[#allocation5 + $0x6e0] sm:$0xff]  ;;  %9595 = vmatpush2.bf16.msra.mxu1 %v14448_v39 }
  0xbf   :  { %v14441_v41 = vcombine.high %v405_v36, %v409_v37  ;;  %v269_v42 = vld [vmem:[#allocation5 + $0x280] sm:$0xff]  ;;  %9555 = vmatprep.subr.bf16.mxu0 %v14313_v40  ;;  %v14440_v47 = vcombine.low %v405_v36, %v409_v37 }
  0xc0   :  { %v273_v43 = vld [vmem:[#allocation5 + $0x2a0] sm:$0xff]  ;;  %9556 = vmatpush2.bf16.msra.mxu0 %v14312_v46 }
  0xc1   :  { %v397_v44 = vld [vmem:[#allocation5 + $0x680] sm:$0xff]  ;;  %v14305_v48 = vcombine.high %v269_v42, %v273_v43  ;;  %9596 = vmatprep.subr.bf16.mxu1 %v14441_v41  ;;  %v14304_v56 = vcombine.low %v269_v42, %v273_v43 }
  0xc2   :  { %v401_v45 = vld [vmem:[#allocation5 + $0x6a0] sm:$0xff]  ;;  %9597 = vmatpush2.bf16.msra.mxu1 %v14440_v47 }
  0xc3   :  { %v14433_v49 = vcombine.high %v397_v44, %v401_v45  ;;  %v261_v50 = vld [vmem:[#allocation5 + $0x240] sm:$0xff]  ;;  %9557 = vmatprep.subr.bf16.mxu0 %v14305_v48  ;;  %v14432_v57 = vcombine.low %v397_v44, %v401_v45 }
  0xc4   :  { %v265_v51 = vld [vmem:[#allocation5 + $0x260] sm:$0xff]  ;;  %9558 = vmatpush2.bf16.msra.mxu0 %v14304_v56 }
  0xc5   :  { %v389_v52 = vld [vmem:[#allocation5 + $0x640] sm:$0xff]  ;;  %v14297_v60 = vcombine.high %v261_v50, %v265_v51  ;;  %9598 = vmatprep.subr.bf16.mxu1 %v14433_v49  ;;  %v14296_v2 = vcombine.low %v261_v50, %v265_v51 }
  0xc6   :  { %v393_v55 = vld [vmem:[#allocation5 + $0x660] sm:$0xff]  ;;  %9599 = vmatpush2.bf16.msra.mxu1 %v14432_v57 }
  0xc7   :  { %v14425_v61 = vcombine.high %v389_v52, %v393_v55  ;;  %v253_v62 = vld [vmem:[#allocation5 + $0x200] sm:$0xff]  ;;  %9559 = vmatprep.subr.bf16.mxu0 %v14297_v60  ;;  %v14424_v3 = vcombine.low %v389_v52, %v393_v55 }
  0xc8   :  { %v257_v63 = vld [vmem:[#allocation5 + $0x220] sm:$0xff]  ;;  %9560 = vmatpush2.bf16.msra.mxu0 %v14296_v2 }
  0xc9   :  { %v381_v0 = vld [vmem:[#allocation5 + $0x600] sm:$0xff]  ;;  %v14289_v4 = vcombine.high %v253_v62, %v257_v63  ;;  %9600 = vmatprep.subr.bf16.mxu1 %v14425_v61  ;;  %v14288_v10 = vcombine.low %v253_v62, %v257_v63 }
  0xca   :  { %v385_v1 = vld [vmem:[#allocation5 + $0x620] sm:$0xff]  ;;  %9601 = vmatpush2.bf16.msra.mxu1 %v14424_v3 }
  0xcb   :  { %v14417_v5 = vcombine.high %v381_v0, %v385_v1  ;;  %v501_v6 = vld [vmem:[#allocation5 + $0x9c0] sm:$0xff]  ;;  %9561 = vmatprep.subr.bf16.mxu0 %v14289_v4  ;;  %v14416_v11 = vcombine.low %v381_v0, %v385_v1 }
  0xcc   :  { %v505_v7 = vld [vmem:[#allocation5 + $0x9e0] sm:$0xff]  ;;  %9562 = vmatpush2.bf16.msra.mxu0 %v14288_v10 }
  0xcd   :  { %v629_v8 = vld [vmem:[#allocation5 + $0xdc0] sm:$0xff]  ;;  %v14537_v12 = vcombine.high %v501_v6, %v505_v7  ;;  %9602 = vmatprep.subr.bf16.mxu1 %v14417_v5  ;;  %v14536_v21 = vcombine.low %v501_v6, %v505_v7 }
  0xce   :  { %v633_v9 = vld [vmem:[#allocation5 + $0xde0] sm:$0xff]  ;;  %9603 = vmatpush2.bf16.msra.mxu1 %v14416_v11 }
  0xcf   :  { %v14665_v13 = vcombine.high %v629_v8, %v633_v9  ;;  %v493_v14 = vld [vmem:[#allocation5 + $0x980] sm:$0xff]  ;;  %9613 = vmatprep.subr.bf16.mxu0 %v14537_v12  ;;  %v14664_v23 = vcombine.low %v629_v8, %v633_v9  ;;  %9564 = vmatmul.mubr.bf16.vlgmr.msra.gmra.mxu0 %v17095_v16 }
  0xd0   :  { %v497_v15 = vld [vmem:[#allocation5 + $0x9a0] sm:$0xff]  ;;  %9614 = vmatpush1.bf16.msra.mxu0 %v14536_v21  ;;  %9645 = vmatprep.mubr.bf16.mxu0 %v17107_v28 }
  0xd1   :  { %v621_v17 = vld [vmem:[#allocation5 + $0xd80] sm:$0xff]  ;;  %v14529_v24 = vcombine.high %v493_v14, %v497_v15  ;;  %9654 = vmatprep.subr.bf16.mxu1 %v14665_v13  ;;  %9605 = vmatmul.mubr.bf16.vlgmr.msra.gmra.mxu1 %v17101_v20  ;;  %v14528_v30 = vcombine.low %v493_v14, %v497_v15 }
  0xd2   :  { %v625_v18 = vld [vmem:[#allocation5 + $0xda0] sm:$0xff]  ;;  %9655 = vmatpush1.bf16.msra.mxu1 %v14664_v23  ;;  %9686 = vmatprep.mubr.bf16.mxu1 %v17112_v29 }
  0xd3   :  { %v14657_v25 = vcombine.high %v621_v17, %v625_v18  ;;  %v485_v53 = vld [vmem:[#allocation5 + $0x940] sm:$0xff]  ;;  %9615 = vmatprep.subr.bf16.mxu0 %v14529_v24  ;;  %v14656_v31 = vcombine.low %v621_v17, %v625_v18 }
  0xd4   :  { %v489_v26 = vld [vmem:[#allocation5 + $0x960] sm:$0xff]  ;;  %9616 = vmatpush1.bf16.msra.mxu0 %v14528_v30 }
  0xd5   :  { %v613_v27 = vld [vmem:[#allocation5 + $0xd40] sm:$0xff]  ;;  %v14521_v32 = vcombine.high %v485_v53, %v489_v26  ;;  %9656 = vmatprep.subr.bf16.mxu1 %v14657_v25  ;;  %v14520_v38 = vcombine.low %v485_v53, %v489_v26 }
  0xd6   :  { %v617_v54 = vld [vmem:[#allocation5 + $0xd60] sm:$0xff]  ;;  %9657 = vmatpush1.bf16.msra.mxu1 %v14656_v31 }
  0xd7   :  { %v477_v33 = vld [vmem:[#allocation5 + $0x900] sm:$0xff]  ;;  %v14649_v36 = vcombine.high %v613_v27, %v617_v54  ;;  %9617 = vmatprep.subr.bf16.mxu0 %v14521_v32  ;;  %v14648_v39 = vcombine.low %v613_v27, %v617_v54 }
  0xd8   :  { %v481_v34 = vld [vmem:[#allocation5 + $0x920] sm:$0xff]  ;;  %9618 = vmatpush1.bf16.msra.mxu0 %v14520_v38 }
  0xd9   :  { %v605_v35 = vld [vmem:[#allocation5 + $0xd00] sm:$0xff]  ;;  %v14513_v40 = vcombine.high %v477_v33, %v481_v34  ;;  %9658 = vmatprep.subr.bf16.mxu1 %v14649_v36  ;;  %v14512_v46 = vcombine.low %v477_v33, %v481_v34 }
  0xda   :  { %v609_v37 = vld [vmem:[#allocation5 + $0xd20] sm:$0xff]  ;;  %9659 = vmatpush1.bf16.msra.mxu1 %v14648_v39 }
  0xdb   :  { %v469_v41 = vld [vmem:[#allocation5 + $0x8c0] sm:$0xff]  ;;  %v14641_v44 = vcombine.high %v605_v35, %v609_v37  ;;  %9619 = vmatprep.subr.bf16.mxu0 %v14513_v40  ;;  %v14640_v47 = vcombine.low %v605_v35, %v609_v37 }
  0xdc   :  { %v473_v42 = vld [vmem:[#allocation5 + $0x8e0] sm:$0xff]  ;;  %9620 = vmatpush1.bf16.msra.mxu0 %v14512_v46 }
  0xdd   :  { %v597_v43 = vld [vmem:[#allocation5 + $0xcc0] sm:$0xff]  ;;  %v14505_v48 = vcombine.high %v469_v41, %v473_v42  ;;  %9660 = vmatprep.subr.bf16.mxu1 %v14641_v44  ;;  %v14504_v56 = vcombine.low %v469_v41, %v473_v42 }
  0xde   :  { %v601_v45 = vld [vmem:[#allocation5 + $0xce0] sm:$0xff]  ;;  %9661 = vmatpush1.bf16.msra.mxu1 %v14640_v47 }
  0xdf   :  { %v461_v49 = vld [vmem:[#allocation5 + $0x880] sm:$0xff]  ;;  %v14633_v52 = vcombine.high %v597_v43, %v601_v45  ;;  %9621 = vmatprep.subr.bf16.mxu0 %v14505_v48  ;;  %v14632_v57 = vcombine.low %v597_v43, %v601_v45 }
  0xe0   :  { %v465_v50 = vld [vmem:[#allocation5 + $0x8a0] sm:$0xff]  ;;  %9622 = vmatpush1.bf16.msra.mxu0 %v14504_v56 }
  0xe1   :  { %v589_v51 = vld [vmem:[#allocation5 + $0xc80] sm:$0xff]  ;;  %v14497_v60 = vcombine.high %v461_v49, %v465_v50  ;;  %9662 = vmatprep.subr.bf16.mxu1 %v14633_v52  ;;  %v14496_v2 = vcombine.low %v461_v49, %v465_v50 }
  0xe2   :  { %v593_v55 = vld [vmem:[#allocation5 + $0xca0] sm:$0xff]  ;;  %9663 = vmatpush1.bf16.msra.mxu1 %v14632_v57 }
  0xe3   :  { %v453_v61 = vld [vmem:[#allocation5 + $0x840] sm:$0xff]  ;;  %v14625_v0 = vcombine.high %v589_v51, %v593_v55  ;;  %9623 = vmatprep.subr.bf16.mxu0 %v14497_v60  ;;  %v14624_v3 = vcombine.low %v589_v51, %v593_v55 }
  0xe4   :  { %v457_v62 = vld [vmem:[#allocation5 + $0x860] sm:$0xff]  ;;  %9624 = vmatpush1.bf16.msra.mxu0 %v14496_v2 }
  0xe5   :  { %v581_v63 = vld [vmem:[#allocation5 + $0xc40] sm:$0xff]  ;;  %v14489_v4 = vcombine.high %v453_v61, %v457_v62  ;;  %9664 = vmatprep.subr.bf16.mxu1 %v14625_v0  ;;  %v14488_v10 = vcombine.low %v453_v61, %v457_v62 }
  0xe6   :  { %v585_v1 = vld [vmem:[#allocation5 + $0xc60] sm:$0xff]  ;;  %9665 = vmatpush1.bf16.msra.mxu1 %v14624_v3 }
  0xe7   :  { %v445_v5 = vld [vmem:[#allocation5 + $0x800] sm:$0xff]  ;;  %v14617_v8 = vcombine.high %v581_v63, %v585_v1  ;;  %9625 = vmatprep.subr.bf16.mxu0 %v14489_v4  ;;  %v14616_v11 = vcombine.low %v581_v63, %v585_v1 }
  0xe8   :  { %v449_v6 = vld [vmem:[#allocation5 + $0x820] sm:$0xff]  ;;  %9626 = vmatpush1.bf16.msra.mxu0 %v14488_v10 }
  0xe9   :  { %v573_v7 = vld [vmem:[#allocation5 + $0xc00] sm:$0xff]  ;;  %v14481_v12 = vcombine.high %v445_v5, %v449_v6  ;;  %9666 = vmatprep.subr.bf16.mxu1 %v14617_v8  ;;  %v14480_v21 = vcombine.low %v445_v5, %v449_v6 }
  0xea   :  { %v577_v9 = vld [vmem:[#allocation5 + $0xc20] sm:$0xff]  ;;  %9667 = vmatpush1.bf16.msra.mxu1 %v14616_v11 }
  0xeb   :  { %v565_v13 = vld [vmem:[#allocation5 + $0xbc0] sm:$0xff]  ;;  %v14609_v17 = vcombine.high %v573_v7, %v577_v9  ;;  %9627 = vmatprep.subr.bf16.mxu0 %v14481_v12  ;;  %v14608_v23 = vcombine.low %v573_v7, %v577_v9 }
  0xec   :  { %v569_v14 = vld [vmem:[#allocation5 + $0xbe0] sm:$0xff]  ;;  %9628 = vmatpush1.bf16.msra.mxu0 %v14480_v21 }
  0xed   :  { %v693_v15 = vld [vmem:[#allocation5 + $0xfc0] sm:$0xff]  ;;  %v14601_v24 = vcombine.high %v565_v13, %v569_v14  ;;  %9668 = vmatprep.subr.bf16.mxu1 %v14609_v17  ;;  %v14600_v30 = vcombine.low %v565_v13, %v569_v14 }
  0xee   :  { %v697_v18 = vld [vmem:[#allocation5 + $0xfe0] sm:$0xff]  ;;  %9669 = vmatpush1.bf16.msra.mxu1 %v14608_v23 }
  0xef   :  { %v557_v25 = vld [vmem:[#allocation5 + $0xb80] sm:$0xff]  ;;  %v14729_v27 = vcombine.high %v693_v15, %v697_v18  ;;  %9629 = vmatprep.subr.bf16.mxu0 %v14601_v24  ;;  %v14728_v31 = vcombine.low %v693_v15, %v697_v18 }
  0xf0   :  { %v561_v53 = vld [vmem:[#allocation5 + $0xba0] sm:$0xff]  ;;  %9630 = vmatpush2.bf16.msra.mxu0 %v14600_v30 }
  0xf1   :  { %v685_v26 = vld [vmem:[#allocation5 + $0xf80] sm:$0xff]  ;;  %v14593_v32 = vcombine.high %v557_v25, %v561_v53  ;;  %9670 = vmatprep.subr.bf16.mxu1 %v14729_v27  ;;  %v14592_v38 = vcombine.low %v557_v25, %v561_v53 }
  0xf2   :  { %v689_v54 = vld [vmem:[#allocation5 + $0xfa0] sm:$0xff]  ;;  %9671 = vmatpush2.bf16.msra.mxu1 %v14728_v31 }
  0xf3   :  { %v549_v33 = vld [vmem:[#allocation5 + $0xb40] sm:$0xff]  ;;  %v14721_v36 = vcombine.high %v685_v26, %v689_v54  ;;  %9631 = vmatprep.subr.bf16.mxu0 %v14593_v32  ;;  %v14720_v39 = vcombine.low %v685_v26, %v689_v54 }
  0xf4   :  { %v553_v34 = vld [vmem:[#allocation5 + $0xb60] sm:$0xff]  ;;  %9632 = vmatpush2.bf16.msra.mxu0 %v14592_v38 }
  0xf5   :  { %v677_v35 = vld [vmem:[#allocation5 + $0xf40] sm:$0xff]  ;;  %v14585_v40 = vcombine.high %v549_v33, %v553_v34  ;;  %9672 = vmatprep.subr.bf16.mxu1 %v14721_v36  ;;  %v14584_v46 = vcombine.low %v549_v33, %v553_v34 }
  0xf6   :  { %v681_v37 = vld [vmem:[#allocation5 + $0xf60] sm:$0xff]  ;;  %9673 = vmatpush2.bf16.msra.mxu1 %v14720_v39  ;;  %v17121_v39 = vcombine.low %v17097_v19, %v17097_v19 }
  0xf7   :  { %v541_v41 = vld [vmem:[#allocation5 + $0xb00] sm:$0xff]  ;;  %v14713_v44 = vcombine.high %v677_v35, %v681_v37  ;;  %9633 = vmatprep.subr.bf16.mxu0 %v14585_v40  ;;  %v14712_v47 = vcombine.low %v677_v35, %v681_v37  ;;  %v17125_v40 = vcombine.low %v17103_v22, %v17103_v22 }
  0xf8   :  { %v545_v42 = vld [vmem:[#allocation5 + $0xb20] sm:$0xff]  ;;  %9634 = vmatpush2.bf16.msra.mxu0 %v14584_v46 }
  0xf9   :  { %v669_v43 = vld [vmem:[#allocation5 + $0xf00] sm:$0xff]  ;;  %v14577_v48 = vcombine.high %v541_v41, %v545_v42  ;;  %9674 = vmatprep.subr.bf16.mxu1 %v14713_v44  ;;  %v14576_v56 = vcombine.low %v541_v41, %v545_v42  ;;  %v17127_v42 = vld [vmem:[#allocation2 + $0x28] sm:$0xff] }
  0xfa   :  { %v673_v45 = vld [vmem:[#allocation5 + $0xf20] sm:$0xff]  ;;  %9675 = vmatpush2.bf16.msra.mxu1 %v14712_v47  ;;  %v17136_v22 = vcombine.high %v17127_v42, %v17127_v42 }
  0xfb   :  { %v533_v49 = vld [vmem:[#allocation5 + $0xac0] sm:$0xff]  ;;  %v14705_v52 = vcombine.high %v669_v43, %v673_v45  ;;  %9635 = vmatprep.subr.bf16.mxu0 %v14577_v48  ;;  %v14704_v57 = vcombine.low %v669_v43, %v673_v45 }
  0xfc   :  { %v537_v50 = vld [vmem:[#allocation5 + $0xae0] sm:$0xff]  ;;  %9636 = vmatpush2.bf16.msra.mxu0 %v14576_v56 }
  0xfd   :  { %v661_v51 = vld [vmem:[#allocation5 + $0xec0] sm:$0xff]  ;;  %v14569_v60 = vcombine.high %v533_v49, %v537_v50  ;;  %9676 = vmatprep.subr.bf16.mxu1 %v14705_v52  ;;  %v14568_v2 = vcombine.low %v533_v49, %v537_v50 }
  0xfe   :  { %v665_v55 = vld [vmem:[#allocation5 + $0xee0] sm:$0xff]  ;;  %9677 = vmatpush2.bf16.msra.mxu1 %v14704_v57 }
  0xff   :  { %v525_v61 = vld [vmem:[#allocation5 + $0xa80] sm:$0xff]  ;;  %v14697_v0 = vcombine.high %v661_v51, %v665_v55  ;;  %9637 = vmatprep.subr.bf16.mxu0 %v14569_v60  ;;  %v14696_v3 = vcombine.low %v661_v51, %v665_v55 }
 0x100   :  { %v529_v62 = vld [vmem:[#allocation5 + $0xaa0] sm:$0xff]  ;;  %9638 = vmatpush2.bf16.msra.mxu0 %v14568_v2 }
 0x101   :  { %v653_v63 = vld [vmem:[#allocation5 + $0xe80] sm:$0xff]  ;;  %v14561_v4 = vcombine.high %v525_v61, %v529_v62  ;;  %9678 = vmatprep.subr.bf16.mxu1 %v14697_v0  ;;  %v14560_v10 = vcombine.low %v525_v61, %v529_v62 }
 0x102   :  { %v657_v1 = vld [vmem:[#allocation5 + $0xea0] sm:$0xff]  ;;  %9679 = vmatpush2.bf16.msra.mxu1 %v14696_v3 }
 0x103   :  { %v517_v5 = vld [vmem:[#allocation5 + $0xa40] sm:$0xff]  ;;  %v14689_v8 = vcombine.high %v653_v63, %v657_v1  ;;  %9639 = vmatprep.subr.bf16.mxu0 %v14561_v4  ;;  %v14688_v11 = vcombine.low %v653_v63, %v657_v1 }
 0x104   :  { %v521_v6 = vld [vmem:[#allocation5 + $0xa60] sm:$0xff]  ;;  %9640 = vmatpush2.bf16.msra.mxu0 %v14560_v10 }
 0x105   :  { %v645_v7 = vld [vmem:[#allocation5 + $0xe40] sm:$0xff]  ;;  %v14553_v12 = vcombine.high %v517_v5, %v521_v6  ;;  %9680 = vmatprep.subr.bf16.mxu1 %v14689_v8  ;;  %v14552_v21 = vcombine.low %v517_v5, %v521_v6 }
 0x106   :  { %v649_v9 = vld [vmem:[#allocation5 + $0xe60] sm:$0xff]  ;;  %9681 = vmatpush2.bf16.msra.mxu1 %v14688_v11 }
 0x107   :  { %v509_v13 = vld [vmem:[#allocation5 + $0xa00] sm:$0xff]  ;;  %v14681_v17 = vcombine.high %v645_v7, %v649_v9  ;;  %9641 = vmatprep.subr.bf16.mxu0 %v14553_v12  ;;  %v14680_v23 = vcombine.low %v645_v7, %v649_v9 }
 0x108   :  { %v513_v14 = vld [vmem:[#allocation5 + $0xa20] sm:$0xff]  ;;  %9642 = vmatpush2.bf16.msra.mxu0 %v14552_v21 }
 0x109   :  { %v637_v15 = vld [vmem:[#allocation5 + $0xe00] sm:$0xff]  ;;  %v14545_v24 = vcombine.high %v509_v13, %v513_v14  ;;  %9682 = vmatprep.subr.bf16.mxu1 %v14681_v17  ;;  %v14544_v30 = vcombine.low %v509_v13, %v513_v14 }
 0x10a   :  { %v641_v18 = vld [vmem:[#allocation5 + $0xe20] sm:$0xff]  ;;  %9683 = vmatpush2.bf16.msra.mxu1 %v14680_v23 }
 0x10b   :  { %v757_v25 = vld [vmem:[#allocation5 + $0x11c0] sm:$0xff]  ;;  %v14673_v27 = vcombine.high %v637_v15, %v641_v18  ;;  %9643 = vmatprep.subr.bf16.mxu0 %v14545_v24  ;;  %v14672_v32 = vcombine.low %v637_v15, %v641_v18 }
 0x10c   :  { %v761_v53 = vld [vmem:[#allocation5 + $0x11e0] sm:$0xff]  ;;  %9644 = vmatpush2.bf16.msra.mxu0 %v14544_v30 }
 0x10d   :  { %v885_v26 = vld [vmem:[#allocation5 + $0x15c0] sm:$0xff]  ;;  %v14793_v33 = vcombine.high %v757_v25, %v761_v53  ;;  %9684 = vmatprep.subr.bf16.mxu1 %v14673_v27  ;;  %v14792_v41 = vcombine.low %v757_v25, %v761_v53 }
 0x10e   :  { %v889_v54 = vld [vmem:[#allocation5 + $0x15e0] sm:$0xff]  ;;  %9685 = vmatpush2.bf16.msra.mxu1 %v14672_v32 }
 0x10f   :  { %v749_v31 = vld [vmem:[#allocation5 + $0x1180] sm:$0xff]  ;;  %v14921_v37 = vcombine.high %v885_v26, %v889_v54  ;;  %9695 = vmatprep.subr.bf16.mxu0 %v14793_v33  ;;  %v14920_v43 = vcombine.low %v885_v26, %v889_v54  ;;  %9646 = vmatmul.mubr.bf16.vlgmr.msra.gmra.mxu0 %v17121_v39 }
 0x110   :  { %v753_v34 = vld [vmem:[#allocation5 + $0x11a0] sm:$0xff]  ;;  %9696 = vmatpush1.bf16.msra.mxu0 %v14792_v41 }
 0x111   :  { %v877_v35 = vld [vmem:[#allocation5 + $0x1580] sm:$0xff]  ;;  %v14785_v44 = vcombine.high %v749_v31, %v753_v34  ;;  %9736 = vmatprep.subr.bf16.mxu1 %v14921_v37  ;;  %9687 = vmatmul.mubr.bf16.vlgmr.msra.gmra.mxu1 %v17125_v40  ;;  %v14784_v50 = vcombine.low %v749_v31, %v753_v34 }
 0x112   :  { %v881_v36 = vld [vmem:[#allocation5 + $0x15a0] sm:$0xff]  ;;  %9737 = vmatpush1.bf16.msra.mxu1 %v14920_v43  ;;  %9768 = vmatprep.mubr.bf16.mxu1 %v17136_v22 }
 0x113   :  { %v17117_v38 = vld [vmem:[#allocation2 + $0x20] sm:$0xff]  ;;  %v14913_v47 = vcombine.high %v877_v35, %v881_v36  ;;  %9697 = vmatprep.subr.bf16.mxu0 %v14785_v44  ;;  %v14912_v51 = vcombine.low %v877_v35, %v881_v36 }
 0x114   :  { %v741_v45 = vld [vmem:[#allocation5 + $0x1140] sm:$0xff]  ;;  %v17131_v19 = vcombine.high %v17117_v38, %v17117_v38  ;;  %9698 = vmatpush1.bf16.msra.mxu0 %v14784_v50 }
 0x115   :  { %v745_v46 = vld [vmem:[#allocation5 + $0x1160] sm:$0xff]  ;;  %9738 = vmatprep.subr.bf16.mxu1 %v14913_v47 }
 0x116   :  { %v869_v48 = vld [vmem:[#allocation5 + $0x1540] sm:$0xff]  ;;  %v14777_v52 = vcombine.high %v741_v45, %v745_v46  ;;  %9727 = vmatprep.mubr.bf16.mxu0 %v17131_v19  ;;  %v14776_v62 = vcombine.low %v741_v45, %v745_v46  ;;  %9739 = vmatpush1.bf16.msra.mxu1 %v14912_v51 }
 0x117   :  { %v873_v49 = vld [vmem:[#allocation5 + $0x1560] sm:$0xff] }
 0x118   :  { %v733_v55 = vld [vmem:[#allocation5 + $0x1100] sm:$0xff]  ;;  %v14905_v60 = vcombine.high %v869_v48, %v873_v49  ;;  %9699 = vmatprep.subr.bf16.mxu0 %v14777_v52  ;;  %v14904_v63 = vcombine.low %v869_v48, %v873_v49 }
 0x119   :  { %v737_v56 = vld [vmem:[#allocation5 + $0x1120] sm:$0xff]  ;;  %9700 = vmatpush1.bf16.msra.mxu0 %v14776_v62 }
 0x11a   :  { %v861_v57 = vld [vmem:[#allocation5 + $0x1500] sm:$0xff]  ;;  %v14769_v0 = vcombine.high %v733_v55, %v737_v56  ;;  %9740 = vmatprep.subr.bf16.mxu1 %v14905_v60  ;;  %v14768_v6 = vcombine.low %v733_v55, %v737_v56 }
 0x11b   :  { %v865_v61 = vld [vmem:[#allocation5 + $0x1520] sm:$0xff]  ;;  %9741 = vmatpush1.bf16.msra.mxu1 %v14904_v63 }
 0x11c   :  { %v725_v1 = vld [vmem:[#allocation5 + $0x10c0] sm:$0xff]  ;;  %v14897_v4 = vcombine.high %v861_v57, %v865_v61  ;;  %9701 = vmatprep.subr.bf16.mxu0 %v14769_v0  ;;  %v14896_v7 = vcombine.low %v861_v57, %v865_v61 }
 0x11d   :  { %v729_v2 = vld [vmem:[#allocation5 + $0x10e0] sm:$0xff]  ;;  %9702 = vmatpush1.bf16.msra.mxu0 %v14768_v6 }
 0x11e   :  { %v853_v3 = vld [vmem:[#allocation5 + $0x14c0] sm:$0xff]  ;;  %v14761_v8 = vcombine.high %v725_v1, %v729_v2  ;;  %9742 = vmatprep.subr.bf16.mxu1 %v14897_v4  ;;  %v14760_v14 = vcombine.low %v725_v1, %v729_v2 }
 0x11f   :  { %v857_v5 = vld [vmem:[#allocation5 + $0x14e0] sm:$0xff]  ;;  %9743 = vmatpush1.bf16.msra.mxu1 %v14896_v7 }
 0x120   :  { %v717_v9 = vld [vmem:[#allocation5 + $0x1080] sm:$0xff]  ;;  %v14889_v12 = vcombine.high %v853_v3, %v857_v5  ;;  %9703 = vmatprep.subr.bf16.mxu0 %v14761_v8  ;;  %v14888_v15 = vcombine.low %v853_v3, %v857_v5 }
 0x121   :  { %v721_v10 = vld [vmem:[#allocation5 + $0x10a0] sm:$0xff]  ;;  %9704 = vmatpush1.bf16.msra.mxu0 %v14760_v14 }
 0x122   :  { %v845_v11 = vld [vmem:[#allocation5 + $0x1480] sm:$0xff]  ;;  %v14753_v17 = vcombine.high %v717_v9, %v721_v10  ;;  %9744 = vmatprep.subr.bf16.mxu1 %v14889_v12  ;;  %v14752_v53 = vcombine.low %v717_v9, %v721_v10 }
 0x123   :  { %v849_v13 = vld [vmem:[#allocation5 + $0x14a0] sm:$0xff]  ;;  %9745 = vmatpush1.bf16.msra.mxu1 %v14888_v15 }
 0x124   :  { %v709_v18 = vld [vmem:[#allocation5 + $0x1040] sm:$0xff]  ;;  %v14881_v24 = vcombine.high %v845_v11, %v849_v13  ;;  %9705 = vmatprep.subr.bf16.mxu0 %v14753_v17  ;;  %v14880_v26 = vcombine.low %v845_v11, %v849_v13 }
 0x125   :  { %v713_v21 = vld [vmem:[#allocation5 + $0x1060] sm:$0xff]  ;;  %9706 = vmatpush1.bf16.msra.mxu0 %v14752_v53 }
 0x126   :  { %v837_v23 = vld [vmem:[#allocation5 + $0x1440] sm:$0xff]  ;;  %v14745_v27 = vcombine.high %v709_v18, %v713_v21  ;;  %9746 = vmatprep.subr.bf16.mxu1 %v14881_v24  ;;  %v14744_v34 = vcombine.low %v709_v18, %v713_v21 }
 0x127   :  { %v841_v25 = vld [vmem:[#allocation5 + $0x1460] sm:$0xff]  ;;  %9747 = vmatpush1.bf16.msra.mxu1 %v14880_v26 }
 0x128   :  { %v701_v54 = vld [vmem:[#allocation5 + $0x1000] sm:$0xff]  ;;  %v14873_v32 = vcombine.high %v837_v23, %v841_v25  ;;  %9707 = vmatprep.subr.bf16.mxu0 %v14745_v27  ;;  %v14872_v35 = vcombine.low %v837_v23, %v841_v25 }
 0x129   :  { %v705_v30 = vld [vmem:[#allocation5 + $0x1020] sm:$0xff]  ;;  %9708 = vmatpush1.bf16.msra.mxu0 %v14744_v34 }
 0x12a   :  { %v829_v31 = vld [vmem:[#allocation5 + $0x1400] sm:$0xff]  ;;  %v14737_v36 = vcombine.high %v701_v54, %v705_v30  ;;  %9748 = vmatprep.subr.bf16.mxu1 %v14873_v32  ;;  %v14736_v46 = vcombine.low %v701_v54, %v705_v30 }
 0x12b   :  { %v833_v33 = vld [vmem:[#allocation5 + $0x1420] sm:$0xff]  ;;  %9749 = vmatpush1.bf16.msra.mxu1 %v14872_v35 }
 0x12c   :  { %v821_v37 = vld [vmem:[#allocation5 + $0x13c0] sm:$0xff]  ;;  %v14865_v44 = vcombine.high %v829_v31, %v833_v33  ;;  %9709 = vmatprep.subr.bf16.mxu0 %v14737_v36  ;;  %v14864_v47 = vcombine.low %v829_v31, %v833_v33 }
 0x12d   :  { %v825_v41 = vld [vmem:[#allocation5 + $0x13e0] sm:$0xff]  ;;  %9710 = vmatpush1.bf16.msra.mxu0 %v14736_v46 }
 0x12e   :  { %v949_v43 = vld [vmem:[#allocation5 + $0x17c0] sm:$0xff]  ;;  %v14857_v48 = vcombine.high %v821_v37, %v825_v41  ;;  %9750 = vmatprep.subr.bf16.mxu1 %v14865_v44  ;;  %v14856_v56 = vcombine.low %v821_v37, %v825_v41 }
 0x12f   :  { %v953_v45 = vld [vmem:[#allocation5 + $0x17e0] sm:$0xff]  ;;  %9751 = vmatpush1.bf16.msra.mxu1 %v14864_v47 }
 0x130   :  { %v813_v49 = vld [vmem:[#allocation5 + $0x1380] sm:$0xff]  ;;  %v14985_v52 = vcombine.high %v949_v43, %v953_v45  ;;  %9711 = vmatprep.subr.bf16.mxu0 %v14857_v48  ;;  %v14984_v57 = vcombine.low %v949_v43, %v953_v45 }
 0x131   :  { %v817_v50 = vld [vmem:[#allocation5 + $0x13a0] sm:$0xff]  ;;  %9712 = vmatpush2.bf16.msra.mxu0 %v14856_v56 }
 0x132   :  { %v941_v51 = vld [vmem:[#allocation5 + $0x1780] sm:$0xff]  ;;  %v14849_v60 = vcombine.high %v813_v49, %v817_v50  ;;  %9752 = vmatprep.subr.bf16.mxu1 %v14985_v52  ;;  %v14848_v2 = vcombine.low %v813_v49, %v817_v50 }
 0x133   :  { %v945_v55 = vld [vmem:[#allocation5 + $0x17a0] sm:$0xff]  ;;  %9753 = vmatpush2.bf16.msra.mxu1 %v14984_v57 }
 0x134   :  { %v805_v61 = vld [vmem:[#allocation5 + $0x1340] sm:$0xff]  ;;  %v14977_v0 = vcombine.high %v941_v51, %v945_v55  ;;  %9713 = vmatprep.subr.bf16.mxu0 %v14849_v60  ;;  %v14976_v3 = vcombine.low %v941_v51, %v945_v55 }
 0x135   :  { %v809_v62 = vld [vmem:[#allocation5 + $0x1360] sm:$0xff]  ;;  %9714 = vmatpush2.bf16.msra.mxu0 %v14848_v2 }
 0x136   :  { %v933_v63 = vld [vmem:[#allocation5 + $0x1740] sm:$0xff]  ;;  %v14841_v4 = vcombine.high %v805_v61, %v809_v62  ;;  %9754 = vmatprep.subr.bf16.mxu1 %v14977_v0  ;;  %v14840_v10 = vcombine.low %v805_v61, %v809_v62 }
 0x137   :  { %v937_v1 = vld [vmem:[#allocation5 + $0x1760] sm:$0xff]  ;;  %9755 = vmatpush2.bf16.msra.mxu1 %v14976_v3 }
 0x138   :  { %v797_v5 = vld [vmem:[#allocation5 + $0x1300] sm:$0xff]  ;;  %v14969_v8 = vcombine.high %v933_v63, %v937_v1  ;;  %9715 = vmatprep.subr.bf16.mxu0 %v14841_v4  ;;  %v14968_v11 = vcombine.low %v933_v63, %v937_v1 }
 0x139   :  { %v801_v6 = vld [vmem:[#allocation5 + $0x1320] sm:$0xff]  ;;  %9716 = vmatpush2.bf16.msra.mxu0 %v14840_v10  ;;  %v17151_v10 = vld [vmem:[#allocation2 + $0x38] sm:$0xff] }
 0x13a   :  { %v925_v7 = vld [vmem:[#allocation5 + $0x1700] sm:$0xff]  ;;  %v14833_v12 = vcombine.high %v797_v5, %v801_v6  ;;  %9756 = vmatprep.subr.bf16.mxu1 %v14969_v8  ;;  %v14832_v21 = vcombine.low %v797_v5, %v801_v6  ;;  %v17141_v6 = vld [vmem:[#allocation2 + $0x30] sm:$0xff]  ;;  %v17149_v8 = vcombine.low %v17127_v42, %v17127_v42  ;;  %v17160_v42 = vcombine.high %v17151_v10, %v17151_v10 }
 0x13b   :  { %v929_v9 = vld [vmem:[#allocation5 + $0x1720] sm:$0xff]  ;;  %9757 = vmatpush2.bf16.msra.mxu1 %v14968_v11 }
 0x13c   :  { %v789_v13 = vld [vmem:[#allocation5 + $0x12c0] sm:$0xff]  ;;  %v14961_v17 = vcombine.high %v925_v7, %v929_v9  ;;  %9717 = vmatprep.subr.bf16.mxu0 %v14833_v12  ;;  %v14960_v23 = vcombine.low %v925_v7, %v929_v9  ;;  %v17145_v7 = vcombine.low %v17117_v38, %v17117_v38  ;;  %v17155_v38 = vcombine.high %v17141_v6, %v17141_v6 }
 0x13d   :  { %v793_v14 = vld [vmem:[#allocation5 + $0x12e0] sm:$0xff]  ;;  %9718 = vmatpush2.bf16.msra.mxu0 %v14832_v21 }
 0x13e   :  { %v917_v15 = vld [vmem:[#allocation5 + $0x16c0] sm:$0xff]  ;;  %v14825_v24 = vcombine.high %v789_v13, %v793_v14  ;;  %9758 = vmatprep.subr.bf16.mxu1 %v14961_v17  ;;  %v14824_v30 = vcombine.low %v789_v13, %v793_v14 }
 0x13f   :  { %v921_v18 = vld [vmem:[#allocation5 + $0x16e0] sm:$0xff]  ;;  %9759 = vmatpush2.bf16.msra.mxu1 %v14960_v23 }
 0x140   :  { %v781_v25 = vld [vmem:[#allocation5 + $0x1280] sm:$0xff]  ;;  %v14953_v27 = vcombine.high %v917_v15, %v921_v18  ;;  %9719 = vmatprep.subr.bf16.mxu0 %v14825_v24  ;;  %v14952_v31 = vcombine.low %v917_v15, %v921_v18 }
 0x141   :  { %v785_v53 = vld [vmem:[#allocation5 + $0x12a0] sm:$0xff]  ;;  %9720 = vmatpush2.bf16.msra.mxu0 %v14824_v30 }
 0x142   :  { %v909_v26 = vld [vmem:[#allocation5 + $0x1680] sm:$0xff]  ;;  %v14817_v32 = vcombine.high %v781_v25, %v785_v53  ;;  %9760 = vmatprep.subr.bf16.mxu1 %v14953_v27  ;;  %v14816_v41 = vcombine.low %v781_v25, %v785_v53 }
 0x143   :  { %v913_v54 = vld [vmem:[#allocation5 + $0x16a0] sm:$0xff]  ;;  %9761 = vmatpush2.bf16.msra.mxu1 %v14952_v31 }
 0x144   :  { %v773_v33 = vld [vmem:[#allocation5 + $0x1240] sm:$0xff]  ;;  %v14945_v36 = vcombine.high %v909_v26, %v913_v54  ;;  %9721 = vmatprep.subr.bf16.mxu0 %v14817_v32  ;;  %v14944_v43 = vcombine.low %v909_v26, %v913_v54 }
 0x145   :  { %v777_v34 = vld [vmem:[#allocation5 + $0x1260] sm:$0xff]  ;;  %9722 = vmatpush2.bf16.msra.mxu0 %v14816_v41 }
 0x146   :  { %v901_v35 = vld [vmem:[#allocation5 + $0x1640] sm:$0xff]  ;;  %v14809_v44 = vcombine.high %v773_v33, %v777_v34  ;;  %9762 = vmatprep.subr.bf16.mxu1 %v14945_v36  ;;  %v14808_v50 = vcombine.low %v773_v33, %v777_v34 }
 0x147   :  { %v905_v37 = vld [vmem:[#allocation5 + $0x1660] sm:$0xff]  ;;  %9763 = vmatpush2.bf16.msra.mxu1 %v14944_v43 }
 0x148   :  { %v765_v45 = vld [vmem:[#allocation5 + $0x1200] sm:$0xff]  ;;  %v14937_v48 = vcombine.high %v901_v35, %v905_v37  ;;  %9723 = vmatprep.subr.bf16.mxu0 %v14809_v44  ;;  %v14936_v51 = vcombine.low %v901_v35, %v905_v37 }
 0x149   :  { %v769_v46 = vld [vmem:[#allocation5 + $0x1220] sm:$0xff]  ;;  %9724 = vmatpush2.bf16.msra.mxu0 %v14808_v50 }
 0x14a   :  { %v893_v47 = vld [vmem:[#allocation5 + $0x1600] sm:$0xff]  ;;  %v14801_v52 = vcombine.high %v765_v45, %v769_v46  ;;  %9764 = vmatprep.subr.bf16.mxu1 %v14937_v48  ;;  %v14800_v62 = vcombine.low %v765_v45, %v769_v46 }
 0x14b   :  { %v897_v49 = vld [vmem:[#allocation5 + $0x1620] sm:$0xff]  ;;  %9765 = vmatpush2.bf16.msra.mxu1 %v14936_v51 }
 0x14c   :  { %v1013_v55 = vld [vmem:[#allocation5 + $0x19c0] sm:$0xff]  ;;  %v14929_v60 = vcombine.high %v893_v47, %v897_v49  ;;  %9725 = vmatprep.subr.bf16.mxu0 %v14801_v52  ;;  %v14928_v0 = vcombine.low %v893_v47, %v897_v49 }
 0x14d   :  { %v1017_v56 = vld [vmem:[#allocation5 + $0x19e0] sm:$0xff]  ;;  %9726 = vmatpush2.bf16.msra.mxu0 %v14800_v62 }
 0x14e   :  { %v1141_v57 = vld [vmem:[#allocation5 + $0x1dc0] sm:$0xff]  ;;  %v15049_v1 = vcombine.high %v1013_v55, %v1017_v56  ;;  %9766 = vmatprep.subr.bf16.mxu1 %v14929_v60  ;;  %v15048_v9 = vcombine.low %v1013_v55, %v1017_v56 }
 0x14f   :  { %v1145_v61 = vld [vmem:[#allocation5 + $0x1de0] sm:$0xff]  ;;  %9767 = vmatpush2.bf16.msra.mxu1 %v14928_v0 }
 0x150   :  { %v1005_v63 = vld [vmem:[#allocation5 + $0x1980] sm:$0xff]  ;;  %v15177_v5 = vcombine.high %v1141_v57, %v1145_v61  ;;  %9777 = vmatprep.subr.bf16.mxu0 %v15049_v1  ;;  %v15176_v11 = vcombine.low %v1141_v57, %v1145_v61  ;;  %9728 = vmatmul.mubr.bf16.vlgmr.msra.gmra.mxu0 %v17145_v7 }
 0x151   :  { %v1009_v2 = vld [vmem:[#allocation5 + $0x19a0] sm:$0xff]  ;;  %9778 = vmatpush1.bf16.msra.mxu0 %v15048_v9  ;;  %9809 = vmatprep.mubr.bf16.mxu0 %v17155_v38 }
 0x152   :  { %v1133_v3 = vld [vmem:[#allocation5 + $0x1d80] sm:$0xff]  ;;  %v15041_v12 = vcombine.high %v1005_v63, %v1009_v2  ;;  %9818 = vmatprep.subr.bf16.mxu1 %v15177_v5  ;;  %9769 = vmatmul.mubr.bf16.vlgmr.msra.gmra.mxu1 %v17149_v8  ;;  %v15040_v21 = vcombine.low %v1005_v63, %v1009_v2 }
 0x153   :  { %v1137_v4 = vld [vmem:[#allocation5 + $0x1da0] sm:$0xff]  ;;  %9819 = vmatpush1.bf16.msra.mxu1 %v15176_v11  ;;  %9850 = vmatprep.mubr.bf16.mxu1 %v17160_v42 }
 0x154   :  { %v997_v13 = vld [vmem:[#allocation5 + $0x1940] sm:$0xff]  ;;  %v15169_v17 = vcombine.high %v1133_v3, %v1137_v4  ;;  %9779 = vmatprep.subr.bf16.mxu0 %v15041_v12  ;;  %v15168_v23 = vcombine.low %v1133_v3, %v1137_v4 }
 0x155   :  { %v1001_v14 = vld [vmem:[#allocation5 + $0x1960] sm:$0xff]  ;;  %9780 = vmatpush1.bf16.msra.mxu0 %v15040_v21 }
 0x156   :  { %v1125_v15 = vld [vmem:[#allocation5 + $0x1d40] sm:$0xff]  ;;  %v15033_v24 = vcombine.high %v997_v13, %v1001_v14  ;;  %9820 = vmatprep.subr.bf16.mxu1 %v15169_v17  ;;  %v15032_v30 = vcombine.low %v997_v13, %v1001_v14 }
 0x157   :  { %v1129_v18 = vld [vmem:[#allocation5 + $0x1d60] sm:$0xff]  ;;  %9821 = vmatpush1.bf16.msra.mxu1 %v15168_v23 }
 0x158   :  { %v989_v25 = vld [vmem:[#allocation5 + $0x1900] sm:$0xff]  ;;  %v15161_v27 = vcombine.high %v1125_v15, %v1129_v18  ;;  %9781 = vmatprep.subr.bf16.mxu0 %v15033_v24  ;;  %v15160_v31 = vcombine.low %v1125_v15, %v1129_v18 }
 0x159   :  { %v993_v53 = vld [vmem:[#allocation5 + $0x1920] sm:$0xff]  ;;  %9782 = vmatpush1.bf16.msra.mxu0 %v15032_v30 }
 0x15a   :  { %v1117_v26 = vld [vmem:[#allocation5 + $0x1d00] sm:$0xff]  ;;  %v15025_v32 = vcombine.high %v989_v25, %v993_v53  ;;  %9822 = vmatprep.subr.bf16.mxu1 %v15161_v27  ;;  %v15024_v41 = vcombine.low %v989_v25, %v993_v53 }
 0x15b   :  { %v1121_v54 = vld [vmem:[#allocation5 + $0x1d20] sm:$0xff]  ;;  %9823 = vmatpush1.bf16.msra.mxu1 %v15160_v31 }
 0x15c   :  { %v981_v33 = vld [vmem:[#allocation5 + $0x18c0] sm:$0xff]  ;;  %v15153_v36 = vcombine.high %v1117_v26, %v1121_v54  ;;  %9783 = vmatprep.subr.bf16.mxu0 %v15025_v32  ;;  %v15152_v43 = vcombine.low %v1117_v26, %v1121_v54 }
 0x15d   :  { %v985_v34 = vld [vmem:[#allocation5 + $0x18e0] sm:$0xff]  ;;  %9784 = vmatpush1.bf16.msra.mxu0 %v15024_v41 }
 0x15e   :  { %v1109_v35 = vld [vmem:[#allocation5 + $0x1cc0] sm:$0xff]  ;;  %v15017_v44 = vcombine.high %v981_v33, %v985_v34  ;;  %9824 = vmatprep.subr.bf16.mxu1 %v15153_v36  ;;  %v15016_v50 = vcombine.low %v981_v33, %v985_v34 }
 0x15f   :  { %v1113_v37 = vld [vmem:[#allocation5 + $0x1ce0] sm:$0xff]  ;;  %9825 = vmatpush1.bf16.msra.mxu1 %v15152_v43 }
 0x160   :  { %v973_v45 = vld [vmem:[#allocation5 + $0x1880] sm:$0xff]  ;;  %v15145_v48 = vcombine.high %v1109_v35, %v1113_v37  ;;  %9785 = vmatprep.subr.bf16.mxu0 %v15017_v44  ;;  %v15144_v51 = vcombine.low %v1109_v35, %v1113_v37 }
 0x161   :  { %v977_v46 = vld [vmem:[#allocation5 + $0x18a0] sm:$0xff]  ;;  %9786 = vmatpush1.bf16.msra.mxu0 %v15016_v50 }
 0x162   :  { %v1101_v47 = vld [vmem:[#allocation5 + $0x1c80] sm:$0xff]  ;;  %v15009_v52 = vcombine.high %v973_v45, %v977_v46  ;;  %9826 = vmatprep.subr.bf16.mxu1 %v15145_v48  ;;  %v15008_v62 = vcombine.low %v973_v45, %v977_v46 }
 0x163   :  { %v1105_v49 = vld [vmem:[#allocation5 + $0x1ca0] sm:$0xff]  ;;  %9827 = vmatpush1.bf16.msra.mxu1 %v15144_v51 }
 0x164   :  { %v965_v55 = vld [vmem:[#allocation5 + $0x1840] sm:$0xff]  ;;  %v15137_v60 = vcombine.high %v1101_v47, %v1105_v49  ;;  %9787 = vmatprep.subr.bf16.mxu0 %v15009_v52  ;;  %v15136_v63 = vcombine.low %v1101_v47, %v1105_v49 }
 0x165   :  { %v969_v56 = vld [vmem:[#allocation5 + $0x1860] sm:$0xff]  ;;  %9788 = vmatpush1.bf16.msra.mxu0 %v15008_v62 }
 0x166   :  { %v1093_v57 = vld [vmem:[#allocation5 + $0x1c40] sm:$0xff]  ;;  %v15001_v0 = vcombine.high %v965_v55, %v969_v56  ;;  %9828 = vmatprep.subr.bf16.mxu1 %v15137_v60  ;;  %v15000_v9 = vcombine.low %v965_v55, %v969_v56 }
 0x167   :  { %v1097_v61 = vld [vmem:[#allocation5 + $0x1c60] sm:$0xff]  ;;  %9829 = vmatpush1.bf16.msra.mxu1 %v15136_v63 }
 0x168   :  { %v957_v1 = vld [vmem:[#allocation5 + $0x1800] sm:$0xff]  ;;  %v15129_v4 = vcombine.high %v1093_v57, %v1097_v61  ;;  %9789 = vmatprep.subr.bf16.mxu0 %v15001_v0  ;;  %v15128_v11 = vcombine.low %v1093_v57, %v1097_v61 }
 0x169   :  { %v961_v2 = vld [vmem:[#allocation5 + $0x1820] sm:$0xff]  ;;  %9790 = vmatpush1.bf16.msra.mxu0 %v15000_v9 }
 0x16a   :  { %v1085_v3 = vld [vmem:[#allocation5 + $0x1c00] sm:$0xff]  ;;  %v14993_v12 = vcombine.high %v957_v1, %v961_v2  ;;  %9830 = vmatprep.subr.bf16.mxu1 %v15129_v4  ;;  %v14992_v21 = vcombine.low %v957_v1, %v961_v2 }
 0x16b   :  { %v1089_v5 = vld [vmem:[#allocation5 + $0x1c20] sm:$0xff]  ;;  %9831 = vmatpush1.bf16.msra.mxu1 %v15128_v11 }
 0x16c   :  { %v1077_v13 = vld [vmem:[#allocation5 + $0x1bc0] sm:$0xff]  ;;  %v15121_v17 = vcombine.high %v1085_v3, %v1089_v5  ;;  %9791 = vmatprep.subr.bf16.mxu0 %v14993_v12  ;;  %v15120_v23 = vcombine.low %v1085_v3, %v1089_v5 }
 0x16d   :  { %v1081_v14 = vld [vmem:[#allocation5 + $0x1be0] sm:$0xff]  ;;  %9792 = vmatpush1.bf16.msra.mxu0 %v14992_v21  ;;  %v1727_v21 = vlaneseq }
 0x16e   :  { %v1205_v15 = vld [vmem:[#allocation5 + $0x1fc0] sm:$0xff]  ;;  %v15113_v24 = vcombine.high %v1077_v13, %v1081_v14  ;;  %9832 = vmatprep.subr.bf16.mxu1 %v15121_v17  ;;  %v15112_v30 = vcombine.low %v1077_v13, %v1081_v14 }
 0x16f   :  { %v1209_v18 = vld [vmem:[#allocation5 + $0x1fe0] sm:$0xff]  ;;  %9833 = vmatpush1.bf16.msra.mxu1 %v15120_v23 }
 0x170   :  { %v1069_v25 = vld [vmem:[#allocation5 + $0x1b80] sm:$0xff]  ;;  %v15241_v27 = vcombine.high %v1205_v15, %v1209_v18  ;;  %9793 = vmatprep.subr.bf16.mxu0 %v15113_v24  ;;  %v15240_v31 = vcombine.low %v1205_v15, %v1209_v18 }
 0x171   :  { %v1073_v53 = vld [vmem:[#allocation5 + $0x1ba0] sm:$0xff]  ;;  %9794 = vmatpush2.bf16.msra.mxu0 %v15112_v30 }
 0x172   :  { %v1197_v26 = vld [vmem:[#allocation5 + $0x1f80] sm:$0xff]  ;;  %v15105_v32 = vcombine.high %v1069_v25, %v1073_v53  ;;  %9834 = vmatprep.subr.bf16.mxu1 %v15241_v27  ;;  %v15104_v41 = vcombine.low %v1069_v25, %v1073_v53 }
 0x173   :  { %v1201_v54 = vld [vmem:[#allocation5 + $0x1fa0] sm:$0xff]  ;;  %9835 = vmatpush2.bf16.msra.mxu1 %v15240_v31  ;;  %v17165_v31 = vshrl.u32 %v1727_v21, 7 }
 0x174   :  { %v1061_v33 = vld [vmem:[#allocation5 + $0x1b40] sm:$0xff]  ;;  %v15233_v36 = vcombine.high %v1197_v26, %v1201_v54  ;;  %9795 = vmatprep.subr.bf16.mxu0 %v15105_v32  ;;  %v15232_v43 = vcombine.low %v1197_v26, %v1201_v54 }
 0x175   :  { %v1065_v34 = vld [vmem:[#allocation5 + $0x1b60] sm:$0xff]  ;;  %9796 = vmatpush2.bf16.msra.mxu0 %v15104_v41 }
 0x176   :  { %v1189_v35 = vld [vmem:[#allocation5 + $0x1f40] sm:$0xff]  ;;  %v15097_v44 = vcombine.high %v1061_v33, %v1065_v34  ;;  %9836 = vmatprep.subr.bf16.mxu1 %v15233_v36  ;;  %v15096_v50 = vcombine.low %v1061_v33, %v1065_v34 }
 0x177   :  { %v1193_v37 = vld [vmem:[#allocation5 + $0x1f60] sm:$0xff]  ;;  %9837 = vmatpush2.bf16.msra.mxu1 %v15232_v43  ;;  %v17168_v43 = vsub.s32 0, %v17165_v31 }
 0x178   :  { %v1053_v45 = vld [vmem:[#allocation5 + $0x1b00] sm:$0xff]  ;;  %v15225_v48 = vcombine.high %v1189_v35, %v1193_v37  ;;  %9797 = vmatprep.subr.bf16.mxu0 %v15097_v44  ;;  %v15224_v51 = vcombine.low %v1189_v35, %v1193_v37 }
 0x179   :  { %v1057_v46 = vld [vmem:[#allocation5 + $0x1b20] sm:$0xff]  ;;  %9798 = vmatpush2.bf16.msra.mxu0 %v15096_v50  ;;  %v17171_v50 = vsub.s32 1, %v17165_v31 }
 0x17a   :  { %v1181_v47 = vld [vmem:[#allocation5 + $0x1f00] sm:$0xff]  ;;  %v15089_v52 = vcombine.high %v1053_v45, %v1057_v46  ;;  %9838 = vmatprep.subr.bf16.mxu1 %v15225_v48  ;;  %v15088_v62 = vcombine.low %v1053_v45, %v1057_v46 }
 0x17b   :  { %v1185_v49 = vld [vmem:[#allocation5 + $0x1f20] sm:$0xff]  ;;  %9839 = vmatpush2.bf16.msra.mxu1 %v15224_v51 }
 0x17c   :  { %v1045_v55 = vld [vmem:[#allocation5 + $0x1ac0] sm:$0xff]  ;;  %v15217_v60 = vcombine.high %v1181_v47, %v1185_v49  ;;  %9799 = vmatprep.subr.bf16.mxu0 %v15089_v52  ;;  %v15216_v63 = vcombine.low %v1181_v47, %v1185_v49 }
 0x17d   :  { %v1049_v56 = vld [vmem:[#allocation5 + $0x1ae0] sm:$0xff]  ;;  %9800 = vmatpush2.bf16.msra.mxu0 %v15088_v62  ;;  %v17182_v62 = vcombine.low %v17151_v10, %v17151_v10 }
 0x17e   :  { %v1173_v57 = vld [vmem:[#allocation5 + $0x1ec0] sm:$0xff]  ;;  %v15081_v0 = vcombine.high %v1045_v55, %v1049_v56  ;;  %9840 = vmatprep.subr.bf16.mxu1 %v15217_v60  ;;  %v15080_v9 = vcombine.low %v1045_v55, %v1049_v56  ;;  %v17175_v55 = vcombine.low %v17141_v6, %v17141_v6 }
 0x17f   :  { %v1177_v61 = vld [vmem:[#allocation5 + $0x1ee0] sm:$0xff]  ;;  %9841 = vmatpush2.bf16.msra.mxu1 %v15216_v63 }
 0x180   :  { %v1037_v1 = vld [vmem:[#allocation5 + $0x1a80] sm:$0xff]  ;;  %v15209_v4 = vcombine.high %v1173_v57, %v1177_v61  ;;  %9801 = vmatprep.subr.bf16.mxu0 %v15081_v0  ;;  %v15208_v11 = vcombine.low %v1173_v57, %v1177_v61  ;;  %v17184_v0 = vld [vmem:[#allocation2 + $0x48] sm:$0xff] }
 0x181   :  { %v1041_v2 = vld [vmem:[#allocation5 + $0x1aa0] sm:$0xff]  ;;  %9802 = vmatpush2.bf16.msra.mxu0 %v15080_v9 }
 0x182   :  { %v1165_v3 = vld [vmem:[#allocation5 + $0x1e80] sm:$0xff]  ;;  %v15073_v12 = vcombine.high %v1037_v1, %v1041_v2  ;;  %9842 = vmatprep.subr.bf16.mxu1 %v15209_v4  ;;  %v15072_v23 = vcombine.low %v1037_v1, %v1041_v2 }
 0x183   :  { %v1169_v5 = vld [vmem:[#allocation5 + $0x1ea0] sm:$0xff]  ;;  %9843 = vmatpush2.bf16.msra.mxu1 %v15208_v11 }
 0x184   :  { %v1029_v13 = vld [vmem:[#allocation5 + $0x1a40] sm:$0xff]  ;;  %v15201_v17 = vcombine.high %v1165_v3, %v1169_v5  ;;  %9803 = vmatprep.subr.bf16.mxu0 %v15073_v12  ;;  %v15200_v24 = vcombine.low %v1165_v3, %v1169_v5 }
 0x185   :  { %v1033_v14 = vld [vmem:[#allocation5 + $0x1a60] sm:$0xff]  ;;  %9804 = vmatpush2.bf16.msra.mxu0 %v15072_v23 }
 0x186   :  { %v1157_v15 = vld [vmem:[#allocation5 + $0x1e40] sm:$0xff]  ;;  %v15065_v25 = vcombine.high %v1029_v13, %v1033_v14  ;;  %9844 = vmatprep.subr.bf16.mxu1 %v15201_v17  ;;  %v15064_v32 = vcombine.low %v1029_v13, %v1033_v14  ;;  %v17194_v13 = vcombine.high %v17184_v0, %v17184_v0 }
 0x187   :  { %v1161_v18 = vld [vmem:[#allocation5 + $0x1e60] sm:$0xff]  ;;  %9845 = vmatpush2.bf16.msra.mxu1 %v15200_v24 }
 0x188   :  { %v1021_v53 = vld [vmem:[#allocation5 + $0x1a00] sm:$0xff]  ;;  %v15193_v54 = vcombine.high %v1157_v15, %v1161_v18  ;;  %9805 = vmatprep.subr.bf16.mxu0 %v15065_v25  ;;  %v15192_v33 = vcombine.low %v1157_v15, %v1161_v18 }
 0x189   :  { %v1025_v26 = vld [vmem:[#allocation5 + $0x1a20] sm:$0xff]  ;;  %9806 = vmatpush2.bf16.msra.mxu0 %v15064_v32 }
 0x18a   :  { %v1149_v27 = vld [vmem:[#allocation5 + $0x1e00] sm:$0xff]  ;;  %v15057_v34 = vcombine.high %v1021_v53, %v1025_v26  ;;  %9846 = vmatprep.subr.bf16.mxu1 %v15193_v54  ;;  %v15056_v45 = vcombine.low %v1021_v53, %v1025_v26 }
 0x18b   :  { %v1153_v30 = vld [vmem:[#allocation5 + $0x1e20] sm:$0xff]  ;;  %9847 = vmatpush2.bf16.msra.mxu1 %v15192_v33 }
 0x18c   :  { %v1269_v35 = vld [vmem:[#allocation5 + $0x21c0] sm:$0xff]  ;;  %v15185_v41 = vcombine.high %v1149_v27, %v1153_v30  ;;  %9807 = vmatprep.subr.bf16.mxu0 %v15057_v34  ;;  %v15184_v46 = vcombine.low %v1149_v27, %v1153_v30 }
 0x18d   :  { %v1273_v36 = vld [vmem:[#allocation5 + $0x21e0] sm:$0xff]  ;;  %9808 = vmatpush2.bf16.msra.mxu0 %v15056_v45 }
 0x18e   :  { %v1397_v37 = vld [vmem:[#allocation5 + $0x25c0] sm:$0xff]  ;;  %v15305_v48 = vcombine.high %v1269_v35, %v1273_v36  ;;  %9848 = vmatprep.subr.bf16.mxu1 %v15185_v41  ;;  %v15304_v63 = vcombine.low %v1269_v35, %v1273_v36 }
 0x18f   :  { %v1401_v44 = vld [vmem:[#allocation5 + $0x25e0] sm:$0xff]  ;;  %9849 = vmatpush2.bf16.msra.mxu1 %v15184_v46  ;;  %v9565_v11 = vpop.f32.mrf.mxu0 }
 0x190   :  { %v1725_v47 = vld [vmem:[#allocation7] sm:$0xff]  ;;  %v15433_v49 = vcombine.high %v1397_v37, %v1401_v44  ;;  %9859 = vmatprep.subr.bf16.mxu0 %v15305_v48  ;;  %v15432_v1 = vcombine.low %v1397_v37, %v1401_v44  ;;  %9810 = vmatmul.mubr.bf16.vlgmr.msra.gmra.mxu0 %v17175_v55 }
 0x191   :  { %v1261_v51 = vld [vmem:[#allocation5 + $0x2180] sm:$0xff]  ;;  %v1730_v61 = vrot.slane %v1725_v47, %v17168_v43  ;;  %v1734_v6 = vrot.slane %v1725_v47, %v17171_v50  ;;  %v9606_v15 = vpop.f32.mrf.mxu1  ;;  %9860 = vmatpush1.bf16.msra.mxu0 %v15304_v63  ;;  %v9567_v18 = vpop.f32.mrf.mxu0 }
 0x192   :  { %v1265_v52 = vld [vmem:[#allocation5 + $0x21a0] sm:$0xff]  ;;  %9900 = vmatprep.subr.bf16.mxu1 %v15433_v49  ;;  %9851 = vmatmul.mubr.bf16.vlgmr.msra.gmra.mxu1 %v17182_v62 }
 0x193   :  { %v1389_v56 = vld [vmem:[#allocation5 + $0x2580] sm:$0xff]  ;;  %v15297_v2 = vcombine.high %v1261_v51, %v1265_v52  ;;  %v9566_v14 = vadd.f32 %v9565_v11, %v1730_v61  ;;  %v15296_v17 = vcombine.low %v1261_v51, %v1265_v52  ;;  %9901 = vmatpush1.bf16.msra.mxu1 %v15432_v1  ;;  %v9568_v25 = vadd.f32 %v9567_v18, %v1734_v6  ;;  %v9608_v53 = vpop.f32.mrf.mxu1  ;;  %v9569_v30 = vpop.f32.mrf.mxu0 }
 0x194   :  { %v1393_v57 = vld [vmem:[#allocation5 + $0x25a0] sm:$0xff]  ;;  %9932 = vmatprep.mubr.bf16.mxu1 %v17194_v13 }
 0x195   :  { %v17177_v60 = vld [vmem:[#allocation2 + $0x40] sm:$0xff]  ;;  %v15425_v3 = vcombine.high %v1389_v56, %v1393_v57  ;;  %9861 = vmatprep.subr.bf16.mxu0 %v15297_v2  ;;  %v15424_v21 = vcombine.low %v1389_v56, %v1393_v57  ;;  %v17197_v24 = vadd.f32 %v9606_v15, %v9566_v14  ;;  %v17201_v34 = vadd.f32 %v9608_v53, %v9568_v25  ;;  %v9610_v35 = vpop.f32.mrf.mxu1  ;;  %v9570_v37 = vpop.f32.mrf.mxu0 }
 0x196   :  { %v1253_v4 = vld [vmem:[#allocation5 + $0x2140] sm:$0xff]  ;;  %v17189_v9 = vcombine.high %v17177_v60, %v17177_v60  ;;  %9862 = vmatpush1.bf16.msra.mxu0 %v15296_v17 }
 0x197   :  { %v1257_v5 = vld [vmem:[#allocation5 + $0x2160] sm:$0xff]  ;;  %9902 = vmatprep.subr.bf16.mxu1 %v15425_v3  ;;  %v9611_v45 = vpop.f32.mrf.mxu1 }
 0x198   :  { %v1381_v10 = vld [vmem:[#allocation5 + $0x2540] sm:$0xff]  ;;  %v15289_v23 = vcombine.high %v1253_v4, %v1257_v5  ;;  %9891 = vmatprep.mubr.bf16.mxu0 %v17189_v9  ;;  %v15288_v36 = vcombine.low %v1253_v4, %v1257_v5  ;;  %9903 = vmatpush1.bf16.msra.mxu1 %v15424_v21 }
 0x199   :  { %v1385_v12 = vld [vmem:[#allocation5 + $0x2560] sm:$0xff] }
 0x19a   :  { %v15417_v26 = vcombine.high %v1381_v10, %v1385_v12  ;;  %v1245_v27 = vld [vmem:[#allocation5 + $0x2100] sm:$0xff]  ;;  %9863 = vmatprep.subr.bf16.mxu0 %v15289_v23  ;;  %v15416_v41 = vcombine.low %v1381_v10, %v1385_v12 }
 0x19b   :  { %v1249_v54 = vld [vmem:[#allocation5 + $0x2120] sm:$0xff]  ;;  %9864 = vmatpush1.bf16.msra.mxu0 %v15288_v36 }
 0x19c   :  { %v1373_v32 = vld [vmem:[#allocation5 + $0x2500] sm:$0xff]  ;;  %v15281_v44 = vcombine.high %v1245_v27, %v1249_v54  ;;  %9904 = vmatprep.subr.bf16.mxu1 %v15417_v26  ;;  %v15280_v52 = vcombine.low %v1245_v27, %v1249_v54 }
 0x19d   :  { %v1377_v33 = vld [vmem:[#allocation5 + $0x2520] sm:$0xff]  ;;  %9905 = vmatpush1.bf16.msra.mxu1 %v15416_v41 }
 0x19e   :  { %v15409_v46 = vcombine.high %v1373_v32, %v1377_v33  ;;  %v1237_v47 = vld [vmem:[#allocation5 + $0x20c0] sm:$0xff]  ;;  %9865 = vmatprep.subr.bf16.mxu0 %v15281_v44  ;;  %v15408_v56 = vcombine.low %v1373_v32, %v1377_v33 }
 0x19f   :  { %v1241_v48 = vld [vmem:[#allocation5 + $0x20e0] sm:$0xff]  ;;  %9866 = vmatpush1.bf16.msra.mxu0 %v15280_v52 }
 0x1a0   :  { %v1365_v49 = vld [vmem:[#allocation5 + $0x24c0] sm:$0xff]  ;;  %v15273_v57 = vcombine.high %v1237_v47, %v1241_v48  ;;  %9906 = vmatprep.subr.bf16.mxu1 %v15409_v46  ;;  %v15272_v3 = vcombine.low %v1237_v47, %v1241_v48 }
 0x1a1   :  { %v1369_v51 = vld [vmem:[#allocation5 + $0x24e0] sm:$0xff]  ;;  %9907 = vmatpush1.bf16.msra.mxu1 %v15408_v56 }
 0x1a2   :  { %v15401_v61 = vcombine.high %v1365_v49, %v1369_v51  ;;  %v1229_v63 = vld [vmem:[#allocation5 + $0x2080] sm:$0xff]  ;;  %9867 = vmatprep.subr.bf16.mxu0 %v15273_v57  ;;  %v15400_v4 = vcombine.low %v1365_v49, %v1369_v51 }
 0x1a3   :  { %v1233_v1 = vld [vmem:[#allocation5 + $0x20a0] sm:$0xff]  ;;  %9868 = vmatpush1.bf16.msra.mxu0 %v15272_v3 }
 0x1a4   :  { %v1357_v2 = vld [vmem:[#allocation5 + $0x2480] sm:$0xff]  ;;  %v15265_v5 = vcombine.high %v1229_v63, %v1233_v1  ;;  %9908 = vmatprep.subr.bf16.mxu1 %v15401_v61  ;;  %v15264_v17 = vcombine.low %v1229_v63, %v1233_v1 }
 0x1a5   :  { %v1361_v6 = vld [vmem:[#allocation5 + $0x24a0] sm:$0xff]  ;;  %9909 = vmatpush1.bf16.msra.mxu1 %v15400_v4 }
 0x1a6   :  { %v15393_v11 = vcombine.high %v1357_v2, %v1361_v6  ;;  %v1221_v10 = vld [vmem:[#allocation5 + $0x2040] sm:$0xff]  ;;  %9869 = vmatprep.subr.bf16.mxu0 %v15265_v5  ;;  %v15392_v18 = vcombine.low %v1357_v2, %v1361_v6 }
 0x1a7   :  { %v1225_v12 = vld [vmem:[#allocation5 + $0x2060] sm:$0xff]  ;;  %9870 = vmatpush1.bf16.msra.mxu0 %v15264_v17 }
 0x1a8   :  { %v1349_v14 = vld [vmem:[#allocation5 + $0x2440] sm:$0xff]  ;;  %v15257_v21 = vcombine.high %v1221_v10, %v1225_v12  ;;  %9910 = vmatprep.subr.bf16.mxu1 %v15393_v11  ;;  %v15256_v54 = vcombine.low %v1221_v10, %v1225_v12 }
 0x1a9   :  { %v1353_v15 = vld [vmem:[#allocation5 + $0x2460] sm:$0xff]  ;;  %9911 = vmatpush1.bf16.msra.mxu1 %v15392_v18 }
 0x1aa   :  { %v15385_v23 = vcombine.high %v1349_v14, %v1353_v15  ;;  %v1213_v25 = vld [vmem:[#allocation5 + $0x2000] sm:$0xff]  ;;  %9871 = vmatprep.subr.bf16.mxu0 %v15257_v21  ;;  %v15384_v30 = vcombine.low %v1349_v14, %v1353_v15 }
 0x1ab   :  { %v1217_v53 = vld [vmem:[#allocation5 + $0x2020] sm:$0xff]  ;;  %9872 = vmatpush1.bf16.msra.mxu0 %v15256_v54 }
 0x1ac   :  { %v1341_v26 = vld [vmem:[#allocation5 + $0x2400] sm:$0xff]  ;;  %v15249_v32 = vcombine.high %v1213_v25, %v1217_v53  ;;  %9912 = vmatprep.subr.bf16.mxu1 %v15385_v23  ;;  %v15248_v44 = vcombine.low %v1213_v25, %v1217_v53 }
 0x1ad   :  { %v1345_v27 = vld [vmem:[#allocation5 + $0x2420] sm:$0xff]  ;;  %9913 = vmatpush1.bf16.msra.mxu1 %v15384_v30 }
 0x1ae   :  { %v15377_v33 = vcombine.high %v1341_v26, %v1345_v27  ;;  %v1333_v35 = vld [vmem:[#allocation5 + $0x23c0] sm:$0xff]  ;;  %9873 = vmatprep.subr.bf16.mxu0 %v15249_v32  ;;  %v15376_v45 = vcombine.low %v1341_v26, %v1345_v27 }
 0x1af   :  { %v1337_v36 = vld [vmem:[#allocation5 + $0x23e0] sm:$0xff]  ;;  %9874 = vmatpush1.bf16.msra.mxu0 %v15248_v44 }
 0x1b0   :  { %v1461_v37 = vld [vmem:[#allocation5 + $0x27c0] sm:$0xff]  ;;  %v15369_v46 = vcombine.high %v1333_v35, %v1337_v36  ;;  %9914 = vmatprep.subr.bf16.mxu1 %v15377_v33  ;;  %v15368_v56 = vcombine.low %v1333_v35, %v1337_v36 }
 0x1b1   :  { %v1465_v41 = vld [vmem:[#allocation5 + $0x27e0] sm:$0xff]  ;;  %9915 = vmatpush1.bf16.msra.mxu1 %v15376_v45 }
 0x1b2   :  { %v15497_v47 = vcombine.high %v1461_v37, %v1465_v41  ;;  %v1325_v48 = vld [vmem:[#allocation5 + $0x2380] sm:$0xff]  ;;  %9875 = vmatprep.subr.bf16.mxu0 %v15369_v46  ;;  %v15496_v57 = vcombine.low %v1461_v37, %v1465_v41 }
 0x1b3   :  { %v1329_v49 = vld [vmem:[#allocation5 + $0x23a0] sm:$0xff]  ;;  %9876 = vmatpush2.bf16.msra.mxu0 %v15368_v56 }
 0x1b4   :  { %v1453_v51 = vld [vmem:[#allocation5 + $0x2780] sm:$0xff]  ;;  %v15361_v61 = vcombine.high %v1325_v48, %v1329_v49  ;;  %9916 = vmatprep.subr.bf16.mxu1 %v15497_v47  ;;  %v15360_v4 = vcombine.low %v1325_v48, %v1329_v49 }
 0x1b5   :  { %v1457_v52 = vld [vmem:[#allocation5 + $0x27a0] sm:$0xff]  ;;  %9917 = vmatpush2.bf16.msra.mxu1 %v15496_v57 }
 0x1b6   :  { %v15489_v63 = vcombine.high %v1453_v51, %v1457_v52  ;;  %v1317_v1 = vld [vmem:[#allocation5 + $0x2340] sm:$0xff]  ;;  %9877 = vmatprep.subr.bf16.mxu0 %v15361_v61  ;;  %v15488_v5 = vcombine.low %v1453_v51, %v1457_v52 }
 0x1b7   :  { %v1321_v2 = vld [vmem:[#allocation5 + $0x2360] sm:$0xff]  ;;  %9878 = vmatpush2.bf16.msra.mxu0 %v15360_v4 }
 0x1b8   :  { %v1445_v6 = vld [vmem:[#allocation5 + $0x2740] sm:$0xff]  ;;  %v15353_v11 = vcombine.high %v1317_v1, %v1321_v2  ;;  %9918 = vmatprep.subr.bf16.mxu1 %v15489_v63  ;;  %v15352_v18 = vcombine.low %v1317_v1, %v1321_v2 }
 0x1b9   :  { %v1449_v3 = vld [vmem:[#allocation5 + $0x2760] sm:$0xff]  ;;  %9919 = vmatpush2.bf16.msra.mxu1 %v15488_v5 }
 0x1ba   :  { %v15481_v10 = vcombine.high %v1445_v6, %v1449_v3  ;;  %v1309_v12 = vld [vmem:[#allocation5 + $0x2300] sm:$0xff]  ;;  %9879 = vmatprep.subr.bf16.mxu0 %v15353_v11  ;;  %v15480_v21 = vcombine.low %v1445_v6, %v1449_v3 }
 0x1bb   :  { %v1313_v14 = vld [vmem:[#allocation5 + $0x2320] sm:$0xff]  ;;  %9880 = vmatpush2.bf16.msra.mxu0 %v15352_v18 }
 0x1bc   :  { %v1437_v15 = vld [vmem:[#allocation5 + $0x2700] sm:$0xff]  ;;  %v15345_v23 = vcombine.high %v1309_v12, %v1313_v14  ;;  %9920 = vmatprep.subr.bf16.mxu1 %v15481_v10  ;;  %v15344_v30 = vcombine.low %v1309_v12, %v1313_v14 }
 0x1bd   :  { %v1441_v17 = vld [vmem:[#allocation5 + $0x2720] sm:$0xff]  ;;  %9921 = vmatpush2.bf16.msra.mxu1 %v15480_v21 }
 0x1be   :  { %v15473_v25 = vcombine.high %v1437_v15, %v1441_v17  ;;  %v1301_v53 = vld [vmem:[#allocation5 + $0x22c0] sm:$0xff]  ;;  %9881 = vmatprep.subr.bf16.mxu0 %v15345_v23  ;;  %v15472_v32 = vcombine.low %v1437_v15, %v1441_v17 }
 0x1bf   :  { %v1305_v26 = vld [vmem:[#allocation5 + $0x22e0] sm:$0xff]  ;;  %9882 = vmatpush2.bf16.msra.mxu0 %v15344_v30 }
 0x1c0   :  { %v1429_v27 = vld [vmem:[#allocation5 + $0x26c0] sm:$0xff]  ;;  %v15337_v33 = vcombine.high %v1301_v53, %v1305_v26  ;;  %9922 = vmatprep.subr.bf16.mxu1 %v15473_v25  ;;  %v15336_v45 = vcombine.low %v1301_v53, %v1305_v26 }
 0x1c1   :  { %v1433_v54 = vld [vmem:[#allocation5 + $0x26e0] sm:$0xff]  ;;  %9923 = vmatpush2.bf16.msra.mxu1 %v15472_v32 }
 0x1c2   :  { %v15465_v35 = vcombine.high %v1429_v27, %v1433_v54  ;;  %v1293_v36 = vld [vmem:[#allocation5 + $0x2280] sm:$0xff]  ;;  %9883 = vmatprep.subr.bf16.mxu0 %v15337_v33  ;;  %v15464_v46 = vcombine.low %v1429_v27, %v1433_v54  ;;  %v17205_v54 = vcombine.low %v17177_v60, %v17177_v60  ;;  %v17207_v33 = vld [vmem:[#allocation2 + $0x50] sm:$0xff] }
 0x1c3   :  { %v1297_v37 = vld [vmem:[#allocation5 + $0x22a0] sm:$0xff]  ;;  %9884 = vmatpush2.bf16.msra.mxu0 %v15336_v45 }
 0x1c4   :  { %v1421_v41 = vld [vmem:[#allocation5 + $0x2680] sm:$0xff]  ;;  %v15329_v47 = vcombine.high %v1293_v36, %v1297_v37  ;;  %9924 = vmatprep.subr.bf16.mxu1 %v15465_v35  ;;  %v15328_v57 = vcombine.low %v1293_v36, %v1297_v37  ;;  %v17211_v35 = vcombine.low %v17184_v0, %v17184_v0  ;;  %v17213_v37 = vld [vmem:[#allocation2 + $0x58] sm:$0xff] }
 0x1c5   :  { %v1425_v44 = vld [vmem:[#allocation5 + $0x26a0] sm:$0xff]  ;;  %9925 = vmatpush2.bf16.msra.mxu1 %v15464_v46 }
 0x1c6   :  { %v15457_v48 = vcombine.high %v1421_v41, %v1425_v44  ;;  %v1285_v49 = vld [vmem:[#allocation5 + $0x2240] sm:$0xff]  ;;  %9885 = vmatprep.subr.bf16.mxu0 %v15329_v47  ;;  %v15456_v61 = vcombine.low %v1421_v41, %v1425_v44  ;;  %v17217_v47 = vcombine.high %v17207_v33, %v17207_v33 }
 0x1c7   :  { %v1289_v51 = vld [vmem:[#allocation5 + $0x2260] sm:$0xff]  ;;  %9886 = vmatpush2.bf16.msra.mxu0 %v15328_v57 }
 0x1c8   :  { %v1413_v52 = vld [vmem:[#allocation5 + $0x2640] sm:$0xff]  ;;  %v15321_v63 = vcombine.high %v1285_v49, %v1289_v51  ;;  %9926 = vmatprep.subr.bf16.mxu1 %v15457_v48  ;;  %v15320_v5 = vcombine.low %v1285_v49, %v1289_v51  ;;  %v17222_v51 = vcombine.high %v17213_v37, %v17213_v37 }
 0x1c9   :  { %v1417_v56 = vld [vmem:[#allocation5 + $0x2660] sm:$0xff]  ;;  %9927 = vmatpush2.bf16.msra.mxu1 %v15456_v61 }
 0x1ca   :  { %v15449_v1 = vcombine.high %v1413_v52, %v1417_v56  ;;  %v1277_v2 = vld [vmem:[#allocation5 + $0x2200] sm:$0xff]  ;;  %9887 = vmatprep.subr.bf16.mxu0 %v15321_v63  ;;  %v15448_v11 = vcombine.low %v1413_v52, %v1417_v56 }
 0x1cb   :  { %v1281_v6 = vld [vmem:[#allocation5 + $0x2220] sm:$0xff]  ;;  %9888 = vmatpush2.bf16.msra.mxu0 %v15320_v5 }
 0x1cc   :  { %v1405_v3 = vld [vmem:[#allocation5 + $0x2600] sm:$0xff]  ;;  %v15313_v10 = vcombine.high %v1277_v2, %v1281_v6  ;;  %9928 = vmatprep.subr.bf16.mxu1 %v15449_v1  ;;  %v15312_v21 = vcombine.low %v1277_v2, %v1281_v6 }
 0x1cd   :  { %v1409_v4 = vld [vmem:[#allocation5 + $0x2620] sm:$0xff]  ;;  %9929 = vmatpush2.bf16.msra.mxu1 %v15448_v11 }
 0x1ce   :  { %v15441_v12 = vcombine.high %v1405_v3, %v1409_v4  ;;  %v1525_v14 = vld [vmem:[#allocation5 + $0x29c0] sm:$0xff]  ;;  %9889 = vmatprep.subr.bf16.mxu0 %v15313_v10  ;;  %v15440_v23 = vcombine.low %v1405_v3, %v1409_v4 }
 0x1cf   :  { %v1529_v15 = vld [vmem:[#allocation5 + $0x29e0] sm:$0xff]  ;;  %9890 = vmatpush2.bf16.msra.mxu0 %v15312_v21  ;;  %v9647_v48 = vpop.f32.mrf.mxu0 }
 0x1d0   :  { %v1653_v17 = vld [vmem:[#allocation5 + $0x2dc0] sm:$0xff]  ;;  %v15561_v25 = vcombine.high %v1525_v14, %v1529_v15  ;;  %9930 = vmatprep.subr.bf16.mxu1 %v15441_v12  ;;  %v15560_v36 = vcombine.low %v1525_v14, %v1529_v15  ;;  %v9648_v52 = vadd.f32 %v9647_v48, %v17197_v24 }
 0x1d1   :  { %v1657_v18 = vld [vmem:[#allocation5 + $0x2de0] sm:$0xff]  ;;  %9931 = vmatpush2.bf16.msra.mxu1 %v15440_v23  ;;  %v9688_v56 = vpop.f32.mrf.mxu1  ;;  %v9649_v61 = vpop.f32.mrf.mxu0 }
 0x1d2   :  { %v15689_v53 = vcombine.high %v1653_v17, %v1657_v18  ;;  %v1517_v26 = vld [vmem:[#allocation5 + $0x2980] sm:$0xff]  ;;  %9941 = vmatprep.subr.bf16.mxu0 %v15561_v25  ;;  %v15688_v41 = vcombine.low %v1653_v17, %v1657_v18  ;;  %9892 = vmatmul.mubr.bf16.vlgmr.msra.gmra.mxu0 %v17205_v54  ;;  %v17226_v2 = vadd.f32 %v9688_v56, %v9648_v52 }
 0x1d3   :  { %v1521_v27 = vld [vmem:[#allocation5 + $0x29a0] sm:$0xff]  ;;  %9942 = vmatpush1.bf16.msra.mxu0 %v15560_v36  ;;  %v9650_v6 = vadd.f32 %v9649_v61, %v17201_v34  ;;  %v9690_v3 = vpop.f32.mrf.mxu1  ;;  %9973 = vmatprep.mubr.bf16.mxu0 %v17217_v47  ;;  %v9651_v24 = vpop.f32.mrf.mxu0 }
 0x1d4   :  { %v1645_v30 = vld [vmem:[#allocation5 + $0x2d80] sm:$0xff]  ;;  %v15553_v44 = vcombine.high %v1517_v26, %v1521_v27  ;;  %9982 = vmatprep.subr.bf16.mxu1 %v15689_v53  ;;  %9933 = vmatmul.mubr.bf16.vlgmr.msra.gmra.mxu1 %v17211_v35  ;;  %v15552_v57 = vcombine.low %v1517_v26, %v1521_v27 }
 0x1d5   :  { %v1649_v32 = vld [vmem:[#allocation5 + $0x2da0] sm:$0xff]  ;;  %9983 = vmatpush1.bf16.msra.mxu1 %v15688_v41  ;;  %10014 = vmatprep.mubr.bf16.mxu1 %v17222_v51  ;;  %v17231_v14 = vadd.f32 %v9690_v3, %v9650_v6  ;;  %v9692_v15 = vpop.f32.mrf.mxu1  ;;  %v9652_v18 = vpop.f32.mrf.mxu0 }
 0x1d6   :  { %v15681_v45 = vcombine.high %v1645_v30, %v1649_v32  ;;  %v1509_v60 = vld [vmem:[#allocation5 + $0x2940] sm:$0xff]  ;;  %9943 = vmatprep.subr.bf16.mxu0 %v15553_v44  ;;  %v15680_v63 = vcombine.low %v1645_v30, %v1649_v32 }
 0x1d7   :  { %v1513_v46 = vld [vmem:[#allocation5 + $0x2960] sm:$0xff]  ;;  %9944 = vmatpush1.bf16.msra.mxu0 %v15552_v57  ;;  %v9693_v23 = vpop.f32.mrf.mxu1 }
 0x1d8   :  { %v1637_v0 = vld [vmem:[#allocation5 + $0x2d40] sm:$0xff]  ;;  %v15545_v1 = vcombine.high %v1509_v60, %v1513_v46  ;;  %9984 = vmatprep.subr.bf16.mxu1 %v15681_v45  ;;  %v15544_v17 = vcombine.low %v1509_v60, %v1513_v46 }
 0x1d9   :  { %v1641_v49 = vld [vmem:[#allocation5 + $0x2d60] sm:$0xff]  ;;  %9985 = vmatpush1.bf16.msra.mxu1 %v15680_v63 }
 0x1da   :  { %v15673_v4 = vcombine.high %v1637_v0, %v1641_v49  ;;  %v1501_v5 = vld [vmem:[#allocation5 + $0x2900] sm:$0xff]  ;;  %9945 = vmatprep.subr.bf16.mxu0 %v15545_v1  ;;  %v15672_v34 = vcombine.low %v1637_v0, %v1641_v49 }
 0x1db   :  { %v1505_v11 = vld [vmem:[#allocation5 + $0x2920] sm:$0xff]  ;;  %9946 = vmatpush1.bf16.msra.mxu0 %v15544_v17 }
 0x1dc   :  { %v1629_v10 = vld [vmem:[#allocation5 + $0x2d00] sm:$0xff]  ;;  %v15537_v21 = vcombine.high %v1501_v5, %v1505_v11  ;;  %9986 = vmatprep.subr.bf16.mxu1 %v15673_v4  ;;  %v15536_v32 = vcombine.low %v1501_v5, %v1505_v11 }
 0x1dd   :  { %v1633_v12 = vld [vmem:[#allocation5 + $0x2d20] sm:$0xff]  ;;  %9987 = vmatpush1.bf16.msra.mxu1 %v15672_v34 }
 0x1de   :  { %v15665_v25 = vcombine.high %v1629_v10, %v1633_v12  ;;  %v1493_v53 = vld [vmem:[#allocation5 + $0x28c0] sm:$0xff]  ;;  %9947 = vmatprep.subr.bf16.mxu0 %v15537_v21  ;;  %v15664_v36 = vcombine.low %v1629_v10, %v1633_v12 }
 0x1df   :  { %v1497_v26 = vld [vmem:[#allocation5 + $0x28e0] sm:$0xff]  ;;  %9948 = vmatpush1.bf16.msra.mxu0 %v15536_v32 }
 0x1e0   :  { %v1621_v27 = vld [vmem:[#allocation5 + $0x2cc0] sm:$0xff]  ;;  %v15529_v41 = vcombine.high %v1493_v53, %v1497_v26  ;;  %9988 = vmatprep.subr.bf16.mxu1 %v15665_v25  ;;  %v15528_v0 = vcombine.low %v1493_v53, %v1497_v26 }
 0x1e1   :  { %v1625_v30 = vld [vmem:[#allocation5 + $0x2ce0] sm:$0xff]  ;;  %9989 = vmatpush1.bf16.msra.mxu1 %v15664_v36 }
 0x1e2   :  { %v15657_v44 = vcombine.high %v1621_v27, %v1625_v30  ;;  %v1485_v45 = vld [vmem:[#allocation5 + $0x2880] sm:$0xff]  ;;  %9949 = vmatprep.subr.bf16.mxu0 %v15529_v41  ;;  %v15656_v49 = vcombine.low %v1621_v27, %v1625_v30 }
 0x1e3   :  { %v1489_v60 = vld [vmem:[#allocation5 + $0x28a0] sm:$0xff]  ;;  %9950 = vmatpush1.bf16.msra.mxu0 %v15528_v0 }
 0x1e4   :  { %v1613_v46 = vld [vmem:[#allocation5 + $0x2c80] sm:$0xff]  ;;  %v15521_v52 = vcombine.high %v1485_v45, %v1489_v60  ;;  %9990 = vmatprep.subr.bf16.mxu1 %v15657_v44  ;;  %v15520_v6 = vcombine.low %v1485_v45, %v1489_v60 }
 0x1e5   :  { %v1617_v48 = vld [vmem:[#allocation5 + $0x2ca0] sm:$0xff]  ;;  %9991 = vmatpush1.bf16.msra.mxu1 %v15656_v49 }
 0x1e6   :  { %v15649_v56 = vcombine.high %v1613_v46, %v1617_v48  ;;  %v1477_v57 = vld [vmem:[#allocation5 + $0x2840] sm:$0xff]  ;;  %9951 = vmatprep.subr.bf16.mxu0 %v15521_v52  ;;  %v15648_v3 = vcombine.low %v1613_v46, %v1617_v48 }
 0x1e7   :  { %v1481_v61 = vld [vmem:[#allocation5 + $0x2860] sm:$0xff]  ;;  %9952 = vmatpush1.bf16.msra.mxu0 %v15520_v6 }
 0x1e8   :  { %v1605_v63 = vld [vmem:[#allocation5 + $0x2c40] sm:$0xff]  ;;  %v15513_v4 = vcombine.high %v1477_v57, %v1481_v61  ;;  %9992 = vmatprep.subr.bf16.mxu1 %v15649_v56  ;;  %v15512_v15 = vcombine.low %v1477_v57, %v1481_v61 }
 0x1e9   :  { %v1609_v1 = vld [vmem:[#allocation5 + $0x2c60] sm:$0xff]  ;;  %9993 = vmatpush1.bf16.msra.mxu1 %v15648_v3 }
 0x1ea   :  { %v15641_v5 = vcombine.high %v1605_v63, %v1609_v1  ;;  %v1469_v11 = vld [vmem:[#allocation5 + $0x2800] sm:$0xff]  ;;  %9953 = vmatprep.subr.bf16.mxu0 %v15513_v4  ;;  %v15640_v17 = vcombine.low %v1605_v63, %v1609_v1 }
 0x1eb   :  { %v1473_v24 = vld [vmem:[#allocation5 + $0x2820] sm:$0xff]  ;;  %9954 = vmatpush1.bf16.msra.mxu0 %v15512_v15 }
 0x1ec   :  { %v1597_v10 = vld [vmem:[#allocation5 + $0x2c00] sm:$0xff]  ;;  %v15505_v18 = vcombine.high %v1469_v11, %v1473_v24  ;;  %9994 = vmatprep.subr.bf16.mxu1 %v15641_v5  ;;  %v15504_v26 = vcombine.low %v1469_v11, %v1473_v24 }
 0x1ed   :  { %v1601_v12 = vld [vmem:[#allocation5 + $0x2c20] sm:$0xff]  ;;  %9995 = vmatpush1.bf16.msra.mxu1 %v15640_v17 }
 0x1ee   :  { %v15633_v34 = vcombine.high %v1597_v10, %v1601_v12  ;;  %v1589_v21 = vld [vmem:[#allocation5 + $0x2bc0] sm:$0xff]  ;;  %9955 = vmatprep.subr.bf16.mxu0 %v15505_v18  ;;  %v15632_v27 = vcombine.low %v1597_v10, %v1601_v12 }
 0x1ef   :  { %v1593_v23 = vld [vmem:[#allocation5 + $0x2be0] sm:$0xff]  ;;  %9956 = vmatpush1.bf16.msra.mxu0 %v15504_v26 }
 0x1f0   :  { %v1717_v25 = vld [vmem:[#allocation5 + $0x2fc0] sm:$0xff]  ;;  %v15625_v30 = vcombine.high %v1589_v21, %v1593_v23  ;;  %9996 = vmatprep.subr.bf16.mxu1 %v15633_v34  ;;  %v15624_v60 = vcombine.low %v1589_v21, %v1593_v23 }
 0x1f1   :  { %v1721_v53 = vld [vmem:[#allocation5 + $0x2fe0] sm:$0xff]  ;;  %9997 = vmatpush1.bf16.msra.mxu1 %v15632_v27 }
 0x1f2   :  { %v15753_v32 = vcombine.high %v1717_v25, %v1721_v53  ;;  %v1581_v36 = vld [vmem:[#allocation5 + $0x2b80] sm:$0xff]  ;;  %9957 = vmatprep.subr.bf16.mxu0 %v15625_v30  ;;  %v15752_v46 = vcombine.low %v1717_v25, %v1721_v53 }
 0x1f3   :  { %v1585_v41 = vld [vmem:[#allocation5 + $0x2ba0] sm:$0xff]  ;;  %9958 = vmatpush2.bf16.msra.mxu0 %v15624_v60 }
 0x1f4   :  { %v1709_v44 = vld [vmem:[#allocation5 + $0x2f80] sm:$0xff]  ;;  %v15617_v48 = vcombine.high %v1581_v36, %v1585_v41  ;;  %9998 = vmatprep.subr.bf16.mxu1 %v15753_v32  ;;  %v15616_v61 = vcombine.low %v1581_v36, %v1585_v41 }
 0x1f5   :  { %v1713_v45 = vld [vmem:[#allocation5 + $0x2fa0] sm:$0xff]  ;;  %9999 = vmatpush2.bf16.msra.mxu1 %v15752_v46 }
 0x1f6   :  { %v15745_v0 = vcombine.high %v1709_v44, %v1713_v45  ;;  %v1573_v49 = vld [vmem:[#allocation5 + $0x2b40] sm:$0xff]  ;;  %9959 = vmatprep.subr.bf16.mxu0 %v15617_v48  ;;  %v15744_v63 = vcombine.low %v1709_v44, %v1713_v45 }
 0x1f7   :  { %v1577_v52 = vld [vmem:[#allocation5 + $0x2b60] sm:$0xff]  ;;  %9960 = vmatpush2.bf16.msra.mxu0 %v15616_v61 }
 0x1f8   :  { %v1701_v56 = vld [vmem:[#allocation5 + $0x2f40] sm:$0xff]  ;;  %v15609_v1 = vcombine.high %v1573_v49, %v1577_v52  ;;  %10000 = vmatprep.subr.bf16.mxu1 %v15745_v0  ;;  %v15608_v24 = vcombine.low %v1573_v49, %v1577_v52 }
 0x1f9   :  { %v1705_v57 = vld [vmem:[#allocation5 + $0x2f60] sm:$0xff]  ;;  %10001 = vmatpush2.bf16.msra.mxu1 %v15744_v63 }
 0x1fa   :  { %v15737_v6 = vcombine.high %v1701_v56, %v1705_v57  ;;  %v1565_v3 = vld [vmem:[#allocation5 + $0x2b00] sm:$0xff]  ;;  %9961 = vmatprep.subr.bf16.mxu0 %v15609_v1  ;;  %v15736_v10 = vcombine.low %v1701_v56, %v1705_v57 }
 0x1fb   :  { %v1569_v4 = vld [vmem:[#allocation5 + $0x2b20] sm:$0xff]  ;;  %9962 = vmatpush2.bf16.msra.mxu0 %v15608_v24 }
 0x1fc   :  { %v1693_v5 = vld [vmem:[#allocation5 + $0x2f00] sm:$0xff]  ;;  %v15601_v12 = vcombine.high %v1565_v3, %v1569_v4  ;;  %10002 = vmatprep.subr.bf16.mxu1 %v15737_v6  ;;  %v15600_v23 = vcombine.low %v1565_v3, %v1569_v4 }
 0x1fd   :  { %v1697_v11 = vld [vmem:[#allocation5 + $0x2f20] sm:$0xff]  ;;  %10003 = vmatpush2.bf16.msra.mxu1 %v15736_v10  ;;  %v246_v10 = vld [vmem:[#allocation5 + $0x1c8] sm:$0xff] }
 0x1fe   :  { %v15729_v15 = vcombine.high %v1693_v5, %v1697_v11  ;;  %v1557_v17 = vld [vmem:[#allocation5 + $0x2ac0] sm:$0xff]  ;;  %9963 = vmatprep.subr.bf16.mxu0 %v15601_v12  ;;  %v15728_v25 = vcombine.low %v1693_v5, %v1697_v11  ;;  %v250_v12 = vld [vmem:[#allocation5 + $0x1e8] sm:$0xff] }
 0x1ff   :  { %v1561_v18 = vld [vmem:[#allocation5 + $0x2ae0] sm:$0xff]  ;;  %9964 = vmatpush2.bf16.msra.mxu0 %v15600_v23 }
 0x200   :  { %v1685_v34 = vld [vmem:[#allocation5 + $0x2ec0] sm:$0xff]  ;;  %v15593_v53 = vcombine.high %v1557_v17, %v1561_v18  ;;  %10004 = vmatprep.subr.bf16.mxu1 %v15729_v15  ;;  %v15592_v41 = vcombine.low %v1557_v17, %v1561_v18  ;;  %v374_v15 = vld [vmem:[#allocation5 + $0x5c8] sm:$0xff] }
 0x201   :  { %v1689_v21 = vld [vmem:[#allocation5 + $0x2ee0] sm:$0xff]  ;;  %10005 = vmatpush2.bf16.msra.mxu1 %v15728_v25  ;;  %v378_v17 = vld [vmem:[#allocation5 + $0x5e8] sm:$0xff] }
 0x202   :  { %v15721_v26 = vcombine.high %v1685_v34, %v1689_v21  ;;  %v1549_v27 = vld [vmem:[#allocation5 + $0x2a80] sm:$0xff]  ;;  %9965 = vmatprep.subr.bf16.mxu0 %v15593_v53  ;;  %v15720_v44 = vcombine.low %v1685_v34, %v1689_v21  ;;  %v14283_v21 = vcombine.high %v246_v10, %v250_v12  ;;  %v14411_v23 = vcombine.high %v374_v15, %v378_v17  ;;  %v238_v25 = vld [vmem:[#allocation5 + $0x188] sm:$0xff] }
 0x203   :  { %v1553_v30 = vld [vmem:[#allocation5 + $0x2aa0] sm:$0xff]  ;;  %9966 = vmatpush2.bf16.msra.mxu0 %v15592_v41  ;;  %v242_v53 = vld [vmem:[#allocation5 + $0x1a8] sm:$0xff]  ;;  %v14410_v41 = vcombine.low %v374_v15, %v378_v17 }
 0x204   :  { %v1677_v32 = vld [vmem:[#allocation5 + $0x2e80] sm:$0xff]  ;;  %v15585_v45 = vcombine.high %v1549_v27, %v1553_v30  ;;  %10006 = vmatprep.subr.bf16.mxu1 %v15721_v26  ;;  %v15584_v52 = vcombine.low %v1549_v27, %v1553_v30  ;;  %v17235_v26 = vcombine.low %v17207_v33, %v17207_v33  ;;  %v366_v27 = vld [vmem:[#allocation5 + $0x588] sm:$0xff] }
 0x205   :  { %v1681_v36 = vld [vmem:[#allocation5 + $0x2ea0] sm:$0xff]  ;;  %10007 = vmatpush2.bf16.msra.mxu1 %v15720_v44  ;;  %v370_v30 = vld [vmem:[#allocation5 + $0x5a8] sm:$0xff]  ;;  %v14275_v44 = vcombine.high %v238_v25, %v242_v53 }
 0x206   :  { %v15713_v60 = vcombine.high %v1677_v32, %v1681_v36  ;;  %v1541_v46 = vld [vmem:[#allocation5 + $0x2a40] sm:$0xff]  ;;  %9967 = vmatprep.subr.bf16.mxu0 %v15585_v45  ;;  %v15712_v56 = vcombine.low %v1677_v32, %v1681_v36  ;;  %v17239_v32 = vcombine.low %v17213_v37, %v17213_v37  ;;  %v14282_v36 = vcombine.low %v246_v10, %v250_v12  ;;  %v358_v33 = vld [vmem:[#allocation5 + $0x548] sm:$0xff] }
 0x207   :  { %v1545_v48 = vld [vmem:[#allocation5 + $0x2a60] sm:$0xff]  ;;  %9968 = vmatpush2.bf16.msra.mxu0 %v15584_v52  ;;  %v14403_v45 = vcombine.high %v366_v27, %v370_v30  ;;  %v14274_v37 = vcombine.low %v238_v25, %v242_v53  ;;  %v218_v25 = vld [vmem:[#allocation5 + $0xe8] sm:$0xff] }
 0x208   :  { %v1669_v0 = vld [vmem:[#allocation5 + $0x2e40] sm:$0xff]  ;;  %v15577_v57 = vcombine.high %v1541_v46, %v1545_v48  ;;  %10008 = vmatprep.subr.bf16.mxu1 %v15713_v60  ;;  %v15576_v4 = vcombine.low %v1541_v46, %v1545_v48  ;;  %v230_v60 = vld [vmem:[#allocation5 + $0x148] sm:$0xff] }
 0x209   :  { %v1673_v49 = vld [vmem:[#allocation5 + $0x2e60] sm:$0xff]  ;;  %10009 = vmatpush2.bf16.msra.mxu1 %v15712_v56  ;;  %v234_v46 = vld [vmem:[#allocation5 + $0x168] sm:$0xff] }
 0x20a   :  { %v15705_v61 = vcombine.high %v1669_v0, %v1673_v49  ;;  %v1533_v63 = vld [vmem:[#allocation5 + $0x2a00] sm:$0xff]  ;;  %9969 = vmatprep.subr.bf16.mxu0 %v15577_v57  ;;  %v15704_v5 = vcombine.low %v1669_v0, %v1673_v49  ;;  %v362_v0 = vld [vmem:[#allocation5 + $0x568] sm:$0xff]  ;;  %v14402_v57 = vcombine.low %v366_v27, %v370_v30  ;;  %v14266_v15 = vcombine.low %v230_v60, %v234_v46 }
 0x20b   :  { %v1537_v1 = vld [vmem:[#allocation5 + $0x2a20] sm:$0xff]  ;;  %9970 = vmatpush2.bf16.msra.mxu0 %v15576_v4  ;;  %v222_v4 = vld [vmem:[#allocation5 + $0x108] sm:$0xff] }
 0x20c   :  { %v1661_v6 = vld [vmem:[#allocation5 + $0x2e00] sm:$0xff]  ;;  %v15569_v11 = vcombine.high %v1533_v63, %v1537_v1  ;;  %10010 = vmatprep.subr.bf16.mxu1 %v15705_v61  ;;  %v15568_v18 = vcombine.low %v1533_v63, %v1537_v1  ;;  %v14267_v61 = vcombine.high %v230_v60, %v234_v46  ;;  %v342_v53 = vld [vmem:[#allocation5 + $0x4c8] sm:$0xff] }
 0x20d   :  { %v1665_v3 = vld [vmem:[#allocation5 + $0x2e20] sm:$0xff]  ;;  %10011 = vmatpush2.bf16.msra.mxu1 %v15704_v5  ;;  %v226_v5 = vld [vmem:[#allocation5 + $0x128] sm:$0xff] }
 0x20e   :  { %v15697_v24 = vcombine.high %v1661_v6, %v1665_v3  ;;  %9971 = vmatprep.subr.bf16.mxu0 %v15569_v11  ;;  %v15696_v34 = vcombine.low %v1661_v6, %v1665_v3  ;;  %v14395_v3 = vcombine.high %v358_v33, %v362_v0  ;;  %v350_v11 = vld [vmem:[#allocation5 + $0x508] sm:$0xff]  ;;  %v14258_v30 = vcombine.low %v222_v4, %v226_v5 }
 0x20f   :  { %9972 = vmatpush2.bf16.msra.mxu0 %v15568_v18  ;;  %v14259_v18 = vcombine.high %v222_v4, %v226_v5  ;;  %v346_v27 = vld [vmem:[#allocation5 + $0x4e8] sm:$0xff] }
 0x210   :  { %10012 = vmatprep.subr.bf16.mxu1 %v15697_v24  ;;  %10023 = vmatprep.subr.bf16.mxu0 %v14283_v21  ;;  %v9729_v48 = vpop.f32.mrf.mxu0  ;;  %v354_v24 = vld [vmem:[#allocation5 + $0x528] sm:$0xff] }
 0x211   :  { %10013 = vmatpush2.bf16.msra.mxu1 %v15696_v34  ;;  %v9730_v49 = vadd.f32 %v9729_v48, %v17226_v2  ;;  %v14387_v21 = vcombine.high %v350_v11, %v354_v24  ;;  %v210_v60 = vld [vmem:[#allocation5 + $0xa8] sm:$0xff] }
 0x212   :  { %10064 = vmatprep.subr.bf16.mxu1 %v14411_v23  ;;  %9974 = vmatmul.mubr.bf16.vlgmr.msra.gmra.mxu0 %v17235_v26  ;;  %v9770_v52 = vpop.f32.mrf.mxu1  ;;  %v9731_v56 = vpop.f32.mrf.mxu0  ;;  %v214_v23 = vld [vmem:[#allocation5 + $0xc8] sm:$0xff] }
 0x213   :  { %10024 = vmatpush1.bf16.msra.mxu0 %v14282_v36  ;;  %v17244_v63 = vadd.f32 %v9770_v52, %v9730_v49  ;;  %v9732_v1 = vadd.f32 %v9731_v56, %v17231_v14  ;;  %10055 = vmatprep.mubr.bf16.mxu0 %v17085_v58  ;;  %v14394_v14 = vcombine.low %v358_v33, %v362_v0  ;;  %v334_v46 = vld [vmem:[#allocation5 + $0x488] sm:$0xff] }
 0x214   :  { %10015 = vmatmul.mubr.bf16.vlgmr.msra.gmra.mxu1 %v17239_v32  ;;  %10025 = vmatprep.subr.bf16.mxu0 %v14275_v44  ;;  %v9772_v6 = vpop.f32.mrf.mxu1  ;;  %v9733_v2 = vpop.f32.mrf.mxu0  ;;  %v14386_v36 = vcombine.low %v350_v11, %v354_v24  ;;  %v14379_v44 = vcombine.high %v342_v53, %v346_v27  ;;  %v338_v48 = vld [vmem:[#allocation5 + $0x4a8] sm:$0xff]  ;;  %v14250_v33 = vcombine.low %v214_v23, %v218_v25 }
 0x215   :  { %10065 = vmatpush1.bf16.msra.mxu1 %v14410_v41  ;;  %10096 = vmatprep.mubr.bf16.mxu1 %v17089_v59  ;;  %v17249_v10 = vadd.f32 %v9772_v6, %v9732_v1  ;;  %v14251_v41 = vcombine.high %v214_v23, %v218_v25  ;;  %v14378_v0 = vcombine.low %v342_v53, %v346_v27  ;;  %v202_v56 = vld [vmem:[#allocation5 + $0x68] sm:$0xff] }
 0x216   :  { %10066 = vmatprep.subr.bf16.mxu1 %v14403_v45  ;;  %v9774_v12 = vpop.f32.mrf.mxu1  ;;  %v9734_v17 = vpop.f32.mrf.mxu0  ;;  %v206_v45 = vld [vmem:[#allocation5 + $0x88] sm:$0xff]  ;;  %v14371_v52 = vcombine.high %v334_v46, %v338_v48  ;;  %v14370_v6 = vcombine.low %v334_v46, %v338_v48 }
 0x217   :  { %10026 = vmatpush1.bf16.msra.mxu0 %v14274_v37  ;;  %v14243_v49 = vcombine.high %v206_v45, %v210_v60  ;;  %v198_v37 = vld [vmem:[#allocation5 + $0x48] sm:$0xff]  ;;  %v14242_v1 = vcombine.low %v206_v45, %v210_v60 }
 0x218   :  { %10027 = vmatprep.subr.bf16.mxu0 %v14267_v61  ;;  %v9775_v34 = vpop.f32.mrf.mxu1  ;;  %v330_v61 = vld [vmem:[#allocation5 + $0x468] sm:$0xff]  ;;  %v14234_v12 = vcombine.low %v198_v37, %v202_v56 }
 0x219   :  { %10067 = vmatpush1.bf16.msra.mxu1 %v14402_v57  ;;  %v326_v57 = vld [vmem:[#allocation5 + $0x448] sm:$0xff] }
 0x21a   :  { %10068 = vmatprep.subr.bf16.mxu1 %v14395_v3  ;;  %v14235_v3 = vcombine.high %v198_v37, %v202_v56  ;;  %v14363_v4 = vcombine.high %v326_v57, %v330_v61  ;;  %v190_v5 = vld [vmem:[#allocation5 + $0x8] sm:$0xff] }
 0x21b   :  { %10028 = vmatpush1.bf16.msra.mxu0 %v14266_v15  ;;  %v194_v2 = vld [vmem:[#allocation5 + $0x28] sm:$0xff]  ;;  %v14362_v15 = vcombine.low %v326_v57, %v330_v61 }
 0x21c   :  { %10029 = vmatprep.subr.bf16.mxu0 %v14259_v18  ;;  %v318_v11 = vld [vmem:[#allocation5 + $0x408] sm:$0xff]  ;;  %v14227_v17 = vcombine.high %v190_v5, %v194_v2  ;;  %v14226_v25 = vcombine.low %v190_v5, %v194_v2 }
 0x21d   :  { %10069 = vmatpush1.bf16.msra.mxu1 %v14394_v14  ;;  %v322_v24 = vld [vmem:[#allocation5 + $0x428] sm:$0xff] }
 0x21e   :  { %10070 = vmatprep.subr.bf16.mxu1 %v14387_v21  ;;  %v14355_v14 = vcombine.high %v318_v11, %v322_v24  ;;  %v310_v18 = vld [vmem:[#allocation5 + $0x3c8] sm:$0xff]  ;;  %v14354_v53 = vcombine.low %v318_v11, %v322_v24 }
 0x21f   :  { %10030 = vmatpush1.bf16.msra.mxu0 %v14258_v30  ;;  %v314_v34 = vld [vmem:[#allocation5 + $0x3e8] sm:$0xff] }
 0x220   :  { %10031 = vmatprep.subr.bf16.mxu0 %v14251_v41  ;;  %v438_v21 = vld [vmem:[#allocation5 + $0x7c8] sm:$0xff]  ;;  %v14347_v27 = vcombine.high %v310_v18, %v314_v34  ;;  %v14346_v60 = vcombine.low %v310_v18, %v314_v34 }
 0x221   :  { %10071 = vmatpush1.bf16.msra.mxu1 %v14386_v36  ;;  %v442_v23 = vld [vmem:[#allocation5 + $0x7e8] sm:$0xff] }
 0x222   :  { %10072 = vmatprep.subr.bf16.mxu1 %v14379_v44  ;;  %v14475_v30 = vcombine.high %v438_v21, %v442_v23  ;;  %v302_v36 = vld [vmem:[#allocation5 + $0x388] sm:$0xff]  ;;  %v14474_v46 = vcombine.low %v438_v21, %v442_v23 }
 0x223   :  { %10032 = vmatpush1.bf16.msra.mxu0 %v14250_v33  ;;  %v306_v41 = vld [vmem:[#allocation5 + $0x3a8] sm:$0xff] }
 0x224   :  { %10033 = vmatprep.subr.bf16.mxu0 %v14243_v49  ;;  %v430_v44 = vld [vmem:[#allocation5 + $0x788] sm:$0xff]  ;;  %v14339_v48 = vcombine.high %v302_v36, %v306_v41  ;;  %v14338_v56 = vcombine.low %v302_v36, %v306_v41 }
 0x225   :  { %10073 = vmatpush1.bf16.msra.mxu1 %v14378_v0  ;;  %v434_v45 = vld [vmem:[#allocation5 + $0x7a8] sm:$0xff] }
 0x226   :  { %10074 = vmatprep.subr.bf16.mxu1 %v14371_v52  ;;  %v14467_v33 = vcombine.high %v430_v44, %v434_v45  ;;  %v294_v0 = vld [vmem:[#allocation5 + $0x348] sm:$0xff]  ;;  %v14466_v57 = vcombine.low %v430_v44, %v434_v45 }
 0x227   :  { %10034 = vmatpush1.bf16.msra.mxu0 %v14242_v1  ;;  %v298_v49 = vld [vmem:[#allocation5 + $0x368] sm:$0xff] }
 0x228   :  { %10035 = vmatprep.subr.bf16.mxu0 %v14235_v3  ;;  %v422_v52 = vld [vmem:[#allocation5 + $0x748] sm:$0xff]  ;;  %v14331_v61 = vcombine.high %v294_v0, %v298_v49  ;;  %v14330_v2 = vcombine.low %v294_v0, %v298_v49 }
 0x229   :  { %10075 = vmatpush1.bf16.msra.mxu1 %v14370_v6  ;;  %v426_v37 = vld [vmem:[#allocation5 + $0x768] sm:$0xff] }
 0x22a   :  { %10076 = vmatprep.subr.bf16.mxu1 %v14363_v4  ;;  %v14459_v1 = vcombine.high %v422_v52, %v426_v37  ;;  %v286_v6 = vld [vmem:[#allocation5 + $0x308] sm:$0xff]  ;;  %v14458_v11 = vcombine.low %v422_v52, %v426_v37 }
 0x22b   :  { %10036 = vmatpush1.bf16.msra.mxu0 %v14234_v12  ;;  %v290_v3 = vld [vmem:[#allocation5 + $0x328] sm:$0xff] }
 0x22c   :  { %10037 = vmatprep.subr.bf16.mxu0 %v14227_v17  ;;  %v414_v4 = vld [vmem:[#allocation5 + $0x708] sm:$0xff]  ;;  %v14323_v24 = vcombine.high %v286_v6, %v290_v3  ;;  %v14322_v34 = vcombine.low %v286_v6, %v290_v3 }
 0x22d   :  { %10077 = vmatpush1.bf16.msra.mxu1 %v14362_v15  ;;  %v418_v5 = vld [vmem:[#allocation5 + $0x728] sm:$0xff] }
 0x22e   :  { %10078 = vmatprep.subr.bf16.mxu1 %v14355_v14  ;;  %v14451_v12 = vcombine.high %v414_v4, %v418_v5  ;;  %v278_v15 = vld [vmem:[#allocation5 + $0x2c8] sm:$0xff]  ;;  %v14450_v21 = vcombine.low %v414_v4, %v418_v5 }
 0x22f   :  { %10038 = vmatpush1.bf16.msra.mxu0 %v14226_v25  ;;  %v282_v17 = vld [vmem:[#allocation5 + $0x2e8] sm:$0xff] }
 0x230   :  { %10039 = vmatprep.subr.bf16.mxu0 %v14347_v27  ;;  %v406_v14 = vld [vmem:[#allocation5 + $0x6c8] sm:$0xff]  ;;  %v14315_v23 = vcombine.high %v278_v15, %v282_v17  ;;  %v14314_v41 = vcombine.low %v278_v15, %v282_v17 }
 0x231   :  { %10079 = vmatpush1.bf16.msra.mxu1 %v14354_v53  ;;  %v410_v18 = vld [vmem:[#allocation5 + $0x6e8] sm:$0xff] }
 0x232   :  { %10080 = vmatprep.subr.bf16.mxu1 %v14475_v30  ;;  %v14443_v25 = vcombine.high %v406_v14, %v410_v18  ;;  %v270_v53 = vld [vmem:[#allocation5 + $0x288] sm:$0xff]  ;;  %v14442_v44 = vcombine.low %v406_v14, %v410_v18 }
 0x233   :  { %10040 = vmatpush2.bf16.msra.mxu0 %v14346_v60  ;;  %v274_v27 = vld [vmem:[#allocation5 + $0x2a8] sm:$0xff] }
 0x234   :  { %10041 = vmatprep.subr.bf16.mxu0 %v14339_v48  ;;  %v398_v30 = vld [vmem:[#allocation5 + $0x688] sm:$0xff]  ;;  %v14307_v45 = vcombine.high %v270_v53, %v274_v27  ;;  %v14306_v49 = vcombine.low %v270_v53, %v274_v27 }
 0x235   :  { %10081 = vmatpush2.bf16.msra.mxu1 %v14474_v46  ;;  %v402_v36 = vld [vmem:[#allocation5 + $0x6a8] sm:$0xff] }
 0x236   :  { %10082 = vmatprep.subr.bf16.mxu1 %v14467_v33  ;;  %v14435_v60 = vcombine.high %v398_v30, %v402_v36  ;;  %v262_v46 = vld [vmem:[#allocation5 + $0x248] sm:$0xff]  ;;  %v14434_v52 = vcombine.low %v398_v30, %v402_v36 }
 0x237   :  { %10042 = vmatpush2.bf16.msra.mxu0 %v14338_v56  ;;  %v266_v48 = vld [vmem:[#allocation5 + $0x268] sm:$0xff] }
 0x238   :  { %10043 = vmatprep.subr.bf16.mxu0 %v14331_v61  ;;  %v390_v33 = vld [vmem:[#allocation5 + $0x648] sm:$0xff]  ;;  %v14299_v37 = vcombine.high %v262_v46, %v266_v48  ;;  %v14298_v3 = vcombine.low %v262_v46, %v266_v48 }
 0x239   :  { %10083 = vmatpush2.bf16.msra.mxu1 %v14466_v57  ;;  %v394_v0 = vld [vmem:[#allocation5 + $0x668] sm:$0xff] }
 0x23a   :  { %10084 = vmatprep.subr.bf16.mxu1 %v14459_v1  ;;  %v14427_v56 = vcombine.high %v390_v33, %v394_v0  ;;  %v254_v57 = vld [vmem:[#allocation5 + $0x208] sm:$0xff]  ;;  %v14426_v4 = vcombine.low %v390_v33, %v394_v0 }
 0x23b   :  { %10044 = vmatpush2.bf16.msra.mxu0 %v14330_v2  ;;  %v258_v61 = vld [vmem:[#allocation5 + $0x228] sm:$0xff] }
 0x23c   :  { %10045 = vmatprep.subr.bf16.mxu0 %v14323_v24  ;;  %v382_v1 = vld [vmem:[#allocation5 + $0x608] sm:$0xff]  ;;  %v14291_v5 = vcombine.high %v254_v57, %v258_v61  ;;  %v14290_v17 = vcombine.low %v254_v57, %v258_v61 }
 0x23d   :  { %10085 = vmatpush2.bf16.msra.mxu1 %v14458_v11  ;;  %v386_v6 = vld [vmem:[#allocation5 + $0x628] sm:$0xff] }
 0x23e   :  { %10086 = vmatprep.subr.bf16.mxu1 %v14451_v12  ;;  %v14419_v2 = vcombine.high %v382_v1, %v386_v6  ;;  %v502_v11 = vld [vmem:[#allocation5 + $0x9c8] sm:$0xff]  ;;  %v14418_v14 = vcombine.low %v382_v1, %v386_v6 }
 0x23f   :  { %10046 = vmatpush2.bf16.msra.mxu0 %v14322_v34  ;;  %v506_v24 = vld [vmem:[#allocation5 + $0x9e8] sm:$0xff] }
 0x240   :  { %10047 = vmatprep.subr.bf16.mxu0 %v14315_v23  ;;  %v630_v12 = vld [vmem:[#allocation5 + $0xdc8] sm:$0xff]  ;;  %v14539_v18 = vcombine.high %v502_v11, %v506_v24  ;;  %v14538_v27 = vcombine.low %v502_v11, %v506_v24 }
 0x241   :  { %10087 = vmatpush2.bf16.msra.mxu1 %v14450_v21  ;;  %v634_v15 = vld [vmem:[#allocation5 + $0xde8] sm:$0xff] }
 0x242   :  { %10088 = vmatprep.subr.bf16.mxu1 %v14443_v25  ;;  %v14667_v34 = vcombine.high %v630_v12, %v634_v15  ;;  %v494_v21 = vld [vmem:[#allocation5 + $0x988] sm:$0xff]  ;;  %v14666_v30 = vcombine.low %v630_v12, %v634_v15 }
 0x243   :  { %10048 = vmatpush2.bf16.msra.mxu0 %v14314_v41  ;;  %v498_v23 = vld [vmem:[#allocation5 + $0x9a8] sm:$0xff] }
 0x244   :  { %10049 = vmatprep.subr.bf16.mxu0 %v14307_v45  ;;  %v622_v25 = vld [vmem:[#allocation5 + $0xd88] sm:$0xff]  ;;  %v14531_v36 = vcombine.high %v494_v21, %v498_v23 }
 0x245   :  { %10089 = vmatpush2.bf16.msra.mxu1 %v14442_v44  ;;  %v626_v53 = vld [vmem:[#allocation5 + $0xda8] sm:$0xff] }
 0x246   :  { %10090 = vmatprep.subr.bf16.mxu1 %v14435_v60  ;;  %v14659_v41 = vcombine.high %v622_v25, %v626_v53  ;;  %v486_v44 = vld [vmem:[#allocation5 + $0x948] sm:$0xff] }
 0x247   :  { %10050 = vmatpush2.bf16.msra.mxu0 %v14306_v49  ;;  %v490_v45 = vld [vmem:[#allocation5 + $0x968] sm:$0xff]  ;;  %v14530_v49 = vcombine.low %v494_v21, %v498_v23 }
 0x248   :  { %10051 = vmatprep.subr.bf16.mxu0 %v14299_v37  ;;  %v614_v46 = vld [vmem:[#allocation5 + $0xd48] sm:$0xff]  ;;  %v14658_v37 = vcombine.low %v622_v25, %v626_v53  ;;  %v14522_v12 = vcombine.low %v486_v44, %v490_v45 }
 0x249   :  { %10091 = vmatpush2.bf16.msra.mxu1 %v14434_v52  ;;  %v618_v48 = vld [vmem:[#allocation5 + $0xd68] sm:$0xff] }
 0x24a   :  { %10092 = vmatprep.subr.bf16.mxu1 %v14427_v56  ;;  %v14523_v56 = vcombine.high %v486_v44, %v490_v45  ;;  %v14651_v6 = vcombine.high %v614_v46, %v618_v48  ;;  %v474_v21 = vld [vmem:[#allocation5 + $0x8e8] sm:$0xff] }
 0x24b   :  { %10052 = vmatpush2.bf16.msra.mxu0 %v14298_v3  ;;  %v478_v3 = vld [vmem:[#allocation5 + $0x908] sm:$0xff] }
 0x24c   :  { %10053 = vmatprep.subr.bf16.mxu0 %v14291_v5  ;;  %v606_v5 = vld [vmem:[#allocation5 + $0xd08] sm:$0xff] }
 0x24d   :  { %10093 = vmatpush2.bf16.msra.mxu1 %v14426_v4  ;;  %v482_v4 = vld [vmem:[#allocation5 + $0x928] sm:$0xff] }
 0x24e   :  { %10094 = vmatprep.subr.bf16.mxu1 %v14419_v2  ;;  %v610_v2 = vld [vmem:[#allocation5 + $0xd28] sm:$0xff]  ;;  %v14514_v53 = vcombine.low %v478_v3, %v482_v4 }
 0x24f   :  { %10054 = vmatpush2.bf16.msra.mxu0 %v14290_v17  ;;  %v14515_v17 = vcombine.high %v478_v3, %v482_v4  ;;  %v598_v23 = vld [vmem:[#allocation5 + $0xcc8] sm:$0xff] }
 0x250   :  { %10105 = vmatprep.subr.bf16.mxu0 %v14539_v18  ;;  %v9811_v60 = vpop.f32.mrf.mxu0  ;;  %v14643_v18 = vcombine.high %v606_v5, %v610_v2  ;;  %v602_v25 = vld [vmem:[#allocation5 + $0xce8] sm:$0xff] }
 0x251   :  { %10095 = vmatpush2.bf16.msra.mxu1 %v14418_v14  ;;  %v9812_v33 = vadd.f32 %v9811_v60, %v17244_v63  ;;  %v466_v44 = vld [vmem:[#allocation5 + $0x8a8] sm:$0xff] }
 0x252   :  { %10146 = vmatprep.subr.bf16.mxu1 %v14667_v34  ;;  %10056 = vmatmul.mubr.bf16.vlgmr.msra.gmra.mxu0 %v17095_v16  ;;  %v9852_v0 = vpop.f32.mrf.mxu1  ;;  %v9813_v52 = vpop.f32.mrf.mxu0  ;;  %v470_v34 = vld [vmem:[#allocation5 + $0x8c8] sm:$0xff] }
 0x253   :  { %10106 = vmatpush1.bf16.msra.mxu0 %v14538_v27  ;;  %v17254_v57 = vadd.f32 %v9852_v0, %v9812_v33  ;;  %v9814_v61 = vadd.f32 %v9813_v52, %v17249_v10  ;;  %10137 = vmatprep.mubr.bf16.mxu0 %v17107_v28  ;;  %v14650_v10 = vcombine.low %v614_v46, %v618_v48  ;;  %v590_v45 = vld [vmem:[#allocation5 + $0xc88] sm:$0xff] }
 0x254   :  { %10097 = vmatmul.mubr.bf16.vlgmr.msra.gmra.mxu1 %v17101_v20  ;;  %10107 = vmatprep.subr.bf16.mxu0 %v14531_v36  ;;  %v9854_v1 = vpop.f32.mrf.mxu1  ;;  %v9815_v63 = vpop.f32.mrf.mxu0  ;;  %v14642_v27 = vcombine.low %v606_v5, %v610_v2  ;;  %v14635_v36 = vcombine.high %v598_v23, %v602_v25  ;;  %v594_v60 = vld [vmem:[#allocation5 + $0xca8] sm:$0xff]  ;;  %v14506_v46 = vcombine.low %v470_v34, %v474_v21 }
 0x255   :  { %10147 = vmatpush1.bf16.msra.mxu1 %v14666_v30  ;;  %10178 = vmatprep.mubr.bf16.mxu1 %v17112_v29  ;;  %v17259_v11 = vadd.f32 %v9854_v1, %v9814_v61  ;;  %v14507_v30 = vcombine.high %v470_v34, %v474_v21  ;;  %v14634_v48 = vcombine.low %v598_v23, %v602_v25  ;;  %v458_v52 = vld [vmem:[#allocation5 + $0x868] sm:$0xff] }
 0x256   :  { %10148 = vmatprep.subr.bf16.mxu1 %v14659_v41  ;;  %v9856_v24 = vpop.f32.mrf.mxu1  ;;  %v9816_v15 = vpop.f32.mrf.mxu0  ;;  %v462_v41 = vld [vmem:[#allocation5 + $0x888] sm:$0xff]  ;;  %v14627_v0 = vcombine.high %v590_v45, %v594_v60  ;;  %v14626_v1 = vcombine.low %v590_v45, %v594_v60 }
 0x257   :  { %10108 = vmatpush1.bf16.msra.mxu0 %v14530_v49  ;;  %v14499_v33 = vcombine.high %v462_v41, %v466_v44  ;;  %v454_v49 = vld [vmem:[#allocation5 + $0x848] sm:$0xff]  ;;  %v14498_v61 = vcombine.low %v462_v41, %v466_v44 }
 0x258   :  { %10109 = vmatprep.subr.bf16.mxu0 %v14523_v56  ;;  %v9857_v14 = vpop.f32.mrf.mxu1  ;;  %v586_v56 = vld [vmem:[#allocation5 + $0xc68] sm:$0xff]  ;;  %v14490_v24 = vcombine.low %v454_v49, %v458_v52 }
 0x259   :  { %10149 = vmatpush1.bf16.msra.mxu1 %v14658_v37  ;;  %v582_v37 = vld [vmem:[#allocation5 + $0xc48] sm:$0xff] }
 0x25a   :  { %10150 = vmatprep.subr.bf16.mxu1 %v14651_v6  ;;  %v14491_v6 = vcombine.high %v454_v49, %v458_v52  ;;  %v14619_v3 = vcombine.high %v582_v37, %v586_v56  ;;  %v446_v4 = vld [vmem:[#allocation5 + $0x808] sm:$0xff] }
 0x25b   :  { %10110 = vmatpush1.bf16.msra.mxu0 %v14522_v12  ;;  %v450_v63 = vld [vmem:[#allocation5 + $0x828] sm:$0xff]  ;;  %v14618_v12 = vcombine.low %v582_v37, %v586_v56 }
 0x25c   :  { %10111 = vmatprep.subr.bf16.mxu0 %v14515_v17  ;;  %v574_v5 = vld [vmem:[#allocation5 + $0xc08] sm:$0xff]  ;;  %v14483_v15 = vcombine.high %v446_v4, %v450_v63  ;;  %v14482_v21 = vcombine.low %v446_v4, %v450_v63 }
 0x25d   :  { %10151 = vmatpush1.bf16.msra.mxu1 %v14650_v10  ;;  %v578_v2 = vld [vmem:[#allocation5 + $0xc28] sm:$0xff] }
 0x25e   :  { %10152 = vmatprep.subr.bf16.mxu1 %v14643_v18  ;;  %v14611_v10 = vcombine.high %v574_v5, %v578_v2  ;;  %v566_v17 = vld [vmem:[#allocation5 + $0xbc8] sm:$0xff]  ;;  %v14610_v23 = vcombine.low %v574_v5, %v578_v2 }
 0x25f   :  { %10112 = vmatpush1.bf16.msra.mxu0 %v14514_v53  ;;  %v570_v14 = vld [vmem:[#allocation5 + $0xbe8] sm:$0xff] }
 0x260   :  { %10113 = vmatprep.subr.bf16.mxu0 %v14507_v30  ;;  %v694_v18 = vld [vmem:[#allocation5 + $0xfc8] sm:$0xff]  ;;  %v14603_v25 = vcombine.high %v566_v17, %v570_v14  ;;  %v14602_v44 = vcombine.low %v566_v17, %v570_v14 }
 0x261   :  { %10153 = vmatpush1.bf16.msra.mxu1 %v14642_v27  ;;  %v698_v34 = vld [vmem:[#allocation5 + $0xfe8] sm:$0xff] }
 0x262   :  { %10154 = vmatprep.subr.bf16.mxu1 %v14635_v36  ;;  %v14731_v53 = vcombine.high %v694_v18, %v698_v34  ;;  %v558_v27 = vld [vmem:[#allocation5 + $0xb88] sm:$0xff]  ;;  %v14730_v45 = vcombine.low %v694_v18, %v698_v34 }
 0x263   :  { %10114 = vmatpush1.bf16.msra.mxu0 %v14506_v46  ;;  %v562_v30 = vld [vmem:[#allocation5 + $0xba8] sm:$0xff] }
 0x264   :  { %10115 = vmatprep.subr.bf16.mxu0 %v14499_v33  ;;  %v686_v36 = vld [vmem:[#allocation5 + $0xf88] sm:$0xff]  ;;  %v14595_v60 = vcombine.high %v558_v27, %v562_v30  ;;  %v14594_v52 = vcombine.low %v558_v27, %v562_v30 }
 0x265   :  { %10155 = vmatpush1.bf16.msra.mxu1 %v14634_v48  ;;  %v690_v41 = vld [vmem:[#allocation5 + $0xfa8] sm:$0xff] }
 0x266   :  { %10156 = vmatprep.subr.bf16.mxu1 %v14627_v0  ;;  %v14723_v46 = vcombine.high %v686_v36, %v690_v41  ;;  %v550_v48 = vld [vmem:[#allocation5 + $0xb48] sm:$0xff]  ;;  %v14722_v37 = vcombine.low %v686_v36, %v690_v41 }
 0x267   :  { %10116 = vmatpush1.bf16.msra.mxu0 %v14498_v61  ;;  %v554_v33 = vld [vmem:[#allocation5 + $0xb68] sm:$0xff] }
 0x268   :  { %10117 = vmatprep.subr.bf16.mxu0 %v14491_v6  ;;  %v678_v0 = vld [vmem:[#allocation5 + $0xf48] sm:$0xff]  ;;  %v14587_v56 = vcombine.high %v550_v48, %v554_v33  ;;  %v14586_v63 = vcombine.low %v550_v48, %v554_v33 }
 0x269   :  { %10157 = vmatpush1.bf16.msra.mxu1 %v14626_v1  ;;  %v682_v49 = vld [vmem:[#allocation5 + $0xf68] sm:$0xff] }
 0x26a   :  { %10158 = vmatprep.subr.bf16.mxu1 %v14619_v3  ;;  %v14715_v61 = vcombine.high %v678_v0, %v682_v49  ;;  %v542_v1 = vld [vmem:[#allocation5 + $0xb08] sm:$0xff]  ;;  %v14714_v5 = vcombine.low %v678_v0, %v682_v49 }
 0x26b   :  { %10118 = vmatpush1.bf16.msra.mxu0 %v14490_v24  ;;  %v546_v6 = vld [vmem:[#allocation5 + $0xb28] sm:$0xff] }
 0x26c   :  { %10119 = vmatprep.subr.bf16.mxu0 %v14483_v15  ;;  %v670_v3 = vld [vmem:[#allocation5 + $0xf08] sm:$0xff]  ;;  %v14579_v2 = vcombine.high %v542_v1, %v546_v6  ;;  %v14578_v14 = vcombine.low %v542_v1, %v546_v6 }
 0x26d   :  { %10159 = vmatpush1.bf16.msra.mxu1 %v14618_v12  ;;  %v674_v4 = vld [vmem:[#allocation5 + $0xf28] sm:$0xff] }
 0x26e   :  { %10160 = vmatprep.subr.bf16.mxu1 %v14611_v10  ;;  %v14707_v24 = vcombine.high %v670_v3, %v674_v4  ;;  %v534_v12 = vld [vmem:[#allocation5 + $0xac8] sm:$0xff]  ;;  %v14706_v18 = vcombine.low %v670_v3, %v674_v4 }
 0x26f   :  { %10120 = vmatpush1.bf16.msra.mxu0 %v14482_v21  ;;  %v538_v15 = vld [vmem:[#allocation5 + $0xae8] sm:$0xff] }
 0x270   :  { %10121 = vmatprep.subr.bf16.mxu0 %v14603_v25  ;;  %v662_v10 = vld [vmem:[#allocation5 + $0xec8] sm:$0xff]  ;;  %v14571_v34 = vcombine.high %v534_v12, %v538_v15  ;;  %v14570_v30 = vcombine.low %v534_v12, %v538_v15 }
 0x271   :  { %10161 = vmatpush1.bf16.msra.mxu1 %v14610_v23  ;;  %v666_v17 = vld [vmem:[#allocation5 + $0xee8] sm:$0xff] }
 0x272   :  { %10162 = vmatprep.subr.bf16.mxu1 %v14731_v53  ;;  %v14699_v21 = vcombine.high %v662_v10, %v666_v17  ;;  %v526_v23 = vld [vmem:[#allocation5 + $0xa88] sm:$0xff]  ;;  %v14698_v36 = vcombine.low %v662_v10, %v666_v17 }
 0x273   :  { %10122 = vmatpush2.bf16.msra.mxu0 %v14602_v44  ;;  %v530_v25 = vld [vmem:[#allocation5 + $0xaa8] sm:$0xff] }
 0x274   :  { %10123 = vmatprep.subr.bf16.mxu0 %v14595_v60  ;;  %v654_v53 = vld [vmem:[#allocation5 + $0xe88] sm:$0xff]  ;;  %v14563_v41 = vcombine.high %v526_v23, %v530_v25  ;;  %v14562_v33 = vcombine.low %v526_v23, %v530_v25 }
 0x275   :  { %10163 = vmatpush2.bf16.msra.mxu1 %v14730_v45  ;;  %v658_v27 = vld [vmem:[#allocation5 + $0xea8] sm:$0xff] }
 0x276   :  { %10164 = vmatprep.subr.bf16.mxu1 %v14723_v46  ;;  %v14691_v44 = vcombine.high %v654_v53, %v658_v27  ;;  %v518_v45 = vld [vmem:[#allocation5 + $0xa48] sm:$0xff]  ;;  %v14690_v0 = vcombine.low %v654_v53, %v658_v27 }
 0x277   :  { %10124 = vmatpush2.bf16.msra.mxu0 %v14594_v52  ;;  %v522_v60 = vld [vmem:[#allocation5 + $0xa68] sm:$0xff] }
 0x278   :  { %10125 = vmatprep.subr.bf16.mxu0 %v14587_v56  ;;  %v646_v46 = vld [vmem:[#allocation5 + $0xe48] sm:$0xff]  ;;  %v14555_v49 = vcombine.high %v518_v45, %v522_v60  ;;  %v14554_v6 = vcombine.low %v518_v45, %v522_v60 }
 0x279   :  { %10165 = vmatpush2.bf16.msra.mxu1 %v14722_v37  ;;  %v650_v48 = vld [vmem:[#allocation5 + $0xe68] sm:$0xff] }
 0x27a   :  { %10166 = vmatprep.subr.bf16.mxu1 %v14715_v61  ;;  %v14683_v52 = vcombine.high %v646_v46, %v650_v48  ;;  %v510_v37 = vld [vmem:[#allocation5 + $0xa08] sm:$0xff]  ;;  %v14682_v3 = vcombine.low %v646_v46, %v650_v48 }
 0x27b   :  { %10126 = vmatpush2.bf16.msra.mxu0 %v14586_v63  ;;  %v514_v56 = vld [vmem:[#allocation5 + $0xa28] sm:$0xff] }
 0x27c   :  { %10127 = vmatprep.subr.bf16.mxu0 %v14579_v2  ;;  %v638_v61 = vld [vmem:[#allocation5 + $0xe08] sm:$0xff]  ;;  %v14547_v4 = vcombine.high %v510_v37, %v514_v56  ;;  %v14546_v15 = vcombine.low %v510_v37, %v514_v56 }
 0x27d   :  { %10167 = vmatpush2.bf16.msra.mxu1 %v14714_v5  ;;  %v642_v1 = vld [vmem:[#allocation5 + $0xe28] sm:$0xff] }
 0x27e   :  { %10168 = vmatprep.subr.bf16.mxu1 %v14707_v24  ;;  %v14675_v63 = vcombine.high %v638_v61, %v642_v1  ;;  %v758_v5 = vld [vmem:[#allocation5 + $0x11c8] sm:$0xff]  ;;  %v14674_v10 = vcombine.low %v638_v61, %v642_v1 }
 0x27f   :  { %10128 = vmatpush2.bf16.msra.mxu0 %v14578_v14  ;;  %v762_v2 = vld [vmem:[#allocation5 + $0x11e8] sm:$0xff] }
 0x280   :  { %10129 = vmatprep.subr.bf16.mxu0 %v14571_v34  ;;  %v886_v24 = vld [vmem:[#allocation5 + $0x15c8] sm:$0xff]  ;;  %v14795_v17 = vcombine.high %v758_v5, %v762_v2  ;;  %v14794_v25 = vcombine.low %v758_v5, %v762_v2 }
 0x281   :  { %10169 = vmatpush2.bf16.msra.mxu1 %v14706_v18  ;;  %v890_v12 = vld [vmem:[#allocation5 + $0x15e8] sm:$0xff] }
 0x282   :  { %10170 = vmatprep.subr.bf16.mxu1 %v14699_v21  ;;  %v14923_v14 = vcombine.high %v886_v24, %v890_v12  ;;  %v750_v18 = vld [vmem:[#allocation5 + $0x1188] sm:$0xff]  ;;  %v14922_v53 = vcombine.low %v886_v24, %v890_v12 }
 0x283   :  { %10130 = vmatpush2.bf16.msra.mxu0 %v14570_v30  ;;  %v754_v34 = vld [vmem:[#allocation5 + $0x11a8] sm:$0xff] }
 0x284   :  { %10131 = vmatprep.subr.bf16.mxu0 %v14563_v41  ;;  %v878_v21 = vld [vmem:[#allocation5 + $0x1588] sm:$0xff]  ;;  %v14787_v27 = vcombine.high %v750_v18, %v754_v34 }
 0x285   :  { %10171 = vmatpush2.bf16.msra.mxu1 %v14698_v36  ;;  %v882_v23 = vld [vmem:[#allocation5 + $0x15a8] sm:$0xff] }
 0x286   :  { %10172 = vmatprep.subr.bf16.mxu1 %v14691_v44  ;;  %v14915_v30 = vcombine.high %v878_v21, %v882_v23  ;;  %v742_v36 = vld [vmem:[#allocation5 + $0x1148] sm:$0xff] }
 0x287   :  { %10132 = vmatpush2.bf16.msra.mxu0 %v14562_v33  ;;  %v746_v41 = vld [vmem:[#allocation5 + $0x1168] sm:$0xff]  ;;  %v14786_v33 = vcombine.low %v750_v18, %v754_v34 }
 0x288   :  { %10133 = vmatprep.subr.bf16.mxu0 %v14555_v49  ;;  %v870_v45 = vld [vmem:[#allocation5 + $0x1548] sm:$0xff]  ;;  %v14914_v49 = vcombine.low %v878_v21, %v882_v23  ;;  %v14778_v24 = vcombine.low %v742_v36, %v746_v41 }
 0x289   :  { %10173 = vmatpush2.bf16.msra.mxu1 %v14690_v0  ;;  %v874_v60 = vld [vmem:[#allocation5 + $0x1568] sm:$0xff] }
 0x28a   :  { %10174 = vmatprep.subr.bf16.mxu1 %v14683_v52  ;;  %v14779_v52 = vcombine.high %v742_v36, %v746_v41  ;;  %v14907_v1 = vcombine.high %v870_v45, %v874_v60  ;;  %v730_v18 = vld [vmem:[#allocation5 + $0x10e8] sm:$0xff] }
 0x28b   :  { %10134 = vmatpush2.bf16.msra.mxu0 %v14554_v6  ;;  %v734_v6 = vld [vmem:[#allocation5 + $0x1108] sm:$0xff] }
 0x28c   :  { %10135 = vmatprep.subr.bf16.mxu0 %v14547_v4  ;;  %v862_v4 = vld [vmem:[#allocation5 + $0x1508] sm:$0xff] }
 0x28d   :  { %10175 = vmatpush2.bf16.msra.mxu1 %v14682_v3  ;;  %v738_v3 = vld [vmem:[#allocation5 + $0x1128] sm:$0xff] }
 0x28e   :  { %10176 = vmatprep.subr.bf16.mxu1 %v14675_v63  ;;  %v866_v63 = vld [vmem:[#allocation5 + $0x1528] sm:$0xff]  ;;  %v14770_v23 = vcombine.low %v734_v6, %v738_v3 }
 0x28f   :  { %10136 = vmatpush2.bf16.msra.mxu0 %v14546_v15  ;;  %v14771_v15 = vcombine.high %v734_v6, %v738_v3  ;;  %v854_v34 = vld [vmem:[#allocation5 + $0x14c8] sm:$0xff] }
 0x290   :  { %10187 = vmatprep.subr.bf16.mxu0 %v14795_v17  ;;  %v14899_v17 = vcombine.high %v862_v4, %v866_v63  ;;  %v858_v21 = vld [vmem:[#allocation5 + $0x14e8] sm:$0xff] }
 0x291   :  { %10177 = vmatpush2.bf16.msra.mxu1 %v14674_v10  ;;  %v722_v36 = vld [vmem:[#allocation5 + $0x10a8] sm:$0xff] }
 0x292   :  { %10228 = vmatprep.subr.bf16.mxu1 %v14923_v14  ;;  %v9893_v44 = vpop.f32.mrf.mxu0  ;;  %10138 = vmatmul.mubr.bf16.vlgmr.msra.gmra.mxu0 %v17121_v39  ;;  %v726_v14 = vld [vmem:[#allocation5 + $0x10c8] sm:$0xff] }
 0x293   :  { %v9894_v46 = vadd.f32 %v9893_v44, %v17254_v57  ;;  %10188 = vmatpush1.bf16.msra.mxu0 %v14794_v25  ;;  %10219 = vmatprep.mubr.bf16.mxu0 %v17131_v19  ;;  %v14898_v25 = vcombine.low %v862_v4, %v866_v63  ;;  %v846_v41 = vld [vmem:[#allocation5 + $0x1488] sm:$0xff] }
 0x294   :  { %v9934_v48 = vpop.f32.mrf.mxu1  ;;  %10179 = vmatmul.mubr.bf16.vlgmr.msra.gmra.mxu1 %v17125_v40  ;;  %v9895_v0 = vpop.f32.mrf.mxu0  ;;  %10189 = vmatprep.subr.bf16.mxu0 %v14787_v27  ;;  %v14891_v27 = vcombine.high %v854_v34, %v858_v21  ;;  %v850_v44 = vld [vmem:[#allocation5 + $0x14a8] sm:$0xff] }
 0x295   :  { %10229 = vmatpush1.bf16.msra.mxu1 %v14922_v53  ;;  %v17264_v37 = vadd.f32 %v9934_v48, %v9894_v46  ;;  %v9896_v56 = vadd.f32 %v9895_v0, %v17259_v11  ;;  %10260 = vmatprep.mubr.bf16.mxu1 %v17136_v22  ;;  %v14906_v11 = vcombine.low %v870_v45, %v874_v60  ;;  %v714_v0 = vld [vmem:[#allocation5 + $0x1068] sm:$0xff] }
 0x296   :  { %v9936_v61 = vpop.f32.mrf.mxu1  ;;  %10230 = vmatprep.subr.bf16.mxu1 %v14915_v30  ;;  %v9897_v57 = vpop.f32.mrf.mxu0  ;;  %v14763_v53 = vcombine.high %v726_v14, %v730_v18  ;;  %v718_v30 = vld [vmem:[#allocation5 + $0x1088] sm:$0xff]  ;;  %v14762_v45 = vcombine.low %v726_v14, %v730_v18  ;;  %v14890_v60 = vcombine.low %v854_v34, %v858_v21  ;;  %v14883_v48 = vcombine.high %v846_v41, %v850_v44 }
 0x297   :  { %v17269_v5 = vadd.f32 %v9936_v61, %v9896_v56  ;;  %10190 = vmatpush1.bf16.msra.mxu0 %v14786_v33  ;;  %v14755_v46 = vcombine.high %v718_v30, %v722_v36  ;;  %v710_v33 = vld [vmem:[#allocation5 + $0x1048] sm:$0xff]  ;;  %v14754_v56 = vcombine.low %v718_v30, %v722_v36  ;;  %v14882_v61 = vcombine.low %v846_v41, %v850_v44 }
 0x298   :  { %v9938_v2 = vpop.f32.mrf.mxu1  ;;  %v9898_v12 = vpop.f32.mrf.mxu0  ;;  %10191 = vmatprep.subr.bf16.mxu0 %v14779_v52  ;;  %v842_v52 = vld [vmem:[#allocation5 + $0x1468] sm:$0xff] }
 0x299   :  { %10231 = vmatpush1.bf16.msra.mxu1 %v14914_v49  ;;  %v838_v49 = vld [vmem:[#allocation5 + $0x1448] sm:$0xff]  ;;  %v14746_v2 = vcombine.low %v710_v33, %v714_v0 }
 0x29a   :  { %v9939_v10 = vpop.f32.mrf.mxu1  ;;  %10232 = vmatprep.subr.bf16.mxu1 %v14907_v1  ;;  %v14747_v1 = vcombine.high %v710_v33, %v714_v0  ;;  %v14875_v6 = vcombine.high %v838_v49, %v842_v52  ;;  %v702_v3 = vld [vmem:[#allocation5 + $0x1008] sm:$0xff] }
 0x29b   :  { %10192 = vmatpush1.bf16.msra.mxu0 %v14778_v24  ;;  %v706_v57 = vld [vmem:[#allocation5 + $0x1028] sm:$0xff]  ;;  %v14874_v24 = vcombine.low %v838_v49, %v842_v52 }
 0x29c   :  { %10193 = vmatprep.subr.bf16.mxu0 %v14771_v15  ;;  %v830_v4 = vld [vmem:[#allocation5 + $0x1408] sm:$0xff]  ;;  %v14739_v12 = vcombine.high %v702_v3, %v706_v57  ;;  %v14738_v18 = vcombine.low %v702_v3, %v706_v57 }
 0x29d   :  { %10233 = vmatpush1.bf16.msra.mxu1 %v14906_v11  ;;  %v834_v63 = vld [vmem:[#allocation5 + $0x1428] sm:$0xff] }
 0x29e   :  { %10234 = vmatprep.subr.bf16.mxu1 %v14899_v17  ;;  %v14867_v11 = vcombine.high %v830_v4, %v834_v63  ;;  %v822_v15 = vld [vmem:[#allocation5 + $0x13c8] sm:$0xff]  ;;  %v14866_v34 = vcombine.low %v830_v4, %v834_v63 }
 0x29f   :  { %10194 = vmatpush1.bf16.msra.mxu0 %v14770_v23  ;;  %v826_v10 = vld [vmem:[#allocation5 + $0x13e8] sm:$0xff] }
 0x2a0   :  { %10195 = vmatprep.subr.bf16.mxu0 %v14763_v53  ;;  %v950_v17 = vld [vmem:[#allocation5 + $0x17c8] sm:$0xff]  ;;  %v14859_v21 = vcombine.high %v822_v15, %v826_v10  ;;  %v14858_v36 = vcombine.low %v822_v15, %v826_v10 }
 0x2a1   :  { %10235 = vmatpush1.bf16.msra.mxu1 %v14898_v25  ;;  %v954_v14 = vld [vmem:[#allocation5 + $0x17e8] sm:$0xff] }
 0x2a2   :  { %10236 = vmatprep.subr.bf16.mxu1 %v14891_v27  ;;  %v14987_v23 = vcombine.high %v950_v17, %v954_v14  ;;  %v814_v25 = vld [vmem:[#allocation5 + $0x1388] sm:$0xff]  ;;  %v14986_v41 = vcombine.low %v950_v17, %v954_v14 }
 0x2a3   :  { %10196 = vmatpush1.bf16.msra.mxu0 %v14762_v45  ;;  %v818_v53 = vld [vmem:[#allocation5 + $0x13a8] sm:$0xff] }
 0x2a4   :  { %10197 = vmatprep.subr.bf16.mxu0 %v14755_v46  ;;  %v942_v27 = vld [vmem:[#allocation5 + $0x1788] sm:$0xff]  ;;  %v14851_v44 = vcombine.high %v814_v25, %v818_v53  ;;  %v14850_v0 = vcombine.low %v814_v25, %v818_v53 }
 0x2a5   :  { %10237 = vmatpush1.bf16.msra.mxu1 %v14890_v60  ;;  %v946_v30 = vld [vmem:[#allocation5 + $0x17a8] sm:$0xff] }
 0x2a6   :  { %10238 = vmatprep.subr.bf16.mxu1 %v14883_v48  ;;  %v14979_v45 = vcombine.high %v942_v27, %v946_v30  ;;  %v806_v60 = vld [vmem:[#allocation5 + $0x1348] sm:$0xff]  ;;  %v14978_v49 = vcombine.low %v942_v27, %v946_v30 }
 0x2a7   :  { %10198 = vmatpush1.bf16.msra.mxu0 %v14754_v56  ;;  %v810_v46 = vld [vmem:[#allocation5 + $0x1368] sm:$0xff] }
 0x2a8   :  { %10199 = vmatprep.subr.bf16.mxu0 %v14747_v1  ;;  %v934_v48 = vld [vmem:[#allocation5 + $0x1748] sm:$0xff]  ;;  %v14843_v52 = vcombine.high %v806_v60, %v810_v46  ;;  %v14842_v57 = vcombine.low %v806_v60, %v810_v46 }
 0x2a9   :  { %10239 = vmatpush1.bf16.msra.mxu1 %v14882_v61  ;;  %v938_v33 = vld [vmem:[#allocation5 + $0x1768] sm:$0xff] }
 0x2aa   :  { %10240 = vmatprep.subr.bf16.mxu1 %v14875_v6  ;;  %v14971_v56 = vcombine.high %v934_v48, %v938_v33  ;;  %v798_v61 = vld [vmem:[#allocation5 + $0x1308] sm:$0xff]  ;;  %v14970_v4 = vcombine.low %v934_v48, %v938_v33 }
 0x2ab   :  { %10200 = vmatpush1.bf16.msra.mxu0 %v14746_v2  ;;  %v802_v1 = vld [vmem:[#allocation5 + $0x1328] sm:$0xff] }
 0x2ac   :  { %10201 = vmatprep.subr.bf16.mxu0 %v14739_v12  ;;  %v926_v6 = vld [vmem:[#allocation5 + $0x1708] sm:$0xff]  ;;  %v14835_v63 = vcombine.high %v798_v61, %v802_v1  ;;  %v14834_v10 = vcombine.low %v798_v61, %v802_v1 }
 0x2ad   :  { %10241 = vmatpush1.bf16.msra.mxu1 %v14874_v24  ;;  %v930_v3 = vld [vmem:[#allocation5 + $0x1728] sm:$0xff] }
 0x2ae   :  { %10242 = vmatprep.subr.bf16.mxu1 %v14867_v11  ;;  %v14963_v2 = vcombine.high %v926_v6, %v930_v3  ;;  %v790_v24 = vld [vmem:[#allocation5 + $0x12c8] sm:$0xff]  ;;  %v14962_v17 = vcombine.low %v926_v6, %v930_v3 }
 0x2af   :  { %10202 = vmatpush1.bf16.msra.mxu0 %v14738_v18  ;;  %v794_v12 = vld [vmem:[#allocation5 + $0x12e8] sm:$0xff] }
 0x2b0   :  { %10203 = vmatprep.subr.bf16.mxu0 %v14859_v21  ;;  %v918_v11 = vld [vmem:[#allocation5 + $0x16c8] sm:$0xff]  ;;  %v14827_v14 = vcombine.high %v790_v24, %v794_v12  ;;  %v14826_v53 = vcombine.low %v790_v24, %v794_v12 }
 0x2b1   :  { %10243 = vmatpush1.bf16.msra.mxu1 %v14866_v34  ;;  %v922_v15 = vld [vmem:[#allocation5 + $0x16e8] sm:$0xff] }
 0x2b2   :  { %10244 = vmatprep.subr.bf16.mxu1 %v14987_v23  ;;  %v14955_v18 = vcombine.high %v918_v11, %v922_v15  ;;  %v782_v34 = vld [vmem:[#allocation5 + $0x1288] sm:$0xff]  ;;  %v14954_v27 = vcombine.low %v918_v11, %v922_v15 }
 0x2b3   :  { %10204 = vmatpush2.bf16.msra.mxu0 %v14858_v36  ;;  %v786_v21 = vld [vmem:[#allocation5 + $0x12a8] sm:$0xff] }
 0x2b4   :  { %10205 = vmatprep.subr.bf16.mxu0 %v14851_v44  ;;  %v910_v23 = vld [vmem:[#allocation5 + $0x1688] sm:$0xff]  ;;  %v14819_v30 = vcombine.high %v782_v34, %v786_v21  ;;  %v14818_v46 = vcombine.low %v782_v34, %v786_v21 }
 0x2b5   :  { %10245 = vmatpush2.bf16.msra.mxu1 %v14986_v41  ;;  %v914_v25 = vld [vmem:[#allocation5 + $0x16a8] sm:$0xff] }
 0x2b6   :  { %10246 = vmatprep.subr.bf16.mxu1 %v14979_v45  ;;  %v14947_v36 = vcombine.high %v910_v23, %v914_v25  ;;  %v774_v41 = vld [vmem:[#allocation5 + $0x1248] sm:$0xff]  ;;  %v14946_v48 = vcombine.low %v910_v23, %v914_v25 }
 0x2b7   :  { %10206 = vmatpush2.bf16.msra.mxu0 %v14850_v0  ;;  %v778_v44 = vld [vmem:[#allocation5 + $0x1268] sm:$0xff] }
 0x2b8   :  { %10207 = vmatprep.subr.bf16.mxu0 %v14843_v52  ;;  %v902_v45 = vld [vmem:[#allocation5 + $0x1648] sm:$0xff]  ;;  %v14811_v33 = vcombine.high %v774_v41, %v778_v44  ;;  %v14810_v1 = vcombine.low %v774_v41, %v778_v44 }
 0x2b9   :  { %10247 = vmatpush2.bf16.msra.mxu1 %v14978_v49  ;;  %v906_v60 = vld [vmem:[#allocation5 + $0x1668] sm:$0xff] }
 0x2ba   :  { %10248 = vmatprep.subr.bf16.mxu1 %v14971_v56  ;;  %v14939_v0 = vcombine.high %v902_v45, %v906_v60  ;;  %v766_v49 = vld [vmem:[#allocation5 + $0x1208] sm:$0xff]  ;;  %v14938_v6 = vcombine.low %v902_v45, %v906_v60 }
 0x2bb   :  { %10208 = vmatpush2.bf16.msra.mxu0 %v14842_v57  ;;  %v770_v52 = vld [vmem:[#allocation5 + $0x1228] sm:$0xff] }
 0x2bc   :  { %10209 = vmatprep.subr.bf16.mxu0 %v14835_v63  ;;  %v894_v56 = vld [vmem:[#allocation5 + $0x1608] sm:$0xff]  ;;  %v14803_v3 = vcombine.high %v766_v49, %v770_v52  ;;  %v14802_v12 = vcombine.low %v766_v49, %v770_v52 }
 0x2bd   :  { %10249 = vmatpush2.bf16.msra.mxu1 %v14970_v4  ;;  %v898_v61 = vld [vmem:[#allocation5 + $0x1628] sm:$0xff] }
 0x2be   :  { %10250 = vmatprep.subr.bf16.mxu1 %v14963_v2  ;;  %v14931_v57 = vcombine.high %v894_v56, %v898_v61  ;;  %v1014_v4 = vld [vmem:[#allocation5 + $0x19c8] sm:$0xff]  ;;  %v14930_v11 = vcombine.low %v894_v56, %v898_v61 }
 0x2bf   :  { %10210 = vmatpush2.bf16.msra.mxu0 %v14834_v10  ;;  %v1018_v63 = vld [vmem:[#allocation5 + $0x19e8] sm:$0xff] }
 0x2c0   :  { %10211 = vmatprep.subr.bf16.mxu0 %v14827_v14  ;;  %v1142_v2 = vld [vmem:[#allocation5 + $0x1dc8] sm:$0xff]  ;;  %v15051_v15 = vcombine.high %v1014_v4, %v1018_v63  ;;  %v15050_v21 = vcombine.low %v1014_v4, %v1018_v63 }
 0x2c1   :  { %10251 = vmatpush2.bf16.msra.mxu1 %v14962_v17  ;;  %v1146_v24 = vld [vmem:[#allocation5 + $0x1de8] sm:$0xff] }
 0x2c2   :  { %10252 = vmatprep.subr.bf16.mxu1 %v14955_v18  ;;  %v15179_v10 = vcombine.high %v1142_v2, %v1146_v24  ;;  %v1006_v17 = vld [vmem:[#allocation5 + $0x1988] sm:$0xff]  ;;  %v15178_v23 = vcombine.low %v1142_v2, %v1146_v24 }
 0x2c3   :  { %10212 = vmatpush2.bf16.msra.mxu0 %v14826_v53  ;;  %v1010_v14 = vld [vmem:[#allocation5 + $0x19a8] sm:$0xff] }
 0x2c4   :  { %10213 = vmatprep.subr.bf16.mxu0 %v14819_v30  ;;  %v1134_v18 = vld [vmem:[#allocation5 + $0x1d88] sm:$0xff]  ;;  %v15043_v25 = vcombine.high %v1006_v17, %v1010_v14 }
 0x2c5   :  { %10253 = vmatpush2.bf16.msra.mxu1 %v14954_v27  ;;  %v1138_v34 = vld [vmem:[#allocation5 + $0x1da8] sm:$0xff] }
 0x2c6   :  { %10254 = vmatprep.subr.bf16.mxu1 %v14947_v36  ;;  %v15171_v53 = vcombine.high %v1134_v18, %v1138_v34  ;;  %v998_v27 = vld [vmem:[#allocation5 + $0x1948] sm:$0xff] }
 0x2c7   :  { %10214 = vmatpush2.bf16.msra.mxu0 %v14818_v46  ;;  %v1002_v30 = vld [vmem:[#allocation5 + $0x1968] sm:$0xff]  ;;  %v15042_v46 = vcombine.low %v1006_v17, %v1010_v14 }
 0x2c8   :  { %10215 = vmatprep.subr.bf16.mxu0 %v14811_v33  ;;  %v1126_v41 = vld [vmem:[#allocation5 + $0x1d48] sm:$0xff]  ;;  %v15170_v33 = vcombine.low %v1134_v18, %v1138_v34  ;;  %v15034_v2 = vcombine.low %v998_v27, %v1002_v30 }
 0x2c9   :  { %10255 = vmatpush2.bf16.msra.mxu1 %v14946_v48  ;;  %v1130_v44 = vld [vmem:[#allocation5 + $0x1d68] sm:$0xff] }
 0x2ca   :  { %10256 = vmatprep.subr.bf16.mxu1 %v14939_v0  ;;  %v15035_v0 = vcombine.high %v998_v27, %v1002_v30  ;;  %v15163_v61 = vcombine.high %v1126_v41, %v1130_v44  ;;  %v986_v17 = vld [vmem:[#allocation5 + $0x18e8] sm:$0xff] }
 0x2cb   :  { %10216 = vmatpush2.bf16.msra.mxu0 %v14810_v1  ;;  %v990_v1 = vld [vmem:[#allocation5 + $0x1908] sm:$0xff] }
 0x2cc   :  { %10217 = vmatprep.subr.bf16.mxu0 %v14803_v3  ;;  %v1118_v3 = vld [vmem:[#allocation5 + $0x1d08] sm:$0xff] }
 0x2cd   :  { %10257 = vmatpush2.bf16.msra.mxu1 %v14938_v6  ;;  %v994_v6 = vld [vmem:[#allocation5 + $0x1928] sm:$0xff] }
 0x2ce   :  { %10258 = vmatprep.subr.bf16.mxu1 %v14931_v57  ;;  %v1122_v57 = vld [vmem:[#allocation5 + $0x1d28] sm:$0xff]  ;;  %v15026_v34 = vcombine.low %v990_v1, %v994_v6 }
 0x2cf   :  { %10218 = vmatpush2.bf16.msra.mxu0 %v14802_v12  ;;  %v15027_v12 = vcombine.high %v990_v1, %v994_v6  ;;  %v1110_v14 = vld [vmem:[#allocation5 + $0x1cc8] sm:$0xff] }
 0x2d0   :  { %10269 = vmatprep.subr.bf16.mxu0 %v15051_v15  ;;  %v15155_v15 = vcombine.high %v1118_v3, %v1122_v57  ;;  %v1114_v18 = vld [vmem:[#allocation5 + $0x1ce8] sm:$0xff] }
 0x2d1   :  { %10259 = vmatpush2.bf16.msra.mxu1 %v14930_v11  ;;  %v978_v27 = vld [vmem:[#allocation5 + $0x18a8] sm:$0xff] }
 0x2d2   :  { %10310 = vmatprep.subr.bf16.mxu1 %v15179_v10  ;;  %v9975_v36 = vpop.f32.mrf.mxu0  ;;  %10220 = vmatmul.mubr.bf16.vlgmr.msra.gmra.mxu0 %v17145_v7  ;;  %v982_v10 = vld [vmem:[#allocation5 + $0x18c8] sm:$0xff] }
 0x2d3   :  { %v9976_v45 = vadd.f32 %v9975_v36, %v17264_v37  ;;  %10270 = vmatpush1.bf16.msra.mxu0 %v15050_v21  ;;  %10301 = vmatprep.mubr.bf16.mxu0 %v17155_v38  ;;  %v15154_v21 = vcombine.low %v1118_v3, %v1122_v57  ;;  %v1102_v30 = vld [vmem:[#allocation5 + $0x1c88] sm:$0xff] }
 0x2d4   :  { %v10016_v60 = vpop.f32.mrf.mxu1  ;;  %10261 = vmatmul.mubr.bf16.vlgmr.msra.gmra.mxu1 %v17149_v8  ;;  %v9977_v48 = vpop.f32.mrf.mxu0  ;;  %10271 = vmatprep.subr.bf16.mxu0 %v15043_v25  ;;  %v15147_v25 = vcombine.high %v1110_v14, %v1114_v18  ;;  %v1106_v36 = vld [vmem:[#allocation5 + $0x1ca8] sm:$0xff] }
 0x2d5   :  { %10311 = vmatpush1.bf16.msra.mxu1 %v15178_v23  ;;  %v17274_v49 = vadd.f32 %v10016_v60, %v9976_v45  ;;  %v9978_v52 = vadd.f32 %v9977_v48, %v17269_v5  ;;  %10342 = vmatprep.mubr.bf16.mxu1 %v17160_v42  ;;  %v15162_v5 = vcombine.low %v1126_v41, %v1130_v44  ;;  %v970_v48 = vld [vmem:[#allocation5 + $0x1868] sm:$0xff] }
 0x2d6   :  { %v10018_v56 = vpop.f32.mrf.mxu1  ;;  %10312 = vmatprep.subr.bf16.mxu1 %v15171_v53  ;;  %v9979_v37 = vpop.f32.mrf.mxu0  ;;  %v15019_v23 = vcombine.high %v982_v10, %v986_v17  ;;  %v974_v53 = vld [vmem:[#allocation5 + $0x1888] sm:$0xff]  ;;  %v15018_v41 = vcombine.low %v982_v10, %v986_v17  ;;  %v15146_v44 = vcombine.low %v1110_v14, %v1114_v18  ;;  %v15139_v60 = vcombine.high %v1102_v30, %v1106_v36 }
 0x2d7   :  { %v17279_v4 = vadd.f32 %v10018_v56, %v9978_v52  ;;  %10272 = vmatpush1.bf16.msra.mxu0 %v15042_v46  ;;  %v15011_v45 = vcombine.high %v974_v53, %v978_v27  ;;  %v966_v46 = vld [vmem:[#allocation5 + $0x1848] sm:$0xff]  ;;  %v15010_v52 = vcombine.low %v974_v53, %v978_v27  ;;  %v15138_v56 = vcombine.low %v1102_v30, %v1106_v36 }
 0x2d8   :  { %v10020_v63 = vpop.f32.mrf.mxu1  ;;  %v9980_v24 = vpop.f32.mrf.mxu0  ;;  %10273 = vmatprep.subr.bf16.mxu0 %v15035_v0  ;;  %v1098_v0 = vld [vmem:[#allocation5 + $0x1c68] sm:$0xff] }
 0x2d9   :  { %10313 = vmatpush1.bf16.msra.mxu1 %v15170_v33  ;;  %v1094_v33 = vld [vmem:[#allocation5 + $0x1c48] sm:$0xff]  ;;  %v15002_v63 = vcombine.low %v966_v46, %v970_v48 }
 0x2da   :  { %v10021_v11 = vpop.f32.mrf.mxu1  ;;  %10314 = vmatprep.subr.bf16.mxu1 %v15163_v61  ;;  %v15003_v61 = vcombine.high %v966_v46, %v970_v48  ;;  %v15131_v1 = vcombine.high %v1094_v33, %v1098_v0  ;;  %v958_v6 = vld [vmem:[#allocation5 + $0x1808] sm:$0xff] }
 0x2db   :  { %10274 = vmatpush1.bf16.msra.mxu0 %v15034_v2  ;;  %v962_v37 = vld [vmem:[#allocation5 + $0x1828] sm:$0xff]  ;;  %v15130_v2 = vcombine.low %v1094_v33, %v1098_v0 }
 0x2dc   :  { %10275 = vmatprep.subr.bf16.mxu0 %v15027_v12  ;;  %v1086_v3 = vld [vmem:[#allocation5 + $0x1c08] sm:$0xff]  ;;  %v14995_v24 = vcombine.high %v958_v6, %v962_v37  ;;  %v14994_v17 = vcombine.low %v958_v6, %v962_v37 }
 0x2dd   :  { %10315 = vmatpush1.bf16.msra.mxu1 %v15162_v5  ;;  %v1090_v57 = vld [vmem:[#allocation5 + $0x1c28] sm:$0xff] }
 0x2de   :  { %10316 = vmatprep.subr.bf16.mxu1 %v15155_v15  ;;  %v15123_v5 = vcombine.high %v1086_v3, %v1090_v57  ;;  %v1078_v12 = vld [vmem:[#allocation5 + $0x1bc8] sm:$0xff]  ;;  %v15122_v14 = vcombine.low %v1086_v3, %v1090_v57 }
 0x2df   :  { %10276 = vmatpush1.bf16.msra.mxu0 %v15026_v34  ;;  %v1082_v11 = vld [vmem:[#allocation5 + $0x1be8] sm:$0xff] }
 0x2e0   :  { %10277 = vmatprep.subr.bf16.mxu0 %v15019_v23  ;;  %v1206_v15 = vld [vmem:[#allocation5 + $0x1fc8] sm:$0xff]  ;;  %v15115_v18 = vcombine.high %v1078_v12, %v1082_v11  ;;  %v15114_v27 = vcombine.low %v1078_v12, %v1082_v11 }
 0x2e1   :  { %10317 = vmatpush1.bf16.msra.mxu1 %v15154_v21  ;;  %v1210_v10 = vld [vmem:[#allocation5 + $0x1fe8] sm:$0xff] }
 0x2e2   :  { %10318 = vmatprep.subr.bf16.mxu1 %v15147_v25  ;;  %v15243_v34 = vcombine.high %v1206_v15, %v1210_v10  ;;  %v1070_v21 = vld [vmem:[#allocation5 + $0x1b88] sm:$0xff]  ;;  %v15242_v30 = vcombine.low %v1206_v15, %v1210_v10 }
 0x2e3   :  { %10278 = vmatpush1.bf16.msra.mxu0 %v15018_v41  ;;  %v1074_v23 = vld [vmem:[#allocation5 + $0x1ba8] sm:$0xff] }
 0x2e4   :  { %10279 = vmatprep.subr.bf16.mxu0 %v15011_v45  ;;  %v1198_v25 = vld [vmem:[#allocation5 + $0x1f88] sm:$0xff]  ;;  %v15107_v36 = vcombine.high %v1070_v21, %v1074_v23  ;;  %v15106_v48 = vcombine.low %v1070_v21, %v1074_v23 }
 0x2e5   :  { %10319 = vmatpush1.bf16.msra.mxu1 %v15146_v44  ;;  %v1202_v53 = vld [vmem:[#allocation5 + $0x1fa8] sm:$0xff] }
 0x2e6   :  { %10320 = vmatprep.subr.bf16.mxu1 %v15139_v60  ;;  %v15235_v41 = vcombine.high %v1198_v25, %v1202_v53  ;;  %v1062_v44 = vld [vmem:[#allocation5 + $0x1b48] sm:$0xff]  ;;  %v15234_v33 = vcombine.low %v1198_v25, %v1202_v53 }
 0x2e7   :  { %10280 = vmatpush1.bf16.msra.mxu0 %v15010_v52  ;;  %v1066_v45 = vld [vmem:[#allocation5 + $0x1b68] sm:$0xff] }
 0x2e8   :  { %10281 = vmatprep.subr.bf16.mxu0 %v15003_v61  ;;  %v1190_v60 = vld [vmem:[#allocation5 + $0x1f48] sm:$0xff]  ;;  %v15099_v0 = vcombine.high %v1062_v44, %v1066_v45  ;;  %v15098_v37 = vcombine.low %v1062_v44, %v1066_v45 }
 0x2e9   :  { %10321 = vmatpush1.bf16.msra.mxu1 %v15138_v56  ;;  %v1194_v46 = vld [vmem:[#allocation5 + $0x1f68] sm:$0xff] }
 0x2ea   :  { %10322 = vmatprep.subr.bf16.mxu1 %v15131_v1  ;;  %v15227_v52 = vcombine.high %v1190_v60, %v1194_v46  ;;  %v1054_v56 = vld [vmem:[#allocation5 + $0x1b08] sm:$0xff]  ;;  %v15226_v3 = vcombine.low %v1190_v60, %v1194_v46 }
 0x2eb   :  { %10282 = vmatpush1.bf16.msra.mxu0 %v15002_v63  ;;  %v1058_v61 = vld [vmem:[#allocation5 + $0x1b28] sm:$0xff] }
 0x2ec   :  { %10283 = vmatprep.subr.bf16.mxu0 %v14995_v24  ;;  %v1182_v1 = vld [vmem:[#allocation5 + $0x1f08] sm:$0xff]  ;;  %v15091_v57 = vcombine.high %v1054_v56, %v1058_v61  ;;  %v15090_v11 = vcombine.low %v1054_v56, %v1058_v61 }
 0x2ed   :  { %10323 = vmatpush1.bf16.msra.mxu1 %v15130_v2  ;;  %v1186_v6 = vld [vmem:[#allocation5 + $0x1f28] sm:$0xff] }
 0x2ee   :  { %10324 = vmatprep.subr.bf16.mxu1 %v15123_v5  ;;  %v15219_v63 = vcombine.high %v1182_v1, %v1186_v6  ;;  %v1046_v2 = vld [vmem:[#allocation5 + $0x1ac8] sm:$0xff]  ;;  %v15218_v15 = vcombine.low %v1182_v1, %v1186_v6 }
 0x2ef   :  { %10284 = vmatpush1.bf16.msra.mxu0 %v14994_v17  ;;  %v1050_v24 = vld [vmem:[#allocation5 + $0x1ae8] sm:$0xff] }
 0x2f0   :  { %10285 = vmatprep.subr.bf16.mxu0 %v15115_v18  ;;  %v1174_v5 = vld [vmem:[#allocation5 + $0x1ec8] sm:$0xff]  ;;  %v15083_v10 = vcombine.high %v1046_v2, %v1050_v24  ;;  %v15082_v23 = vcombine.low %v1046_v2, %v1050_v24 }
 0x2f1   :  { %10325 = vmatpush1.bf16.msra.mxu1 %v15122_v14  ;;  %v1178_v12 = vld [vmem:[#allocation5 + $0x1ee8] sm:$0xff] }
 0x2f2   :  { %10326 = vmatprep.subr.bf16.mxu1 %v15243_v34  ;;  %v15211_v17 = vcombine.high %v1174_v5, %v1178_v12  ;;  %v1038_v14 = vld [vmem:[#allocation5 + $0x1a88] sm:$0xff]  ;;  %v15210_v25 = vcombine.low %v1174_v5, %v1178_v12  ;;  %v1737_v5 = vsub.s32 2, %v17165_v31 }
 0x2f3   :  { %10286 = vmatpush2.bf16.msra.mxu0 %v15114_v27  ;;  %v1042_v18 = vld [vmem:[#allocation5 + $0x1aa8] sm:$0xff] }
 0x2f4   :  { %10287 = vmatprep.subr.bf16.mxu0 %v15107_v36  ;;  %v1166_v34 = vld [vmem:[#allocation5 + $0x1e88] sm:$0xff]  ;;  %v15075_v53 = vcombine.high %v1038_v14, %v1042_v18  ;;  %v15074_v45 = vcombine.low %v1038_v14, %v1042_v18 }
 0x2f5   :  { %10327 = vmatpush2.bf16.msra.mxu1 %v15242_v30  ;;  %v1170_v21 = vld [vmem:[#allocation5 + $0x1ea8] sm:$0xff] }
 0x2f6   :  { %10328 = vmatprep.subr.bf16.mxu1 %v15235_v41  ;;  %v15203_v27 = vcombine.high %v1166_v34, %v1170_v21  ;;  %v1030_v30 = vld [vmem:[#allocation5 + $0x1a48] sm:$0xff]  ;;  %v15202_v60 = vcombine.low %v1166_v34, %v1170_v21  ;;  %v16707_v21 = vld [vmem:[#allocation7] sm:$0xff] }
 0x2f7   :  { %10288 = vmatpush2.bf16.msra.mxu0 %v15106_v48  ;;  %v1034_v36 = vld [vmem:[#allocation5 + $0x1a68] sm:$0xff] }
 0x2f8   :  { %10289 = vmatprep.subr.bf16.mxu0 %v15099_v0  ;;  %v1158_v41 = vld [vmem:[#allocation5 + $0x1e48] sm:$0xff]  ;;  %v15067_v46 = vcombine.high %v1030_v30, %v1034_v36  ;;  %v15066_v61 = vcombine.low %v1030_v30, %v1034_v36 }
 0x2f9   :  { %10329 = vmatpush2.bf16.msra.mxu1 %v15234_v33  ;;  %v1162_v44 = vld [vmem:[#allocation5 + $0x1e68] sm:$0xff] }
 0x2fa   :  { %10330 = vmatprep.subr.bf16.mxu1 %v15227_v52  ;;  %v15195_v48 = vcombine.high %v1158_v41, %v1162_v44  ;;  %v1022_v33 = vld [vmem:[#allocation5 + $0x1a08] sm:$0xff]  ;;  %v15194_v1 = vcombine.low %v1158_v41, %v1162_v44 }
 0x2fb   :  { %10290 = vmatpush2.bf16.msra.mxu0 %v15098_v37  ;;  %v1026_v0 = vld [vmem:[#allocation5 + $0x1a28] sm:$0xff] }
 0x2fc   :  { %10291 = vmatprep.subr.bf16.mxu0 %v15091_v57  ;;  %v1150_v52 = vld [vmem:[#allocation5 + $0x1e08] sm:$0xff]  ;;  %v15059_v6 = vcombine.high %v1022_v33, %v1026_v0  ;;  %v15058_v24 = vcombine.low %v1022_v33, %v1026_v0 }
 0x2fd   :  { %10331 = vmatpush2.bf16.msra.mxu1 %v15226_v3  ;;  %v1154_v56 = vld [vmem:[#allocation5 + $0x1e28] sm:$0xff] }
 0x2fe   :  { %10332 = vmatprep.subr.bf16.mxu1 %v15219_v63  ;;  %v15187_v37 = vcombine.high %v1150_v52, %v1154_v56  ;;  %v1270_v3 = vld [vmem:[#allocation5 + $0x21c8] sm:$0xff]  ;;  %v15186_v12 = vcombine.low %v1150_v52, %v1154_v56 }
 0x2ff   :  { %10292 = vmatpush2.bf16.msra.mxu0 %v15090_v11  ;;  %v1274_v57 = vld [vmem:[#allocation5 + $0x21e8] sm:$0xff] }
 0x300   :  { %10293 = vmatprep.subr.bf16.mxu0 %v15083_v10  ;;  %v1398_v63 = vld [vmem:[#allocation5 + $0x25c8] sm:$0xff]  ;;  %v15307_v11 = vcombine.high %v1270_v3, %v1274_v57  ;;  %v1741_v10 = vsub.s32 3, %v17165_v31 }
 0x301   :  { %10333 = vmatpush2.bf16.msra.mxu1 %v15218_v15  ;;  %v1402_v2 = vld [vmem:[#allocation5 + $0x25e8] sm:$0xff] }
 0x302   :  { %10334 = vmatprep.subr.bf16.mxu1 %v15211_v17  ;;  %v15435_v15 = vcombine.high %v1398_v63, %v1402_v2  ;;  %v1262_v17 = vld [vmem:[#allocation5 + $0x2188] sm:$0xff]  ;;  %v1742_v30 = vrot.slane %v16707_v21, %v1741_v10 }
 0x303   :  { %10294 = vmatpush2.bf16.msra.mxu0 %v15082_v23  ;;  %v1266_v14 = vld [vmem:[#allocation5 + $0x21a8] sm:$0xff]  ;;  %v1738_v23 = vrot.slane %v16707_v21, %v1737_v5 }
 0x304   :  { %10295 = vmatprep.subr.bf16.mxu0 %v15075_v53  ;;  %v1390_v18 = vld [vmem:[#allocation5 + $0x2588] sm:$0xff]  ;;  %v15434_v53 = vcombine.low %v1398_v63, %v1402_v2  ;;  %v15298_v0 = vcombine.low %v1262_v17, %v1266_v14 }
 0x305   :  { %10335 = vmatpush2.bf16.msra.mxu1 %v15210_v25  ;;  %v1394_v34 = vld [vmem:[#allocation5 + $0x25a8] sm:$0xff]  ;;  %v15306_v25 = vcombine.low %v1270_v3, %v1274_v57 }
 0x306   :  { %10336 = vmatprep.subr.bf16.mxu1 %v15203_v27  ;;  %v15299_v27 = vcombine.high %v1262_v17, %v1266_v14  ;;  %v15427_v36 = vcombine.high %v1390_v18, %v1394_v34  ;;  %v1254_v41 = vld [vmem:[#allocation5 + $0x2148] sm:$0xff]  ;;  %v15426_v56 = vcombine.low %v1390_v18, %v1394_v34 }
 0x307   :  { %10296 = vmatpush2.bf16.msra.mxu0 %v15074_v45  ;;  %v1258_v44 = vld [vmem:[#allocation5 + $0x2168] sm:$0xff] }
 0x308   :  { %10297 = vmatprep.subr.bf16.mxu0 %v15067_v46  ;;  %v1386_v46 = vld [vmem:[#allocation5 + $0x2568] sm:$0xff]  ;;  %v15290_v17 = vcombine.low %v1254_v41, %v1258_v44 }
 0x309   :  { %10337 = vmatpush2.bf16.msra.mxu1 %v15202_v60  ;;  %v1382_v60 = vld [vmem:[#allocation5 + $0x2548] sm:$0xff] }
 0x30a   :  { %10338 = vmatprep.subr.bf16.mxu1 %v15195_v48  ;;  %v15419_v3 = vcombine.high %v1382_v60, %v1386_v46  ;;  %v1246_v57 = vld [vmem:[#allocation5 + $0x2108] sm:$0xff]  ;;  %v15418_v18 = vcombine.low %v1382_v60, %v1386_v46 }
 0x30b   :  { %10298 = vmatpush2.bf16.msra.mxu0 %v15066_v61  ;;  %v15291_v61 = vcombine.high %v1254_v41, %v1258_v44  ;;  %v1250_v63 = vld [vmem:[#allocation5 + $0x2128] sm:$0xff] }
 0x30c   :  { %10299 = vmatprep.subr.bf16.mxu0 %v15059_v6  ;;  %v15283_v34 = vcombine.high %v1246_v57, %v1250_v63  ;;  %v1230_v44 = vld [vmem:[#allocation5 + $0x2088] sm:$0xff] }
 0x30d   :  { %10339 = vmatpush2.bf16.msra.mxu1 %v15194_v1  ;;  %v1362_v60 = vld [vmem:[#allocation5 + $0x24a8] sm:$0xff] }
 0x30e   :  { %10340 = vmatprep.subr.bf16.mxu1 %v15187_v37 }
 0x30f   :  { %10300 = vmatpush2.bf16.msra.mxu0 %v15058_v24  ;;  %v1374_v24 = vld [vmem:[#allocation5 + $0x2508] sm:$0xff] }
 0x310   :  { %10351 = vmatprep.subr.bf16.mxu0 %v15307_v11 }
 0x311   :  { %10341 = vmatpush2.bf16.msra.mxu1 %v15186_v12  ;;  %v1378_v12 = vld [vmem:[#allocation5 + $0x2528] sm:$0xff] }
 0x312   :  { %10392 = vmatprep.subr.bf16.mxu1 %v15435_v15  ;;  %v10057_v45 = vpop.f32.mrf.mxu0  ;;  %10302 = vmatmul.mubr.bf16.vlgmr.msra.gmra.mxu0 %v17175_v55 }
 0x313   :  { %v10058_v48 = vadd.f32 %v10057_v45, %v1738_v23  ;;  %10352 = vmatpush1.bf16.msra.mxu0 %v15306_v25  ;;  %10383 = vmatprep.mubr.bf16.mxu0 %v17189_v9  ;;  %v15411_v23 = vcombine.high %v1374_v24, %v1378_v12  ;;  %v1238_v25 = vld [vmem:[#allocation5 + $0x20c8] sm:$0xff]  ;;  %v15410_v45 = vcombine.low %v1374_v24, %v1378_v12 }
 0x314   :  { %v10098_v33 = vpop.f32.mrf.mxu1  ;;  %10343 = vmatmul.mubr.bf16.vlgmr.msra.gmra.mxu1 %v17182_v62  ;;  %v10059_v52 = vpop.f32.mrf.mxu0  ;;  %10353 = vmatprep.subr.bf16.mxu0 %v15299_v27  ;;  %v1366_v27 = vld [vmem:[#allocation5 + $0x24c8] sm:$0xff] }
 0x315   :  { %10393 = vmatpush1.bf16.msra.mxu1 %v15434_v53  ;;  %v17289_v1 = vadd.f32 %v10098_v33, %v10058_v48  ;;  %v10060_v6 = vadd.f32 %v10059_v52, %v1742_v30  ;;  %10424 = vmatprep.mubr.bf16.mxu1 %v17194_v13  ;;  %v1242_v53 = vld [vmem:[#allocation5 + $0x20e8] sm:$0xff] }
 0x316   :  { %v10100_v37 = vpop.f32.mrf.mxu1  ;;  %10394 = vmatprep.subr.bf16.mxu1 %v15427_v36  ;;  %v10061_v2 = vpop.f32.mrf.mxu0  ;;  %v1370_v30 = vld [vmem:[#allocation5 + $0x24e8] sm:$0xff]  ;;  %v15282_v36 = vcombine.low %v1246_v57, %v1250_v63  ;;  %v15275_v48 = vcombine.high %v1238_v25, %v1242_v53  ;;  %v15274_v46 = vcombine.low %v1238_v25, %v1242_v53 }
 0x317   :  { %v17293_v11 = vadd.f32 %v10100_v37, %v10060_v6  ;;  %10354 = vmatpush1.bf16.msra.mxu0 %v15298_v0  ;;  %v15403_v41 = vcombine.high %v1366_v27, %v1370_v30  ;;  %v1234_v33 = vld [vmem:[#allocation5 + $0x20a8] sm:$0xff]  ;;  %v15402_v52 = vcombine.low %v1366_v27, %v1370_v30 }
 0x318   :  { %v10102_v15 = vpop.f32.mrf.mxu1  ;;  %v10062_v14 = vpop.f32.mrf.mxu0  ;;  %10355 = vmatprep.subr.bf16.mxu0 %v15291_v61  ;;  %v1358_v0 = vld [vmem:[#allocation5 + $0x2488] sm:$0xff]  ;;  %v15266_v63 = vcombine.low %v1230_v44, %v1234_v33 }
 0x319   :  { %10395 = vmatpush1.bf16.msra.mxu1 %v15426_v56  ;;  %v15267_v56 = vcombine.high %v1230_v44, %v1234_v33  ;;  %v15395_v61 = vcombine.high %v1358_v0, %v1362_v60  ;;  %v1222_v6 = vld [vmem:[#allocation5 + $0x2048] sm:$0xff]  ;;  %v15394_v2 = vcombine.low %v1358_v0, %v1362_v60 }
 0x31a   :  { %v10103_v21 = vpop.f32.mrf.mxu1  ;;  %10396 = vmatprep.subr.bf16.mxu1 %v15419_v3  ;;  %v1226_v37 = vld [vmem:[#allocation5 + $0x2068] sm:$0xff] }
 0x31b   :  { %10356 = vmatpush1.bf16.msra.mxu0 %v15290_v17  ;;  %v1350_v3 = vld [vmem:[#allocation5 + $0x2448] sm:$0xff]  ;;  %v15259_v24 = vcombine.high %v1222_v6, %v1226_v37 }
 0x31c   :  { %10357 = vmatprep.subr.bf16.mxu0 %v15283_v34  ;;  %v1354_v57 = vld [vmem:[#allocation5 + $0x2468] sm:$0xff]  ;;  %v15258_v34 = vcombine.low %v1222_v6, %v1226_v37 }
 0x31d   :  { %10397 = vmatpush1.bf16.msra.mxu1 %v15418_v18  ;;  %v15387_v12 = vcombine.high %v1350_v3, %v1354_v57  ;;  %v1214_v15 = vld [vmem:[#allocation5 + $0x2008] sm:$0xff]  ;;  %v15386_v21 = vcombine.low %v1350_v3, %v1354_v57 }
 0x31e   :  { %10398 = vmatprep.subr.bf16.mxu1 %v15411_v23  ;;  %v1218_v17 = vld [vmem:[#allocation5 + $0x2028] sm:$0xff] }
 0x31f   :  { %10358 = vmatpush1.bf16.msra.mxu0 %v15282_v36  ;;  %v1342_v14 = vld [vmem:[#allocation5 + $0x2408] sm:$0xff]  ;;  %v15251_v23 = vcombine.high %v1214_v15, %v1218_v17 }
 0x320   :  { %10359 = vmatprep.subr.bf16.mxu0 %v15275_v48  ;;  %v1346_v18 = vld [vmem:[#allocation5 + $0x2428] sm:$0xff] }
 0x321   :  { %10399 = vmatpush1.bf16.msra.mxu1 %v15410_v45  ;;  %v15379_v25 = vcombine.high %v1342_v14, %v1346_v18  ;;  %v1334_v53 = vld [vmem:[#allocation5 + $0x23c8] sm:$0xff]  ;;  %v15250_v45 = vcombine.low %v1214_v15, %v1218_v17  ;;  %v15378_v48 = vcombine.low %v1342_v14, %v1346_v18 }
 0x322   :  { %10400 = vmatprep.subr.bf16.mxu1 %v15403_v41  ;;  %v1338_v27 = vld [vmem:[#allocation5 + $0x23e8] sm:$0xff] }
 0x323   :  { %10360 = vmatpush1.bf16.msra.mxu0 %v15274_v46  ;;  %v1462_v30 = vld [vmem:[#allocation5 + $0x27c8] sm:$0xff]  ;;  %v15371_v41 = vcombine.high %v1334_v53, %v1338_v27 }
 0x324   :  { %10361 = vmatprep.subr.bf16.mxu0 %v15267_v56  ;;  %v1466_v36 = vld [vmem:[#allocation5 + $0x27e8] sm:$0xff] }
 0x325   :  { %10401 = vmatpush1.bf16.msra.mxu1 %v15402_v52  ;;  %v15499_v44 = vcombine.high %v1462_v30, %v1466_v36  ;;  %v1326_v33 = vld [vmem:[#allocation5 + $0x2388] sm:$0xff]  ;;  %v15370_v52 = vcombine.low %v1334_v53, %v1338_v27  ;;  %v15498_v56 = vcombine.low %v1462_v30, %v1466_v36 }
 0x326   :  { %10402 = vmatprep.subr.bf16.mxu1 %v15395_v61  ;;  %v1330_v0 = vld [vmem:[#allocation5 + $0x23a8] sm:$0xff] }
 0x327   :  { %10362 = vmatpush1.bf16.msra.mxu0 %v15266_v63  ;;  %v1454_v60 = vld [vmem:[#allocation5 + $0x2788] sm:$0xff]  ;;  %v15363_v61 = vcombine.high %v1326_v33, %v1330_v0 }
 0x328   :  { %10363 = vmatprep.subr.bf16.mxu0 %v15259_v24  ;;  %v1458_v46 = vld [vmem:[#allocation5 + $0x27a8] sm:$0xff] }
 0x329   :  { %10403 = vmatpush1.bf16.msra.mxu1 %v15394_v2  ;;  %v15491_v6 = vcombine.high %v1454_v60, %v1458_v46  ;;  %v1318_v37 = vld [vmem:[#allocation5 + $0x2348] sm:$0xff]  ;;  %v15362_v2 = vcombine.low %v1326_v33, %v1330_v0  ;;  %v15490_v24 = vcombine.low %v1454_v60, %v1458_v46 }
 0x32a   :  { %10404 = vmatprep.subr.bf16.mxu1 %v15387_v12  ;;  %v1322_v3 = vld [vmem:[#allocation5 + $0x2368] sm:$0xff] }
 0x32b   :  { %10364 = vmatpush1.bf16.msra.mxu0 %v15258_v34  ;;  %v1446_v57 = vld [vmem:[#allocation5 + $0x2748] sm:$0xff]  ;;  %v15355_v12 = vcombine.high %v1318_v37, %v1322_v3 }
 0x32c   :  { %10365 = vmatprep.subr.bf16.mxu0 %v15251_v23  ;;  %v1450_v63 = vld [vmem:[#allocation5 + $0x2768] sm:$0xff] }
 0x32d   :  { %10405 = vmatpush1.bf16.msra.mxu1 %v15386_v21  ;;  %v15483_v15 = vcombine.high %v1446_v57, %v1450_v63  ;;  %v1310_v17 = vld [vmem:[#allocation5 + $0x2308] sm:$0xff]  ;;  %v15354_v21 = vcombine.low %v1318_v37, %v1322_v3  ;;  %v15482_v23 = vcombine.low %v1446_v57, %v1450_v63 }
 0x32e   :  { %10406 = vmatprep.subr.bf16.mxu1 %v15379_v25  ;;  %v1314_v14 = vld [vmem:[#allocation5 + $0x2328] sm:$0xff] }
 0x32f   :  { %10366 = vmatpush1.bf16.msra.mxu0 %v15250_v45  ;;  %v1438_v18 = vld [vmem:[#allocation5 + $0x2708] sm:$0xff]  ;;  %v15347_v25 = vcombine.high %v1310_v17, %v1314_v14 }
 0x330   :  { %10367 = vmatprep.subr.bf16.mxu0 %v15371_v41  ;;  %v1442_v34 = vld [vmem:[#allocation5 + $0x2728] sm:$0xff] }
 0x331   :  { %10407 = vmatpush1.bf16.msra.mxu1 %v15378_v48  ;;  %v15475_v53 = vcombine.high %v1438_v18, %v1442_v34  ;;  %v1302_v27 = vld [vmem:[#allocation5 + $0x22c8] sm:$0xff]  ;;  %v15346_v48 = vcombine.low %v1310_v17, %v1314_v14  ;;  %v15474_v41 = vcombine.low %v1438_v18, %v1442_v34 }
 0x332   :  { %10408 = vmatprep.subr.bf16.mxu1 %v15499_v44  ;;  %v1306_v30 = vld [vmem:[#allocation5 + $0x22e8] sm:$0xff] }
 0x333   :  { %10368 = vmatpush2.bf16.msra.mxu0 %v15370_v52  ;;  %v1430_v36 = vld [vmem:[#allocation5 + $0x26c8] sm:$0xff]  ;;  %v15339_v44 = vcombine.high %v1302_v27, %v1306_v30 }
 0x334   :  { %10369 = vmatprep.subr.bf16.mxu0 %v15363_v61  ;;  %v1434_v45 = vld [vmem:[#allocation5 + $0x26e8] sm:$0xff] }
 0x335   :  { %10409 = vmatpush2.bf16.msra.mxu1 %v15498_v56  ;;  %v15467_v33 = vcombine.high %v1430_v36, %v1434_v45  ;;  %v1294_v0 = vld [vmem:[#allocation5 + $0x2288] sm:$0xff]  ;;  %v15338_v56 = vcombine.low %v1302_v27, %v1306_v30  ;;  %v15466_v61 = vcombine.low %v1430_v36, %v1434_v45 }
 0x336   :  { %10410 = vmatprep.subr.bf16.mxu1 %v15491_v6  ;;  %v1298_v60 = vld [vmem:[#allocation5 + $0x22a8] sm:$0xff] }
 0x337   :  { %10370 = vmatpush2.bf16.msra.mxu0 %v15362_v2  ;;  %v1422_v46 = vld [vmem:[#allocation5 + $0x2688] sm:$0xff]  ;;  %v15331_v6 = vcombine.high %v1294_v0, %v1298_v60 }
 0x338   :  { %10371 = vmatprep.subr.bf16.mxu0 %v15355_v12  ;;  %v1426_v52 = vld [vmem:[#allocation5 + $0x26a8] sm:$0xff] }
 0x339   :  { %10411 = vmatpush2.bf16.msra.mxu1 %v15490_v24  ;;  %v15459_v37 = vcombine.high %v1422_v46, %v1426_v52  ;;  %v1286_v3 = vld [vmem:[#allocation5 + $0x2248] sm:$0xff]  ;;  %v15330_v24 = vcombine.low %v1294_v0, %v1298_v60  ;;  %v15458_v12 = vcombine.low %v1422_v46, %v1426_v52 }
 0x33a   :  { %10412 = vmatprep.subr.bf16.mxu1 %v15483_v15  ;;  %v1290_v57 = vld [vmem:[#allocation5 + $0x2268] sm:$0xff] }
 0x33b   :  { %10372 = vmatpush2.bf16.msra.mxu0 %v15354_v21  ;;  %v1414_v63 = vld [vmem:[#allocation5 + $0x2648] sm:$0xff]  ;;  %v15323_v15 = vcombine.high %v1286_v3, %v1290_v57 }
 0x33c   :  { %10373 = vmatprep.subr.bf16.mxu0 %v15347_v25  ;;  %v1418_v2 = vld [vmem:[#allocation5 + $0x2668] sm:$0xff] }
 0x33d   :  { %10413 = vmatpush2.bf16.msra.mxu1 %v15482_v23  ;;  %v15451_v17 = vcombine.high %v1414_v63, %v1418_v2  ;;  %v1278_v14 = vld [vmem:[#allocation5 + $0x2208] sm:$0xff]  ;;  %v15322_v23 = vcombine.low %v1286_v3, %v1290_v57  ;;  %v15450_v25 = vcombine.low %v1414_v63, %v1418_v2 }
 0x33e   :  { %10414 = vmatprep.subr.bf16.mxu1 %v15475_v53  ;;  %v1282_v18 = vld [vmem:[#allocation5 + $0x2228] sm:$0xff] }
 0x33f   :  { %10374 = vmatpush2.bf16.msra.mxu0 %v15346_v48  ;;  %v1406_v34 = vld [vmem:[#allocation5 + $0x2608] sm:$0xff]  ;;  %v15315_v53 = vcombine.high %v1278_v14, %v1282_v18 }
 0x340   :  { %10375 = vmatprep.subr.bf16.mxu0 %v15339_v44  ;;  %v1410_v21 = vld [vmem:[#allocation5 + $0x2628] sm:$0xff] }
 0x341   :  { %10415 = vmatpush2.bf16.msra.mxu1 %v15474_v41  ;;  %v15443_v27 = vcombine.high %v1406_v34, %v1410_v21  ;;  %v1526_v30 = vld [vmem:[#allocation5 + $0x29c8] sm:$0xff]  ;;  %v15314_v41 = vcombine.low %v1278_v14, %v1282_v18  ;;  %v15442_v44 = vcombine.low %v1406_v34, %v1410_v21 }
 0x342   :  { %10416 = vmatprep.subr.bf16.mxu1 %v15467_v33  ;;  %v1530_v36 = vld [vmem:[#allocation5 + $0x29e8] sm:$0xff] }
 0x343   :  { %10376 = vmatpush2.bf16.msra.mxu0 %v15338_v56  ;;  %v1654_v45 = vld [vmem:[#allocation5 + $0x2dc8] sm:$0xff]  ;;  %v15563_v33 = vcombine.high %v1526_v30, %v1530_v36 }
 0x344   :  { %10377 = vmatprep.subr.bf16.mxu0 %v15331_v6  ;;  %v1658_v48 = vld [vmem:[#allocation5 + $0x2de8] sm:$0xff] }
 0x345   :  { %10417 = vmatpush2.bf16.msra.mxu1 %v15466_v61  ;;  %v15691_v0 = vcombine.high %v1654_v45, %v1658_v48  ;;  %v1518_v60 = vld [vmem:[#allocation5 + $0x2988] sm:$0xff]  ;;  %v15562_v61 = vcombine.low %v1526_v30, %v1530_v36  ;;  %v15690_v6 = vcombine.low %v1654_v45, %v1658_v48 }
 0x346   :  { %10418 = vmatprep.subr.bf16.mxu1 %v15459_v37  ;;  %v1522_v46 = vld [vmem:[#allocation5 + $0x29a8] sm:$0xff] }
 0x347   :  { %10378 = vmatpush2.bf16.msra.mxu0 %v15330_v24  ;;  %v1646_v52 = vld [vmem:[#allocation5 + $0x2d88] sm:$0xff]  ;;  %v15555_v37 = vcombine.high %v1518_v60, %v1522_v46  ;;  %v15554_v14 = vcombine.low %v1518_v60, %v1522_v46 }
 0x348   :  { %10379 = vmatprep.subr.bf16.mxu0 %v15323_v15  ;;  %v1650_v56 = vld [vmem:[#allocation5 + $0x2da8] sm:$0xff] }
 0x349   :  { %10419 = vmatpush2.bf16.msra.mxu1 %v15458_v12  ;;  %v15683_v3 = vcombine.high %v1646_v52, %v1650_v56  ;;  %v1510_v57 = vld [vmem:[#allocation5 + $0x2948] sm:$0xff]  ;;  %v15682_v34 = vcombine.low %v1646_v52, %v1650_v56 }
 0x34a   :  { %10420 = vmatprep.subr.bf16.mxu1 %v15451_v17  ;;  %v1514_v63 = vld [vmem:[#allocation5 + $0x2968] sm:$0xff] }
 0x34b   :  { %10380 = vmatpush2.bf16.msra.mxu0 %v15322_v23  ;;  %v1638_v24 = vld [vmem:[#allocation5 + $0x2d48] sm:$0xff]  ;;  %v15547_v21 = vcombine.high %v1510_v57, %v1514_v63 }
 0x34c   :  { %10381 = vmatprep.subr.bf16.mxu0 %v15315_v53  ;;  %v1642_v12 = vld [vmem:[#allocation5 + $0x2d68] sm:$0xff] }
 0x34d   :  { %10421 = vmatpush2.bf16.msra.mxu1 %v15450_v25  ;;  %v1502_v30 = vld [vmem:[#allocation5 + $0x2908] sm:$0xff] }
 0x34e   :  { %10422 = vmatprep.subr.bf16.mxu1 %v15443_v27  ;;  %v15675_v27 = vcombine.high %v1638_v24, %v1642_v12  ;;  %v1506_v36 = vld [vmem:[#allocation5 + $0x2928] sm:$0xff] }
 0x34f   :  { %10382 = vmatpush2.bf16.msra.mxu0 %v15314_v41  ;;  %v1630_v45 = vld [vmem:[#allocation5 + $0x2d08] sm:$0xff]  ;;  %v15539_v60 = vcombine.high %v1502_v30, %v1506_v36 }
 0x350   :  { %10433 = vmatprep.subr.bf16.mxu0 %v15563_v33  ;;  %v1634_v48 = vld [vmem:[#allocation5 + $0x2d28] sm:$0xff]  ;;  %v15546_v33 = vcombine.low %v1510_v57, %v1514_v63 }
 0x351   :  { %10423 = vmatpush2.bf16.msra.mxu1 %v15442_v44  ;;  %v15667_v52 = vcombine.high %v1630_v45, %v1634_v48  ;;  %v1494_v56 = vld [vmem:[#allocation5 + $0x28c8] sm:$0xff] }
 0x352   :  { %10474 = vmatprep.subr.bf16.mxu1 %v15691_v0  ;;  %v10139_v2 = vpop.f32.mrf.mxu0  ;;  %10384 = vmatmul.mubr.bf16.vlgmr.msra.gmra.mxu0 %v17205_v54  ;;  %v1486_v63 = vld [vmem:[#allocation5 + $0x2888] sm:$0xff] }
 0x353   :  { %v10140_v15 = vadd.f32 %v10139_v2, %v17289_v1  ;;  %10434 = vmatpush1.bf16.msra.mxu0 %v15562_v61  ;;  %10465 = vmatprep.mubr.bf16.mxu0 %v17217_v47  ;;  %v1498_v61 = vld [vmem:[#allocation5 + $0x28e8] sm:$0xff]  ;;  %v15666_v2 = vcombine.low %v1630_v45, %v1634_v48 }
 0x354   :  { %v10180_v17 = vpop.f32.mrf.mxu1  ;;  %10425 = vmatmul.mubr.bf16.vlgmr.msra.gmra.mxu1 %v17211_v35  ;;  %v10141_v18 = vpop.f32.mrf.mxu0  ;;  %10435 = vmatprep.subr.bf16.mxu0 %v15555_v37  ;;  %v1626_v37 = vld [vmem:[#allocation5 + $0x2ce8] sm:$0xff] }
 0x355   :  { %10475 = vmatpush1.bf16.msra.mxu1 %v15690_v6  ;;  %v17298_v23 = vadd.f32 %v10180_v17, %v10140_v15  ;;  %v10142_v25 = vadd.f32 %v10141_v18, %v17293_v11  ;;  %10506 = vmatprep.mubr.bf16.mxu1 %v17222_v51  ;;  %v15674_v11 = vcombine.low %v1638_v24, %v1642_v12  ;;  %v1622_v6 = vld [vmem:[#allocation5 + $0x2cc8] sm:$0xff] }
 0x356   :  { %v10182_v53 = vpop.f32.mrf.mxu1  ;;  %10476 = vmatprep.subr.bf16.mxu1 %v15683_v3  ;;  %v10143_v1 = vpop.f32.mrf.mxu0  ;;  %v15538_v3 = vcombine.low %v1502_v30, %v1506_v36  ;;  %v15531_v15 = vcombine.high %v1494_v56, %v1498_v61  ;;  %v15659_v57 = vcombine.high %v1622_v6, %v1626_v37  ;;  %v1490_v17 = vld [vmem:[#allocation5 + $0x28a8] sm:$0xff]  ;;  %v15530_v12 = vcombine.low %v1494_v56, %v1498_v61 }
 0x357   :  { %v17303_v41 = vadd.f32 %v10182_v53, %v10142_v25  ;;  %10436 = vmatpush1.bf16.msra.mxu0 %v15554_v14  ;;  %v1614_v14 = vld [vmem:[#allocation5 + $0x2c88] sm:$0xff]  ;;  %v15658_v18 = vcombine.low %v1622_v6, %v1626_v37  ;;  %v15522_v36 = vcombine.low %v1486_v63, %v1490_v17 }
 0x358   :  { %v10184_v44 = vpop.f32.mrf.mxu1  ;;  %v10144_v0 = vpop.f32.mrf.mxu0  ;;  %10437 = vmatprep.subr.bf16.mxu0 %v15547_v21  ;;  %v1618_v24 = vld [vmem:[#allocation5 + $0x2ca8] sm:$0xff] }
 0x359   :  { %10477 = vmatpush1.bf16.msra.mxu1 %v15682_v34  ;;  %v15523_v34 = vcombine.high %v1486_v63, %v1490_v17  ;;  %v15651_v21 = vcombine.high %v1614_v14, %v1618_v24  ;;  %v1478_v25 = vld [vmem:[#allocation5 + $0x2848] sm:$0xff]  ;;  %v15650_v1 = vcombine.low %v1614_v14, %v1618_v24 }
 0x35a   :  { %v10185_v46 = vpop.f32.mrf.mxu1  ;;  %10478 = vmatprep.subr.bf16.mxu1 %v15675_v27  ;;  %v1482_v53 = vld [vmem:[#allocation5 + $0x2868] sm:$0xff] }
 0x35b   :  { %10438 = vmatpush1.bf16.msra.mxu0 %v15546_v33  ;;  %v1606_v27 = vld [vmem:[#allocation5 + $0x2c48] sm:$0xff]  ;;  %v15515_v45 = vcombine.high %v1478_v25, %v1482_v53 }
 0x35c   :  { %10439 = vmatprep.subr.bf16.mxu0 %v15539_v60  ;;  %v1610_v30 = vld [vmem:[#allocation5 + $0x2c68] sm:$0xff]  ;;  %v15514_v60 = vcombine.low %v1478_v25, %v1482_v53 }
 0x35d   :  { %10479 = vmatpush1.bf16.msra.mxu1 %v15674_v11  ;;  %v15643_v48 = vcombine.high %v1606_v27, %v1610_v30  ;;  %v1470_v44 = vld [vmem:[#allocation5 + $0x2808] sm:$0xff]  ;;  %v15642_v46 = vcombine.low %v1606_v27, %v1610_v30 }
 0x35e   :  { %10480 = vmatprep.subr.bf16.mxu1 %v15667_v52  ;;  %v1474_v33 = vld [vmem:[#allocation5 + $0x2828] sm:$0xff] }
 0x35f   :  { %10440 = vmatpush1.bf16.msra.mxu0 %v15538_v3  ;;  %v1598_v0 = vld [vmem:[#allocation5 + $0x2c08] sm:$0xff]  ;;  %v15507_v52 = vcombine.high %v1470_v44, %v1474_v33 }
 0x360   :  { %10441 = vmatprep.subr.bf16.mxu0 %v15531_v15  ;;  %v1602_v11 = vld [vmem:[#allocation5 + $0x2c28] sm:$0xff] }
 0x361   :  { %10481 = vmatpush1.bf16.msra.mxu1 %v15666_v2  ;;  %v15635_v56 = vcombine.high %v1598_v0, %v1602_v11  ;;  %v1590_v61 = vld [vmem:[#allocation5 + $0x2bc8] sm:$0xff]  ;;  %v15506_v2 = vcombine.low %v1470_v44, %v1474_v33  ;;  %v15634_v15 = vcombine.low %v1598_v0, %v1602_v11 }
 0x362   :  { %10482 = vmatprep.subr.bf16.mxu1 %v15659_v57  ;;  %v1594_v6 = vld [vmem:[#allocation5 + $0x2be8] sm:$0xff] }
 0x363   :  { %10442 = vmatpush1.bf16.msra.mxu0 %v15530_v12  ;;  %v1718_v37 = vld [vmem:[#allocation5 + $0x2fc8] sm:$0xff]  ;;  %v15627_v57 = vcombine.high %v1590_v61, %v1594_v6 }
 0x364   :  { %10443 = vmatprep.subr.bf16.mxu0 %v15523_v34  ;;  %v1722_v3 = vld [vmem:[#allocation5 + $0x2fe8] sm:$0xff] }
 0x365   :  { %10483 = vmatpush1.bf16.msra.mxu1 %v15658_v18  ;;  %v15755_v63 = vcombine.high %v1718_v37, %v1722_v3  ;;  %v1582_v17 = vld [vmem:[#allocation5 + $0x2b88] sm:$0xff]  ;;  %v15626_v18 = vcombine.low %v1590_v61, %v1594_v6  ;;  %v15754_v34 = vcombine.low %v1718_v37, %v1722_v3 }
 0x366   :  { %10484 = vmatprep.subr.bf16.mxu1 %v15651_v21  ;;  %v1586_v14 = vld [vmem:[#allocation5 + $0x2ba8] sm:$0xff] }
 0x367   :  { %10444 = vmatpush1.bf16.msra.mxu0 %v15522_v36  ;;  %v1710_v24 = vld [vmem:[#allocation5 + $0x2f88] sm:$0xff]  ;;  %v15619_v21 = vcombine.high %v1582_v17, %v1586_v14 }
 0x368   :  { %10445 = vmatprep.subr.bf16.mxu0 %v15515_v45  ;;  %v1714_v12 = vld [vmem:[#allocation5 + $0x2fa8] sm:$0xff] }
 0x369   :  { %10485 = vmatpush1.bf16.msra.mxu1 %v15650_v1  ;;  %v15747_v25 = vcombine.high %v1710_v24, %v1714_v12  ;;  %v1574_v53 = vld [vmem:[#allocation5 + $0x2b48] sm:$0xff]  ;;  %v15618_v1 = vcombine.low %v1582_v17, %v1586_v14  ;;  %v15746_v45 = vcombine.low %v1710_v24, %v1714_v12 }
 0x36a   :  { %10486 = vmatprep.subr.bf16.mxu1 %v15643_v48  ;;  %v1578_v27 = vld [vmem:[#allocation5 + $0x2b68] sm:$0xff] }
 0x36b   :  { %10446 = vmatpush1.bf16.msra.mxu0 %v15514_v60  ;;  %v1702_v30 = vld [vmem:[#allocation5 + $0x2f48] sm:$0xff]  ;;  %v15611_v48 = vcombine.high %v1574_v53, %v1578_v27 }
 0x36c   :  { %10447 = vmatprep.subr.bf16.mxu0 %v15507_v52  ;;  %v1706_v36 = vld [vmem:[#allocation5 + $0x2f68] sm:$0xff] }
 0x36d   :  { %10487 = vmatpush1.bf16.msra.mxu1 %v15642_v46  ;;  %v15739_v44 = vcombine.high %v1702_v30, %v1706_v36  ;;  %v1566_v33 = vld [vmem:[#allocation5 + $0x2b08] sm:$0xff]  ;;  %v15610_v46 = vcombine.low %v1574_v53, %v1578_v27  ;;  %v15738_v52 = vcombine.low %v1702_v30, %v1706_v36 }
 0x36e   :  { %10488 = vmatprep.subr.bf16.mxu1 %v15635_v56  ;;  %v1570_v0 = vld [vmem:[#allocation5 + $0x2b28] sm:$0xff] }
 0x36f   :  { %10448 = vmatpush1.bf16.msra.mxu0 %v15506_v2  ;;  %v1694_v11 = vld [vmem:[#allocation5 + $0x2f08] sm:$0xff]  ;;  %v15603_v56 = vcombine.high %v1566_v33, %v1570_v0 }
 0x370   :  { %10449 = vmatprep.subr.bf16.mxu0 %v15627_v57  ;;  %v1698_v60 = vld [vmem:[#allocation5 + $0x2f28] sm:$0xff] }
 0x371   :  { %10489 = vmatpush1.bf16.msra.mxu1 %v15634_v15  ;;  %v15731_v61 = vcombine.high %v1694_v11, %v1698_v60  ;;  %v1558_v6 = vld [vmem:[#allocation5 + $0x2ac8] sm:$0xff]  ;;  %v15602_v15 = vcombine.low %v1566_v33, %v1570_v0  ;;  %v15730_v57 = vcombine.low %v1694_v11, %v1698_v60 }
 0x372   :  { %10490 = vmatprep.subr.bf16.mxu1 %v15755_v63  ;;  %v1562_v37 = vld [vmem:[#allocation5 + $0x2ae8] sm:$0xff] }
 0x373   :  { %10450 = vmatpush2.bf16.msra.mxu0 %v15626_v18  ;;  %v1686_v3 = vld [vmem:[#allocation5 + $0x2ec8] sm:$0xff]  ;;  %v15595_v63 = vcombine.high %v1558_v6, %v1562_v37 }
 0x374   :  { %10451 = vmatprep.subr.bf16.mxu0 %v15619_v21  ;;  %v1690_v2 = vld [vmem:[#allocation5 + $0x2ee8] sm:$0xff] }
 0x375   :  { %10491 = vmatpush2.bf16.msra.mxu1 %v15754_v34  ;;  %v15723_v17 = vcombine.high %v1686_v3, %v1690_v2  ;;  %v1550_v14 = vld [vmem:[#allocation5 + $0x2a88] sm:$0xff]  ;;  %v15594_v34 = vcombine.low %v1558_v6, %v1562_v37  ;;  %v15722_v21 = vcombine.low %v1686_v3, %v1690_v2  ;;  %v247_v37 = vld [vmem:[#allocation5 + $0x1d0] sm:$0xff] }
 0x376   :  { %10492 = vmatprep.subr.bf16.mxu1 %v15747_v25  ;;  %v1554_v24 = vld [vmem:[#allocation5 + $0x2aa8] sm:$0xff]  ;;  %v251_v3 = vld [vmem:[#allocation5 + $0x1f0] sm:$0xff] }
 0x377   :  { %10452 = vmatpush2.bf16.msra.mxu0 %v15618_v1  ;;  %v1678_v12 = vld [vmem:[#allocation5 + $0x2e88] sm:$0xff]  ;;  %v15587_v25 = vcombine.high %v1550_v14, %v1554_v24  ;;  %v375_v2 = vld [vmem:[#allocation5 + $0x5d0] sm:$0xff] }
 0x378   :  { %10453 = vmatprep.subr.bf16.mxu0 %v15611_v48  ;;  %v1682_v18 = vld [vmem:[#allocation5 + $0x2ea8] sm:$0xff] }
 0x379   :  { %10493 = vmatpush2.bf16.msra.mxu1 %v15746_v45  ;;  %v15715_v53 = vcombine.high %v1678_v12, %v1682_v18  ;;  %v1542_v27 = vld [vmem:[#allocation5 + $0x2a48] sm:$0xff]  ;;  %v15586_v45 = vcombine.low %v1550_v14, %v1554_v24  ;;  %v15714_v48 = vcombine.low %v1678_v12, %v1682_v18  ;;  %v239_v24 = vld [vmem:[#allocation5 + $0x190] sm:$0xff] }
 0x37a   :  { %10494 = vmatprep.subr.bf16.mxu1 %v15739_v44  ;;  %v1546_v30 = vld [vmem:[#allocation5 + $0x2a68] sm:$0xff]  ;;  %v243_v12 = vld [vmem:[#allocation5 + $0x1b0] sm:$0xff] }
 0x37b   :  { %10454 = vmatpush2.bf16.msra.mxu0 %v15610_v46  ;;  %v1670_v36 = vld [vmem:[#allocation5 + $0x2e48] sm:$0xff]  ;;  %v15579_v44 = vcombine.high %v1542_v27, %v1546_v30  ;;  %v367_v18 = vld [vmem:[#allocation5 + $0x590] sm:$0xff] }
 0x37c   :  { %10455 = vmatprep.subr.bf16.mxu0 %v15603_v56  ;;  %v1674_v1 = vld [vmem:[#allocation5 + $0x2e68] sm:$0xff] }
 0x37d   :  { %10495 = vmatpush2.bf16.msra.mxu1 %v15738_v52  ;;  %v15707_v33 = vcombine.high %v1670_v36, %v1674_v1  ;;  %v1534_v0 = vld [vmem:[#allocation5 + $0x2a08] sm:$0xff]  ;;  %v15578_v52 = vcombine.low %v1542_v27, %v1546_v30  ;;  %v15706_v56 = vcombine.low %v1670_v36, %v1674_v1  ;;  %v231_v30 = vld [vmem:[#allocation5 + $0x150] sm:$0xff] }
 0x37e   :  { %10496 = vmatprep.subr.bf16.mxu1 %v15731_v61  ;;  %v1538_v11 = vld [vmem:[#allocation5 + $0x2a28] sm:$0xff]  ;;  %v235_v36 = vld [vmem:[#allocation5 + $0x170] sm:$0xff] }
 0x37f   :  { %10456 = vmatpush2.bf16.msra.mxu0 %v15602_v15  ;;  %v1662_v60 = vld [vmem:[#allocation5 + $0x2e08] sm:$0xff]  ;;  %v15571_v61 = vcombine.high %v1534_v0, %v1538_v11  ;;  %v379_v15 = vld [vmem:[#allocation5 + $0x5f0] sm:$0xff] }
 0x380   :  { %10457 = vmatprep.subr.bf16.mxu0 %v15595_v63  ;;  %v1666_v46 = vld [vmem:[#allocation5 + $0x2e28] sm:$0xff]  ;;  %v14413_v14 = vcombine.high %v375_v2, %v379_v15 }
 0x381   :  { %10497 = vmatpush2.bf16.msra.mxu1 %v15730_v57  ;;  %v15699_v6 = vcombine.high %v1662_v60, %v1666_v46  ;;  %v15570_v57 = vcombine.low %v1534_v0, %v1538_v11  ;;  %v15698_v63 = vcombine.low %v1662_v60, %v1666_v46  ;;  %v14276_v0 = vcombine.low %v239_v24, %v243_v12 }
 0x382   :  { %10498 = vmatprep.subr.bf16.mxu1 %v15723_v17  ;;  %v14285_v17 = vcombine.high %v247_v37, %v251_v3  ;;  %v14269_v46 = vcombine.high %v231_v30, %v235_v36 }
 0x383   :  { %10458 = vmatpush2.bf16.msra.mxu0 %v15594_v34  ;;  %v371_v34 = vld [vmem:[#allocation5 + $0x5b0] sm:$0xff] }
 0x384   :  { %10459 = vmatprep.subr.bf16.mxu0 %v15587_v25  ;;  %v14412_v25 = vcombine.low %v375_v2, %v379_v15  ;;  %v14405_v27 = vcombine.high %v367_v18, %v371_v34  ;;  %v14404_v60 = vcombine.low %v367_v18, %v371_v34  ;;  %v351_v2 = vld [vmem:[#allocation5 + $0x510] sm:$0xff] }
 0x385   :  { %10499 = vmatpush2.bf16.msra.mxu1 %v15722_v21  ;;  %v14284_v21 = vcombine.low %v247_v37, %v251_v3  ;;  %v223_v37 = vld [vmem:[#allocation5 + $0x110] sm:$0xff] }
 0x386   :  { %10500 = vmatprep.subr.bf16.mxu1 %v15715_v53  ;;  %v14277_v53 = vcombine.high %v239_v24, %v243_v12  ;;  %v227_v3 = vld [vmem:[#allocation5 + $0x130] sm:$0xff] }
 0x387   :  { %10460 = vmatpush2.bf16.msra.mxu0 %v15586_v45  ;;  %v359_v45 = vld [vmem:[#allocation5 + $0x550] sm:$0xff]  ;;  %v14261_v24 = vcombine.high %v223_v37, %v227_v3 }
 0x388   :  { %10461 = vmatprep.subr.bf16.mxu0 %v15579_v44  ;;  %v355_v15 = vld [vmem:[#allocation5 + $0x530] sm:$0xff] }
 0x389   :  { %10501 = vmatpush2.bf16.msra.mxu1 %v15714_v48  ;;  %v363_v48 = vld [vmem:[#allocation5 + $0x570] sm:$0xff]  ;;  %v14389_v18 = vcombine.high %v351_v2, %v355_v15 }
 0x38a   :  { %10502 = vmatprep.subr.bf16.mxu1 %v15707_v33  ;;  %v215_v34 = vld [vmem:[#allocation5 + $0xd0] sm:$0xff] }
 0x38b   :  { %10462 = vmatpush2.bf16.msra.mxu0 %v15578_v52 }
 0x38c   :  { %10463 = vmatprep.subr.bf16.mxu0 %v15571_v61 }
 0x38d   :  { %10503 = vmatpush2.bf16.msra.mxu1 %v15706_v56 }
 0x38e   :  { %10504 = vmatprep.subr.bf16.mxu1 %v15699_v6  ;;  %v14397_v6 = vcombine.high %v359_v45, %v363_v48 }
 0x38f   :  { %10464 = vmatpush2.bf16.msra.mxu0 %v15570_v57 }
 0x390   :  { %10515 = vmatprep.subr.bf16.mxu0 %v14285_v17  ;;  %v14268_v17 = vcombine.low %v231_v30, %v235_v36  ;;  %v207_v36 = vld [vmem:[#allocation5 + $0x90] sm:$0xff] }
 0x391   :  { %10505 = vmatpush2.bf16.msra.mxu1 %v15698_v63 }
 0x392   :  { %10556 = vmatprep.subr.bf16.mxu1 %v14413_v14  ;;  %v10221_v1 = vpop.f32.mrf.mxu0  ;;  %10466 = vmatmul.mubr.bf16.vlgmr.msra.gmra.mxu0 %v17235_v26 }
 0x393   :  { %v10222_v44 = vadd.f32 %v10221_v1, %v17298_v23  ;;  %10516 = vmatpush1.bf16.msra.mxu0 %v14284_v21  ;;  %10547 = vmatprep.mubr.bf16.mxu0 %v17085_v58  ;;  %v219_v21 = vld [vmem:[#allocation5 + $0xf0] sm:$0xff]  ;;  %v14388_v1 = vcombine.low %v351_v2, %v355_v15 }
 0x394   :  { %v10262_v33 = vpop.f32.mrf.mxu1  ;;  %10507 = vmatmul.mubr.bf16.vlgmr.msra.gmra.mxu1 %v17239_v32  ;;  %v10223_v11 = vpop.f32.mrf.mxu0  ;;  %10517 = vmatprep.subr.bf16.mxu0 %v14277_v53  ;;  %v347_v53 = vld [vmem:[#allocation5 + $0x4f0] sm:$0xff] }
 0x395   :  { %10557 = vmatpush1.bf16.msra.mxu1 %v14412_v25  ;;  %v17308_v52 = vadd.f32 %v10262_v33, %v10222_v44  ;;  %v10224_v56 = vadd.f32 %v10223_v11, %v17303_v41  ;;  %10588 = vmatprep.mubr.bf16.mxu1 %v17089_v59  ;;  %v14396_v41 = vcombine.low %v359_v45, %v363_v48  ;;  %v343_v25 = vld [vmem:[#allocation5 + $0x4d0] sm:$0xff] }
 0x396   :  { %v10264_v61 = vpop.f32.mrf.mxu1  ;;  %10558 = vmatprep.subr.bf16.mxu1 %v14405_v27  ;;  %v10225_v23 = vpop.f32.mrf.mxu0  ;;  %v14260_v27 = vcombine.low %v223_v37, %v227_v3  ;;  %v14253_v44 = vcombine.high %v215_v34, %v219_v21  ;;  %v14381_v30 = vcombine.high %v343_v25, %v347_v53  ;;  %v211_v33 = vld [vmem:[#allocation5 + $0xb0] sm:$0xff]  ;;  %v14252_v48 = vcombine.low %v215_v34, %v219_v21 }
 0x397   :  { %v17313_v57 = vadd.f32 %v10264_v61, %v10224_v56  ;;  %10518 = vmatpush1.bf16.msra.mxu0 %v14276_v0  ;;  %v335_v0 = vld [vmem:[#allocation5 + $0x490] sm:$0xff]  ;;  %v14380_v11 = vcombine.low %v343_v25, %v347_v53  ;;  %v14244_v3 = vcombine.low %v207_v36, %v211_v33 }
 0x398   :  { %v10266_v63 = vpop.f32.mrf.mxu1  ;;  %v10226_v14 = vpop.f32.mrf.mxu0  ;;  %10519 = vmatprep.subr.bf16.mxu0 %v14269_v46  ;;  %v339_v45 = vld [vmem:[#allocation5 + $0x4b0] sm:$0xff] }
 0x399   :  { %10559 = vmatpush1.bf16.msra.mxu1 %v14404_v60  ;;  %v14245_v60 = vcombine.high %v207_v36, %v211_v33  ;;  %v14373_v46 = vcombine.high %v335_v0, %v339_v45  ;;  %v199_v56 = vld [vmem:[#allocation5 + $0x50] sm:$0xff]  ;;  %v14372_v23 = vcombine.low %v335_v0, %v339_v45 }
 0x39a   :  { %v10267_v12 = vpop.f32.mrf.mxu1  ;;  %10560 = vmatprep.subr.bf16.mxu1 %v14397_v6  ;;  %v203_v61 = vld [vmem:[#allocation5 + $0x70] sm:$0xff] }
 0x39b   :  { %10520 = vmatpush1.bf16.msra.mxu0 %v14268_v17  ;;  %v327_v6 = vld [vmem:[#allocation5 + $0x450] sm:$0xff]  ;;  %v14237_v2 = vcombine.high %v199_v56, %v203_v61 }
 0x39c   :  { %10521 = vmatprep.subr.bf16.mxu0 %v14261_v24  ;;  %v331_v37 = vld [vmem:[#allocation5 + $0x470] sm:$0xff]  ;;  %v14236_v24 = vcombine.low %v199_v56, %v203_v61 }
 0x39d   :  { %10561 = vmatpush1.bf16.msra.mxu1 %v14396_v41  ;;  %v14365_v15 = vcombine.high %v327_v6, %v331_v37  ;;  %v191_v63 = vld [vmem:[#allocation5 + $0x10] sm:$0xff]  ;;  %v14364_v12 = vcombine.low %v327_v6, %v331_v37 }
 0x39e   :  { %10562 = vmatprep.subr.bf16.mxu1 %v14389_v18  ;;  %v195_v17 = vld [vmem:[#allocation5 + $0x30] sm:$0xff] }
 0x39f   :  { %10522 = vmatpush1.bf16.msra.mxu0 %v14260_v27  ;;  %v319_v14 = vld [vmem:[#allocation5 + $0x410] sm:$0xff]  ;;  %v14229_v18 = vcombine.high %v191_v63, %v195_v17 }
 0x3a0   :  { %10523 = vmatprep.subr.bf16.mxu0 %v14253_v44  ;;  %v323_v41 = vld [vmem:[#allocation5 + $0x430] sm:$0xff] }
 0x3a1   :  { %10563 = vmatpush1.bf16.msra.mxu1 %v14388_v1  ;;  %v14357_v34 = vcombine.high %v319_v14, %v323_v41  ;;  %v311_v21 = vld [vmem:[#allocation5 + $0x3d0] sm:$0xff]  ;;  %v14228_v1 = vcombine.low %v191_v63, %v195_v17  ;;  %v14356_v44 = vcombine.low %v319_v14, %v323_v41 }
 0x3a2   :  { %10564 = vmatprep.subr.bf16.mxu1 %v14381_v30  ;;  %v315_v25 = vld [vmem:[#allocation5 + $0x3f0] sm:$0xff] }
 0x3a3   :  { %10524 = vmatpush1.bf16.msra.mxu0 %v14252_v48  ;;  %v439_v53 = vld [vmem:[#allocation5 + $0x7d0] sm:$0xff]  ;;  %v14349_v30 = vcombine.high %v311_v21, %v315_v25 }
 0x3a4   :  { %10525 = vmatprep.subr.bf16.mxu0 %v14245_v60  ;;  %v443_v27 = vld [vmem:[#allocation5 + $0x7f0] sm:$0xff] }
 0x3a5   :  { %10565 = vmatpush1.bf16.msra.mxu1 %v14380_v11  ;;  %v14477_v36 = vcombine.high %v439_v53, %v443_v27  ;;  %v303_v33 = vld [vmem:[#allocation5 + $0x390] sm:$0xff]  ;;  %v14348_v11 = vcombine.low %v311_v21, %v315_v25  ;;  %v14476_v60 = vcombine.low %v439_v53, %v443_v27 }
 0x3a6   :  { %10566 = vmatprep.subr.bf16.mxu1 %v14373_v46  ;;  %v307_v0 = vld [vmem:[#allocation5 + $0x3b0] sm:$0xff] }
 0x3a7   :  { %10526 = vmatpush1.bf16.msra.mxu0 %v14244_v3  ;;  %v431_v45 = vld [vmem:[#allocation5 + $0x790] sm:$0xff]  ;;  %v14341_v46 = vcombine.high %v303_v33, %v307_v0 }
 0x3a8   :  { %10527 = vmatprep.subr.bf16.mxu0 %v14237_v2  ;;  %v435_v48 = vld [vmem:[#allocation5 + $0x7b0] sm:$0xff] }
 0x3a9   :  { %10567 = vmatpush1.bf16.msra.mxu1 %v14372_v23  ;;  %v14469_v56 = vcombine.high %v431_v45, %v435_v48  ;;  %v295_v61 = vld [vmem:[#allocation5 + $0x350] sm:$0xff]  ;;  %v14340_v23 = vcombine.low %v303_v33, %v307_v0  ;;  %v14468_v2 = vcombine.low %v431_v45, %v435_v48 }
 0x3aa   :  { %10568 = vmatprep.subr.bf16.mxu1 %v14365_v15  ;;  %v299_v6 = vld [vmem:[#allocation5 + $0x370] sm:$0xff] }
 0x3ab   :  { %10528 = vmatpush1.bf16.msra.mxu0 %v14236_v24  ;;  %v423_v37 = vld [vmem:[#allocation5 + $0x750] sm:$0xff]  ;;  %v14333_v15 = vcombine.high %v295_v61, %v299_v6 }
 0x3ac   :  { %10529 = vmatprep.subr.bf16.mxu0 %v14229_v18  ;;  %v427_v3 = vld [vmem:[#allocation5 + $0x770] sm:$0xff] }
 0x3ad   :  { %10569 = vmatpush1.bf16.msra.mxu1 %v14364_v12  ;;  %v14461_v63 = vcombine.high %v423_v37, %v427_v3  ;;  %v287_v17 = vld [vmem:[#allocation5 + $0x310] sm:$0xff]  ;;  %v14332_v12 = vcombine.low %v295_v61, %v299_v6  ;;  %v14460_v18 = vcombine.low %v423_v37, %v427_v3 }
 0x3ae   :  { %10570 = vmatprep.subr.bf16.mxu1 %v14357_v34  ;;  %v291_v14 = vld [vmem:[#allocation5 + $0x330] sm:$0xff] }
 0x3af   :  { %10530 = vmatpush1.bf16.msra.mxu0 %v14228_v1  ;;  %v415_v41 = vld [vmem:[#allocation5 + $0x710] sm:$0xff]  ;;  %v14325_v34 = vcombine.high %v287_v17, %v291_v14 }
 0x3b0   :  { %10531 = vmatprep.subr.bf16.mxu0 %v14349_v30  ;;  %v419_v24 = vld [vmem:[#allocation5 + $0x730] sm:$0xff] }
 0x3b1   :  { %10571 = vmatpush1.bf16.msra.mxu1 %v14356_v44  ;;  %v14453_v21 = vcombine.high %v415_v41, %v419_v24  ;;  %v279_v25 = vld [vmem:[#allocation5 + $0x2d0] sm:$0xff]  ;;  %v14324_v44 = vcombine.low %v287_v17, %v291_v14  ;;  %v14452_v30 = vcombine.low %v415_v41, %v419_v24 }
 0x3b2   :  { %10572 = vmatprep.subr.bf16.mxu1 %v14477_v36  ;;  %v283_v53 = vld [vmem:[#allocation5 + $0x2f0] sm:$0xff] }
 0x3b3   :  { %10532 = vmatpush2.bf16.msra.mxu0 %v14348_v11  ;;  %v407_v27 = vld [vmem:[#allocation5 + $0x6d0] sm:$0xff]  ;;  %v14317_v36 = vcombine.high %v279_v25, %v283_v53 }
 0x3b4   :  { %10533 = vmatprep.subr.bf16.mxu0 %v14341_v46  ;;  %v411_v1 = vld [vmem:[#allocation5 + $0x6f0] sm:$0xff] }
 0x3b5   :  { %10573 = vmatpush2.bf16.msra.mxu1 %v14476_v60  ;;  %v14445_v33 = vcombine.high %v407_v27, %v411_v1  ;;  %v271_v0 = vld [vmem:[#allocation5 + $0x290] sm:$0xff]  ;;  %v14316_v60 = vcombine.low %v279_v25, %v283_v53  ;;  %v14444_v46 = vcombine.low %v407_v27, %v411_v1 }
 0x3b6   :  { %10574 = vmatprep.subr.bf16.mxu1 %v14469_v56  ;;  %v275_v45 = vld [vmem:[#allocation5 + $0x2b0] sm:$0xff] }
 0x3b7   :  { %10534 = vmatpush2.bf16.msra.mxu0 %v14340_v23  ;;  %v399_v48 = vld [vmem:[#allocation5 + $0x690] sm:$0xff]  ;;  %v14309_v56 = vcombine.high %v271_v0, %v275_v45 }
 0x3b8   :  { %10535 = vmatprep.subr.bf16.mxu0 %v14333_v15  ;;  %v403_v11 = vld [vmem:[#allocation5 + $0x6b0] sm:$0xff] }
 0x3b9   :  { %10575 = vmatpush2.bf16.msra.mxu1 %v14468_v2  ;;  %v14437_v61 = vcombine.high %v399_v48, %v403_v11  ;;  %v263_v6 = vld [vmem:[#allocation5 + $0x250] sm:$0xff]  ;;  %v14308_v2 = vcombine.low %v271_v0, %v275_v45  ;;  %v14436_v15 = vcombine.low %v399_v48, %v403_v11 }
 0x3ba   :  { %10576 = vmatprep.subr.bf16.mxu1 %v14461_v63  ;;  %v267_v37 = vld [vmem:[#allocation5 + $0x270] sm:$0xff] }
 0x3bb   :  { %10536 = vmatpush2.bf16.msra.mxu0 %v14332_v12  ;;  %v391_v3 = vld [vmem:[#allocation5 + $0x650] sm:$0xff]  ;;  %v14301_v63 = vcombine.high %v263_v6, %v267_v37 }
 0x3bc   :  { %10537 = vmatprep.subr.bf16.mxu0 %v14325_v34  ;;  %v395_v23 = vld [vmem:[#allocation5 + $0x670] sm:$0xff] }
 0x3bd   :  { %10577 = vmatpush2.bf16.msra.mxu1 %v14460_v18  ;;  %v14429_v17 = vcombine.high %v391_v3, %v395_v23  ;;  %v255_v14 = vld [vmem:[#allocation5 + $0x210] sm:$0xff]  ;;  %v14300_v18 = vcombine.low %v263_v6, %v267_v37  ;;  %v14428_v34 = vcombine.low %v391_v3, %v395_v23 }
 0x3be   :  { %10578 = vmatprep.subr.bf16.mxu1 %v14453_v21  ;;  %v259_v41 = vld [vmem:[#allocation5 + $0x230] sm:$0xff] }
 0x3bf   :  { %10538 = vmatpush2.bf16.msra.mxu0 %v14324_v44  ;;  %v383_v24 = vld [vmem:[#allocation5 + $0x610] sm:$0xff]  ;;  %v14293_v21 = vcombine.high %v255_v14, %v259_v41 }
 0x3c0   :  { %10539 = vmatprep.subr.bf16.mxu0 %v14317_v36  ;;  %v387_v12 = vld [vmem:[#allocation5 + $0x630] sm:$0xff] }
 0x3c1   :  { %10579 = vmatpush2.bf16.msra.mxu1 %v14452_v30  ;;  %v14421_v25 = vcombine.high %v383_v24, %v387_v12  ;;  %v503_v53 = vld [vmem:[#allocation5 + $0x9d0] sm:$0xff]  ;;  %v14292_v30 = vcombine.low %v255_v14, %v259_v41  ;;  %v14420_v36 = vcombine.low %v383_v24, %v387_v12 }
 0x3c2   :  { %10580 = vmatprep.subr.bf16.mxu1 %v14445_v33  ;;  %v507_v27 = vld [vmem:[#allocation5 + $0x9f0] sm:$0xff] }
 0x3c3   :  { %10540 = vmatpush2.bf16.msra.mxu0 %v14316_v60  ;;  %v631_v1 = vld [vmem:[#allocation5 + $0xdd0] sm:$0xff]  ;;  %v14541_v33 = vcombine.high %v503_v53, %v507_v27 }
 0x3c4   :  { %10541 = vmatprep.subr.bf16.mxu0 %v14309_v56  ;;  %v635_v44 = vld [vmem:[#allocation5 + $0xdf0] sm:$0xff] }
 0x3c5   :  { %10581 = vmatpush2.bf16.msra.mxu1 %v14444_v46  ;;  %v14669_v0 = vcombine.high %v631_v1, %v635_v44  ;;  %v495_v45 = vld [vmem:[#allocation5 + $0x990] sm:$0xff]  ;;  %v14540_v46 = vcombine.low %v503_v53, %v507_v27  ;;  %v14668_v56 = vcombine.low %v631_v1, %v635_v44 }
 0x3c6   :  { %10582 = vmatprep.subr.bf16.mxu1 %v14437_v61  ;;  %v499_v48 = vld [vmem:[#allocation5 + $0x9b0] sm:$0xff] }
 0x3c7   :  { %10542 = vmatpush2.bf16.msra.mxu0 %v14308_v2  ;;  %v623_v11 = vld [vmem:[#allocation5 + $0xd90] sm:$0xff]  ;;  %v14533_v61 = vcombine.high %v495_v45, %v499_v48  ;;  %v14532_v14 = vcombine.low %v495_v45, %v499_v48 }
 0x3c8   :  { %10543 = vmatprep.subr.bf16.mxu0 %v14301_v63  ;;  %v627_v60 = vld [vmem:[#allocation5 + $0xdb0] sm:$0xff] }
 0x3c9   :  { %10583 = vmatpush2.bf16.msra.mxu1 %v14436_v15  ;;  %v14661_v6 = vcombine.high %v623_v11, %v627_v60  ;;  %v487_v37 = vld [vmem:[#allocation5 + $0x950] sm:$0xff]  ;;  %v14660_v24 = vcombine.low %v623_v11, %v627_v60 }
 0x3ca   :  { %10584 = vmatprep.subr.bf16.mxu1 %v14429_v17  ;;  %v491_v3 = vld [vmem:[#allocation5 + $0x970] sm:$0xff] }
 0x3cb   :  { %10544 = vmatpush2.bf16.msra.mxu0 %v14300_v18  ;;  %v615_v2 = vld [vmem:[#allocation5 + $0xd50] sm:$0xff]  ;;  %v14525_v12 = vcombine.high %v487_v37, %v491_v3 }
 0x3cc   :  { %10545 = vmatprep.subr.bf16.mxu0 %v14293_v21  ;;  %v619_v15 = vld [vmem:[#allocation5 + $0xd70] sm:$0xff] }
 0x3cd   :  { %10585 = vmatpush2.bf16.msra.mxu1 %v14428_v34  ;;  %v479_v53 = vld [vmem:[#allocation5 + $0x910] sm:$0xff] }
 0x3ce   :  { %10586 = vmatprep.subr.bf16.mxu1 %v14421_v25  ;;  %v14653_v25 = vcombine.high %v615_v2, %v619_v15  ;;  %v483_v27 = vld [vmem:[#allocation5 + $0x930] sm:$0xff] }
 0x3cf   :  { %10546 = vmatpush2.bf16.msra.mxu0 %v14292_v30  ;;  %v607_v1 = vld [vmem:[#allocation5 + $0xd10] sm:$0xff]  ;;  %v14517_v45 = vcombine.high %v479_v53, %v483_v27 }
 0x3d0   :  { %10597 = vmatprep.subr.bf16.mxu0 %v14541_v33  ;;  %v611_v44 = vld [vmem:[#allocation5 + $0xd30] sm:$0xff]  ;;  %v14524_v33 = vcombine.low %v487_v37, %v491_v3 }
 0x3d1   :  { %10587 = vmatpush2.bf16.msra.mxu1 %v14420_v36  ;;  %v14645_v11 = vcombine.high %v607_v1, %v611_v44  ;;  %v471_v60 = vld [vmem:[#allocation5 + $0x8d0] sm:$0xff] }
 0x3d2   :  { %10638 = vmatprep.subr.bf16.mxu1 %v14669_v0  ;;  %v10303_v23 = vpop.f32.mrf.mxu0  ;;  %10548 = vmatmul.mubr.bf16.vlgmr.msra.gmra.mxu0 %v17095_v16  ;;  %v463_v3 = vld [vmem:[#allocation5 + $0x890] sm:$0xff] }
 0x3d3   :  { %v10304_v63 = vadd.f32 %v10303_v23, %v17308_v52  ;;  %10598 = vmatpush1.bf16.msra.mxu0 %v14540_v46  ;;  %10629 = vmatprep.mubr.bf16.mxu0 %v17107_v28  ;;  %v475_v46 = vld [vmem:[#allocation5 + $0x8f0] sm:$0xff]  ;;  %v14644_v23 = vcombine.low %v607_v1, %v611_v44 }
 0x3d4   :  { %v10344_v17 = vpop.f32.mrf.mxu1  ;;  %10589 = vmatmul.mubr.bf16.vlgmr.msra.gmra.mxu1 %v17101_v20  ;;  %v10305_v41 = vpop.f32.mrf.mxu0  ;;  %10599 = vmatprep.subr.bf16.mxu0 %v14533_v61  ;;  %v603_v61 = vld [vmem:[#allocation5 + $0xcf0] sm:$0xff] }
 0x3d5   :  { %10639 = vmatpush1.bf16.msra.mxu1 %v14668_v56  ;;  %v17318_v18 = vadd.f32 %v10344_v17, %v10304_v63  ;;  %v10306_v34 = vadd.f32 %v10305_v41, %v17313_v57  ;;  %10670 = vmatprep.mubr.bf16.mxu1 %v17112_v29  ;;  %v14652_v57 = vcombine.low %v615_v2, %v619_v15  ;;  %v599_v56 = vld [vmem:[#allocation5 + $0xcd0] sm:$0xff] }
 0x3d6   :  { %v10346_v21 = vpop.f32.mrf.mxu1  ;;  %10640 = vmatprep.subr.bf16.mxu1 %v14661_v6  ;;  %v10307_v52 = vpop.f32.mrf.mxu0  ;;  %v14516_v6 = vcombine.low %v479_v53, %v483_v27  ;;  %v14509_v63 = vcombine.high %v471_v60, %v475_v46  ;;  %v14637_v37 = vcombine.high %v599_v56, %v603_v61  ;;  %v467_v17 = vld [vmem:[#allocation5 + $0x8b0] sm:$0xff]  ;;  %v14508_v15 = vcombine.low %v471_v60, %v475_v46 }
 0x3d7   :  { %v17323_v30 = vadd.f32 %v10346_v21, %v10306_v34  ;;  %10600 = vmatpush1.bf16.msra.mxu0 %v14532_v14  ;;  %v591_v14 = vld [vmem:[#allocation5 + $0xc90] sm:$0xff]  ;;  %v14636_v41 = vcombine.low %v599_v56, %v603_v61  ;;  %v14500_v27 = vcombine.low %v463_v3, %v467_v17 }
 0x3d8   :  { %v10348_v36 = vpop.f32.mrf.mxu1  ;;  %v10308_v0 = vpop.f32.mrf.mxu0  ;;  %10601 = vmatprep.subr.bf16.mxu0 %v14525_v12  ;;  %v595_v2 = vld [vmem:[#allocation5 + $0xcb0] sm:$0xff] }
 0x3d9   :  { %10641 = vmatpush1.bf16.msra.mxu1 %v14660_v24  ;;  %v14501_v24 = vcombine.high %v463_v3, %v467_v17  ;;  %v14629_v12 = vcombine.high %v591_v14, %v595_v2  ;;  %v455_v34 = vld [vmem:[#allocation5 + $0x850] sm:$0xff]  ;;  %v14628_v52 = vcombine.low %v591_v14, %v595_v2 }
 0x3da   :  { %v10349_v48 = vpop.f32.mrf.mxu1  ;;  %10642 = vmatprep.subr.bf16.mxu1 %v14653_v25  ;;  %v459_v21 = vld [vmem:[#allocation5 + $0x870] sm:$0xff] }
 0x3db   :  { %10602 = vmatpush1.bf16.msra.mxu0 %v14524_v33  ;;  %v583_v25 = vld [vmem:[#allocation5 + $0xc50] sm:$0xff]  ;;  %v14493_v1 = vcombine.high %v455_v34, %v459_v21 }
 0x3dc   :  { %10603 = vmatprep.subr.bf16.mxu0 %v14517_v45  ;;  %v587_v53 = vld [vmem:[#allocation5 + $0xc70] sm:$0xff]  ;;  %v14492_v45 = vcombine.low %v455_v34, %v459_v21 }
 0x3dd   :  { %10643 = vmatpush1.bf16.msra.mxu1 %v14652_v57  ;;  %v14621_v44 = vcombine.high %v583_v25, %v587_v53  ;;  %v447_v36 = vld [vmem:[#allocation5 + $0x810] sm:$0xff]  ;;  %v14620_v48 = vcombine.low %v583_v25, %v587_v53 }
 0x3de   :  { %10644 = vmatprep.subr.bf16.mxu1 %v14645_v11  ;;  %v451_v33 = vld [vmem:[#allocation5 + $0x830] sm:$0xff] }
 0x3df   :  { %10604 = vmatpush1.bf16.msra.mxu0 %v14516_v6  ;;  %v575_v0 = vld [vmem:[#allocation5 + $0xc10] sm:$0xff]  ;;  %v14485_v11 = vcombine.high %v447_v36, %v451_v33 }
 0x3e0   :  { %10605 = vmatprep.subr.bf16.mxu0 %v14509_v63  ;;  %v579_v57 = vld [vmem:[#allocation5 + $0xc30] sm:$0xff] }
 0x3e1   :  { %10645 = vmatpush1.bf16.msra.mxu1 %v14644_v23  ;;  %v14613_v60 = vcombine.high %v575_v0, %v579_v57  ;;  %v567_v46 = vld [vmem:[#allocation5 + $0xbd0] sm:$0xff]  ;;  %v14484_v23 = vcombine.low %v447_v36, %v451_v33  ;;  %v14612_v63 = vcombine.low %v575_v0, %v579_v57 }
 0x3e2   :  { %10646 = vmatprep.subr.bf16.mxu1 %v14637_v37  ;;  %v571_v56 = vld [vmem:[#allocation5 + $0xbf0] sm:$0xff] }
 0x3e3   :  { %10606 = vmatpush1.bf16.msra.mxu0 %v14508_v15  ;;  %v695_v61 = vld [vmem:[#allocation5 + $0xfd0] sm:$0xff]  ;;  %v14605_v37 = vcombine.high %v567_v46, %v571_v56 }
 0x3e4   :  { %10607 = vmatprep.subr.bf16.mxu0 %v14501_v24  ;;  %v699_v6 = vld [vmem:[#allocation5 + $0xff0] sm:$0xff] }
 0x3e5   :  { %10647 = vmatpush1.bf16.msra.mxu1 %v14636_v41  ;;  %v14733_v3 = vcombine.high %v695_v61, %v699_v6  ;;  %v559_v17 = vld [vmem:[#allocation5 + $0xb90] sm:$0xff]  ;;  %v14604_v41 = vcombine.low %v567_v46, %v571_v56  ;;  %v14732_v24 = vcombine.low %v695_v61, %v699_v6 }
 0x3e6   :  { %10648 = vmatprep.subr.bf16.mxu1 %v14629_v12  ;;  %v563_v14 = vld [vmem:[#allocation5 + $0xbb0] sm:$0xff] }
 0x3e7   :  { %10608 = vmatpush1.bf16.msra.mxu0 %v14500_v27  ;;  %v687_v2 = vld [vmem:[#allocation5 + $0xf90] sm:$0xff]  ;;  %v14597_v12 = vcombine.high %v559_v17, %v563_v14 }
 0x3e8   :  { %10609 = vmatprep.subr.bf16.mxu0 %v14493_v1  ;;  %v691_v15 = vld [vmem:[#allocation5 + $0xfb0] sm:$0xff] }
 0x3e9   :  { %10649 = vmatpush1.bf16.msra.mxu1 %v14628_v52  ;;  %v14725_v34 = vcombine.high %v687_v2, %v691_v15  ;;  %v551_v21 = vld [vmem:[#allocation5 + $0xb50] sm:$0xff]  ;;  %v14596_v52 = vcombine.low %v559_v17, %v563_v14  ;;  %v14724_v1 = vcombine.low %v687_v2, %v691_v15 }
 0x3ea   :  { %10650 = vmatprep.subr.bf16.mxu1 %v14621_v44  ;;  %v555_v25 = vld [vmem:[#allocation5 + $0xb70] sm:$0xff] }
 0x3eb   :  { %10610 = vmatpush1.bf16.msra.mxu0 %v14492_v45  ;;  %v679_v53 = vld [vmem:[#allocation5 + $0xf50] sm:$0xff]  ;;  %v14589_v44 = vcombine.high %v551_v21, %v555_v25 }
 0x3ec   :  { %10611 = vmatprep.subr.bf16.mxu0 %v14485_v11  ;;  %v683_v27 = vld [vmem:[#allocation5 + $0xf70] sm:$0xff] }
 0x3ed   :  { %10651 = vmatpush1.bf16.msra.mxu1 %v14620_v48  ;;  %v14717_v36 = vcombine.high %v679_v53, %v683_v27  ;;  %v543_v33 = vld [vmem:[#allocation5 + $0xb10] sm:$0xff]  ;;  %v14588_v48 = vcombine.low %v551_v21, %v555_v25  ;;  %v14716_v11 = vcombine.low %v679_v53, %v683_v27 }
 0x3ee   :  { %10652 = vmatprep.subr.bf16.mxu1 %v14613_v60  ;;  %v547_v0 = vld [vmem:[#allocation5 + $0xb30] sm:$0xff] }
 0x3ef   :  { %10612 = vmatpush1.bf16.msra.mxu0 %v14484_v23  ;;  %v671_v57 = vld [vmem:[#allocation5 + $0xf10] sm:$0xff]  ;;  %v14581_v60 = vcombine.high %v543_v33, %v547_v0 }
 0x3f0   :  { %10613 = vmatprep.subr.bf16.mxu0 %v14605_v37  ;;  %v675_v45 = vld [vmem:[#allocation5 + $0xf30] sm:$0xff] }
 0x3f1   :  { %10653 = vmatpush1.bf16.msra.mxu1 %v14612_v63  ;;  %v14709_v46 = vcombine.high %v671_v57, %v675_v45  ;;  %v535_v56 = vld [vmem:[#allocation5 + $0xad0] sm:$0xff]  ;;  %v14580_v63 = vcombine.low %v543_v33, %v547_v0  ;;  %v14708_v37 = vcombine.low %v671_v57, %v675_v45 }
 0x3f2   :  { %10654 = vmatprep.subr.bf16.mxu1 %v14733_v3  ;;  %v539_v61 = vld [vmem:[#allocation5 + $0xaf0] sm:$0xff] }
 0x3f3   :  { %10614 = vmatpush2.bf16.msra.mxu0 %v14604_v41  ;;  %v663_v6 = vld [vmem:[#allocation5 + $0xed0] sm:$0xff]  ;;  %v14573_v3 = vcombine.high %v535_v56, %v539_v61 }
 0x3f4   :  { %10615 = vmatprep.subr.bf16.mxu0 %v14597_v12  ;;  %v667_v23 = vld [vmem:[#allocation5 + $0xef0] sm:$0xff] }
 0x3f5   :  { %10655 = vmatpush2.bf16.msra.mxu1 %v14732_v24  ;;  %v14701_v17 = vcombine.high %v663_v6, %v667_v23  ;;  %v527_v14 = vld [vmem:[#allocation5 + $0xa90] sm:$0xff]  ;;  %v14572_v24 = vcombine.low %v535_v56, %v539_v61  ;;  %v14700_v12 = vcombine.low %v663_v6, %v667_v23 }
 0x3f6   :  { %10656 = vmatprep.subr.bf16.mxu1 %v14725_v34  ;;  %v531_v2 = vld [vmem:[#allocation5 + $0xab0] sm:$0xff] }
 0x3f7   :  { %10616 = vmatpush2.bf16.msra.mxu0 %v14596_v52  ;;  %v655_v15 = vld [vmem:[#allocation5 + $0xe90] sm:$0xff]  ;;  %v14565_v34 = vcombine.high %v527_v14, %v531_v2 }
 0x3f8   :  { %10617 = vmatprep.subr.bf16.mxu0 %v14589_v44  ;;  %v659_v41 = vld [vmem:[#allocation5 + $0xeb0] sm:$0xff] }
 0x3f9   :  { %10657 = vmatpush2.bf16.msra.mxu1 %v14724_v1  ;;  %v14693_v21 = vcombine.high %v655_v15, %v659_v41  ;;  %v519_v25 = vld [vmem:[#allocation5 + $0xa50] sm:$0xff]  ;;  %v14564_v1 = vcombine.low %v527_v14, %v531_v2  ;;  %v14692_v44 = vcombine.low %v655_v15, %v659_v41 }
 0x3fa   :  { %10658 = vmatprep.subr.bf16.mxu1 %v14717_v36  ;;  %v523_v53 = vld [vmem:[#allocation5 + $0xa70] sm:$0xff] }
 0x3fb   :  { %10618 = vmatpush2.bf16.msra.mxu0 %v14588_v48  ;;  %v647_v27 = vld [vmem:[#allocation5 + $0xe50] sm:$0xff]  ;;  %v14557_v36 = vcombine.high %v519_v25, %v523_v53 }
 0x3fc   :  { %10619 = vmatprep.subr.bf16.mxu0 %v14581_v60  ;;  %v651_v52 = vld [vmem:[#allocation5 + $0xe70] sm:$0xff] }
 0x3fd   :  { %10659 = vmatpush2.bf16.msra.mxu1 %v14716_v11  ;;  %v14685_v33 = vcombine.high %v647_v27, %v651_v52  ;;  %v511_v0 = vld [vmem:[#allocation5 + $0xa10] sm:$0xff]  ;;  %v14556_v11 = vcombine.low %v519_v25, %v523_v53  ;;  %v14684_v60 = vcombine.low %v647_v27, %v651_v52 }
 0x3fe   :  { %10660 = vmatprep.subr.bf16.mxu1 %v14709_v46  ;;  %v515_v57 = vld [vmem:[#allocation5 + $0xa30] sm:$0xff] }
 0x3ff   :  { %10620 = vmatpush2.bf16.msra.mxu0 %v14580_v63  ;;  %v639_v45 = vld [vmem:[#allocation5 + $0xe10] sm:$0xff]  ;;  %v14549_v46 = vcombine.high %v511_v0, %v515_v57 }
 0x400   :  { %10621 = vmatprep.subr.bf16.mxu0 %v14573_v3  ;;  %v643_v48 = vld [vmem:[#allocation5 + $0xe30] sm:$0xff] }
 0x401   :  { %10661 = vmatpush2.bf16.msra.mxu1 %v14708_v37  ;;  %v14677_v56 = vcombine.high %v639_v45, %v643_v48  ;;  %v759_v61 = vld [vmem:[#allocation5 + $0x11d0] sm:$0xff]  ;;  %v14548_v37 = vcombine.low %v511_v0, %v515_v57  ;;  %v14676_v3 = vcombine.low %v639_v45, %v643_v48 }
 0x402   :  { %10662 = vmatprep.subr.bf16.mxu1 %v14701_v17  ;;  %v763_v6 = vld [vmem:[#allocation5 + $0x11f0] sm:$0xff] }
 0x403   :  { %10622 = vmatpush2.bf16.msra.mxu0 %v14572_v24  ;;  %v887_v23 = vld [vmem:[#allocation5 + $0x15d0] sm:$0xff]  ;;  %v14797_v17 = vcombine.high %v759_v61, %v763_v6 }
 0x404   :  { %10623 = vmatprep.subr.bf16.mxu0 %v14565_v34  ;;  %v891_v63 = vld [vmem:[#allocation5 + $0x15f0] sm:$0xff] }
 0x405   :  { %10663 = vmatpush2.bf16.msra.mxu1 %v14700_v12  ;;  %v14925_v14 = vcombine.high %v887_v23, %v891_v63  ;;  %v751_v2 = vld [vmem:[#allocation5 + $0x1190] sm:$0xff]  ;;  %v14796_v12 = vcombine.low %v759_v61, %v763_v6  ;;  %v14924_v34 = vcombine.low %v887_v23, %v891_v63 }
 0x406   :  { %10664 = vmatprep.subr.bf16.mxu1 %v14693_v21  ;;  %v755_v15 = vld [vmem:[#allocation5 + $0x11b0] sm:$0xff] }
 0x407   :  { %10624 = vmatpush2.bf16.msra.mxu0 %v14564_v1  ;;  %v879_v41 = vld [vmem:[#allocation5 + $0x1590] sm:$0xff]  ;;  %v14789_v21 = vcombine.high %v751_v2, %v755_v15  ;;  %v14788_v0 = vcombine.low %v751_v2, %v755_v15 }
 0x408   :  { %10625 = vmatprep.subr.bf16.mxu0 %v14557_v36  ;;  %v883_v24 = vld [vmem:[#allocation5 + $0x15b0] sm:$0xff] }
 0x409   :  { %10665 = vmatpush2.bf16.msra.mxu1 %v14692_v44  ;;  %v14917_v25 = vcombine.high %v879_v41, %v883_v24  ;;  %v743_v53 = vld [vmem:[#allocation5 + $0x1150] sm:$0xff]  ;;  %v14916_v45 = vcombine.low %v879_v41, %v883_v24 }
 0x40a   :  { %10666 = vmatprep.subr.bf16.mxu1 %v14685_v33  ;;  %v747_v27 = vld [vmem:[#allocation5 + $0x1170] sm:$0xff] }
 0x40b   :  { %10626 = vmatpush2.bf16.msra.mxu0 %v14556_v11  ;;  %v871_v1 = vld [vmem:[#allocation5 + $0x1550] sm:$0xff]  ;;  %v14781_v48 = vcombine.high %v743_v53, %v747_v27 }
 0x40c   :  { %10627 = vmatprep.subr.bf16.mxu0 %v14549_v46  ;;  %v875_v44 = vld [vmem:[#allocation5 + $0x1570] sm:$0xff] }
 0x40d   :  { %10667 = vmatpush2.bf16.msra.mxu1 %v14684_v60  ;;  %v735_v61 = vld [vmem:[#allocation5 + $0x1110] sm:$0xff] }
 0x40e   :  { %10668 = vmatprep.subr.bf16.mxu1 %v14677_v56  ;;  %v14909_v56 = vcombine.high %v871_v1, %v875_v44  ;;  %v739_v6 = vld [vmem:[#allocation5 + $0x1130] sm:$0xff] }
 0x40f   :  { %10628 = vmatpush2.bf16.msra.mxu0 %v14548_v37  ;;  %v863_v23 = vld [vmem:[#allocation5 + $0x1510] sm:$0xff]  ;;  %v14773_v2 = vcombine.high %v735_v61, %v739_v6 }
 0x410   :  { %10679 = vmatprep.subr.bf16.mxu0 %v14797_v17  ;;  %v867_v63 = vld [vmem:[#allocation5 + $0x1530] sm:$0xff]  ;;  %v14780_v17 = vcombine.low %v743_v53, %v747_v27 }
 0x411   :  { %10669 = vmatpush2.bf16.msra.mxu1 %v14676_v3  ;;  %v14901_v41 = vcombine.high %v863_v23, %v867_v63  ;;  %v727_v24 = vld [vmem:[#allocation5 + $0x10d0] sm:$0xff] }
 0x412   :  { %10720 = vmatprep.subr.bf16.mxu1 %v14925_v14  ;;  %v10385_v52 = vpop.f32.mrf.mxu0  ;;  %10630 = vmatmul.mubr.bf16.vlgmr.msra.gmra.mxu0 %v17121_v39  ;;  %v719_v27 = vld [vmem:[#allocation5 + $0x1090] sm:$0xff] }
 0x413   :  { %v10386_v36 = vadd.f32 %v10385_v52, %v17318_v18  ;;  %10680 = vmatpush1.bf16.msra.mxu0 %v14796_v12  ;;  %10711 = vmatprep.mubr.bf16.mxu0 %v17131_v19  ;;  %v731_v12 = vld [vmem:[#allocation5 + $0x10f0] sm:$0xff]  ;;  %v14900_v52 = vcombine.low %v863_v23, %v867_v63 }
 0x414   :  { %v10426_v33 = vpop.f32.mrf.mxu1  ;;  %10671 = vmatmul.mubr.bf16.vlgmr.msra.gmra.mxu1 %v17125_v40  ;;  %v10387_v57 = vpop.f32.mrf.mxu0  ;;  %10681 = vmatprep.subr.bf16.mxu0 %v14789_v21  ;;  %v859_v21 = vld [vmem:[#allocation5 + $0x14f0] sm:$0xff] }
 0x415   :  { %10721 = vmatpush1.bf16.msra.mxu1 %v14924_v34  ;;  %v17328_v11 = vadd.f32 %v10426_v33, %v10386_v36  ;;  %v10388_v60 = vadd.f32 %v10387_v57, %v17323_v30  ;;  %10752 = vmatprep.mubr.bf16.mxu1 %v17136_v22  ;;  %v14908_v30 = vcombine.low %v871_v1, %v875_v44  ;;  %v855_v34 = vld [vmem:[#allocation5 + $0x14d0] sm:$0xff] }
 0x416   :  { %v10428_v46 = vpop.f32.mrf.mxu1  ;;  %10722 = vmatprep.subr.bf16.mxu1 %v14917_v25  ;;  %v10389_v18 = vpop.f32.mrf.mxu0  ;;  %v14772_v25 = vcombine.low %v735_v61, %v739_v6  ;;  %v14765_v36 = vcombine.high %v727_v24, %v731_v12  ;;  %v14893_v53 = vcombine.high %v855_v34, %v859_v21  ;;  %v723_v33 = vld [vmem:[#allocation5 + $0x10b0] sm:$0xff]  ;;  %v14764_v44 = vcombine.low %v727_v24, %v731_v12 }
 0x417   :  { %v17333_v37 = vadd.f32 %v10428_v46, %v10388_v60  ;;  %10682 = vmatpush1.bf16.msra.mxu0 %v14788_v0  ;;  %v847_v0 = vld [vmem:[#allocation5 + $0x1490] sm:$0xff]  ;;  %v14892_v57 = vcombine.low %v855_v34, %v859_v21  ;;  %v14756_v6 = vcombine.low %v719_v27, %v723_v33 }
 0x418   :  { %v10430_v3 = vpop.f32.mrf.mxu1  ;;  %v10390_v14 = vpop.f32.mrf.mxu0  ;;  %10683 = vmatprep.subr.bf16.mxu0 %v14781_v48  ;;  %v851_v1 = vld [vmem:[#allocation5 + $0x14b0] sm:$0xff] }
 0x419   :  { %10723 = vmatpush1.bf16.msra.mxu1 %v14916_v45  ;;  %v14757_v45 = vcombine.high %v719_v27, %v723_v33  ;;  %v14885_v48 = vcombine.high %v847_v0, %v851_v1  ;;  %v711_v60 = vld [vmem:[#allocation5 + $0x1050] sm:$0xff]  ;;  %v14884_v18 = vcombine.low %v847_v0, %v851_v1 }
 0x41a   :  { %v10431_v15 = vpop.f32.mrf.mxu1  ;;  %10724 = vmatprep.subr.bf16.mxu1 %v14909_v56  ;;  %v715_v46 = vld [vmem:[#allocation5 + $0x1070] sm:$0xff] }
 0x41b   :  { %10684 = vmatpush1.bf16.msra.mxu0 %v14780_v17  ;;  %v839_v56 = vld [vmem:[#allocation5 + $0x1450] sm:$0xff]  ;;  %v14749_v23 = vcombine.high %v711_v60, %v715_v46 }
 0x41c   :  { %10685 = vmatprep.subr.bf16.mxu0 %v14773_v2  ;;  %v843_v61 = vld [vmem:[#allocation5 + $0x1470] sm:$0xff]  ;;  %v14748_v2 = vcombine.low %v711_v60, %v715_v46 }
 0x41d   :  { %10725 = vmatpush1.bf16.msra.mxu1 %v14908_v30  ;;  %v14877_v63 = vcombine.high %v839_v56, %v843_v61  ;;  %v703_v3 = vld [vmem:[#allocation5 + $0x1010] sm:$0xff]  ;;  %v14876_v15 = vcombine.low %v839_v56, %v843_v61 }
 0x41e   :  { %10726 = vmatprep.subr.bf16.mxu1 %v14901_v41  ;;  %v707_v17 = vld [vmem:[#allocation5 + $0x1030] sm:$0xff] }
 0x41f   :  { %10686 = vmatpush1.bf16.msra.mxu0 %v14772_v25  ;;  %v831_v14 = vld [vmem:[#allocation5 + $0x1410] sm:$0xff]  ;;  %v14741_v41 = vcombine.high %v703_v3, %v707_v17 }
 0x420   :  { %10687 = vmatprep.subr.bf16.mxu0 %v14765_v36  ;;  %v835_v30 = vld [vmem:[#allocation5 + $0x1430] sm:$0xff] }
 0x421   :  { %10727 = vmatpush1.bf16.msra.mxu1 %v14900_v52  ;;  %v14869_v24 = vcombine.high %v831_v14, %v835_v30  ;;  %v823_v12 = vld [vmem:[#allocation5 + $0x13d0] sm:$0xff]  ;;  %v14740_v52 = vcombine.low %v703_v3, %v707_v17  ;;  %v14868_v36 = vcombine.low %v831_v14, %v835_v30 }
 0x422   :  { %10728 = vmatprep.subr.bf16.mxu1 %v14893_v53  ;;  %v827_v34 = vld [vmem:[#allocation5 + $0x13f0] sm:$0xff] }
 0x423   :  { %10688 = vmatpush1.bf16.msra.mxu0 %v14764_v44  ;;  %v951_v21 = vld [vmem:[#allocation5 + $0x17d0] sm:$0xff]  ;;  %v14861_v53 = vcombine.high %v823_v12, %v827_v34 }
 0x424   :  { %10689 = vmatprep.subr.bf16.mxu0 %v14757_v45  ;;  %v955_v25 = vld [vmem:[#allocation5 + $0x17f0] sm:$0xff] }
 0x425   :  { %10729 = vmatpush1.bf16.msra.mxu1 %v14892_v57  ;;  %v14989_v27 = vcombine.high %v951_v21, %v955_v25  ;;  %v815_v33 = vld [vmem:[#allocation5 + $0x1390] sm:$0xff]  ;;  %v14860_v57 = vcombine.low %v823_v12, %v827_v34  ;;  %v14988_v45 = vcombine.low %v951_v21, %v955_v25 }
 0x426   :  { %10730 = vmatprep.subr.bf16.mxu1 %v14885_v48  ;;  %v819_v0 = vld [vmem:[#allocation5 + $0x13b0] sm:$0xff] }
 0x427   :  { %10690 = vmatpush1.bf16.msra.mxu0 %v14756_v6  ;;  %v943_v1 = vld [vmem:[#allocation5 + $0x1790] sm:$0xff]  ;;  %v14853_v48 = vcombine.high %v815_v33, %v819_v0 }
 0x428   :  { %10691 = vmatprep.subr.bf16.mxu0 %v14749_v23  ;;  %v947_v44 = vld [vmem:[#allocation5 + $0x17b0] sm:$0xff] }
 0x429   :  { %10731 = vmatpush1.bf16.msra.mxu1 %v14884_v18  ;;  %v14981_v60 = vcombine.high %v943_v1, %v947_v44  ;;  %v807_v46 = vld [vmem:[#allocation5 + $0x1350] sm:$0xff]  ;;  %v14852_v18 = vcombine.low %v815_v33, %v819_v0  ;;  %v14980_v23 = vcombine.low %v943_v1, %v947_v44 }
 0x42a   :  { %10732 = vmatprep.subr.bf16.mxu1 %v14877_v63  ;;  %v811_v56 = vld [vmem:[#allocation5 + $0x1370] sm:$0xff] }
 0x42b   :  { %10692 = vmatpush1.bf16.msra.mxu0 %v14748_v2  ;;  %v935_v61 = vld [vmem:[#allocation5 + $0x1750] sm:$0xff]  ;;  %v14845_v63 = vcombine.high %v807_v46, %v811_v56 }
 0x42c   :  { %10693 = vmatprep.subr.bf16.mxu0 %v14741_v41  ;;  %v939_v6 = vld [vmem:[#allocation5 + $0x1770] sm:$0xff] }
 0x42d   :  { %10733 = vmatpush1.bf16.msra.mxu1 %v14876_v15  ;;  %v14973_v3 = vcombine.high %v935_v61, %v939_v6  ;;  %v799_v17 = vld [vmem:[#allocation5 + $0x1310] sm:$0xff]  ;;  %v14844_v15 = vcombine.low %v807_v46, %v811_v56  ;;  %v14972_v41 = vcombine.low %v935_v61, %v939_v6 }
 0x42e   :  { %10734 = vmatprep.subr.bf16.mxu1 %v14869_v24  ;;  %v803_v14 = vld [vmem:[#allocation5 + $0x1330] sm:$0xff] }
 0x42f   :  { %10694 = vmatpush1.bf16.msra.mxu0 %v14740_v52  ;;  %v927_v30 = vld [vmem:[#allocation5 + $0x1710] sm:$0xff]  ;;  %v14837_v24 = vcombine.high %v799_v17, %v803_v14 }
 0x430   :  { %10695 = vmatprep.subr.bf16.mxu0 %v14861_v53  ;;  %v931_v2 = vld [vmem:[#allocation5 + $0x1730] sm:$0xff] }
 0x431   :  { %10735 = vmatpush1.bf16.msra.mxu1 %v14868_v36  ;;  %v14965_v12 = vcombine.high %v927_v30, %v931_v2  ;;  %v791_v34 = vld [vmem:[#allocation5 + $0x12d0] sm:$0xff]  ;;  %v14836_v36 = vcombine.low %v799_v17, %v803_v14  ;;  %v14964_v53 = vcombine.low %v927_v30, %v931_v2 }
 0x432   :  { %10736 = vmatprep.subr.bf16.mxu1 %v14989_v27  ;;  %v795_v21 = vld [vmem:[#allocation5 + $0x12f0] sm:$0xff] }
 0x433   :  { %10696 = vmatpush2.bf16.msra.mxu0 %v14860_v57  ;;  %v919_v25 = vld [vmem:[#allocation5 + $0x16d0] sm:$0xff]  ;;  %v14829_v27 = vcombine.high %v791_v34, %v795_v21 }
 0x434   :  { %10697 = vmatprep.subr.bf16.mxu0 %v14853_v48  ;;  %v923_v52 = vld [vmem:[#allocation5 + $0x16f0] sm:$0xff] }
 0x435   :  { %10737 = vmatpush2.bf16.msra.mxu1 %v14988_v45  ;;  %v14957_v33 = vcombine.high %v919_v25, %v923_v52  ;;  %v783_v0 = vld [vmem:[#allocation5 + $0x1290] sm:$0xff]  ;;  %v14828_v45 = vcombine.low %v791_v34, %v795_v21  ;;  %v14956_v48 = vcombine.low %v919_v25, %v923_v52 }
 0x436   :  { %10738 = vmatprep.subr.bf16.mxu1 %v14981_v60  ;;  %v787_v1 = vld [vmem:[#allocation5 + $0x12b0] sm:$0xff] }
 0x437   :  { %10698 = vmatpush2.bf16.msra.mxu0 %v14852_v18  ;;  %v911_v44 = vld [vmem:[#allocation5 + $0x1690] sm:$0xff]  ;;  %v14821_v60 = vcombine.high %v783_v0, %v787_v1 }
 0x438   :  { %10699 = vmatprep.subr.bf16.mxu0 %v14845_v63  ;;  %v915_v57 = vld [vmem:[#allocation5 + $0x16b0] sm:$0xff] }
 0x439   :  { %10739 = vmatpush2.bf16.msra.mxu1 %v14980_v23  ;;  %v14949_v46 = vcombine.high %v911_v44, %v915_v57  ;;  %v775_v56 = vld [vmem:[#allocation5 + $0x1250] sm:$0xff]  ;;  %v14820_v23 = vcombine.low %v783_v0, %v787_v1  ;;  %v14948_v63 = vcombine.low %v911_v44, %v915_v57 }
 0x43a   :  { %10740 = vmatprep.subr.bf16.mxu1 %v14973_v3  ;;  %v779_v61 = vld [vmem:[#allocation5 + $0x1270] sm:$0xff] }
 0x43b   :  { %10700 = vmatpush2.bf16.msra.mxu0 %v14844_v15  ;;  %v903_v6 = vld [vmem:[#allocation5 + $0x1650] sm:$0xff]  ;;  %v14813_v3 = vcombine.high %v775_v56, %v779_v61 }
 0x43c   :  { %10701 = vmatprep.subr.bf16.mxu0 %v14837_v24  ;;  %v907_v18 = vld [vmem:[#allocation5 + $0x1670] sm:$0xff] }
 0x43d   :  { %10741 = vmatpush2.bf16.msra.mxu1 %v14972_v41  ;;  %v14941_v17 = vcombine.high %v903_v6, %v907_v18  ;;  %v767_v14 = vld [vmem:[#allocation5 + $0x1210] sm:$0xff]  ;;  %v14812_v41 = vcombine.low %v775_v56, %v779_v61  ;;  %v14940_v24 = vcombine.low %v903_v6, %v907_v18 }
 0x43e   :  { %10742 = vmatprep.subr.bf16.mxu1 %v14965_v12  ;;  %v771_v30 = vld [vmem:[#allocation5 + $0x1230] sm:$0xff] }
 0x43f   :  { %10702 = vmatpush2.bf16.msra.mxu0 %v14836_v36  ;;  %v895_v2 = vld [vmem:[#allocation5 + $0x1610] sm:$0xff]  ;;  %v14805_v12 = vcombine.high %v767_v14, %v771_v30 }
 0x440   :  { %10703 = vmatprep.subr.bf16.mxu0 %v14829_v27  ;;  %v899_v15 = vld [vmem:[#allocation5 + $0x1630] sm:$0xff] }
 0x441   :  { %10743 = vmatpush2.bf16.msra.mxu1 %v14964_v53  ;;  %v14933_v34 = vcombine.high %v895_v2, %v899_v15  ;;  %v1015_v21 = vld [vmem:[#allocation5 + $0x19d0] sm:$0xff]  ;;  %v14804_v53 = vcombine.low %v767_v14, %v771_v30  ;;  %v14932_v27 = vcombine.low %v895_v2, %v899_v15 }
 0x442   :  { %10744 = vmatprep.subr.bf16.mxu1 %v14957_v33  ;;  %v1019_v25 = vld [vmem:[#allocation5 + $0x19f0] sm:$0xff] }
 0x443   :  { %10704 = vmatpush2.bf16.msra.mxu0 %v14828_v45  ;;  %v1143_v52 = vld [vmem:[#allocation5 + $0x1dd0] sm:$0xff]  ;;  %v15053_v33 = vcombine.high %v1015_v21, %v1019_v25 }
 0x444   :  { %10705 = vmatprep.subr.bf16.mxu0 %v14821_v60  ;;  %v1147_v36 = vld [vmem:[#allocation5 + $0x1df0] sm:$0xff] }
 0x445   :  { %10745 = vmatpush2.bf16.msra.mxu1 %v14956_v48  ;;  %v15181_v0 = vcombine.high %v1143_v52, %v1147_v36  ;;  %v1007_v1 = vld [vmem:[#allocation5 + $0x1990] sm:$0xff]  ;;  %v15052_v48 = vcombine.low %v1015_v21, %v1019_v25  ;;  %v15180_v60 = vcombine.low %v1143_v52, %v1147_v36 }
 0x446   :  { %10746 = vmatprep.subr.bf16.mxu1 %v14949_v46  ;;  %v1011_v44 = vld [vmem:[#allocation5 + $0x19b0] sm:$0xff] }
 0x447   :  { %10706 = vmatpush2.bf16.msra.mxu0 %v14820_v23  ;;  %v1135_v57 = vld [vmem:[#allocation5 + $0x1d90] sm:$0xff]  ;;  %v15045_v46 = vcombine.high %v1007_v1, %v1011_v44  ;;  %v15044_v14 = vcombine.low %v1007_v1, %v1011_v44 }
 0x448   :  { %10707 = vmatprep.subr.bf16.mxu0 %v14813_v3  ;;  %v1139_v45 = vld [vmem:[#allocation5 + $0x1db0] sm:$0xff] }
 0x449   :  { %10747 = vmatpush2.bf16.msra.mxu1 %v14948_v63  ;;  %v15173_v56 = vcombine.high %v1135_v57, %v1139_v45  ;;  %v999_v61 = vld [vmem:[#allocation5 + $0x1950] sm:$0xff]  ;;  %v15172_v2 = vcombine.low %v1135_v57, %v1139_v45 }
 0x44a   :  { %10748 = vmatprep.subr.bf16.mxu1 %v14941_v17  ;;  %v1003_v6 = vld [vmem:[#allocation5 + $0x1970] sm:$0xff] }
 0x44b   :  { %10708 = vmatpush2.bf16.msra.mxu0 %v14812_v41  ;;  %v1127_v23 = vld [vmem:[#allocation5 + $0x1d50] sm:$0xff]  ;;  %v15037_v15 = vcombine.high %v999_v61, %v1003_v6 }
 0x44c   :  { %10709 = vmatprep.subr.bf16.mxu0 %v14805_v12  ;;  %v1131_v63 = vld [vmem:[#allocation5 + $0x1d70] sm:$0xff] }
 0x44d   :  { %10749 = vmatpush2.bf16.msra.mxu1 %v14940_v24  ;;  %v991_v21 = vld [vmem:[#allocation5 + $0x1910] sm:$0xff] }
 0x44e   :  { %10750 = vmatprep.subr.bf16.mxu1 %v14933_v34  ;;  %v15165_v34 = vcombine.high %v1127_v23, %v1131_v63  ;;  %v995_v25 = vld [vmem:[#allocation5 + $0x1930] sm:$0xff] }
 0x44f   :  { %10710 = vmatpush2.bf16.msra.mxu0 %v14804_v53  ;;  %v1119_v52 = vld [vmem:[#allocation5 + $0x1d10] sm:$0xff]  ;;  %v15029_v1 = vcombine.high %v991_v21, %v995_v25 }
 0x450   :  { %10761 = vmatprep.subr.bf16.mxu0 %v15053_v33  ;;  %v1123_v36 = vld [vmem:[#allocation5 + $0x1d30] sm:$0xff]  ;;  %v15036_v33 = vcombine.low %v999_v61, %v1003_v6 }
 0x451   :  { %10751 = vmatpush2.bf16.msra.mxu1 %v14932_v27  ;;  %v15157_v57 = vcombine.high %v1119_v52, %v1123_v36  ;;  %v983_v45 = vld [vmem:[#allocation5 + $0x18d0] sm:$0xff] }
 0x452   :  { %10802 = vmatprep.subr.bf16.mxu1 %v15181_v0  ;;  %v10467_v18 = vpop.f32.mrf.mxu0  ;;  %10712 = vmatmul.mubr.bf16.vlgmr.msra.gmra.mxu0 %v17145_v7  ;;  %v975_v6 = vld [vmem:[#allocation5 + $0x1890] sm:$0xff] }
 0x453   :  { %v10468_v3 = vadd.f32 %v10467_v18, %v17328_v11  ;;  %10762 = vmatpush1.bf16.msra.mxu0 %v15052_v48  ;;  %10793 = vmatprep.mubr.bf16.mxu0 %v17155_v38  ;;  %v987_v48 = vld [vmem:[#allocation5 + $0x18f0] sm:$0xff]  ;;  %v15156_v18 = vcombine.low %v1119_v52, %v1123_v36 }
 0x454   :  { %v10508_v17 = vpop.f32.mrf.mxu1  ;;  %10753 = vmatmul.mubr.bf16.vlgmr.msra.gmra.mxu1 %v17149_v8  ;;  %v10469_v30 = vpop.f32.mrf.mxu0  ;;  %10763 = vmatprep.subr.bf16.mxu0 %v15045_v46  ;;  %v1115_v46 = vld [vmem:[#allocation5 + $0x1cf0] sm:$0xff] }
 0x455   :  { %10803 = vmatpush1.bf16.msra.mxu1 %v15180_v60  ;;  %v17338_v41 = vadd.f32 %v10508_v17, %v10468_v3  ;;  %v10470_v24 = vadd.f32 %v10469_v30, %v17333_v37  ;;  %10834 = vmatprep.mubr.bf16.mxu1 %v17160_v42  ;;  %v15164_v37 = vcombine.low %v1127_v23, %v1131_v63  ;;  %v1111_v60 = vld [vmem:[#allocation5 + $0x1cd0] sm:$0xff] }
 0x456   :  { %v10510_v12 = vpop.f32.mrf.mxu1  ;;  %10804 = vmatprep.subr.bf16.mxu1 %v15173_v56  ;;  %v10471_v11 = vpop.f32.mrf.mxu0  ;;  %v15028_v56 = vcombine.low %v991_v21, %v995_v25  ;;  %v15021_v3 = vcombine.high %v983_v45, %v987_v48  ;;  %v15149_v61 = vcombine.high %v1111_v60, %v1115_v46  ;;  %v979_v17 = vld [vmem:[#allocation5 + $0x18b0] sm:$0xff]  ;;  %v15020_v63 = vcombine.low %v983_v45, %v987_v48 }
 0x457   :  { %v17343_v53 = vadd.f32 %v10510_v12, %v10470_v24  ;;  %10764 = vmatpush1.bf16.msra.mxu0 %v15044_v14  ;;  %v1103_v14 = vld [vmem:[#allocation5 + $0x1c90] sm:$0xff]  ;;  %v15148_v30 = vcombine.low %v1111_v60, %v1115_v46  ;;  %v15012_v25 = vcombine.low %v975_v6, %v979_v17 }
 0x458   :  { %v10512_v27 = vpop.f32.mrf.mxu1  ;;  %v10472_v0 = vpop.f32.mrf.mxu0  ;;  %10765 = vmatprep.subr.bf16.mxu0 %v15037_v15  ;;  %v1107_v23 = vld [vmem:[#allocation5 + $0x1cb0] sm:$0xff] }
 0x459   :  { %10805 = vmatpush1.bf16.msra.mxu1 %v15172_v2  ;;  %v15013_v2 = vcombine.high %v975_v6, %v979_v17  ;;  %v15141_v15 = vcombine.high %v1103_v14, %v1107_v23  ;;  %v967_v24 = vld [vmem:[#allocation5 + $0x1850] sm:$0xff]  ;;  %v15140_v11 = vcombine.low %v1103_v14, %v1107_v23 }
 0x45a   :  { %v10513_v44 = vpop.f32.mrf.mxu1  ;;  %10806 = vmatprep.subr.bf16.mxu1 %v15165_v34  ;;  %v971_v12 = vld [vmem:[#allocation5 + $0x1870] sm:$0xff] }
 0x45b   :  { %10766 = vmatpush1.bf16.msra.mxu0 %v15036_v33  ;;  %v1095_v34 = vld [vmem:[#allocation5 + $0x1c50] sm:$0xff]  ;;  %v15005_v52 = vcombine.high %v967_v24, %v971_v12 }
 0x45c   :  { %10767 = vmatprep.subr.bf16.mxu0 %v15029_v1  ;;  %v1099_v21 = vld [vmem:[#allocation5 + $0x1c70] sm:$0xff]  ;;  %v15004_v1 = vcombine.low %v967_v24, %v971_v12 }
 0x45d   :  { %10807 = vmatpush1.bf16.msra.mxu1 %v15164_v37  ;;  %v15133_v36 = vcombine.high %v1095_v34, %v1099_v21  ;;  %v959_v27 = vld [vmem:[#allocation5 + $0x1810] sm:$0xff]  ;;  %v15132_v44 = vcombine.low %v1095_v34, %v1099_v21 }
 0x45e   :  { %10808 = vmatprep.subr.bf16.mxu1 %v15157_v57  ;;  %v963_v33 = vld [vmem:[#allocation5 + $0x1830] sm:$0xff] }
 0x45f   :  { %10768 = vmatpush1.bf16.msra.mxu0 %v15028_v56  ;;  %v1087_v0 = vld [vmem:[#allocation5 + $0x1c10] sm:$0xff]  ;;  %v14997_v57 = vcombine.high %v959_v27, %v963_v33 }
 0x460   :  { %10769 = vmatprep.subr.bf16.mxu0 %v15021_v3  ;;  %v1091_v37 = vld [vmem:[#allocation5 + $0x1c30] sm:$0xff] }
 0x461   :  { %10809 = vmatpush1.bf16.msra.mxu1 %v15156_v18  ;;  %v15125_v45 = vcombine.high %v1087_v0, %v1091_v37  ;;  %v1079_v48 = vld [vmem:[#allocation5 + $0x1bd0] sm:$0xff]  ;;  %v14996_v18 = vcombine.low %v959_v27, %v963_v33  ;;  %v15124_v3 = vcombine.low %v1087_v0, %v1091_v37 }
 0x462   :  { %10810 = vmatprep.subr.bf16.mxu1 %v15149_v61  ;;  %v1083_v60 = vld [vmem:[#allocation5 + $0x1bf0] sm:$0xff] }
 0x463   :  { %10770 = vmatpush1.bf16.msra.mxu0 %v15020_v63  ;;  %v1207_v46 = vld [vmem:[#allocation5 + $0x1fd0] sm:$0xff]  ;;  %v15117_v61 = vcombine.high %v1079_v48, %v1083_v60 }
 0x464   :  { %10771 = vmatprep.subr.bf16.mxu0 %v15013_v2  ;;  %v1211_v56 = vld [vmem:[#allocation5 + $0x1ff0] sm:$0xff] }
 0x465   :  { %10811 = vmatpush1.bf16.msra.mxu1 %v15148_v30  ;;  %v15245_v6 = vcombine.high %v1207_v46, %v1211_v56  ;;  %v1071_v17 = vld [vmem:[#allocation5 + $0x1b90] sm:$0xff]  ;;  %v15116_v30 = vcombine.low %v1079_v48, %v1083_v60  ;;  %v15244_v2 = vcombine.low %v1207_v46, %v1211_v56 }
 0x466   :  { %10812 = vmatprep.subr.bf16.mxu1 %v15141_v15  ;;  %v1075_v14 = vld [vmem:[#allocation5 + $0x1bb0] sm:$0xff] }
 0x467   :  { %10772 = vmatpush1.bf16.msra.mxu0 %v15012_v25  ;;  %v1199_v23 = vld [vmem:[#allocation5 + $0x1f90] sm:$0xff]  ;;  %v15109_v15 = vcombine.high %v1071_v17, %v1075_v14 }
 0x468   :  { %10773 = vmatprep.subr.bf16.mxu0 %v15005_v52  ;;  %v1203_v63 = vld [vmem:[#allocation5 + $0x1fb0] sm:$0xff] }
 0x469   :  { %10813 = vmatpush1.bf16.msra.mxu1 %v15140_v11  ;;  %v15237_v24 = vcombine.high %v1199_v23, %v1203_v63  ;;  %v1063_v12 = vld [vmem:[#allocation5 + $0x1b50] sm:$0xff]  ;;  %v15108_v11 = vcombine.low %v1071_v17, %v1075_v14  ;;  %v15236_v52 = vcombine.low %v1199_v23, %v1203_v63 }
 0x46a   :  { %10814 = vmatprep.subr.bf16.mxu1 %v15133_v36  ;;  %v1067_v34 = vld [vmem:[#allocation5 + $0x1b70] sm:$0xff] }
 0x46b   :  { %10774 = vmatpush1.bf16.msra.mxu0 %v15004_v1  ;;  %v1191_v21 = vld [vmem:[#allocation5 + $0x1f50] sm:$0xff]  ;;  %v15101_v36 = vcombine.high %v1063_v12, %v1067_v34 }
 0x46c   :  { %10775 = vmatprep.subr.bf16.mxu0 %v14997_v57  ;;  %v1195_v25 = vld [vmem:[#allocation5 + $0x1f70] sm:$0xff] }
 0x46d   :  { %10815 = vmatpush1.bf16.msra.mxu1 %v15132_v44  ;;  %v15229_v27 = vcombine.high %v1191_v21, %v1195_v25  ;;  %v1055_v33 = vld [vmem:[#allocation5 + $0x1b10] sm:$0xff]  ;;  %v15100_v44 = vcombine.low %v1063_v12, %v1067_v34  ;;  %v15228_v57 = vcombine.low %v1191_v21, %v1195_v25 }
 0x46e   :  { %10816 = vmatprep.subr.bf16.mxu1 %v15125_v45  ;;  %v1059_v0 = vld [vmem:[#allocation5 + $0x1b30] sm:$0xff] }
 0x46f   :  { %10776 = vmatpush1.bf16.msra.mxu0 %v14996_v18  ;;  %v1183_v37 = vld [vmem:[#allocation5 + $0x1f10] sm:$0xff]  ;;  %v15093_v45 = vcombine.high %v1055_v33, %v1059_v0 }
 0x470   :  { %10777 = vmatprep.subr.bf16.mxu0 %v15117_v61  ;;  %v1187_v1 = vld [vmem:[#allocation5 + $0x1f30] sm:$0xff] }
 0x471   :  { %10817 = vmatpush1.bf16.msra.mxu1 %v15124_v3  ;;  %v15221_v48 = vcombine.high %v1183_v37, %v1187_v1  ;;  %v1047_v60 = vld [vmem:[#allocation5 + $0x1ad0] sm:$0xff]  ;;  %v15092_v3 = vcombine.low %v1055_v33, %v1059_v0  ;;  %v15220_v61 = vcombine.low %v1183_v37, %v1187_v1 }
 0x472   :  { %10818 = vmatprep.subr.bf16.mxu1 %v15245_v6  ;;  %v1051_v46 = vld [vmem:[#allocation5 + $0x1af0] sm:$0xff] }
 0x473   :  { %10778 = vmatpush2.bf16.msra.mxu0 %v15116_v30  ;;  %v1175_v56 = vld [vmem:[#allocation5 + $0x1ed0] sm:$0xff]  ;;  %v15085_v6 = vcombine.high %v1047_v60, %v1051_v46 }
 0x474   :  { %10779 = vmatprep.subr.bf16.mxu0 %v15109_v15  ;;  %v1179_v18 = vld [vmem:[#allocation5 + $0x1ef0] sm:$0xff] }
 0x475   :  { %10819 = vmatpush2.bf16.msra.mxu1 %v15244_v2  ;;  %v15213_v17 = vcombine.high %v1175_v56, %v1179_v18  ;;  %v1039_v14 = vld [vmem:[#allocation5 + $0x1a90] sm:$0xff]  ;;  %v15084_v2 = vcombine.low %v1047_v60, %v1051_v46  ;;  %v15212_v15 = vcombine.low %v1175_v56, %v1179_v18 }
 0x476   :  { %10820 = vmatprep.subr.bf16.mxu1 %v15237_v24  ;;  %v1043_v23 = vld [vmem:[#allocation5 + $0x1ab0] sm:$0xff] }
 0x477   :  { %10780 = vmatpush2.bf16.msra.mxu0 %v15108_v11  ;;  %v1167_v63 = vld [vmem:[#allocation5 + $0x1e90] sm:$0xff]  ;;  %v15077_v24 = vcombine.high %v1039_v14, %v1043_v23 }
 0x478   :  { %10781 = vmatprep.subr.bf16.mxu0 %v15101_v36  ;;  %v1171_v30 = vld [vmem:[#allocation5 + $0x1eb0] sm:$0xff] }
 0x479   :  { %10821 = vmatpush2.bf16.msra.mxu1 %v15236_v52  ;;  %v15205_v12 = vcombine.high %v1167_v63, %v1171_v30  ;;  %v1031_v34 = vld [vmem:[#allocation5 + $0x1a50] sm:$0xff]  ;;  %v15076_v52 = vcombine.low %v1039_v14, %v1043_v23  ;;  %v15204_v36 = vcombine.low %v1167_v63, %v1171_v30  ;;  %v1749_v63 = vsub.s32 5, %v17165_v31 }
 0x47a   :  { %10822 = vmatprep.subr.bf16.mxu1 %v15229_v27  ;;  %v1035_v21 = vld [vmem:[#allocation5 + $0x1a70] sm:$0xff] }
 0x47b   :  { %10782 = vmatpush2.bf16.msra.mxu0 %v15100_v44  ;;  %v1159_v25 = vld [vmem:[#allocation5 + $0x1e50] sm:$0xff]  ;;  %v15069_v27 = vcombine.high %v1031_v34, %v1035_v21 }
 0x47c   :  { %10783 = vmatprep.subr.bf16.mxu0 %v15093_v45  ;;  %v1163_v11 = vld [vmem:[#allocation5 + $0x1e70] sm:$0xff] }
 0x47d   :  { %10823 = vmatpush2.bf16.msra.mxu1 %v15228_v57  ;;  %v15197_v33 = vcombine.high %v1159_v25, %v1163_v11  ;;  %v1023_v0 = vld [vmem:[#allocation5 + $0x1a10] sm:$0xff]  ;;  %v15068_v57 = vcombine.low %v1031_v34, %v1035_v21  ;;  %v15196_v45 = vcombine.low %v1159_v25, %v1163_v11 }
 0x47e   :  { %10824 = vmatprep.subr.bf16.mxu1 %v15221_v48  ;;  %v1027_v37 = vld [vmem:[#allocation5 + $0x1a30] sm:$0xff] }
 0x47f   :  { %10784 = vmatpush2.bf16.msra.mxu0 %v15092_v3  ;;  %v1151_v1 = vld [vmem:[#allocation5 + $0x1e10] sm:$0xff]  ;;  %v15061_v48 = vcombine.high %v1023_v0, %v1027_v37 }
 0x480   :  { %10785 = vmatprep.subr.bf16.mxu0 %v15085_v6  ;;  %v1155_v44 = vld [vmem:[#allocation5 + $0x1e30] sm:$0xff]  ;;  %v1745_v6 = vsub.s32 4, %v17165_v31 }
 0x481   :  { %10825 = vmatpush2.bf16.msra.mxu1 %v15220_v61  ;;  %v15189_v60 = vcombine.high %v1151_v1, %v1155_v44  ;;  %v1271_v46 = vld [vmem:[#allocation5 + $0x21d0] sm:$0xff]  ;;  %v15060_v61 = vcombine.low %v1023_v0, %v1027_v37 }
 0x482   :  { %10826 = vmatprep.subr.bf16.mxu1 %v15213_v17  ;;  %v1275_v56 = vld [vmem:[#allocation5 + $0x21f0] sm:$0xff]  ;;  %v15188_v17 = vcombine.low %v1151_v1, %v1155_v44 }
 0x483   :  { %10786 = vmatpush2.bf16.msra.mxu0 %v15084_v2  ;;  %v1399_v18 = vld [vmem:[#allocation5 + $0x25d0] sm:$0xff]  ;;  %v15309_v14 = vcombine.high %v1271_v46, %v1275_v56  ;;  %v15308_v21 = vcombine.low %v1271_v46, %v1275_v56 }
 0x484   :  { %10787 = vmatprep.subr.bf16.mxu0 %v15077_v24  ;;  %v1403_v3 = vld [vmem:[#allocation5 + $0x25f0] sm:$0xff] }
 0x485   :  { %10827 = vmatpush2.bf16.msra.mxu1 %v15212_v15  ;;  %v15437_v23 = vcombine.high %v1399_v18, %v1403_v3  ;;  %v1263_v30 = vld [vmem:[#allocation5 + $0x2190] sm:$0xff]  ;;  %v15436_v25 = vcombine.low %v1399_v18, %v1403_v3 }
 0x486   :  { %10828 = vmatprep.subr.bf16.mxu1 %v15205_v12  ;;  %v1267_v2 = vld [vmem:[#allocation5 + $0x21b0] sm:$0xff]  ;;  %v16708_v12 = vld [vmem:[#allocation7] sm:$0xff] }
 0x487   :  { %10788 = vmatpush2.bf16.msra.mxu0 %v15076_v52  ;;  %v1391_v15 = vld [vmem:[#allocation5 + $0x2590] sm:$0xff]  ;;  %v1746_v34 = vrot.slane %v16708_v12, %v1745_v6  ;;  %v15301_v11 = vcombine.high %v1263_v30, %v1267_v2  ;;  %v1750_v52 = vrot.slane %v16708_v12, %v1749_v63 }
 0x488   :  { %10789 = vmatprep.subr.bf16.mxu0 %v15069_v27  ;;  %v1395_v24 = vld [vmem:[#allocation5 + $0x25b0] sm:$0xff] }
 0x489   :  { %10829 = vmatpush2.bf16.msra.mxu1 %v15204_v36  ;;  %v15429_v36 = vcombine.high %v1391_v15, %v1395_v24  ;;  %v1255_v27 = vld [vmem:[#allocation5 + $0x2150] sm:$0xff] }
 0x48a   :  { %10830 = vmatprep.subr.bf16.mxu1 %v15197_v33  ;;  %v1259_v33 = vld [vmem:[#allocation5 + $0x2170] sm:$0xff] }
 0x48b   :  { %10790 = vmatpush2.bf16.msra.mxu0 %v15068_v57  ;;  %v1383_v37 = vld [vmem:[#allocation5 + $0x2550] sm:$0xff]  ;;  %v15293_v46 = vcombine.high %v1255_v27, %v1259_v33 }
 0x48c   :  { %10791 = vmatprep.subr.bf16.mxu0 %v15061_v48  ;;  %v1387_v1 = vld [vmem:[#allocation5 + $0x2570] sm:$0xff] }
 0x48d   :  { %10831 = vmatpush2.bf16.msra.mxu1 %v15196_v45  ;;  %v15300_v45 = vcombine.low %v1263_v30, %v1267_v2  ;;  %v1247_v6 = vld [vmem:[#allocation5 + $0x2110] sm:$0xff]  ;;  %v15420_v12 = vcombine.low %v1383_v37, %v1387_v1 }
 0x48e   :  { %10832 = vmatprep.subr.bf16.mxu1 %v15189_v60  ;;  %v15428_v60 = vcombine.low %v1391_v15, %v1395_v24  ;;  %v1379_v63 = vld [vmem:[#allocation5 + $0x2530] sm:$0xff]  ;;  %v15292_v15 = vcombine.low %v1255_v27, %v1259_v33 }
 0x48f   :  { %10792 = vmatpush2.bf16.msra.mxu0 %v15060_v61  ;;  %v15421_v61 = vcombine.high %v1383_v37, %v1387_v1  ;;  %v1231_v33 = vld [vmem:[#allocation5 + $0x2090] sm:$0xff] }
 0x490   :  { %10843 = vmatprep.subr.bf16.mxu0 %v15309_v14  ;;  %v1363_v37 = vld [vmem:[#allocation5 + $0x24b0] sm:$0xff] }
 0x491   :  { %10833 = vmatpush2.bf16.msra.mxu1 %v15188_v17  ;;  %v1251_v17 = vld [vmem:[#allocation5 + $0x2130] sm:$0xff] }
 0x492   :  { %10884 = vmatprep.subr.bf16.mxu1 %v15437_v23  ;;  %v10549_v0 = vpop.f32.mrf.mxu0  ;;  %10794 = vmatmul.mubr.bf16.vlgmr.msra.gmra.mxu0 %v17175_v55  ;;  %v1375_v23 = vld [vmem:[#allocation5 + $0x2510] sm:$0xff] }
 0x493   :  { %v10550_v44 = vadd.f32 %v10549_v0, %v1746_v34  ;;  %10844 = vmatpush1.bf16.msra.mxu0 %v15308_v21  ;;  %10875 = vmatprep.mubr.bf16.mxu0 %v17189_v9  ;;  %v15285_v34 = vcombine.high %v1247_v6, %v1251_v17  ;;  %v1371_v0 = vld [vmem:[#allocation5 + $0x24f0] sm:$0xff] }
 0x494   :  { %v10590_v57 = vpop.f32.mrf.mxu1  ;;  %10835 = vmatmul.mubr.bf16.vlgmr.msra.gmra.mxu1 %v17182_v62  ;;  %v10551_v48 = vpop.f32.mrf.mxu0  ;;  %10845 = vmatprep.subr.bf16.mxu0 %v15301_v11  ;;  %v1239_v11 = vld [vmem:[#allocation5 + $0x20d0] sm:$0xff] }
 0x495   :  { %10885 = vmatpush1.bf16.msra.mxu1 %v15436_v25  ;;  %v17349_v56 = vadd.f32 %v10590_v57, %v10550_v44  ;;  %v10552_v18 = vadd.f32 %v10551_v48, %v1750_v52  ;;  %10916 = vmatprep.mubr.bf16.mxu1 %v17194_v13  ;;  %v15413_v25 = vcombine.high %v1375_v23, %v1379_v63  ;;  %v1243_v52 = vld [vmem:[#allocation5 + $0x20f0] sm:$0xff] }
 0x496   :  { %v10592_v3 = vpop.f32.mrf.mxu1  ;;  %10886 = vmatprep.subr.bf16.mxu1 %v15429_v36  ;;  %v10553_v14 = vpop.f32.mrf.mxu0  ;;  %v1367_v36 = vld [vmem:[#allocation5 + $0x24d0] sm:$0xff]  ;;  %v15284_v44 = vcombine.low %v1247_v6, %v1251_v17  ;;  %v15412_v57 = vcombine.low %v1375_v23, %v1379_v63  ;;  %v15277_v48 = vcombine.high %v1239_v11, %v1243_v52  ;;  %v15276_v1 = vcombine.low %v1239_v11, %v1243_v52 }
 0x497   :  { %v17353_v30 = vadd.f32 %v10592_v3, %v10552_v18  ;;  %10846 = vmatpush1.bf16.msra.mxu0 %v15300_v45  ;;  %v15405_v27 = vcombine.high %v1367_v36, %v1371_v0  ;;  %v1235_v45 = vld [vmem:[#allocation5 + $0x20b0] sm:$0xff] }
 0x498   :  { %v10594_v2 = vpop.f32.mrf.mxu1  ;;  %v10554_v24 = vpop.f32.mrf.mxu0  ;;  %10847 = vmatprep.subr.bf16.mxu0 %v15293_v46  ;;  %v15404_v46 = vcombine.low %v1367_v36, %v1371_v0  ;;  %v15269_v18 = vcombine.high %v1231_v33, %v1235_v45  ;;  %v1227_v6 = vld [vmem:[#allocation5 + $0x2070] sm:$0xff]  ;;  %v15268_v23 = vcombine.low %v1231_v33, %v1235_v45 }
 0x499   :  { %10887 = vmatpush1.bf16.msra.mxu1 %v15428_v60  ;;  %v1359_v60 = vld [vmem:[#allocation5 + $0x2490] sm:$0xff] }
 0x49a   :  { %v10595_v21 = vpop.f32.mrf.mxu1  ;;  %10888 = vmatprep.subr.bf16.mxu1 %v15421_v61  ;;  %v15397_v3 = vcombine.high %v1359_v60, %v1363_v37  ;;  %v1223_v61 = vld [vmem:[#allocation5 + $0x2050] sm:$0xff]  ;;  %v15396_v63 = vcombine.low %v1359_v60, %v1363_v37 }
 0x49b   :  { %10848 = vmatpush1.bf16.msra.mxu0 %v15292_v15  ;;  %v1351_v17 = vld [vmem:[#allocation5 + $0x2450] sm:$0xff]  ;;  %v15261_v2 = vcombine.high %v1223_v61, %v1227_v6 }
 0x49c   :  { %10849 = vmatprep.subr.bf16.mxu0 %v15285_v34  ;;  %v1355_v14 = vld [vmem:[#allocation5 + $0x2470] sm:$0xff] }
 0x49d   :  { %10889 = vmatpush1.bf16.msra.mxu1 %v15420_v12  ;;  %v15389_v15 = vcombine.high %v1351_v17, %v1355_v14  ;;  %v1215_v24 = vld [vmem:[#allocation5 + $0x2010] sm:$0xff]  ;;  %v15388_v11 = vcombine.low %v1351_v17, %v1355_v14 }
 0x49e   :  { %10890 = vmatprep.subr.bf16.mxu1 %v15413_v25  ;;  %v1219_v12 = vld [vmem:[#allocation5 + $0x2030] sm:$0xff]  ;;  %v15260_v25 = vcombine.low %v1223_v61, %v1227_v6 }
 0x49f   :  { %10850 = vmatpush1.bf16.msra.mxu0 %v15284_v44  ;;  %v1343_v34 = vld [vmem:[#allocation5 + $0x2410] sm:$0xff]  ;;  %v15253_v52 = vcombine.high %v1215_v24, %v1219_v12 }
 0x4a0   :  { %10851 = vmatprep.subr.bf16.mxu0 %v15277_v48  ;;  %v1347_v21 = vld [vmem:[#allocation5 + $0x2430] sm:$0xff] }
 0x4a1   :  { %10891 = vmatpush1.bf16.msra.mxu1 %v15412_v57  ;;  %v15381_v36 = vcombine.high %v1343_v34, %v1347_v21  ;;  %v1335_v0 = vld [vmem:[#allocation5 + $0x23d0] sm:$0xff]  ;;  %v15380_v33 = vcombine.low %v1343_v34, %v1347_v21 }
 0x4a2   :  { %10892 = vmatprep.subr.bf16.mxu1 %v15405_v27  ;;  %v1339_v44 = vld [vmem:[#allocation5 + $0x23f0] sm:$0xff]  ;;  %v15252_v27 = vcombine.low %v1215_v24, %v1219_v12 }
 0x4a3   :  { %10852 = vmatpush1.bf16.msra.mxu0 %v15276_v1  ;;  %v1463_v57 = vld [vmem:[#allocation5 + $0x27d0] sm:$0xff]  ;;  %v15373_v45 = vcombine.high %v1335_v0, %v1339_v44 }
 0x4a4   :  { %10853 = vmatprep.subr.bf16.mxu0 %v15269_v18  ;;  %v1467_v48 = vld [vmem:[#allocation5 + $0x27f0] sm:$0xff] }
 0x4a5   :  { %10893 = vmatpush1.bf16.msra.mxu1 %v15404_v46  ;;  %v15501_v60 = vcombine.high %v1463_v57, %v1467_v48  ;;  %v1327_v37 = vld [vmem:[#allocation5 + $0x2390] sm:$0xff]  ;;  %v15500_v61 = vcombine.low %v1463_v57, %v1467_v48 }
 0x4a6   :  { %10894 = vmatprep.subr.bf16.mxu1 %v15397_v3  ;;  %v1331_v1 = vld [vmem:[#allocation5 + $0x23b0] sm:$0xff]  ;;  %v15372_v3 = vcombine.low %v1335_v0, %v1339_v44 }
 0x4a7   :  { %10854 = vmatpush1.bf16.msra.mxu0 %v15268_v23  ;;  %v1455_v46 = vld [vmem:[#allocation5 + $0x2790] sm:$0xff]  ;;  %v15365_v6 = vcombine.high %v1327_v37, %v1331_v1 }
 0x4a8   :  { %10855 = vmatprep.subr.bf16.mxu0 %v15261_v2  ;;  %v1459_v18 = vld [vmem:[#allocation5 + $0x27b0] sm:$0xff] }
 0x4a9   :  { %10895 = vmatpush1.bf16.msra.mxu1 %v15396_v63  ;;  %v15493_v17 = vcombine.high %v1455_v46, %v1459_v18  ;;  %v1319_v14 = vld [vmem:[#allocation5 + $0x2350] sm:$0xff]  ;;  %v15492_v24 = vcombine.low %v1455_v46, %v1459_v18 }
 0x4aa   :  { %10896 = vmatprep.subr.bf16.mxu1 %v15389_v15  ;;  %v1323_v23 = vld [vmem:[#allocation5 + $0x2370] sm:$0xff]  ;;  %v15364_v15 = vcombine.low %v1327_v37, %v1331_v1 }
 0x4ab   :  { %10856 = vmatpush1.bf16.msra.mxu0 %v15260_v25  ;;  %v1447_v63 = vld [vmem:[#allocation5 + $0x2750] sm:$0xff]  ;;  %v15357_v12 = vcombine.high %v1319_v14, %v1323_v23 }
 0x4ac   :  { %10857 = vmatprep.subr.bf16.mxu0 %v15253_v52  ;;  %v1451_v2 = vld [vmem:[#allocation5 + $0x2770] sm:$0xff] }
 0x4ad   :  { %10897 = vmatpush1.bf16.msra.mxu1 %v15388_v11  ;;  %v15485_v34 = vcombine.high %v1447_v63, %v1451_v2  ;;  %v1311_v21 = vld [vmem:[#allocation5 + $0x2310] sm:$0xff]  ;;  %v15484_v0 = vcombine.low %v1447_v63, %v1451_v2 }
 0x4ae   :  { %10898 = vmatprep.subr.bf16.mxu1 %v15381_v36  ;;  %v1315_v25 = vld [vmem:[#allocation5 + $0x2330] sm:$0xff]  ;;  %v15356_v36 = vcombine.low %v1319_v14, %v1323_v23 }
 0x4af   :  { %10858 = vmatpush1.bf16.msra.mxu0 %v15252_v27  ;;  %v1439_v11 = vld [vmem:[#allocation5 + $0x2710] sm:$0xff]  ;;  %v15349_v44 = vcombine.high %v1311_v21, %v1315_v25 }
 0x4b0   :  { %10859 = vmatprep.subr.bf16.mxu0 %v15373_v45  ;;  %v1443_v52 = vld [vmem:[#allocation5 + $0x2730] sm:$0xff] }
 0x4b1   :  { %10899 = vmatpush1.bf16.msra.mxu1 %v15380_v33  ;;  %v15477_v57 = vcombine.high %v1439_v11, %v1443_v52  ;;  %v1303_v48 = vld [vmem:[#allocation5 + $0x22d0] sm:$0xff]  ;;  %v15476_v37 = vcombine.low %v1439_v11, %v1443_v52 }
 0x4b2   :  { %10900 = vmatprep.subr.bf16.mxu1 %v15501_v60  ;;  %v1307_v27 = vld [vmem:[#allocation5 + $0x22f0] sm:$0xff]  ;;  %v15348_v60 = vcombine.low %v1311_v21, %v1315_v25 }
 0x4b3   :  { %10860 = vmatpush2.bf16.msra.mxu0 %v15372_v3  ;;  %v1431_v33 = vld [vmem:[#allocation5 + $0x26d0] sm:$0xff]  ;;  %v15341_v1 = vcombine.high %v1303_v48, %v1307_v27 }
 0x4b4   :  { %10861 = vmatprep.subr.bf16.mxu0 %v15365_v6  ;;  %v1435_v45 = vld [vmem:[#allocation5 + $0x26f0] sm:$0xff] }
 0x4b5   :  { %10901 = vmatpush2.bf16.msra.mxu1 %v15500_v61  ;;  %v15469_v46 = vcombine.high %v1431_v33, %v1435_v45  ;;  %v1295_v18 = vld [vmem:[#allocation5 + $0x2290] sm:$0xff]  ;;  %v15468_v14 = vcombine.low %v1431_v33, %v1435_v45 }
 0x4b6   :  { %10902 = vmatprep.subr.bf16.mxu1 %v15493_v17  ;;  %v1299_v3 = vld [vmem:[#allocation5 + $0x22b0] sm:$0xff]  ;;  %v15340_v17 = vcombine.low %v1303_v48, %v1307_v27 }
 0x4b7   :  { %10862 = vmatpush2.bf16.msra.mxu0 %v15364_v15  ;;  %v1423_v61 = vld [vmem:[#allocation5 + $0x2690] sm:$0xff]  ;;  %v15333_v23 = vcombine.high %v1295_v18, %v1299_v3 }
 0x4b8   :  { %10863 = vmatprep.subr.bf16.mxu0 %v15357_v12  ;;  %v1427_v6 = vld [vmem:[#allocation5 + $0x26b0] sm:$0xff] }
 0x4b9   :  { %10903 = vmatpush2.bf16.msra.mxu1 %v15492_v24  ;;  %v15461_v63 = vcombine.high %v1423_v61, %v1427_v6  ;;  %v1287_v2 = vld [vmem:[#allocation5 + $0x2250] sm:$0xff]  ;;  %v15460_v21 = vcombine.low %v1423_v61, %v1427_v6 }
 0x4ba   :  { %10904 = vmatprep.subr.bf16.mxu1 %v15485_v34  ;;  %v1291_v15 = vld [vmem:[#allocation5 + $0x2270] sm:$0xff]  ;;  %v15332_v34 = vcombine.low %v1295_v18, %v1299_v3 }
 0x4bb   :  { %10864 = vmatpush2.bf16.msra.mxu0 %v15356_v36  ;;  %v1415_v24 = vld [vmem:[#allocation5 + $0x2650] sm:$0xff]  ;;  %v15325_v25 = vcombine.high %v1287_v2, %v1291_v15 }
 0x4bc   :  { %10865 = vmatprep.subr.bf16.mxu0 %v15349_v44  ;;  %v1419_v12 = vld [vmem:[#allocation5 + $0x2670] sm:$0xff] }
 0x4bd   :  { %10905 = vmatpush2.bf16.msra.mxu1 %v15484_v0  ;;  %v15453_v11 = vcombine.high %v1415_v24, %v1419_v12  ;;  %v1279_v52 = vld [vmem:[#allocation5 + $0x2210] sm:$0xff]  ;;  %v15452_v48 = vcombine.low %v1415_v24, %v1419_v12 }
 0x4be   :  { %10906 = vmatprep.subr.bf16.mxu1 %v15477_v57  ;;  %v1283_v36 = vld [vmem:[#allocation5 + $0x2230] sm:$0xff]  ;;  %v15324_v57 = vcombine.low %v1287_v2, %v1291_v15 }
 0x4bf   :  { %10866 = vmatpush2.bf16.msra.mxu0 %v15348_v60  ;;  %v1407_v0 = vld [vmem:[#allocation5 + $0x2610] sm:$0xff]  ;;  %v15317_v27 = vcombine.high %v1279_v52, %v1283_v36 }
 0x4c0   :  { %10867 = vmatprep.subr.bf16.mxu0 %v15341_v1  ;;  %v1411_v44 = vld [vmem:[#allocation5 + $0x2630] sm:$0xff] }
 0x4c1   :  { %10907 = vmatpush2.bf16.msra.mxu1 %v15476_v37  ;;  %v15445_v33 = vcombine.high %v1407_v0, %v1411_v44  ;;  %v1527_v45 = vld [vmem:[#allocation5 + $0x29d0] sm:$0xff]  ;;  %v15444_v18 = vcombine.low %v1407_v0, %v1411_v44 }
 0x4c2   :  { %10908 = vmatprep.subr.bf16.mxu1 %v15469_v46  ;;  %v1531_v60 = vld [vmem:[#allocation5 + $0x29f0] sm:$0xff]  ;;  %v15316_v46 = vcombine.low %v1279_v52, %v1283_v36 }
 0x4c3   :  { %10868 = vmatpush2.bf16.msra.mxu0 %v15340_v17  ;;  %v1655_v37 = vld [vmem:[#allocation5 + $0x2dd0] sm:$0xff]  ;;  %v15565_v3 = vcombine.high %v1527_v45, %v1531_v60 }
 0x4c4   :  { %10869 = vmatprep.subr.bf16.mxu0 %v15333_v23  ;;  %v1659_v1 = vld [vmem:[#allocation5 + $0x2df0] sm:$0xff] }
 0x4c5   :  { %10909 = vmatpush2.bf16.msra.mxu1 %v15468_v14  ;;  %v15693_v61 = vcombine.high %v1655_v37, %v1659_v1  ;;  %v1519_v6 = vld [vmem:[#allocation5 + $0x2990] sm:$0xff]  ;;  %v15692_v2 = vcombine.low %v1655_v37, %v1659_v1 }
 0x4c6   :  { %10910 = vmatprep.subr.bf16.mxu1 %v15461_v63  ;;  %v1523_v17 = vld [vmem:[#allocation5 + $0x29b0] sm:$0xff]  ;;  %v15564_v63 = vcombine.low %v1527_v45, %v1531_v60 }
 0x4c7   :  { %10870 = vmatpush2.bf16.msra.mxu0 %v15332_v34  ;;  %v1647_v14 = vld [vmem:[#allocation5 + $0x2d90] sm:$0xff]  ;;  %v15557_v15 = vcombine.high %v1519_v6, %v1523_v17  ;;  %v15556_v0 = vcombine.low %v1519_v6, %v1523_v17 }
 0x4c8   :  { %10871 = vmatprep.subr.bf16.mxu0 %v15325_v25  ;;  %v1651_v23 = vld [vmem:[#allocation5 + $0x2db0] sm:$0xff] }
 0x4c9   :  { %10911 = vmatpush2.bf16.msra.mxu1 %v15460_v21  ;;  %v15685_v24 = vcombine.high %v1647_v14, %v1651_v23  ;;  %v1511_v12 = vld [vmem:[#allocation5 + $0x2950] sm:$0xff] }
 0x4ca   :  { %10912 = vmatprep.subr.bf16.mxu1 %v15453_v11  ;;  %v1515_v34 = vld [vmem:[#allocation5 + $0x2970] sm:$0xff] }
 0x4cb   :  { %10872 = vmatpush2.bf16.msra.mxu0 %v15324_v57  ;;  %v1639_v25 = vld [vmem:[#allocation5 + $0x2d50] sm:$0xff]  ;;  %v15684_v57 = vcombine.low %v1647_v14, %v1651_v23  ;;  %v15548_v6 = vcombine.low %v1511_v12, %v1515_v34 }
 0x4cc   :  { %10873 = vmatprep.subr.bf16.mxu0 %v15317_v27  ;;  %v1643_v11 = vld [vmem:[#allocation5 + $0x2d70] sm:$0xff] }
 0x4cd   :  { %10913 = vmatpush2.bf16.msra.mxu1 %v15452_v48  ;;  %v15549_v48 = vcombine.high %v1511_v12, %v1515_v34  ;;  %v15677_v60 = vcombine.high %v1639_v25, %v1643_v11  ;;  %v1503_v37 = vld [vmem:[#allocation5 + $0x2910] sm:$0xff] }
 0x4ce   :  { %10914 = vmatprep.subr.bf16.mxu1 %v15445_v33  ;;  %v1507_v1 = vld [vmem:[#allocation5 + $0x2930] sm:$0xff] }
 0x4cf   :  { %10874 = vmatpush2.bf16.msra.mxu0 %v15316_v46  ;;  %v1631_v46 = vld [vmem:[#allocation5 + $0x2d10] sm:$0xff]  ;;  %v15541_v14 = vcombine.high %v1503_v37, %v1507_v1 }
 0x4d0   :  { %10925 = vmatprep.subr.bf16.mxu0 %v15565_v3  ;;  %v1487_v34 = vld [vmem:[#allocation5 + $0x2890] sm:$0xff] }
 0x4d1   :  { %10915 = vmatpush2.bf16.msra.mxu1 %v15444_v18  ;;  %v1635_v18 = vld [vmem:[#allocation5 + $0x2d30] sm:$0xff] }
 0x4d2   :  { %10966 = vmatprep.subr.bf16.mxu1 %v15693_v61  ;;  %v10631_v21 = vpop.f32.mrf.mxu0  ;;  %10876 = vmatmul.mubr.bf16.vlgmr.msra.gmra.mxu0 %v17205_v54 }
 0x4d3   :  { %v10632_v52 = vadd.f32 %v10631_v21, %v17349_v56  ;;  %10926 = vmatpush1.bf16.msra.mxu0 %v15564_v63  ;;  %10957 = vmatprep.mubr.bf16.mxu0 %v17217_v47  ;;  %v15669_v63 = vcombine.high %v1631_v46, %v1635_v18  ;;  %v1627_v21 = vld [vmem:[#allocation5 + $0x2cf0] sm:$0xff] }
 0x4d4   :  { %v10672_v36 = vpop.f32.mrf.mxu1  ;;  %10917 = vmatmul.mubr.bf16.vlgmr.msra.gmra.mxu1 %v17211_v35  ;;  %v10633_v44 = vpop.f32.mrf.mxu0  ;;  %10927 = vmatprep.subr.bf16.mxu0 %v15557_v15  ;;  %v1499_v15 = vld [vmem:[#allocation5 + $0x28f0] sm:$0xff] }
 0x4d5   :  { %10967 = vmatpush1.bf16.msra.mxu1 %v15692_v2  ;;  %v17358_v27 = vadd.f32 %v10672_v36, %v10632_v52  ;;  %v10634_v33 = vadd.f32 %v10633_v44, %v17353_v30  ;;  %10998 = vmatprep.mubr.bf16.mxu1 %v17222_v51  ;;  %v15676_v30 = vcombine.low %v1639_v25, %v1643_v11  ;;  %v1495_v2 = vld [vmem:[#allocation5 + $0x28d0] sm:$0xff] }
 0x4d6   :  { %v10674_v45 = vpop.f32.mrf.mxu1  ;;  %10968 = vmatprep.subr.bf16.mxu1 %v15685_v24  ;;  %v10635_v56 = vpop.f32.mrf.mxu0  ;;  %v1623_v24 = vld [vmem:[#allocation5 + $0x2cd0] sm:$0xff]  ;;  %v15540_v52 = vcombine.low %v1503_v37, %v1507_v1  ;;  %v15668_v36 = vcombine.low %v1631_v46, %v1635_v18  ;;  %v15533_v44 = vcombine.high %v1495_v2, %v1499_v15  ;;  %v15532_v11 = vcombine.low %v1495_v2, %v1499_v15 }
 0x4d7   :  { %v17363_v3 = vadd.f32 %v10674_v45, %v10634_v33  ;;  %10928 = vmatpush1.bf16.msra.mxu0 %v15556_v0  ;;  %v15661_v12 = vcombine.high %v1623_v24, %v1627_v21  ;;  %v1491_v0 = vld [vmem:[#allocation5 + $0x28b0] sm:$0xff] }
 0x4d8   :  { %v10676_v61 = vpop.f32.mrf.mxu1  ;;  %v10636_v17 = vpop.f32.mrf.mxu0  ;;  %10929 = vmatprep.subr.bf16.mxu0 %v15549_v48  ;;  %v1619_v25 = vld [vmem:[#allocation5 + $0x2cb0] sm:$0xff]  ;;  %v15660_v48 = vcombine.low %v1623_v24, %v1627_v21  ;;  %v15525_v33 = vcombine.high %v1487_v34, %v1491_v0  ;;  %v15524_v46 = vcombine.low %v1487_v34, %v1491_v0 }
 0x4d9   :  { %10969 = vmatpush1.bf16.msra.mxu1 %v15684_v57  ;;  %v1615_v57 = vld [vmem:[#allocation5 + $0x2c90] sm:$0xff] }
 0x4da   :  { %v10677_v23 = vpop.f32.mrf.mxu1  ;;  %10970 = vmatprep.subr.bf16.mxu1 %v15677_v60  ;;  %v15653_v45 = vcombine.high %v1615_v57, %v1619_v25  ;;  %v1479_v60 = vld [vmem:[#allocation5 + $0x2850] sm:$0xff]  ;;  %v15652_v18 = vcombine.low %v1615_v57, %v1619_v25 }
 0x4db   :  { %10930 = vmatpush1.bf16.msra.mxu0 %v15548_v6  ;;  %v1483_v37 = vld [vmem:[#allocation5 + $0x2870] sm:$0xff] }
 0x4dc   :  { %10931 = vmatprep.subr.bf16.mxu0 %v15541_v14  ;;  %v1607_v1 = vld [vmem:[#allocation5 + $0x2c50] sm:$0xff]  ;;  %v15517_v61 = vcombine.high %v1479_v60, %v1483_v37 }
 0x4dd   :  { %10971 = vmatpush1.bf16.msra.mxu1 %v15676_v30  ;;  %v1611_v56 = vld [vmem:[#allocation5 + $0x2c70] sm:$0xff] }
 0x4de   :  { %10972 = vmatprep.subr.bf16.mxu1 %v15669_v63  ;;  %v15645_v6 = vcombine.high %v1607_v1, %v1611_v56  ;;  %v1471_v17 = vld [vmem:[#allocation5 + $0x2810] sm:$0xff]  ;;  %v15516_v63 = vcombine.low %v1479_v60, %v1483_v37  ;;  %v15644_v2 = vcombine.low %v1607_v1, %v1611_v56 }
 0x4df   :  { %10932 = vmatpush1.bf16.msra.mxu0 %v15540_v52  ;;  %v1475_v30 = vld [vmem:[#allocation5 + $0x2830] sm:$0xff] }
 0x4e0   :  { %10933 = vmatprep.subr.bf16.mxu0 %v15533_v44  ;;  %v1599_v14 = vld [vmem:[#allocation5 + $0x2c10] sm:$0xff]  ;;  %v15509_v15 = vcombine.high %v1471_v17, %v1475_v30 }
 0x4e1   :  { %10973 = vmatpush1.bf16.msra.mxu1 %v15668_v36  ;;  %v1603_v23 = vld [vmem:[#allocation5 + $0x2c30] sm:$0xff] }
 0x4e2   :  { %10974 = vmatprep.subr.bf16.mxu1 %v15661_v12  ;;  %v15637_v24 = vcombine.high %v1599_v14, %v1603_v23  ;;  %v1591_v21 = vld [vmem:[#allocation5 + $0x2bd0] sm:$0xff]  ;;  %v15508_v12 = vcombine.low %v1471_v17, %v1475_v30  ;;  %v15636_v34 = vcombine.low %v1599_v14, %v1603_v23 }
 0x4e3   :  { %10934 = vmatpush1.bf16.msra.mxu0 %v15532_v11  ;;  %v1595_v52 = vld [vmem:[#allocation5 + $0x2bf0] sm:$0xff] }
 0x4e4   :  { %10935 = vmatprep.subr.bf16.mxu0 %v15525_v33  ;;  %v1719_v36 = vld [vmem:[#allocation5 + $0x2fd0] sm:$0xff]  ;;  %v15629_v0 = vcombine.high %v1591_v21, %v1595_v52 }
 0x4e5   :  { %10975 = vmatpush1.bf16.msra.mxu1 %v15660_v48  ;;  %v1723_v44 = vld [vmem:[#allocation5 + $0x2ff0] sm:$0xff] }
 0x4e6   :  { %10976 = vmatprep.subr.bf16.mxu1 %v15653_v45  ;;  %v15757_v57 = vcombine.high %v1719_v36, %v1723_v44  ;;  %v1583_v25 = vld [vmem:[#allocation5 + $0x2b90] sm:$0xff]  ;;  %v15628_v45 = vcombine.low %v1591_v21, %v1595_v52  ;;  %v15756_v60 = vcombine.low %v1719_v36, %v1723_v44 }
 0x4e7   :  { %10936 = vmatpush1.bf16.msra.mxu0 %v15524_v46  ;;  %v1587_v11 = vld [vmem:[#allocation5 + $0x2bb0] sm:$0xff] }
 0x4e8   :  { %10937 = vmatprep.subr.bf16.mxu0 %v15517_v61  ;;  %v1711_v48 = vld [vmem:[#allocation5 + $0x2f90] sm:$0xff]  ;;  %v15621_v37 = vcombine.high %v1583_v25, %v1587_v11 }
 0x4e9   :  { %10977 = vmatpush1.bf16.msra.mxu1 %v15652_v18  ;;  %v1715_v33 = vld [vmem:[#allocation5 + $0x2fb0] sm:$0xff] }
 0x4ea   :  { %10978 = vmatprep.subr.bf16.mxu1 %v15645_v6  ;;  %v15749_v1 = vcombine.high %v1711_v48, %v1715_v33  ;;  %v1575_v56 = vld [vmem:[#allocation5 + $0x2b50] sm:$0xff]  ;;  %v15620_v6 = vcombine.low %v1583_v25, %v1587_v11  ;;  %v15748_v17 = vcombine.low %v1711_v48, %v1715_v33 }
 0x4eb   :  { %10938 = vmatpush1.bf16.msra.mxu0 %v15516_v63  ;;  %v1579_v46 = vld [vmem:[#allocation5 + $0x2b70] sm:$0xff] }
 0x4ec   :  { %10939 = vmatprep.subr.bf16.mxu0 %v15509_v15  ;;  %v1703_v18 = vld [vmem:[#allocation5 + $0x2f50] sm:$0xff]  ;;  %v15613_v30 = vcombine.high %v1575_v56, %v1579_v46 }
 0x4ed   :  { %10979 = vmatpush1.bf16.msra.mxu1 %v15644_v2  ;;  %v1707_v61 = vld [vmem:[#allocation5 + $0x2f70] sm:$0xff] }
 0x4ee   :  { %10980 = vmatprep.subr.bf16.mxu1 %v15637_v24  ;;  %v15741_v14 = vcombine.high %v1703_v18, %v1707_v61  ;;  %v1567_v23 = vld [vmem:[#allocation5 + $0x2b10] sm:$0xff]  ;;  %v15612_v24 = vcombine.low %v1575_v56, %v1579_v46  ;;  %v15740_v21 = vcombine.low %v1703_v18, %v1707_v61 }
 0x4ef   :  { %10940 = vmatpush1.bf16.msra.mxu0 %v15508_v12  ;;  %v1571_v63 = vld [vmem:[#allocation5 + $0x2b30] sm:$0xff] }
 0x4f0   :  { %10941 = vmatprep.subr.bf16.mxu0 %v15629_v0  ;;  %v1695_v2 = vld [vmem:[#allocation5 + $0x2f10] sm:$0xff]  ;;  %v15605_v52 = vcombine.high %v1567_v23, %v1571_v63 }
 0x4f1   :  { %10981 = vmatpush1.bf16.msra.mxu1 %v15636_v34  ;;  %v1699_v15 = vld [vmem:[#allocation5 + $0x2f30] sm:$0xff] }
 0x4f2   :  { %10982 = vmatprep.subr.bf16.mxu1 %v15757_v57  ;;  %v15733_v36 = vcombine.high %v1695_v2, %v1699_v15  ;;  %v1559_v44 = vld [vmem:[#allocation5 + $0x2ad0] sm:$0xff]  ;;  %v15604_v57 = vcombine.low %v1567_v23, %v1571_v63  ;;  %v15732_v25 = vcombine.low %v1695_v2, %v1699_v15 }
 0x4f3   :  { %10942 = vmatpush2.bf16.msra.mxu0 %v15628_v45  ;;  %v1563_v12 = vld [vmem:[#allocation5 + $0x2af0] sm:$0xff] }
 0x4f4   :  { %10943 = vmatprep.subr.bf16.mxu0 %v15621_v37  ;;  %v1687_v34 = vld [vmem:[#allocation5 + $0x2ed0] sm:$0xff]  ;;  %v15597_v11 = vcombine.high %v1559_v44, %v1563_v12 }
 0x4f5   :  { %10983 = vmatpush2.bf16.msra.mxu1 %v15756_v60  ;;  %v1691_v0 = vld [vmem:[#allocation5 + $0x2ef0] sm:$0xff] }
 0x4f6   :  { %10984 = vmatprep.subr.bf16.mxu1 %v15749_v1  ;;  %v15725_v48 = vcombine.high %v1687_v34, %v1691_v0  ;;  %v1551_v33 = vld [vmem:[#allocation5 + $0x2a90] sm:$0xff]  ;;  %v15596_v1 = vcombine.low %v1559_v44, %v1563_v12  ;;  %v15724_v56 = vcombine.low %v1687_v34, %v1691_v0  ;;  %v248_v0 = vld [vmem:[#allocation5 + $0x1d8] sm:$0xff] }
 0x4f7   :  { %10944 = vmatpush2.bf16.msra.mxu0 %v15620_v6  ;;  %v1555_v45 = vld [vmem:[#allocation5 + $0x2ab0] sm:$0xff] }
 0x4f8   :  { %10945 = vmatprep.subr.bf16.mxu0 %v15613_v30  ;;  %v1679_v60 = vld [vmem:[#allocation5 + $0x2e90] sm:$0xff]  ;;  %v15589_v46 = vcombine.high %v1551_v33, %v1555_v45 }
 0x4f9   :  { %10985 = vmatpush2.bf16.msra.mxu1 %v15748_v17  ;;  %v1683_v37 = vld [vmem:[#allocation5 + $0x2eb0] sm:$0xff] }
 0x4fa   :  { %10986 = vmatprep.subr.bf16.mxu1 %v15741_v14  ;;  %v15717_v18 = vcombine.high %v1679_v60, %v1683_v37  ;;  %v1543_v61 = vld [vmem:[#allocation5 + $0x2a50] sm:$0xff]  ;;  %v15588_v14 = vcombine.low %v1551_v33, %v1555_v45  ;;  %v15716_v23 = vcombine.low %v1679_v60, %v1683_v37  ;;  %v240_v37 = vld [vmem:[#allocation5 + $0x198] sm:$0xff] }
 0x4fb   :  { %10946 = vmatpush2.bf16.msra.mxu0 %v15612_v24  ;;  %v1547_v6 = vld [vmem:[#allocation5 + $0x2a70] sm:$0xff] }
 0x4fc   :  { %10947 = vmatprep.subr.bf16.mxu0 %v15605_v52  ;;  %v1671_v17 = vld [vmem:[#allocation5 + $0x2e50] sm:$0xff]  ;;  %v15581_v63 = vcombine.high %v1543_v61, %v1547_v6 }
 0x4fd   :  { %10987 = vmatpush2.bf16.msra.mxu1 %v15740_v21  ;;  %v1675_v30 = vld [vmem:[#allocation5 + $0x2e70] sm:$0xff] }
 0x4fe   :  { %10988 = vmatprep.subr.bf16.mxu1 %v15733_v36  ;;  %v15709_v2 = vcombine.high %v1671_v17, %v1675_v30  ;;  %v1535_v15 = vld [vmem:[#allocation5 + $0x2a10] sm:$0xff]  ;;  %v15580_v36 = vcombine.low %v1543_v61, %v1547_v6  ;;  %v15708_v44 = vcombine.low %v1671_v17, %v1675_v30  ;;  %v232_v30 = vld [vmem:[#allocation5 + $0x158] sm:$0xff] }
 0x4ff   :  { %10948 = vmatpush2.bf16.msra.mxu0 %v15604_v57  ;;  %v1539_v24 = vld [vmem:[#allocation5 + $0x2a30] sm:$0xff]  ;;  %v252_v57 = vld [vmem:[#allocation5 + $0x1f8] sm:$0xff] }
 0x500   :  { %10949 = vmatprep.subr.bf16.mxu0 %v15597_v11  ;;  %v1663_v21 = vld [vmem:[#allocation5 + $0x2e10] sm:$0xff]  ;;  %v15573_v12 = vcombine.high %v1535_v15, %v1539_v24  ;;  %v380_v11 = vld [vmem:[#allocation5 + $0x5f8] sm:$0xff]  ;;  %v14287_v45 = vcombine.high %v248_v0, %v252_v57 }
 0x501   :  { %10989 = vmatpush2.bf16.msra.mxu1 %v15732_v25  ;;  %v1667_v52 = vld [vmem:[#allocation5 + $0x2e30] sm:$0xff]  ;;  %v376_v25 = vld [vmem:[#allocation5 + $0x5d8] sm:$0xff] }
 0x502   :  { %10990 = vmatprep.subr.bf16.mxu1 %v15725_v48  ;;  %v15701_v34 = vcombine.high %v1663_v21, %v1667_v52  ;;  %v15572_v48 = vcombine.low %v1535_v15, %v1539_v24  ;;  %v15700_v33 = vcombine.low %v1663_v21, %v1667_v52  ;;  %v14415_v60 = vcombine.high %v376_v25, %v380_v11 }
 0x503   :  { %10950 = vmatpush2.bf16.msra.mxu0 %v15596_v1  ;;  %v244_v1 = vld [vmem:[#allocation5 + $0x1b8] sm:$0xff]  ;;  %v14414_v61 = vcombine.low %v376_v25, %v380_v11 }
 0x504   :  { %10951 = vmatprep.subr.bf16.mxu0 %v15589_v46  ;;  %v372_v46 = vld [vmem:[#allocation5 + $0x5b8] sm:$0xff]  ;;  %v14279_v6 = vcombine.high %v240_v37, %v244_v1  ;;  %v14278_v21 = vcombine.low %v240_v37, %v244_v1 }
 0x505   :  { %10991 = vmatpush2.bf16.msra.mxu1 %v15724_v56  ;;  %v368_v56 = vld [vmem:[#allocation5 + $0x598] sm:$0xff] }
 0x506   :  { %10992 = vmatprep.subr.bf16.mxu1 %v15717_v18  ;;  %v14286_v18 = vcombine.low %v248_v0, %v252_v57  ;;  %v14407_v17 = vcombine.high %v368_v56, %v372_v46  ;;  %v224_v25 = vld [vmem:[#allocation5 + $0x118] sm:$0xff] }
 0x507   :  { %10952 = vmatpush2.bf16.msra.mxu0 %v15588_v14  ;;  %v236_v14 = vld [vmem:[#allocation5 + $0x178] sm:$0xff] }
 0x508   :  { %10953 = vmatprep.subr.bf16.mxu0 %v15581_v63  ;;  %v360_v63 = vld [vmem:[#allocation5 + $0x558] sm:$0xff]  ;;  %v14270_v37 = vcombine.low %v232_v30, %v236_v14 }
 0x509   :  { %10993 = vmatpush2.bf16.msra.mxu1 %v15716_v23  ;;  %v228_v11 = vld [vmem:[#allocation5 + $0x138] sm:$0xff] }
 0x50a   :  { %10994 = vmatprep.subr.bf16.mxu1 %v15709_v2  ;;  %v364_v2 = vld [vmem:[#allocation5 + $0x578] sm:$0xff] }
 0x50b   :  { %10954 = vmatpush2.bf16.msra.mxu0 %v15580_v36  ;;  %v14406_v36 = vcombine.low %v368_v56, %v372_v46  ;;  %v14399_v57 = vcombine.high %v360_v63, %v364_v2  ;;  %v14263_v56 = vcombine.high %v224_v25, %v228_v11 }
 0x50c   :  { %10955 = vmatprep.subr.bf16.mxu0 %v15573_v12 }
 0x50d   :  { %10995 = vmatpush2.bf16.msra.mxu1 %v15708_v44  ;;  %v14271_v44 = vcombine.high %v232_v30, %v236_v14  ;;  %v208_v14 = vld [vmem:[#allocation5 + $0x98] sm:$0xff] }
 0x50e   :  { %10996 = vmatprep.subr.bf16.mxu1 %v15701_v34 }
 0x50f   :  { %10956 = vmatpush2.bf16.msra.mxu0 %v15572_v48  ;;  %v352_v48 = vld [vmem:[#allocation5 + $0x518] sm:$0xff] }
 0x510   :  { %11007 = vmatprep.subr.bf16.mxu0 %v14287_v45 }
 0x511   :  { %10997 = vmatpush2.bf16.msra.mxu1 %v15700_v33  ;;  %v356_v33 = vld [vmem:[#allocation5 + $0x538] sm:$0xff] }
 0x512   :  { %11048 = vmatprep.subr.bf16.mxu1 %v14415_v60  ;;  %v10713_v23 = vpop.f32.mrf.mxu0  ;;  %10958 = vmatmul.mubr.bf16.vlgmr.msra.gmra.mxu0 %v17235_v26 }
 0x513   :  { %v10714_v15 = vadd.f32 %v10713_v23, %v17358_v27  ;;  %11008 = vmatpush1.bf16.msra.mxu0 %v14286_v18  ;;  %11039 = vmatprep.mubr.bf16.mxu0 %v17085_v58  ;;  %v14391_v18 = vcombine.high %v352_v48, %v356_v33  ;;  %v220_v58 = vld [vmem:[#allocation5 + $0xf8] sm:$0xff]  ;;  %v14262_v23 = vcombine.low %v224_v25, %v228_v11 }
 0x514   :  { %v10754_v24 = vpop.f32.mrf.mxu1  ;;  %10999 = vmatmul.mubr.bf16.vlgmr.msra.gmra.mxu1 %v17239_v32  ;;  %v10715_v52 = vpop.f32.mrf.mxu0  ;;  %11009 = vmatprep.subr.bf16.mxu0 %v14279_v6  ;;  %v344_v6 = vld [vmem:[#allocation5 + $0x4d8] sm:$0xff] }
 0x515   :  { %11049 = vmatpush1.bf16.msra.mxu1 %v14414_v61  ;;  %v17368_v12 = vadd.f32 %v10754_v24, %v10714_v15  ;;  %v10716_v34 = vadd.f32 %v10715_v52, %v17363_v3  ;;  %11080 = vmatprep.mubr.bf16.mxu1 %v17089_v59  ;;  %v14398_v3 = vcombine.low %v360_v63, %v364_v2  ;;  %v216_v61 = vld [vmem:[#allocation5 + $0xd8] sm:$0xff] }
 0x516   :  { %v10756_v0 = vpop.f32.mrf.mxu1  ;;  %11050 = vmatprep.subr.bf16.mxu1 %v14407_v17  ;;  %v10717_v27 = vpop.f32.mrf.mxu0  ;;  %v348_v17 = vld [vmem:[#allocation5 + $0x4f8] sm:$0xff]  ;;  %v14390_v59 = vcombine.low %v352_v48, %v356_v33  ;;  %v14255_v15 = vcombine.high %v216_v61, %v220_v58  ;;  %v14254_v2 = vcombine.low %v216_v61, %v220_v58 }
 0x517   :  { %v17373_v45 = vadd.f32 %v10756_v0, %v10716_v34  ;;  %11010 = vmatpush1.bf16.msra.mxu0 %v14278_v21  ;;  %v14383_v30 = vcombine.high %v344_v6, %v348_v17  ;;  %v212_v24 = vld [vmem:[#allocation5 + $0xb8] sm:$0xff]  ;;  %v14382_v52 = vcombine.low %v344_v6, %v348_v17 }
 0x518   :  { %v10758_v60 = vpop.f32.mrf.mxu1  ;;  %v10718_v1 = vpop.f32.mrf.mxu0  ;;  %11011 = vmatprep.subr.bf16.mxu0 %v14271_v44  ;;  %v336_v21 = vld [vmem:[#allocation5 + $0x498] sm:$0xff]  ;;  %v14246_v11 = vcombine.low %v208_v14, %v212_v24 }
 0x519   :  { %11051 = vmatpush1.bf16.msra.mxu1 %v14406_v36  ;;  %v340_v63 = vld [vmem:[#allocation5 + $0x4b8] sm:$0xff]  ;;  %v14247_v36 = vcombine.high %v208_v14, %v212_v24 }
 0x51a   :  { %v10759_v46 = vpop.f32.mrf.mxu1  ;;  %11052 = vmatprep.subr.bf16.mxu1 %v14399_v57  ;;  %v14375_v44 = vcombine.high %v336_v21, %v340_v63  ;;  %v200_v34 = vld [vmem:[#allocation5 + $0x58] sm:$0xff]  ;;  %v14374_v27 = vcombine.low %v336_v21, %v340_v63 }
 0x51b   :  { %11012 = vmatpush1.bf16.msra.mxu0 %v14270_v37  ;;  %v204_v0 = vld [vmem:[#allocation5 + $0x78] sm:$0xff] }
 0x51c   :  { %11013 = vmatprep.subr.bf16.mxu0 %v14263_v56  ;;  %v328_v57 = vld [vmem:[#allocation5 + $0x458] sm:$0xff]  ;;  %v14239_v48 = vcombine.high %v200_v34, %v204_v0  ;;  %v14238_v56 = vcombine.low %v200_v34, %v204_v0 }
 0x51d   :  { %11053 = vmatpush1.bf16.msra.mxu1 %v14398_v3  ;;  %v332_v25 = vld [vmem:[#allocation5 + $0x478] sm:$0xff] }
 0x51e   :  { %11054 = vmatprep.subr.bf16.mxu1 %v14391_v18  ;;  %v14367_v33 = vcombine.high %v328_v57, %v332_v25  ;;  %v192_v60 = vld [vmem:[#allocation5 + $0x18] sm:$0xff]  ;;  %v14366_v46 = vcombine.low %v328_v57, %v332_v25 }
 0x51f   :  { %11014 = vmatpush1.bf16.msra.mxu0 %v14262_v23  ;;  %v196_v37 = vld [vmem:[#allocation5 + $0x38] sm:$0xff] }
 0x520   :  { %11015 = vmatprep.subr.bf16.mxu0 %v14255_v15  ;;  %v320_v1 = vld [vmem:[#allocation5 + $0x418] sm:$0xff]  ;;  %v14231_v18 = vcombine.high %v192_v60, %v196_v37 }
 0x521   :  { %11055 = vmatpush1.bf16.msra.mxu1 %v14390_v59  ;;  %v324_v3 = vld [vmem:[#allocation5 + $0x438] sm:$0xff]  ;;  %v14230_v59 = vcombine.low %v192_v60, %v196_v37 }
 0x522   :  { %11056 = vmatprep.subr.bf16.mxu1 %v14383_v30  ;;  %v14359_v61 = vcombine.high %v320_v1, %v324_v3  ;;  %v312_v58 = vld [vmem:[#allocation5 + $0x3d8] sm:$0xff]  ;;  %v14358_v15 = vcombine.low %v320_v1, %v324_v3 }
 0x523   :  { %11016 = vmatpush1.bf16.msra.mxu0 %v14254_v2  ;;  %v316_v6 = vld [vmem:[#allocation5 + $0x3f8] sm:$0xff] }
 0x524   :  { %11017 = vmatprep.subr.bf16.mxu0 %v14247_v36  ;;  %v440_v17 = vld [vmem:[#allocation5 + $0x7d8] sm:$0xff]  ;;  %v14351_v30 = vcombine.high %v312_v58, %v316_v6 }
 0x525   :  { %11057 = vmatpush1.bf16.msra.mxu1 %v14382_v52  ;;  %v444_v23 = vld [vmem:[#allocation5 + $0x7f8] sm:$0xff]  ;;  %v14350_v52 = vcombine.low %v312_v58, %v316_v6 }
 0x526   :  { %11058 = vmatprep.subr.bf16.mxu1 %v14375_v44  ;;  %v14479_v14 = vcombine.high %v440_v17, %v444_v23  ;;  %v304_v24 = vld [vmem:[#allocation5 + $0x398] sm:$0xff]  ;;  %v14478_v36 = vcombine.low %v440_v17, %v444_v23 }
 0x527   :  { %11018 = vmatpush1.bf16.msra.mxu0 %v14246_v11  ;;  %v308_v21 = vld [vmem:[#allocation5 + $0x3b8] sm:$0xff] }
 0x528   :  { %11019 = vmatprep.subr.bf16.mxu0 %v14239_v48  ;;  %v432_v63 = vld [vmem:[#allocation5 + $0x798] sm:$0xff]  ;;  %v14343_v44 = vcombine.high %v304_v24, %v308_v21 }
 0x529   :  { %11059 = vmatpush1.bf16.msra.mxu1 %v14374_v27  ;;  %v436_v2 = vld [vmem:[#allocation5 + $0x7b8] sm:$0xff]  ;;  %v14342_v27 = vcombine.low %v304_v24, %v308_v21 }
 0x52a   :  { %11060 = vmatprep.subr.bf16.mxu1 %v14367_v33  ;;  %v14471_v34 = vcombine.high %v432_v63, %v436_v2  ;;  %v296_v0 = vld [vmem:[#allocation5 + $0x358] sm:$0xff]  ;;  %v14470_v48 = vcombine.low %v432_v63, %v436_v2 }
 0x52b   :  { %11020 = vmatpush1.bf16.msra.mxu0 %v14238_v56  ;;  %v300_v57 = vld [vmem:[#allocation5 + $0x378] sm:$0xff] }
 0x52c   :  { %11021 = vmatprep.subr.bf16.mxu0 %v14231_v18  ;;  %v424_v25 = vld [vmem:[#allocation5 + $0x758] sm:$0xff]  ;;  %v14335_v33 = vcombine.high %v296_v0, %v300_v57 }
 0x52d   :  { %11061 = vmatpush1.bf16.msra.mxu1 %v14366_v46  ;;  %v428_v11 = vld [vmem:[#allocation5 + $0x778] sm:$0xff]  ;;  %v14334_v46 = vcombine.low %v296_v0, %v300_v57 }
 0x52e   :  { %11062 = vmatprep.subr.bf16.mxu1 %v14359_v61  ;;  %v14463_v60 = vcombine.high %v424_v25, %v428_v11  ;;  %v288_v37 = vld [vmem:[#allocation5 + $0x318] sm:$0xff]  ;;  %v14462_v18 = vcombine.low %v424_v25, %v428_v11 }
 0x52f   :  { %11022 = vmatpush1.bf16.msra.mxu0 %v14230_v59  ;;  %v292_v1 = vld [vmem:[#allocation5 + $0x338] sm:$0xff] }
 0x530   :  { %11023 = vmatprep.subr.bf16.mxu0 %v14351_v30  ;;  %v416_v3 = vld [vmem:[#allocation5 + $0x718] sm:$0xff]  ;;  %v14327_v61 = vcombine.high %v288_v37, %v292_v1 }
 0x531   :  { %11063 = vmatpush1.bf16.msra.mxu1 %v14358_v15  ;;  %v420_v56 = vld [vmem:[#allocation5 + $0x738] sm:$0xff]  ;;  %v14326_v15 = vcombine.low %v288_v37, %v292_v1 }
 0x532   :  { %11064 = vmatprep.subr.bf16.mxu1 %v14479_v14  ;;  %v14455_v58 = vcombine.high %v416_v3, %v420_v56  ;;  %v280_v6 = vld [vmem:[#allocation5 + $0x2d8] sm:$0xff]  ;;  %v14454_v30 = vcombine.low %v416_v3, %v420_v56 }
 0x533   :  { %11024 = vmatpush2.bf16.msra.mxu0 %v14350_v52  ;;  %v284_v17 = vld [vmem:[#allocation5 + $0x2f8] sm:$0xff] }
 0x534   :  { %11025 = vmatprep.subr.bf16.mxu0 %v14343_v44  ;;  %v408_v23 = vld [vmem:[#allocation5 + $0x6d8] sm:$0xff]  ;;  %v14319_v14 = vcombine.high %v280_v6, %v284_v17 }
 0x535   :  { %11065 = vmatpush2.bf16.msra.mxu1 %v14478_v36  ;;  %v412_v59 = vld [vmem:[#allocation5 + $0x6f8] sm:$0xff]  ;;  %v14318_v36 = vcombine.low %v280_v6, %v284_v17 }
 0x536   :  { %11066 = vmatprep.subr.bf16.mxu1 %v14471_v34  ;;  %v14447_v24 = vcombine.high %v408_v23, %v412_v59  ;;  %v272_v21 = vld [vmem:[#allocation5 + $0x298] sm:$0xff]  ;;  %v14446_v44 = vcombine.low %v408_v23, %v412_v59 }
 0x537   :  { %11026 = vmatpush2.bf16.msra.mxu0 %v14342_v27  ;;  %v276_v63 = vld [vmem:[#allocation5 + $0x2b8] sm:$0xff] }
 0x538   :  { %11027 = vmatprep.subr.bf16.mxu0 %v14335_v33  ;;  %v400_v2 = vld [vmem:[#allocation5 + $0x698] sm:$0xff]  ;;  %v14311_v34 = vcombine.high %v272_v21, %v276_v63 }
 0x539   :  { %11067 = vmatpush2.bf16.msra.mxu1 %v14470_v48  ;;  %v404_v52 = vld [vmem:[#allocation5 + $0x6b8] sm:$0xff]  ;;  %v14310_v48 = vcombine.low %v272_v21, %v276_v63 }
 0x53a   :  { %11068 = vmatprep.subr.bf16.mxu1 %v14463_v60  ;;  %v14439_v0 = vcombine.high %v400_v2, %v404_v52  ;;  %v264_v57 = vld [vmem:[#allocation5 + $0x258] sm:$0xff]  ;;  %v14438_v33 = vcombine.low %v400_v2, %v404_v52 }
 0x53b   :  { %11028 = vmatpush2.bf16.msra.mxu0 %v14334_v46  ;;  %v268_v25 = vld [vmem:[#allocation5 + $0x278] sm:$0xff] }
 0x53c   :  { %11029 = vmatprep.subr.bf16.mxu0 %v14327_v61  ;;  %v392_v11 = vld [vmem:[#allocation5 + $0x658] sm:$0xff]  ;;  %v14303_v60 = vcombine.high %v264_v57, %v268_v25 }
 0x53d   :  { %11069 = vmatpush2.bf16.msra.mxu1 %v14462_v18  ;;  %v396_v27 = vld [vmem:[#allocation5 + $0x678] sm:$0xff]  ;;  %v14302_v18 = vcombine.low %v264_v57, %v268_v25 }
 0x53e   :  { %11070 = vmatprep.subr.bf16.mxu1 %v14455_v58  ;;  %v14431_v37 = vcombine.high %v392_v11, %v396_v27  ;;  %v256_v1 = vld [vmem:[#allocation5 + $0x218] sm:$0xff]  ;;  %v14430_v61 = vcombine.low %v392_v11, %v396_v27 }
 0x53f   :  { %11030 = vmatpush2.bf16.msra.mxu0 %v14326_v15  ;;  %v260_v3 = vld [vmem:[#allocation5 + $0x238] sm:$0xff] }
 0x540   :  { %11031 = vmatprep.subr.bf16.mxu0 %v14319_v14  ;;  %v384_v56 = vld [vmem:[#allocation5 + $0x618] sm:$0xff]  ;;  %v14295_v58 = vcombine.high %v256_v1, %v260_v3 }
 0x541   :  { %11071 = vmatpush2.bf16.msra.mxu1 %v14454_v30  ;;  %v388_v46 = vld [vmem:[#allocation5 + $0x638] sm:$0xff]  ;;  %v14294_v30 = vcombine.low %v256_v1, %v260_v3 }
 0x542   :  { %11072 = vmatprep.subr.bf16.mxu1 %v14447_v24  ;;  %v14423_v6 = vcombine.high %v384_v56, %v388_v46  ;;  %v504_v17 = vld [vmem:[#allocation5 + $0x9d8] sm:$0xff]  ;;  %v14422_v14 = vcombine.low %v384_v56, %v388_v46 }
 0x543   :  { %11032 = vmatpush2.bf16.msra.mxu0 %v14318_v36  ;;  %v508_v23 = vld [vmem:[#allocation5 + $0x9f8] sm:$0xff] }
 0x544   :  { %11033 = vmatprep.subr.bf16.mxu0 %v14311_v34  ;;  %v632_v59 = vld [vmem:[#allocation5 + $0xdd8] sm:$0xff]  ;;  %v14543_v24 = vcombine.high %v504_v17, %v508_v23 }
 0x545   :  { %11073 = vmatpush2.bf16.msra.mxu1 %v14446_v44  ;;  %v636_v15 = vld [vmem:[#allocation5 + $0xdf8] sm:$0xff]  ;;  %v14542_v44 = vcombine.low %v504_v17, %v508_v23 }
 0x546   :  { %11074 = vmatprep.subr.bf16.mxu1 %v14439_v0  ;;  %v14671_v21 = vcombine.high %v632_v59, %v636_v15  ;;  %v496_v63 = vld [vmem:[#allocation5 + $0x998] sm:$0xff]  ;;  %v14670_v34 = vcombine.low %v632_v59, %v636_v15 }
 0x547   :  { %11034 = vmatpush2.bf16.msra.mxu0 %v14310_v48  ;;  %v500_v2 = vld [vmem:[#allocation5 + $0x9b8] sm:$0xff] }
 0x548   :  { %11035 = vmatprep.subr.bf16.mxu0 %v14303_v60  ;;  %v624_v52 = vld [vmem:[#allocation5 + $0xd98] sm:$0xff]  ;;  %v14535_v0 = vcombine.high %v496_v63, %v500_v2  ;;  %v14534_v1 = vcombine.low %v496_v63, %v500_v2 }
 0x549   :  { %11075 = vmatpush2.bf16.msra.mxu1 %v14438_v33  ;;  %v628_v36 = vld [vmem:[#allocation5 + $0xdb8] sm:$0xff] }
 0x54a   :  { %11076 = vmatprep.subr.bf16.mxu1 %v14431_v37  ;;  %v14663_v57 = vcombine.high %v624_v52, %v628_v36  ;;  %v488_v25 = vld [vmem:[#allocation5 + $0x958] sm:$0xff]  ;;  %v14662_v56 = vcombine.low %v624_v52, %v628_v36 }
 0x54b   :  { %11036 = vmatpush2.bf16.msra.mxu0 %v14302_v18  ;;  %v492_v11 = vld [vmem:[#allocation5 + $0x978] sm:$0xff] }
 0x54c   :  { %11037 = vmatprep.subr.bf16.mxu0 %v14295_v58  ;;  %v616_v48 = vld [vmem:[#allocation5 + $0xd58] sm:$0xff]  ;;  %v14527_v46 = vcombine.high %v488_v25, %v492_v11 }
 0x54d   :  { %11077 = vmatpush2.bf16.msra.mxu1 %v14430_v61  ;;  %v620_v33 = vld [vmem:[#allocation5 + $0xd78] sm:$0xff] }
 0x54e   :  { %11078 = vmatprep.subr.bf16.mxu1 %v14423_v6  ;;  %v480_v6 = vld [vmem:[#allocation5 + $0x918] sm:$0xff] }
 0x54f   :  { %11038 = vmatpush2.bf16.msra.mxu0 %v14294_v30  ;;  %v484_v17 = vld [vmem:[#allocation5 + $0x938] sm:$0xff]  ;;  %v14526_v30 = vcombine.low %v488_v25, %v492_v11 }
 0x550   :  { %11089 = vmatprep.subr.bf16.mxu0 %v14543_v24  ;;  %v612_v23 = vld [vmem:[#allocation5 + $0xd38] sm:$0xff]  ;;  %v14519_v24 = vcombine.high %v480_v6, %v484_v17 }
 0x551   :  { %11079 = vmatpush2.bf16.msra.mxu1 %v14422_v14  ;;  %v472_v2 = vld [vmem:[#allocation5 + $0x8d8] sm:$0xff] }
 0x552   :  { %11130 = vmatprep.subr.bf16.mxu1 %v14671_v21  ;;  %v10795_v27 = vpop.f32.mrf.mxu0  ;;  %11040 = vmatmul.mubr.bf16.vlgmr.msra.gmra.mxu0 %v17095_v16  ;;  %v14655_v16 = vcombine.high %v616_v48, %v620_v33  ;;  %v600_v52 = vld [vmem:[#allocation5 + $0xcd8] sm:$0xff] }
 0x553   :  { %v10796_v60 = vadd.f32 %v10795_v27, %v17368_v12  ;;  %11090 = vmatpush1.bf16.msra.mxu0 %v14542_v44  ;;  %11121 = vmatprep.mubr.bf16.mxu0 %v17107_v28  ;;  %v476_v28 = vld [vmem:[#allocation5 + $0x8f8] sm:$0xff]  ;;  %v14518_v44 = vcombine.low %v480_v6, %v484_v17 }
 0x554   :  { %v10836_v37 = vpop.f32.mrf.mxu1  ;;  %11081 = vmatmul.mubr.bf16.vlgmr.msra.gmra.mxu1 %v17101_v20  ;;  %v10797_v3 = vpop.f32.mrf.mxu0  ;;  %11091 = vmatprep.subr.bf16.mxu0 %v14535_v0  ;;  %v608_v20 = vld [vmem:[#allocation5 + $0xd18] sm:$0xff] }
 0x555   :  { %11131 = vmatpush1.bf16.msra.mxu1 %v14670_v34  ;;  %v17378_v18 = vadd.f32 %v10836_v37, %v10796_v60  ;;  %v10798_v61 = vadd.f32 %v10797_v3, %v17373_v45  ;;  %11162 = vmatprep.mubr.bf16.mxu1 %v17112_v29  ;;  %v14654_v45 = vcombine.low %v616_v48, %v620_v33  ;;  %v604_v36 = vld [vmem:[#allocation5 + $0xcf8] sm:$0xff] }
 0x556   :  { %v10838_v58 = vpop.f32.mrf.mxu1  ;;  %11132 = vmatprep.subr.bf16.mxu1 %v14663_v57  ;;  %v10799_v12 = vpop.f32.mrf.mxu0  ;;  %v14647_v63 = vcombine.high %v608_v20, %v612_v23  ;;  %v14646_v29 = vcombine.low %v608_v20, %v612_v23  ;;  %v14511_v34 = vcombine.high %v472_v2, %v476_v28  ;;  %v14639_v0 = vcombine.high %v600_v52, %v604_v36  ;;  %v464_v57 = vld [vmem:[#allocation5 + $0x898] sm:$0xff] }
 0x557   :  { %v17383_v59 = vadd.f32 %v10838_v58, %v10798_v61  ;;  %11092 = vmatpush1.bf16.msra.mxu0 %v14534_v1  ;;  %v468_v25 = vld [vmem:[#allocation5 + $0x8b8] sm:$0xff]  ;;  %v14510_v48 = vcombine.low %v472_v2, %v476_v28  ;;  %v14638_v33 = vcombine.low %v600_v52, %v604_v36 }
 0x558   :  { %v10840_v15 = vpop.f32.mrf.mxu1  ;;  %v10800_v14 = vpop.f32.mrf.mxu0  ;;  %11093 = vmatprep.subr.bf16.mxu0 %v14527_v46  ;;  %v592_v11 = vld [vmem:[#allocation5 + $0xc98] sm:$0xff]  ;;  %v14503_v60 = vcombine.high %v464_v57, %v468_v25  ;;  %v14502_v61 = vcombine.low %v464_v57, %v468_v25 }
 0x559   :  { %11133 = vmatpush1.bf16.msra.mxu1 %v14662_v56  ;;  %v596_v27 = vld [vmem:[#allocation5 + $0xcb8] sm:$0xff] }
 0x55a   :  { %v10841_v21 = vpop.f32.mrf.mxu1  ;;  %11134 = vmatprep.subr.bf16.mxu1 %v14655_v16  ;;  %v14631_v37 = vcombine.high %v592_v11, %v596_v27  ;;  %v456_v1 = vld [vmem:[#allocation5 + $0x858] sm:$0xff]  ;;  %v14630_v58 = vcombine.low %v592_v11, %v596_v27 }
 0x55b   :  { %11094 = vmatpush1.bf16.msra.mxu0 %v14526_v30  ;;  %v460_v3 = vld [vmem:[#allocation5 + $0x878] sm:$0xff] }
 0x55c   :  { %11095 = vmatprep.subr.bf16.mxu0 %v14519_v24  ;;  %v584_v56 = vld [vmem:[#allocation5 + $0xc58] sm:$0xff]  ;;  %v14495_v16 = vcombine.high %v456_v1, %v460_v3  ;;  %v14494_v15 = vcombine.low %v456_v1, %v460_v3 }
 0x55d   :  { %11135 = vmatpush1.bf16.msra.mxu1 %v14654_v45  ;;  %v588_v46 = vld [vmem:[#allocation5 + $0xc78] sm:$0xff] }
 0x55e   :  { %11136 = vmatprep.subr.bf16.mxu1 %v14647_v63  ;;  %v14623_v6 = vcombine.high %v584_v56, %v588_v46  ;;  %v448_v17 = vld [vmem:[#allocation5 + $0x818] sm:$0xff]  ;;  %v14622_v30 = vcombine.low %v584_v56, %v588_v46 }
 0x55f   :  { %11096 = vmatpush1.bf16.msra.mxu0 %v14518_v44  ;;  %v452_v12 = vld [vmem:[#allocation5 + $0x838] sm:$0xff] }
 0x560   :  { %11097 = vmatprep.subr.bf16.mxu0 %v14511_v34  ;;  %v576_v20 = vld [vmem:[#allocation5 + $0xc18] sm:$0xff]  ;;  %v14487_v14 = vcombine.high %v448_v17, %v452_v12  ;;  %v14486_v28 = vcombine.low %v448_v17, %v452_v12 }
 0x561   :  { %11137 = vmatpush1.bf16.msra.mxu1 %v14646_v29  ;;  %v580_v23 = vld [vmem:[#allocation5 + $0xc38] sm:$0xff] }
 0x562   :  { %11138 = vmatprep.subr.bf16.mxu1 %v14639_v0  ;;  %v14615_v45 = vcombine.high %v576_v20, %v580_v23  ;;  %v568_v24 = vld [vmem:[#allocation5 + $0xbd8] sm:$0xff]  ;;  %v14614_v52 = vcombine.low %v576_v20, %v580_v23 }
 0x563   :  { %11098 = vmatpush1.bf16.msra.mxu0 %v14510_v48  ;;  %v572_v21 = vld [vmem:[#allocation5 + $0xbf8] sm:$0xff] }
 0x564   :  { %11099 = vmatprep.subr.bf16.mxu0 %v14503_v60  ;;  %v696_v63 = vld [vmem:[#allocation5 + $0xfd8] sm:$0xff]  ;;  %v14607_v36 = vcombine.high %v568_v24, %v572_v21  ;;  %v14606_v25 = vcombine.low %v568_v24, %v572_v21 }
 0x565   :  { %11139 = vmatpush1.bf16.msra.mxu1 %v14638_v33  ;;  %v700_v2 = vld [vmem:[#allocation5 + $0xff8] sm:$0xff] }
 0x566   :  { %11140 = vmatprep.subr.bf16.mxu1 %v14631_v37  ;;  %v14735_v44 = vcombine.high %v696_v63, %v700_v2  ;;  %v560_v29 = vld [vmem:[#allocation5 + $0xb98] sm:$0xff]  ;;  %v14734_v11 = vcombine.low %v696_v63, %v700_v2 }
 0x567   :  { %11100 = vmatpush1.bf16.msra.mxu0 %v14502_v61  ;;  %v564_v34 = vld [vmem:[#allocation5 + $0xbb8] sm:$0xff] }
 0x568   :  { %11101 = vmatprep.subr.bf16.mxu0 %v14495_v16  ;;  %v688_v0 = vld [vmem:[#allocation5 + $0xf98] sm:$0xff]  ;;  %v14599_v27 = vcombine.high %v560_v29, %v564_v34  ;;  %v14598_v3 = vcombine.low %v560_v29, %v564_v34 }
 0x569   :  { %11141 = vmatpush1.bf16.msra.mxu1 %v14630_v58  ;;  %v692_v57 = vld [vmem:[#allocation5 + $0xfb8] sm:$0xff] }
 0x56a   :  { %11142 = vmatprep.subr.bf16.mxu1 %v14623_v6  ;;  %v14727_v48 = vcombine.high %v688_v0, %v692_v57  ;;  %v552_v33 = vld [vmem:[#allocation5 + $0xb58] sm:$0xff]  ;;  %v14726_v56 = vcombine.low %v688_v0, %v692_v57 }
 0x56b   :  { %11102 = vmatpush1.bf16.msra.mxu0 %v14494_v15  ;;  %v556_v60 = vld [vmem:[#allocation5 + $0xb78] sm:$0xff] }
 0x56c   :  { %11103 = vmatprep.subr.bf16.mxu0 %v14487_v14  ;;  %v680_v37 = vld [vmem:[#allocation5 + $0xf58] sm:$0xff]  ;;  %v14591_v46 = vcombine.high %v552_v33, %v556_v60  ;;  %v14590_v12 = vcombine.low %v552_v33, %v556_v60 }
 0x56d   :  { %11143 = vmatpush1.bf16.msra.mxu1 %v14622_v30  ;;  %v684_v1 = vld [vmem:[#allocation5 + $0xf78] sm:$0xff] }
 0x56e   :  { %11144 = vmatprep.subr.bf16.mxu1 %v14615_v45  ;;  %v14719_v61 = vcombine.high %v680_v37, %v684_v1  ;;  %v544_v58 = vld [vmem:[#allocation5 + $0xb18] sm:$0xff]  ;;  %v14718_v20 = vcombine.low %v680_v37, %v684_v1 }
 0x56f   :  { %11104 = vmatpush1.bf16.msra.mxu0 %v14486_v28  ;;  %v548_v16 = vld [vmem:[#allocation5 + $0xb38] sm:$0xff] }
 0x570   :  { %11105 = vmatprep.subr.bf16.mxu0 %v14607_v36  ;;  %v672_v6 = vld [vmem:[#allocation5 + $0xf18] sm:$0xff]  ;;  %v14583_v23 = vcombine.high %v544_v58, %v548_v16  ;;  %v14582_v21 = vcombine.low %v544_v58, %v548_v16 }
 0x571   :  { %11145 = vmatpush1.bf16.msra.mxu1 %v14614_v52  ;;  %v676_v17 = vld [vmem:[#allocation5 + $0xf38] sm:$0xff] }
 0x572   :  { %11146 = vmatprep.subr.bf16.mxu1 %v14735_v44  ;;  %v14711_v15 = vcombine.high %v672_v6, %v676_v17  ;;  %v536_v30 = vld [vmem:[#allocation5 + $0xad8] sm:$0xff]  ;;  %v14710_v63 = vcombine.low %v672_v6, %v676_v17 }
 0x573   :  { %11106 = vmatpush2.bf16.msra.mxu0 %v14606_v25  ;;  %v540_v14 = vld [vmem:[#allocation5 + $0xaf8] sm:$0xff] }
 0x574   :  { %11107 = vmatprep.subr.bf16.mxu0 %v14599_v27  ;;  %v664_v45 = vld [vmem:[#allocation5 + $0xed8] sm:$0xff]  ;;  %v14575_v2 = vcombine.high %v536_v30, %v540_v14  ;;  %v14574_v34 = vcombine.low %v536_v30, %v540_v14 }
 0x575   :  { %11147 = vmatpush2.bf16.msra.mxu1 %v14734_v11  ;;  %v668_v24 = vld [vmem:[#allocation5 + $0xef8] sm:$0xff] }
 0x576   :  { %11148 = vmatprep.subr.bf16.mxu1 %v14727_v48  ;;  %v14703_v28 = vcombine.high %v664_v45, %v668_v24  ;;  %v528_v52 = vld [vmem:[#allocation5 + $0xa98] sm:$0xff]  ;;  %v14702_v0 = vcombine.low %v664_v45, %v668_v24 }
 0x577   :  { %11108 = vmatpush2.bf16.msra.mxu0 %v14598_v3  ;;  %v532_v36 = vld [vmem:[#allocation5 + $0xab8] sm:$0xff] }
 0x578   :  { %11109 = vmatprep.subr.bf16.mxu0 %v14591_v46  ;;  %v656_v44 = vld [vmem:[#allocation5 + $0xe98] sm:$0xff]  ;;  %v14567_v57 = vcombine.high %v528_v52, %v532_v36  ;;  %v14566_v60 = vcombine.low %v528_v52, %v532_v36 }
 0x579   :  { %11149 = vmatpush2.bf16.msra.mxu1 %v14726_v56  ;;  %v660_v29 = vld [vmem:[#allocation5 + $0xeb8] sm:$0xff] }
 0x57a   :  { %11150 = vmatprep.subr.bf16.mxu1 %v14719_v61  ;;  %v14695_v25 = vcombine.high %v656_v44, %v660_v29  ;;  %v520_v11 = vld [vmem:[#allocation5 + $0xa58] sm:$0xff]  ;;  %v14694_v37 = vcombine.low %v656_v44, %v660_v29 }
 0x57b   :  { %11110 = vmatpush2.bf16.msra.mxu0 %v14590_v12  ;;  %v524_v27 = vld [vmem:[#allocation5 + $0xa78] sm:$0xff] }
 0x57c   :  { %11111 = vmatprep.subr.bf16.mxu0 %v14583_v23  ;;  %v648_v48 = vld [vmem:[#allocation5 + $0xe58] sm:$0xff]  ;;  %v14559_v1 = vcombine.high %v520_v11, %v524_v27  ;;  %v14558_v16 = vcombine.low %v520_v11, %v524_v27 }
 0x57d   :  { %11151 = vmatpush2.bf16.msra.mxu1 %v14718_v20  ;;  %v652_v33 = vld [vmem:[#allocation5 + $0xe78] sm:$0xff] }
 0x57e   :  { %11152 = vmatprep.subr.bf16.mxu1 %v14711_v15  ;;  %v14687_v3 = vcombine.high %v648_v48, %v652_v33  ;;  %v512_v56 = vld [vmem:[#allocation5 + $0xa18] sm:$0xff]  ;;  %v14686_v6 = vcombine.low %v648_v48, %v652_v33 }
 0x57f   :  { %11112 = vmatpush2.bf16.msra.mxu0 %v14582_v21  ;;  %v516_v46 = vld [vmem:[#allocation5 + $0xa38] sm:$0xff] }
 0x580   :  { %11113 = vmatprep.subr.bf16.mxu0 %v14575_v2  ;;  %v640_v61 = vld [vmem:[#allocation5 + $0xe18] sm:$0xff]  ;;  %v14551_v17 = vcombine.high %v512_v56, %v516_v46  ;;  %v14550_v14 = vcombine.low %v512_v56, %v516_v46 }
 0x581   :  { %11153 = vmatpush2.bf16.msra.mxu1 %v14710_v63  ;;  %v644_v58 = vld [vmem:[#allocation5 + $0xe38] sm:$0xff] }
 0x582   :  { %11154 = vmatprep.subr.bf16.mxu1 %v14703_v28  ;;  %v14679_v12 = vcombine.high %v640_v61, %v644_v58  ;;  %v760_v20 = vld [vmem:[#allocation5 + $0x11d8] sm:$0xff]  ;;  %v14678_v45 = vcombine.low %v640_v61, %v644_v58 }
 0x583   :  { %11114 = vmatpush2.bf16.msra.mxu0 %v14574_v34  ;;  %v764_v23 = vld [vmem:[#allocation5 + $0x11f8] sm:$0xff] }
 0x584   :  { %11115 = vmatprep.subr.bf16.mxu0 %v14567_v57  ;;  %v888_v15 = vld [vmem:[#allocation5 + $0x15d8] sm:$0xff]  ;;  %v14799_v24 = vcombine.high %v760_v20, %v764_v23  ;;  %v14798_v36 = vcombine.low %v760_v20, %v764_v23 }
 0x585   :  { %11155 = vmatpush2.bf16.msra.mxu1 %v14702_v0  ;;  %v892_v30 = vld [vmem:[#allocation5 + $0x15f8] sm:$0xff] }
 0x586   :  { %11156 = vmatprep.subr.bf16.mxu1 %v14695_v25  ;;  %v14927_v21 = vcombine.high %v888_v15, %v892_v30  ;;  %v752_v63 = vld [vmem:[#allocation5 + $0x1198] sm:$0xff]  ;;  %v14926_v44 = vcombine.low %v888_v15, %v892_v30 }
 0x587   :  { %11116 = vmatpush2.bf16.msra.mxu0 %v14566_v60  ;;  %v756_v2 = vld [vmem:[#allocation5 + $0x11b8] sm:$0xff] }
 0x588   :  { %11117 = vmatprep.subr.bf16.mxu0 %v14559_v1  ;;  %v880_v28 = vld [vmem:[#allocation5 + $0x1598] sm:$0xff]  ;;  %v14791_v29 = vcombine.high %v752_v63, %v756_v2  ;;  %v14790_v60 = vcombine.low %v752_v63, %v756_v2 }
 0x589   :  { %11157 = vmatpush2.bf16.msra.mxu1 %v14694_v37  ;;  %v884_v52 = vld [vmem:[#allocation5 + $0x15b8] sm:$0xff] }
 0x58a   :  { %11158 = vmatprep.subr.bf16.mxu1 %v14687_v3  ;;  %v14919_v34 = vcombine.high %v880_v28, %v884_v52  ;;  %v744_v0 = vld [vmem:[#allocation5 + $0x1158] sm:$0xff]  ;;  %v14918_v1 = vcombine.low %v880_v28, %v884_v52 }
 0x58b   :  { %11118 = vmatpush2.bf16.msra.mxu0 %v14558_v16  ;;  %v748_v57 = vld [vmem:[#allocation5 + $0x1178] sm:$0xff] }
 0x58c   :  { %11119 = vmatprep.subr.bf16.mxu0 %v14551_v17  ;;  %v872_v11 = vld [vmem:[#allocation5 + $0x1558] sm:$0xff]  ;;  %v14783_v3 = vcombine.high %v744_v0, %v748_v57  ;;  %v14782_v20 = vcombine.low %v744_v0, %v748_v57 }
 0x58d   :  { %11159 = vmatpush2.bf16.msra.mxu1 %v14686_v6  ;;  %v876_v27 = vld [vmem:[#allocation5 + $0x1578] sm:$0xff] }
 0x58e   :  { %11160 = vmatprep.subr.bf16.mxu1 %v14679_v12  ;;  %v736_v58 = vld [vmem:[#allocation5 + $0x1118] sm:$0xff] }
 0x58f   :  { %11120 = vmatpush2.bf16.msra.mxu0 %v14550_v14  ;;  %v740_v16 = vld [vmem:[#allocation5 + $0x1138] sm:$0xff] }
 0x590   :  { %11171 = vmatprep.subr.bf16.mxu0 %v14799_v24  ;;  %v868_v6 = vld [vmem:[#allocation5 + $0x1538] sm:$0xff]  ;;  %v14775_v15 = vcombine.high %v736_v58, %v740_v16  ;;  %v14774_v63 = vcombine.low %v736_v58, %v740_v16 }
 0x591   :  { %11161 = vmatpush2.bf16.msra.mxu1 %v14678_v45  ;;  %v728_v45 = vld [vmem:[#allocation5 + $0x10d8] sm:$0xff] }
 0x592   :  { %11212 = vmatprep.subr.bf16.mxu1 %v14927_v21  ;;  %v10877_v25 = vpop.f32.mrf.mxu0  ;;  %11122 = vmatmul.mubr.bf16.vlgmr.msra.gmra.mxu0 %v17121_v39  ;;  %v14911_v39 = vcombine.high %v872_v11, %v876_v27  ;;  %v856_v24 = vld [vmem:[#allocation5 + $0x14d8] sm:$0xff] }
 0x593   :  { %v10878_v48 = vadd.f32 %v10877_v25, %v17378_v18  ;;  %11172 = vmatpush1.bf16.msra.mxu0 %v14798_v36  ;;  %11203 = vmatprep.mubr.bf16.mxu0 %v17131_v19  ;;  %v732_v19 = vld [vmem:[#allocation5 + $0x10f8] sm:$0xff] }
 0x594   :  { %v10918_v33 = vpop.f32.mrf.mxu1  ;;  %11163 = vmatmul.mubr.bf16.vlgmr.msra.gmra.mxu1 %v17125_v40  ;;  %v10879_v37 = vpop.f32.mrf.mxu0  ;;  %11173 = vmatprep.subr.bf16.mxu0 %v14791_v29  ;;  %v864_v40 = vld [vmem:[#allocation5 + $0x1518] sm:$0xff]  ;;  %v14767_v2 = vcombine.high %v728_v45, %v732_v19 }
 0x595   :  { %11213 = vmatpush1.bf16.msra.mxu1 %v14926_v44  ;;  %v17388_v56 = vadd.f32 %v10918_v33, %v10878_v48  ;;  %v10880_v46 = vadd.f32 %v10879_v37, %v17383_v59  ;;  %11244 = vmatprep.mubr.bf16.mxu1 %v17136_v22  ;;  %v14910_v59 = vcombine.low %v872_v11, %v876_v27  ;;  %v860_v21 = vld [vmem:[#allocation5 + $0x14f8] sm:$0xff] }
 0x596   :  { %v10920_v61 = vpop.f32.mrf.mxu1  ;;  %11214 = vmatprep.subr.bf16.mxu1 %v14919_v34  ;;  %v10881_v18 = vpop.f32.mrf.mxu0  ;;  %v14903_v14 = vcombine.high %v864_v40, %v868_v6  ;;  %v14902_v22 = vcombine.low %v864_v40, %v868_v6  ;;  %v14895_v28 = vcombine.high %v856_v24, %v860_v21  ;;  %v720_v52 = vld [vmem:[#allocation5 + $0x1098] sm:$0xff]  ;;  %v14766_v34 = vcombine.low %v728_v45, %v732_v19 }
 0x597   :  { %v17393_v17 = vadd.f32 %v10920_v61, %v10880_v46  ;;  %11174 = vmatpush1.bf16.msra.mxu0 %v14790_v60  ;;  %v724_v36 = vld [vmem:[#allocation5 + $0x10b8] sm:$0xff]  ;;  %v14894_v0 = vcombine.low %v856_v24, %v860_v21 }
 0x598   :  { %v10922_v12 = vpop.f32.mrf.mxu1  ;;  %v10882_v23 = vpop.f32.mrf.mxu0  ;;  %11175 = vmatprep.subr.bf16.mxu0 %v14783_v3  ;;  %v848_v44 = vld [vmem:[#allocation5 + $0x1498] sm:$0xff]  ;;  %v14759_v57 = vcombine.high %v720_v52, %v724_v36  ;;  %v14758_v60 = vcombine.low %v720_v52, %v724_v36 }
 0x599   :  { %11215 = vmatpush1.bf16.msra.mxu1 %v14918_v1  ;;  %v852_v29 = vld [vmem:[#allocation5 + $0x14b8] sm:$0xff] }
 0x59a   :  { %v10923_v30 = vpop.f32.mrf.mxu1  ;;  %11216 = vmatprep.subr.bf16.mxu1 %v14911_v39  ;;  %v14887_v25 = vcombine.high %v848_v44, %v852_v29  ;;  %v712_v11 = vld [vmem:[#allocation5 + $0x1058] sm:$0xff]  ;;  %v14886_v37 = vcombine.low %v848_v44, %v852_v29 }
 0x59b   :  { %11176 = vmatpush1.bf16.msra.mxu0 %v14782_v20  ;;  %v716_v27 = vld [vmem:[#allocation5 + $0x1078] sm:$0xff] }
 0x59c   :  { %11177 = vmatprep.subr.bf16.mxu0 %v14775_v15  ;;  %v840_v48 = vld [vmem:[#allocation5 + $0x1458] sm:$0xff]  ;;  %v14751_v1 = vcombine.high %v712_v11, %v716_v27  ;;  %v14750_v16 = vcombine.low %v712_v11, %v716_v27 }
 0x59d   :  { %11217 = vmatpush1.bf16.msra.mxu1 %v14910_v59  ;;  %v844_v33 = vld [vmem:[#allocation5 + $0x1478] sm:$0xff] }
 0x59e   :  { %11218 = vmatprep.subr.bf16.mxu1 %v14903_v14  ;;  %v14879_v3 = vcombine.high %v840_v48, %v844_v33  ;;  %v704_v46 = vld [vmem:[#allocation5 + $0x1018] sm:$0xff]  ;;  %v14878_v18 = vcombine.low %v840_v48, %v844_v33 }
 0x59f   :  { %11178 = vmatpush1.bf16.msra.mxu0 %v14774_v63  ;;  %v708_v61 = vld [vmem:[#allocation5 + $0x1038] sm:$0xff] }
 0x5a0   :  { %11179 = vmatprep.subr.bf16.mxu0 %v14767_v2  ;;  %v832_v39 = vld [vmem:[#allocation5 + $0x1418] sm:$0xff]  ;;  %v14743_v40 = vcombine.high %v704_v46, %v708_v61  ;;  %v14742_v15 = vcombine.low %v704_v46, %v708_v61 }
 0x5a1   :  { %11219 = vmatpush1.bf16.msra.mxu1 %v14902_v22  ;;  %v836_v58 = vld [vmem:[#allocation5 + $0x1438] sm:$0xff] }
 0x5a2   :  { %11220 = vmatprep.subr.bf16.mxu1 %v14895_v28  ;;  %v14871_v6 = vcombine.high %v832_v39, %v836_v58  ;;  %v824_v12 = vld [vmem:[#allocation5 + $0x13d8] sm:$0xff]  ;;  %v14870_v30 = vcombine.low %v832_v39, %v836_v58 }
 0x5a3   :  { %11180 = vmatpush1.bf16.msra.mxu0 %v14766_v34  ;;  %v828_v20 = vld [vmem:[#allocation5 + $0x13f8] sm:$0xff] }
 0x5a4   :  { %11181 = vmatprep.subr.bf16.mxu0 %v14759_v57  ;;  %v952_v23 = vld [vmem:[#allocation5 + $0x17d8] sm:$0xff]  ;;  %v14863_v14 = vcombine.high %v824_v12, %v828_v20  ;;  %v14862_v22 = vcombine.low %v824_v12, %v828_v20 }
 0x5a5   :  { %11221 = vmatpush1.bf16.msra.mxu1 %v14894_v0  ;;  %v956_v59 = vld [vmem:[#allocation5 + $0x17f8] sm:$0xff] }
 0x5a6   :  { %11222 = vmatprep.subr.bf16.mxu1 %v14887_v25  ;;  %v14991_v45 = vcombine.high %v952_v23, %v956_v59  ;;  %v816_v19 = vld [vmem:[#allocation5 + $0x1398] sm:$0xff]  ;;  %v14990_v2 = vcombine.low %v952_v23, %v956_v59 }
 0x5a7   :  { %11182 = vmatpush1.bf16.msra.mxu0 %v14758_v60  ;;  %v820_v24 = vld [vmem:[#allocation5 + $0x13b8] sm:$0xff] }
 0x5a8   :  { %11183 = vmatprep.subr.bf16.mxu0 %v14751_v1  ;;  %v944_v21 = vld [vmem:[#allocation5 + $0x1798] sm:$0xff]  ;;  %v14855_v28 = vcombine.high %v816_v19, %v820_v24  ;;  %v14854_v0 = vcombine.low %v816_v19, %v820_v24 }
 0x5a9   :  { %11223 = vmatpush1.bf16.msra.mxu1 %v14886_v37  ;;  %v948_v63 = vld [vmem:[#allocation5 + $0x17b8] sm:$0xff] }
 0x5aa   :  { %11224 = vmatprep.subr.bf16.mxu1 %v14879_v3  ;;  %v14983_v52 = vcombine.high %v944_v21, %v948_v63  ;;  %v808_v36 = vld [vmem:[#allocation5 + $0x1358] sm:$0xff]  ;;  %v14982_v57 = vcombine.low %v944_v21, %v948_v63 }
 0x5ab   :  { %11184 = vmatpush1.bf16.msra.mxu0 %v14750_v16  ;;  %v812_v44 = vld [vmem:[#allocation5 + $0x1378] sm:$0xff] }
 0x5ac   :  { %11185 = vmatprep.subr.bf16.mxu0 %v14743_v40  ;;  %v936_v29 = vld [vmem:[#allocation5 + $0x1758] sm:$0xff]  ;;  %v14847_v25 = vcombine.high %v808_v36, %v812_v44  ;;  %v14846_v37 = vcombine.low %v808_v36, %v812_v44 }
 0x5ad   :  { %11225 = vmatpush1.bf16.msra.mxu1 %v14878_v18  ;;  %v940_v34 = vld [vmem:[#allocation5 + $0x1778] sm:$0xff] }
 0x5ae   :  { %11226 = vmatprep.subr.bf16.mxu1 %v14871_v6  ;;  %v14975_v11 = vcombine.high %v936_v29, %v940_v34  ;;  %v800_v27 = vld [vmem:[#allocation5 + $0x1318] sm:$0xff]  ;;  %v14974_v1 = vcombine.low %v936_v29, %v940_v34 }
 0x5af   :  { %11186 = vmatpush1.bf16.msra.mxu0 %v14742_v15  ;;  %v804_v48 = vld [vmem:[#allocation5 + $0x1338] sm:$0xff] }
 0x5b0   :  { %11187 = vmatprep.subr.bf16.mxu0 %v14863_v14  ;;  %v928_v33 = vld [vmem:[#allocation5 + $0x1718] sm:$0xff]  ;;  %v14839_v3 = vcombine.high %v800_v27, %v804_v48  ;;  %v14838_v18 = vcombine.low %v800_v27, %v804_v48 }
 0x5b1   :  { %11227 = vmatpush1.bf16.msra.mxu1 %v14870_v30  ;;  %v932_v60 = vld [vmem:[#allocation5 + $0x1738] sm:$0xff] }
 0x5b2   :  { %11228 = vmatprep.subr.bf16.mxu1 %v14991_v45  ;;  %v14967_v46 = vcombine.high %v928_v33, %v932_v60  ;;  %v792_v61 = vld [vmem:[#allocation5 + $0x12d8] sm:$0xff]  ;;  %v14966_v40 = vcombine.low %v928_v33, %v932_v60 }
 0x5b3   :  { %11188 = vmatpush2.bf16.msra.mxu0 %v14862_v22  ;;  %v796_v39 = vld [vmem:[#allocation5 + $0x12f8] sm:$0xff] }
 0x5b4   :  { %11189 = vmatprep.subr.bf16.mxu0 %v14855_v28  ;;  %v920_v58 = vld [vmem:[#allocation5 + $0x16d8] sm:$0xff]  ;;  %v14831_v6 = vcombine.high %v792_v61, %v796_v39  ;;  %v14830_v30 = vcombine.low %v792_v61, %v796_v39 }
 0x5b5   :  { %11229 = vmatpush2.bf16.msra.mxu1 %v14990_v2  ;;  %v924_v16 = vld [vmem:[#allocation5 + $0x16f8] sm:$0xff] }
 0x5b6   :  { %11230 = vmatprep.subr.bf16.mxu1 %v14983_v52  ;;  %v14959_v12 = vcombine.high %v920_v58, %v924_v16  ;;  %v784_v20 = vld [vmem:[#allocation5 + $0x1298] sm:$0xff]  ;;  %v14958_v14 = vcombine.low %v920_v58, %v924_v16 }
 0x5b7   :  { %11190 = vmatpush2.bf16.msra.mxu0 %v14854_v0  ;;  %v788_v23 = vld [vmem:[#allocation5 + $0x12b8] sm:$0xff] }
 0x5b8   :  { %11191 = vmatprep.subr.bf16.mxu0 %v14847_v25  ;;  %v912_v59 = vld [vmem:[#allocation5 + $0x1698] sm:$0xff]  ;;  %v14823_v45 = vcombine.high %v784_v20, %v788_v23  ;;  %v14822_v2 = vcombine.low %v784_v20, %v788_v23 }
 0x5b9   :  { %11231 = vmatpush2.bf16.msra.mxu1 %v14982_v57  ;;  %v916_v15 = vld [vmem:[#allocation5 + $0x16b8] sm:$0xff] }
 0x5ba   :  { %11232 = vmatprep.subr.bf16.mxu1 %v14975_v11  ;;  %v14951_v19 = vcombine.high %v912_v59, %v916_v15  ;;  %v776_v24 = vld [vmem:[#allocation5 + $0x1258] sm:$0xff]  ;;  %v14950_v28 = vcombine.low %v912_v59, %v916_v15 }
 0x5bb   :  { %11192 = vmatpush2.bf16.msra.mxu0 %v14846_v37  ;;  %v780_v21 = vld [vmem:[#allocation5 + $0x1278] sm:$0xff] }
 0x5bc   :  { %11193 = vmatprep.subr.bf16.mxu0 %v14839_v3  ;;  %v904_v63 = vld [vmem:[#allocation5 + $0x1658] sm:$0xff]  ;;  %v14815_v52 = vcombine.high %v776_v24, %v780_v21  ;;  %v14814_v57 = vcombine.low %v776_v24, %v780_v21 }
 0x5bd   :  { %11233 = vmatpush2.bf16.msra.mxu1 %v14974_v1  ;;  %v908_v22 = vld [vmem:[#allocation5 + $0x1678] sm:$0xff] }
 0x5be   :  { %11234 = vmatprep.subr.bf16.mxu1 %v14967_v46  ;;  %v14943_v36 = vcombine.high %v904_v63, %v908_v22  ;;  %v768_v44 = vld [vmem:[#allocation5 + $0x1218] sm:$0xff]  ;;  %v14942_v25 = vcombine.low %v904_v63, %v908_v22 }
 0x5bf   :  { %11194 = vmatpush2.bf16.msra.mxu0 %v14838_v18  ;;  %v772_v29 = vld [vmem:[#allocation5 + $0x1238] sm:$0xff] }
 0x5c0   :  { %11195 = vmatprep.subr.bf16.mxu0 %v14831_v6  ;;  %v896_v34 = vld [vmem:[#allocation5 + $0x1618] sm:$0xff]  ;;  %v14807_v11 = vcombine.high %v768_v44, %v772_v29  ;;  %v14806_v1 = vcombine.low %v768_v44, %v772_v29 }
 0x5c1   :  { %11235 = vmatpush2.bf16.msra.mxu1 %v14966_v40  ;;  %v900_v0 = vld [vmem:[#allocation5 + $0x1638] sm:$0xff] }
 0x5c2   :  { %11236 = vmatprep.subr.bf16.mxu1 %v14959_v12  ;;  %v14935_v27 = vcombine.high %v896_v34, %v900_v0  ;;  %v1016_v48 = vld [vmem:[#allocation5 + $0x19d8] sm:$0xff]  ;;  %v14934_v3 = vcombine.low %v896_v34, %v900_v0 }
 0x5c3   :  { %11196 = vmatpush2.bf16.msra.mxu0 %v14830_v30  ;;  %v1020_v33 = vld [vmem:[#allocation5 + $0x19f8] sm:$0xff] }
 0x5c4   :  { %11197 = vmatprep.subr.bf16.mxu0 %v14823_v45  ;;  %v1144_v60 = vld [vmem:[#allocation5 + $0x1dd8] sm:$0xff]  ;;  %v15055_v46 = vcombine.high %v1016_v48, %v1020_v33  ;;  %v15054_v40 = vcombine.low %v1016_v48, %v1020_v33 }
 0x5c5   :  { %11237 = vmatpush2.bf16.msra.mxu1 %v14958_v14  ;;  %v1148_v37 = vld [vmem:[#allocation5 + $0x1df8] sm:$0xff] }
 0x5c6   :  { %11238 = vmatprep.subr.bf16.mxu1 %v14951_v19  ;;  %v15183_v61 = vcombine.high %v1144_v60, %v1148_v37  ;;  %v1008_v39 = vld [vmem:[#allocation5 + $0x1998] sm:$0xff]  ;;  %v15182_v6 = vcombine.low %v1144_v60, %v1148_v37 }
 0x5c7   :  { %11198 = vmatpush2.bf16.msra.mxu0 %v14822_v2  ;;  %v1012_v58 = vld [vmem:[#allocation5 + $0x19b8] sm:$0xff] }
 0x5c8   :  { %11199 = vmatprep.subr.bf16.mxu0 %v14815_v52  ;;  %v1136_v16 = vld [vmem:[#allocation5 + $0x1d98] sm:$0xff]  ;;  %v15047_v12 = vcombine.high %v1008_v39, %v1012_v58  ;;  %v15046_v24 = vcombine.low %v1008_v39, %v1012_v58 }
 0x5c9   :  { %11239 = vmatpush2.bf16.msra.mxu1 %v14950_v28  ;;  %v1140_v18 = vld [vmem:[#allocation5 + $0x1db8] sm:$0xff] }
 0x5ca   :  { %11240 = vmatprep.subr.bf16.mxu1 %v14943_v36  ;;  %v15175_v20 = vcombine.high %v1136_v16, %v1140_v18  ;;  %v1000_v23 = vld [vmem:[#allocation5 + $0x1958] sm:$0xff]  ;;  %v15174_v63 = vcombine.low %v1136_v16, %v1140_v18 }
 0x5cb   :  { %11200 = vmatpush2.bf16.msra.mxu0 %v14814_v57  ;;  %v1004_v59 = vld [vmem:[#allocation5 + $0x1978] sm:$0xff] }
 0x5cc   :  { %11201 = vmatprep.subr.bf16.mxu0 %v14807_v11  ;;  %v1128_v30 = vld [vmem:[#allocation5 + $0x1d58] sm:$0xff]  ;;  %v15039_v22 = vcombine.high %v1000_v23, %v1004_v59  ;;  %v15038_v57 = vcombine.low %v1000_v23, %v1004_v59 }
 0x5cd   :  { %11241 = vmatpush2.bf16.msra.mxu1 %v14942_v25  ;;  %v1132_v14 = vld [vmem:[#allocation5 + $0x1d78] sm:$0xff] }
 0x5ce   :  { %11242 = vmatprep.subr.bf16.mxu1 %v14935_v27  ;;  %v992_v36 = vld [vmem:[#allocation5 + $0x1918] sm:$0xff] }
 0x5cf   :  { %11202 = vmatpush2.bf16.msra.mxu0 %v14806_v1  ;;  %v996_v44 = vld [vmem:[#allocation5 + $0x1938] sm:$0xff] }
 0x5d0   :  { %11253 = vmatprep.subr.bf16.mxu0 %v15055_v46  ;;  %v1124_v29 = vld [vmem:[#allocation5 + $0x1d38] sm:$0xff]  ;;  %v15031_v11 = vcombine.high %v992_v36, %v996_v44  ;;  %v15030_v1 = vcombine.low %v992_v36, %v996_v44 }
 0x5d1   :  { %11243 = vmatpush2.bf16.msra.mxu1 %v14934_v3  ;;  %v984_v33 = vld [vmem:[#allocation5 + $0x18d8] sm:$0xff] }
 0x5d2   :  { %11294 = vmatprep.subr.bf16.mxu1 %v15183_v61  ;;  %v10959_v15 = vpop.f32.mrf.mxu0  ;;  %11204 = vmatmul.mubr.bf16.vlgmr.msra.gmra.mxu0 %v17145_v7  ;;  %v15167_v7 = vcombine.high %v1128_v30, %v1132_v14  ;;  %v1112_v60 = vld [vmem:[#allocation5 + $0x1cd8] sm:$0xff] }
 0x5d3   :  { %v10960_v45 = vadd.f32 %v10959_v15, %v17388_v56  ;;  %11254 = vmatpush1.bf16.msra.mxu0 %v15054_v40  ;;  %11285 = vmatprep.mubr.bf16.mxu0 %v17155_v38  ;;  %v988_v38 = vld [vmem:[#allocation5 + $0x18f8] sm:$0xff] }
 0x5d4   :  { %v11000_v19 = vpop.f32.mrf.mxu1  ;;  %11245 = vmatmul.mubr.bf16.vlgmr.msra.gmra.mxu1 %v17149_v8  ;;  %v10961_v21 = vpop.f32.mrf.mxu0  ;;  %11255 = vmatprep.subr.bf16.mxu0 %v15047_v12  ;;  %v1120_v8 = vld [vmem:[#allocation5 + $0x1d18] sm:$0xff]  ;;  %v15023_v3 = vcombine.high %v984_v33, %v988_v38  ;;  %v15022_v18 = vcombine.low %v984_v33, %v988_v38 }
 0x5d5   :  { %11295 = vmatpush1.bf16.msra.mxu1 %v15182_v6  ;;  %v17398_v2 = vadd.f32 %v11000_v19, %v10960_v45  ;;  %v10962_v28 = vadd.f32 %v10961_v21, %v17393_v17  ;;  %11326 = vmatprep.mubr.bf16.mxu1 %v17160_v42  ;;  %v15166_v17 = vcombine.low %v1128_v30, %v1132_v14  ;;  %v1116_v37 = vld [vmem:[#allocation5 + $0x1cf8] sm:$0xff] }
 0x5d6   :  { %v11002_v52 = vpop.f32.mrf.mxu1  ;;  %11296 = vmatprep.subr.bf16.mxu1 %v15175_v20  ;;  %v10963_v56 = vpop.f32.mrf.mxu0  ;;  %v15159_v48 = vcombine.high %v1120_v8, %v1124_v29  ;;  %v15158_v42 = vcombine.low %v1120_v8, %v1124_v29  ;;  %v15151_v46 = vcombine.high %v1112_v60, %v1116_v37  ;;  %v976_v61 = vld [vmem:[#allocation5 + $0x1898] sm:$0xff]  ;;  %v15150_v40 = vcombine.low %v1112_v60, %v1116_v37 }
 0x5d7   :  { %v17403_v34 = vadd.f32 %v11002_v52, %v10962_v28  ;;  %11256 = vmatpush1.bf16.msra.mxu0 %v15046_v24  ;;  %v980_v39 = vld [vmem:[#allocation5 + $0x18b8] sm:$0xff] }
 0x5d8   :  { %v11004_v0 = vpop.f32.mrf.mxu1  ;;  %v10964_v25 = vpop.f32.mrf.mxu0  ;;  %11257 = vmatprep.subr.bf16.mxu0 %v15039_v22  ;;  %v1104_v58 = vld [vmem:[#allocation5 + $0x1c98] sm:$0xff]  ;;  %v15015_v6 = vcombine.high %v976_v61, %v980_v39  ;;  %v15014_v30 = vcombine.low %v976_v61, %v980_v39 }
 0x5d9   :  { %11297 = vmatpush1.bf16.msra.mxu1 %v15174_v63  ;;  %v1108_v16 = vld [vmem:[#allocation5 + $0x1cb8] sm:$0xff] }
 0x5da   :  { %v11005_v27 = vpop.f32.mrf.mxu1  ;;  %11298 = vmatprep.subr.bf16.mxu1 %v15167_v7  ;;  %v15143_v12 = vcombine.high %v1104_v58, %v1108_v16  ;;  %v968_v20 = vld [vmem:[#allocation5 + $0x1858] sm:$0xff]  ;;  %v15142_v14 = vcombine.low %v1104_v58, %v1108_v16 }
 0x5db   :  { %11258 = vmatpush1.bf16.msra.mxu0 %v15038_v57  ;;  %v972_v23 = vld [vmem:[#allocation5 + $0x1878] sm:$0xff] }
 0x5dc   :  { %11259 = vmatprep.subr.bf16.mxu0 %v15031_v11  ;;  %v1096_v59 = vld [vmem:[#allocation5 + $0x1c58] sm:$0xff]  ;;  %v15007_v45 = vcombine.high %v968_v20, %v972_v23  ;;  %v15006_v28 = vcombine.low %v968_v20, %v972_v23 }
 0x5dd   :  { %11299 = vmatpush1.bf16.msra.mxu1 %v15166_v17  ;;  %v1100_v15 = vld [vmem:[#allocation5 + $0x1c78] sm:$0xff] }
 0x5de   :  { %11300 = vmatprep.subr.bf16.mxu1 %v15159_v48  ;;  %v15135_v19 = vcombine.high %v1096_v59, %v1100_v15  ;;  %v960_v24 = vld [vmem:[#allocation5 + $0x1818] sm:$0xff]  ;;  %v15134_v52 = vcombine.low %v1096_v59, %v1100_v15 }
 0x5df   :  { %11260 = vmatpush1.bf16.msra.mxu0 %v15030_v1  ;;  %v964_v21 = vld [vmem:[#allocation5 + $0x1838] sm:$0xff] }
 0x5e0   :  { %11261 = vmatprep.subr.bf16.mxu0 %v15023_v3  ;;  %v1088_v63 = vld [vmem:[#allocation5 + $0x1c18] sm:$0xff]  ;;  %v14999_v7 = vcombine.high %v960_v24, %v964_v21  ;;  %v14998_v0 = vcombine.low %v960_v24, %v964_v21 }
 0x5e1   :  { %11301 = vmatpush1.bf16.msra.mxu1 %v15158_v42  ;;  %v1092_v22 = vld [vmem:[#allocation5 + $0x1c38] sm:$0xff] }
 0x5e2   :  { %11302 = vmatprep.subr.bf16.mxu1 %v15151_v46  ;;  %v15127_v36 = vcombine.high %v1088_v63, %v1092_v22  ;;  %v1080_v44 = vld [vmem:[#allocation5 + $0x1bd8] sm:$0xff]  ;;  %v15126_v57 = vcombine.low %v1088_v63, %v1092_v22 }
 0x5e3   :  { %11262 = vmatpush1.bf16.msra.mxu0 %v15022_v18  ;;  %v1084_v56 = vld [vmem:[#allocation5 + $0x1bf8] sm:$0xff] }
 0x5e4   :  { %11263 = vmatprep.subr.bf16.mxu0 %v15015_v6  ;;  %v1208_v8 = vld [vmem:[#allocation5 + $0x1fd8] sm:$0xff]  ;;  %v15119_v25 = vcombine.high %v1080_v44, %v1084_v56  ;;  %v15118_v38 = vcombine.low %v1080_v44, %v1084_v56 }
 0x5e5   :  { %11303 = vmatpush1.bf16.msra.mxu1 %v15150_v40  ;;  %v1212_v29 = vld [vmem:[#allocation5 + $0x1ff8] sm:$0xff] }
 0x5e6   :  { %11304 = vmatprep.subr.bf16.mxu1 %v15143_v12  ;;  %v15247_v17 = vcombine.high %v1208_v8, %v1212_v29  ;;  %v1072_v11 = vld [vmem:[#allocation5 + $0x1b98] sm:$0xff]  ;;  %v15246_v60 = vcombine.low %v1208_v8, %v1212_v29 }
 0x5e7   :  { %11264 = vmatpush1.bf16.msra.mxu0 %v15014_v30  ;;  %v1076_v27 = vld [vmem:[#allocation5 + $0x1bb8] sm:$0xff] }
 0x5e8   :  { %11265 = vmatprep.subr.bf16.mxu0 %v15007_v45  ;;  %v1200_v48 = vld [vmem:[#allocation5 + $0x1f98] sm:$0xff]  ;;  %v15111_v37 = vcombine.high %v1072_v11, %v1076_v27  ;;  %v15110_v39 = vcombine.low %v1072_v11, %v1076_v27 }
 0x5e9   :  { %11305 = vmatpush1.bf16.msra.mxu1 %v15142_v14  ;;  %v1204_v33 = vld [vmem:[#allocation5 + $0x1fb8] sm:$0xff] }
 0x5ea   :  { %11306 = vmatprep.subr.bf16.mxu1 %v15135_v19  ;;  %v15239_v1 = vcombine.high %v1200_v48, %v1204_v33  ;;  %v1064_v42 = vld [vmem:[#allocation5 + $0x1b58] sm:$0xff]  ;;  %v15238_v58 = vcombine.low %v1200_v48, %v1204_v33 }
 0x5eb   :  { %11266 = vmatpush1.bf16.msra.mxu0 %v15006_v28  ;;  %v1068_v3 = vld [vmem:[#allocation5 + $0x1b78] sm:$0xff] }
 0x5ec   :  { %11267 = vmatprep.subr.bf16.mxu0 %v14999_v7  ;;  %v1192_v46 = vld [vmem:[#allocation5 + $0x1f58] sm:$0xff]  ;;  %v15103_v16 = vcombine.high %v1064_v42, %v1068_v3  ;;  %v15102_v23 = vcombine.low %v1064_v42, %v1068_v3 }
 0x5ed   :  { %11307 = vmatpush1.bf16.msra.mxu1 %v15134_v52  ;;  %v1196_v61 = vld [vmem:[#allocation5 + $0x1f78] sm:$0xff] }
 0x5ee   :  { %11308 = vmatprep.subr.bf16.mxu1 %v15127_v36  ;;  %v15231_v18 = vcombine.high %v1192_v46, %v1196_v61  ;;  %v1056_v40 = vld [vmem:[#allocation5 + $0x1b18] sm:$0xff]  ;;  %v15230_v59 = vcombine.low %v1192_v46, %v1196_v61 }
 0x5ef   :  { %11268 = vmatpush1.bf16.msra.mxu0 %v14998_v0  ;;  %v1060_v6 = vld [vmem:[#allocation5 + $0x1b38] sm:$0xff] }
 0x5f0   :  { %11269 = vmatprep.subr.bf16.mxu0 %v15119_v25  ;;  %v1184_v12 = vld [vmem:[#allocation5 + $0x1f18] sm:$0xff]  ;;  %v15095_v15 = vcombine.high %v1056_v40, %v1060_v6  ;;  %v15094_v21 = vcombine.low %v1056_v40, %v1060_v6 }
 0x5f1   :  { %11309 = vmatpush1.bf16.msra.mxu1 %v15126_v57  ;;  %v1188_v20 = vld [vmem:[#allocation5 + $0x1f38] sm:$0xff] }
 0x5f2   :  { %11310 = vmatprep.subr.bf16.mxu1 %v15247_v17  ;;  %v15223_v30 = vcombine.high %v1184_v12, %v1188_v20  ;;  %v1048_v14 = vld [vmem:[#allocation5 + $0x1ad8] sm:$0xff]  ;;  %v15222_v63 = vcombine.low %v1184_v12, %v1188_v20  ;;  %v1753_v12 = vsub.s32 6, %v17165_v31 }
 0x5f3   :  { %11270 = vmatpush2.bf16.msra.mxu0 %v15118_v38  ;;  %v1052_v45 = vld [vmem:[#allocation5 + $0x1af8] sm:$0xff] }
 0x5f4   :  { %11271 = vmatprep.subr.bf16.mxu0 %v15111_v37  ;;  %v1176_v19 = vld [vmem:[#allocation5 + $0x1ed8] sm:$0xff]  ;;  %v15087_v22 = vcombine.high %v1048_v14, %v1052_v45  ;;  %v15086_v56 = vcombine.low %v1048_v14, %v1052_v45 }
 0x5f5   :  { %11311 = vmatpush2.bf16.msra.mxu1 %v15246_v60  ;;  %v1180_v24 = vld [vmem:[#allocation5 + $0x1ef8] sm:$0xff] }
 0x5f6   :  { %11312 = vmatprep.subr.bf16.mxu1 %v15239_v1  ;;  %v15215_v28 = vcombine.high %v1176_v19, %v1180_v24  ;;  %v1040_v52 = vld [vmem:[#allocation5 + $0x1a98] sm:$0xff]  ;;  %v15214_v8 = vcombine.low %v1176_v19, %v1180_v24  ;;  %v16709_v24 = vld [vmem:[#allocation7] sm:$0xff] }
 0x5f7   :  { %11272 = vmatpush2.bf16.msra.mxu0 %v15110_v39  ;;  %v1044_v7 = vld [vmem:[#allocation5 + $0x1ab8] sm:$0xff] }
 0x5f8   :  { %11273 = vmatprep.subr.bf16.mxu0 %v15103_v16  ;;  %v1168_v36 = vld [vmem:[#allocation5 + $0x1e98] sm:$0xff]  ;;  %v15079_v29 = vcombine.high %v1040_v52, %v1044_v7  ;;  %v15078_v27 = vcombine.low %v1040_v52, %v1044_v7 }
 0x5f9   :  { %11313 = vmatpush2.bf16.msra.mxu1 %v15238_v58  ;;  %v1172_v44 = vld [vmem:[#allocation5 + $0x1eb8] sm:$0xff] }
 0x5fa   :  { %11314 = vmatprep.subr.bf16.mxu1 %v15231_v18  ;;  %v15207_v0 = vcombine.high %v1168_v36, %v1172_v44  ;;  %v1032_v57 = vld [vmem:[#allocation5 + $0x1a58] sm:$0xff]  ;;  %v15206_v48 = vcombine.low %v1168_v36, %v1172_v44 }
 0x5fb   :  { %11274 = vmatpush2.bf16.msra.mxu0 %v15102_v23  ;;  %v1036_v25 = vld [vmem:[#allocation5 + $0x1a78] sm:$0xff] }
 0x5fc   :  { %11275 = vmatprep.subr.bf16.mxu0 %v15095_v15  ;;  %v1160_v17 = vld [vmem:[#allocation5 + $0x1e58] sm:$0xff]  ;;  %v15071_v33 = vcombine.high %v1032_v57, %v1036_v25  ;;  %v15070_v3 = vcombine.low %v1032_v57, %v1036_v25  ;;  %v1757_v15 = vsub.s32 7, %v17165_v31 }
 0x5fd   :  { %11315 = vmatpush2.bf16.msra.mxu1 %v15230_v59  ;;  %v1164_v11 = vld [vmem:[#allocation5 + $0x1e78] sm:$0xff] }
 0x5fe   :  { %11316 = vmatprep.subr.bf16.mxu1 %v15223_v30  ;;  %v15199_v38 = vcombine.high %v1160_v17, %v1164_v11  ;;  %v1024_v60 = vld [vmem:[#allocation5 + $0x1a18] sm:$0xff]  ;;  %v15198_v46 = vcombine.low %v1160_v17, %v1164_v11  ;;  %v1758_v52 = vrot.slane %v16709_v24, %v1757_v15 }
 0x5ff   :  { %11276 = vmatpush2.bf16.msra.mxu0 %v15094_v21  ;;  %v1028_v37 = vld [vmem:[#allocation5 + $0x1a38] sm:$0xff]  ;;  %v1754_v21 = vrot.slane %v16709_v24, %v1753_v12 }
 0x600   :  { %11277 = vmatprep.subr.bf16.mxu0 %v15087_v22  ;;  %v1152_v1 = vld [vmem:[#allocation5 + $0x1e18] sm:$0xff]  ;;  %v15063_v61 = vcombine.high %v1024_v60, %v1028_v37  ;;  %v15062_v6 = vcombine.low %v1024_v60, %v1028_v37 }
 0x601   :  { %11317 = vmatpush2.bf16.msra.mxu1 %v15222_v63  ;;  %v1156_v42 = vld [vmem:[#allocation5 + $0x1e38] sm:$0xff] }
 0x602   :  { %11318 = vmatprep.subr.bf16.mxu1 %v15215_v28  ;;  %v15191_v39 = vcombine.high %v1152_v1, %v1156_v42  ;;  %v1272_v58 = vld [vmem:[#allocation5 + $0x21d8] sm:$0xff]  ;;  %v15190_v20 = vcombine.low %v1152_v1, %v1156_v42 }
 0x603   :  { %11278 = vmatpush2.bf16.msra.mxu0 %v15086_v56  ;;  %v1276_v16 = vld [vmem:[#allocation5 + $0x21f8] sm:$0xff] }
 0x604   :  { %11279 = vmatprep.subr.bf16.mxu0 %v15079_v29  ;;  %v1400_v18 = vld [vmem:[#allocation5 + $0x25d8] sm:$0xff]  ;;  %v15311_v23 = vcombine.high %v1272_v58, %v1276_v16  ;;  %v15310_v63 = vcombine.low %v1272_v58, %v1276_v16 }
 0x605   :  { %11319 = vmatpush2.bf16.msra.mxu1 %v15214_v8  ;;  %v1404_v40 = vld [vmem:[#allocation5 + $0x25f8] sm:$0xff] }
 0x606   :  { %11320 = vmatprep.subr.bf16.mxu1 %v15207_v0  ;;  %v15439_v59 = vcombine.high %v1400_v18, %v1404_v40  ;;  %v1264_v30 = vld [vmem:[#allocation5 + $0x2198] sm:$0xff]  ;;  %v15438_v22 = vcombine.low %v1400_v18, %v1404_v40 }
 0x607   :  { %11280 = vmatpush2.bf16.msra.mxu0 %v15078_v27  ;;  %v1268_v14 = vld [vmem:[#allocation5 + $0x21b8] sm:$0xff] }
 0x608   :  { %11281 = vmatprep.subr.bf16.mxu0 %v15071_v33  ;;  %v1392_v45 = vld [vmem:[#allocation5 + $0x2598] sm:$0xff]  ;;  %v15303_v28 = vcombine.high %v1264_v30, %v1268_v14  ;;  %v15302_v25 = vcombine.low %v1264_v30, %v1268_v14 }
 0x609   :  { %11321 = vmatpush2.bf16.msra.mxu1 %v15206_v48  ;;  %v1396_v19 = vld [vmem:[#allocation5 + $0x25b8] sm:$0xff] }
 0x60a   :  { %11322 = vmatprep.subr.bf16.mxu1 %v15199_v38  ;;  %v15431_v7 = vcombine.high %v1392_v45, %v1396_v19  ;;  %v1256_v36 = vld [vmem:[#allocation5 + $0x2158] sm:$0xff]  ;;  %v15430_v11 = vcombine.low %v1392_v45, %v1396_v19 }
 0x60b   :  { %11282 = vmatpush2.bf16.msra.mxu0 %v15070_v3  ;;  %v1260_v44 = vld [vmem:[#allocation5 + $0x2178] sm:$0xff] }
 0x60c   :  { %11283 = vmatprep.subr.bf16.mxu0 %v15063_v61  ;;  %v1384_v8 = vld [vmem:[#allocation5 + $0x2558] sm:$0xff]  ;;  %v15295_v27 = vcombine.high %v1256_v36, %v1260_v44  ;;  %v15294_v61 = vcombine.low %v1256_v36, %v1260_v44 }
 0x60d   :  { %11323 = vmatpush2.bf16.msra.mxu1 %v15198_v46  ;;  %v1388_v29 = vld [vmem:[#allocation5 + $0x2578] sm:$0xff] }
 0x60e   :  { %11324 = vmatprep.subr.bf16.mxu1 %v15191_v39  ;;  %v15423_v60 = vcombine.high %v1384_v8, %v1388_v29  ;;  %v1252_v37 = vld [vmem:[#allocation5 + $0x2138] sm:$0xff]  ;;  %v15422_v58 = vcombine.low %v1384_v8, %v1388_v29 }
 0x60f   :  { %11284 = vmatpush2.bf16.msra.mxu0 %v15062_v6  ;;  %v1376_v42 = vld [vmem:[#allocation5 + $0x2518] sm:$0xff] }
 0x610   :  { %11335 = vmatprep.subr.bf16.mxu0 %v15311_v23  ;;  %v1240_v6 = vld [vmem:[#allocation5 + $0x20d8] sm:$0xff] }
 0x611   :  { %11325 = vmatpush2.bf16.msra.mxu1 %v15190_v20  ;;  %v1368_v12 = vld [vmem:[#allocation5 + $0x24d8] sm:$0xff] }
 0x612   :  { %11376 = vmatprep.subr.bf16.mxu1 %v15439_v59  ;;  %v11041_v56 = vpop.f32.mrf.mxu0  ;;  %11286 = vmatmul.mubr.bf16.vlgmr.msra.gmra.mxu0 %v17175_v55  ;;  %v1248_v55 = vld [vmem:[#allocation5 + $0x2118] sm:$0xff] }
 0x613   :  { %v11042_v0 = vadd.f32 %v11041_v56, %v1754_v21  ;;  %11336 = vmatpush1.bf16.msra.mxu0 %v15310_v63  ;;  %11367 = vmatprep.mubr.bf16.mxu0 %v17189_v9  ;;  %v15287_v16 = vcombine.high %v1248_v55, %v1252_v37  ;;  %v1244_v9 = vld [vmem:[#allocation5 + $0x20f8] sm:$0xff]  ;;  %v15286_v23 = vcombine.low %v1248_v55, %v1252_v37 }
 0x614   :  { %v11082_v57 = vpop.f32.mrf.mxu1  ;;  %11327 = vmatmul.mubr.bf16.vlgmr.msra.gmra.mxu1 %v17182_v62  ;;  %v11043_v17 = vpop.f32.mrf.mxu0  ;;  %11337 = vmatprep.subr.bf16.mxu0 %v15303_v28  ;;  %v1380_v62 = vld [vmem:[#allocation5 + $0x2538] sm:$0xff]  ;;  %v15279_v59 = vcombine.high %v1240_v6, %v1244_v9  ;;  %v15278_v24 = vcombine.low %v1240_v6, %v1244_v9 }
 0x615   :  { %11377 = vmatpush1.bf16.msra.mxu1 %v15438_v22  ;;  %v17409_v48 = vadd.f32 %v11082_v57, %v11042_v0  ;;  %v11044_v33 = vadd.f32 %v11043_v17, %v1758_v52  ;;  %11408 = vmatprep.mubr.bf16.mxu1 %v17194_v13  ;;  %v15415_v40 = vcombine.high %v1376_v42, %v1380_v62  ;;  %v1372_v20 = vld [vmem:[#allocation5 + $0x24f8] sm:$0xff] }
 0x616   :  { %v11084_v38 = vpop.f32.mrf.mxu1  ;;  %11378 = vmatprep.subr.bf16.mxu1 %v15431_v7  ;;  %v11045_v1 = vpop.f32.mrf.mxu0  ;;  %v15414_v13 = vcombine.low %v1376_v42, %v1380_v62  ;;  %v15407_v15 = vcombine.high %v1368_v12, %v1372_v20  ;;  %v1232_v30 = vld [vmem:[#allocation5 + $0x2098] sm:$0xff]  ;;  %v15406_v21 = vcombine.low %v1368_v12, %v1372_v20 }
 0x617   :  { %v17413_v3 = vadd.f32 %v11084_v38, %v11044_v33  ;;  %11338 = vmatpush1.bf16.msra.mxu0 %v15302_v25  ;;  %v1236_v14 = vld [vmem:[#allocation5 + $0x20b8] sm:$0xff] }
 0x618   :  { %v11086_v46 = vpop.f32.mrf.mxu1  ;;  %v11046_v39 = vpop.f32.mrf.mxu0  ;;  %11339 = vmatprep.subr.bf16.mxu0 %v15295_v27  ;;  %v1360_v45 = vld [vmem:[#allocation5 + $0x2498] sm:$0xff]  ;;  %v15271_v63 = vcombine.high %v1232_v30, %v1236_v14  ;;  %v15270_v44 = vcombine.low %v1232_v30, %v1236_v14 }
 0x619   :  { %11379 = vmatpush1.bf16.msra.mxu1 %v15430_v11  ;;  %v1364_v19 = vld [vmem:[#allocation5 + $0x24b8] sm:$0xff] }
 0x61a   :  { %v11087_v18 = vpop.f32.mrf.mxu1  ;;  %11380 = vmatprep.subr.bf16.mxu1 %v15423_v60  ;;  %v15399_v22 = vcombine.high %v1360_v45, %v1364_v19  ;;  %v1224_v28 = vld [vmem:[#allocation5 + $0x2058] sm:$0xff]  ;;  %v15398_v56 = vcombine.low %v1360_v45, %v1364_v19 }
 0x61b   :  { %11340 = vmatpush1.bf16.msra.mxu0 %v15294_v61  ;;  %v1228_v52 = vld [vmem:[#allocation5 + $0x2078] sm:$0xff] }
 0x61c   :  { %11341 = vmatprep.subr.bf16.mxu0 %v15287_v16  ;;  %v1352_v7 = vld [vmem:[#allocation5 + $0x2458] sm:$0xff]  ;;  %v15263_v8 = vcombine.high %v1224_v28, %v1228_v52  ;;  %v15262_v11 = vcombine.low %v1224_v28, %v1228_v52 }
 0x61d   :  { %11381 = vmatpush1.bf16.msra.mxu1 %v15422_v58  ;;  %v1356_v36 = vld [vmem:[#allocation5 + $0x2478] sm:$0xff] }
 0x61e   :  { %11382 = vmatprep.subr.bf16.mxu1 %v15415_v40  ;;  %v15391_v29 = vcombine.high %v1352_v7, %v1356_v36  ;;  %v1216_v0 = vld [vmem:[#allocation5 + $0x2018] sm:$0xff]  ;;  %v15390_v27 = vcombine.low %v1352_v7, %v1356_v36 }
 0x61f   :  { %11342 = vmatpush1.bf16.msra.mxu0 %v15286_v23  ;;  %v1220_v57 = vld [vmem:[#allocation5 + $0x2038] sm:$0xff] }
 0x620   :  { %11343 = vmatprep.subr.bf16.mxu0 %v15279_v59  ;;  %v1344_v25 = vld [vmem:[#allocation5 + $0x2418] sm:$0xff]  ;;  %v15255_v33 = vcombine.high %v1216_v0, %v1220_v57  ;;  %v15254_v42 = vcombine.low %v1216_v0, %v1220_v57 }
 0x621   :  { %11383 = vmatpush1.bf16.msra.mxu1 %v15414_v13  ;;  %v1348_v17 = vld [vmem:[#allocation5 + $0x2438] sm:$0xff] }
 0x622   :  { %11384 = vmatprep.subr.bf16.mxu1 %v15407_v15  ;;  %v15383_v38 = vcombine.high %v1344_v25, %v1348_v17  ;;  %v1336_v60 = vld [vmem:[#allocation5 + $0x23d8] sm:$0xff]  ;;  %v15382_v62 = vcombine.low %v1344_v25, %v1348_v17 }
 0x623   :  { %11344 = vmatpush1.bf16.msra.mxu0 %v15278_v24  ;;  %v1340_v55 = vld [vmem:[#allocation5 + $0x23f8] sm:$0xff] }
 0x624   :  { %11345 = vmatprep.subr.bf16.mxu0 %v15271_v63  ;;  %v1464_v37 = vld [vmem:[#allocation5 + $0x27d8] sm:$0xff]  ;;  %v15375_v46 = vcombine.high %v1336_v60, %v1340_v55  ;;  %v15374_v40 = vcombine.low %v1336_v60, %v1340_v55 }
 0x625   :  { %11385 = vmatpush1.bf16.msra.mxu1 %v15406_v21  ;;  %v1468_v1 = vld [vmem:[#allocation5 + $0x27f8] sm:$0xff] }
 0x626   :  { %11386 = vmatprep.subr.bf16.mxu1 %v15399_v22  ;;  %v15503_v61 = vcombine.high %v1464_v37, %v1468_v1  ;;  %v1328_v39 = vld [vmem:[#allocation5 + $0x2398] sm:$0xff]  ;;  %v15502_v6 = vcombine.low %v1464_v37, %v1468_v1 }
 0x627   :  { %11346 = vmatpush1.bf16.msra.mxu0 %v15270_v44  ;;  %v1332_v58 = vld [vmem:[#allocation5 + $0x23b8] sm:$0xff] }
 0x628   :  { %11347 = vmatprep.subr.bf16.mxu0 %v15263_v8  ;;  %v1456_v16 = vld [vmem:[#allocation5 + $0x2798] sm:$0xff]  ;;  %v15367_v9 = vcombine.high %v1328_v39, %v1332_v58  ;;  %v15366_v15 = vcombine.low %v1328_v39, %v1332_v58 }
 0x629   :  { %11387 = vmatpush1.bf16.msra.mxu1 %v15398_v56  ;;  %v1460_v18 = vld [vmem:[#allocation5 + $0x27b8] sm:$0xff] }
 0x62a   :  { %11388 = vmatprep.subr.bf16.mxu1 %v15391_v29  ;;  %v15495_v12 = vcombine.high %v1456_v16, %v1460_v18  ;;  %v1320_v20 = vld [vmem:[#allocation5 + $0x2358] sm:$0xff]  ;;  %v15494_v30 = vcombine.low %v1456_v16, %v1460_v18 }
 0x62b   :  { %11348 = vmatpush1.bf16.msra.mxu0 %v15262_v11  ;;  %v1324_v23 = vld [vmem:[#allocation5 + $0x2378] sm:$0xff] }
 0x62c   :  { %11349 = vmatprep.subr.bf16.mxu0 %v15255_v33  ;;  %v1448_v13 = vld [vmem:[#allocation5 + $0x2758] sm:$0xff]  ;;  %v15359_v14 = vcombine.high %v1320_v20, %v1324_v23  ;;  %v15358_v22 = vcombine.low %v1320_v20, %v1324_v23 }
 0x62d   :  { %11389 = vmatpush1.bf16.msra.mxu1 %v15390_v27  ;;  %v1452_v59 = vld [vmem:[#allocation5 + $0x2778] sm:$0xff] }
 0x62e   :  { %11390 = vmatprep.subr.bf16.mxu1 %v15383_v38  ;;  %v15487_v45 = vcombine.high %v1448_v13, %v1452_v59  ;;  %v1312_v19 = vld [vmem:[#allocation5 + $0x2318] sm:$0xff]  ;;  %v15486_v28 = vcombine.low %v1448_v13, %v1452_v59 }
 0x62f   :  { %11350 = vmatpush1.bf16.msra.mxu0 %v15254_v42  ;;  %v1316_v24 = vld [vmem:[#allocation5 + $0x2338] sm:$0xff] }
 0x630   :  { %11351 = vmatprep.subr.bf16.mxu0 %v15375_v46  ;;  %v1440_v21 = vld [vmem:[#allocation5 + $0x2718] sm:$0xff]  ;;  %v15351_v52 = vcombine.high %v1312_v19, %v1316_v24  ;;  %v15350_v29 = vcombine.low %v1312_v19, %v1316_v24 }
 0x631   :  { %11391 = vmatpush1.bf16.msra.mxu1 %v15382_v62  ;;  %v1444_v63 = vld [vmem:[#allocation5 + $0x2738] sm:$0xff] }
 0x632   :  { %11392 = vmatprep.subr.bf16.mxu1 %v15503_v61  ;;  %v15479_v7 = vcombine.high %v1440_v21, %v1444_v63  ;;  %v1304_v36 = vld [vmem:[#allocation5 + $0x22d8] sm:$0xff]  ;;  %v15478_v0 = vcombine.low %v1440_v21, %v1444_v63 }
 0x633   :  { %11352 = vmatpush2.bf16.msra.mxu0 %v15374_v40  ;;  %v1308_v44 = vld [vmem:[#allocation5 + $0x22f8] sm:$0xff] }
 0x634   :  { %11353 = vmatprep.subr.bf16.mxu0 %v15367_v9  ;;  %v1432_v56 = vld [vmem:[#allocation5 + $0x26d8] sm:$0xff]  ;;  %v15343_v57 = vcombine.high %v1304_v36, %v1308_v44  ;;  %v15342_v38 = vcombine.low %v1304_v36, %v1308_v44 }
 0x635   :  { %11393 = vmatpush2.bf16.msra.mxu1 %v15502_v6  ;;  %v1436_v8 = vld [vmem:[#allocation5 + $0x26f8] sm:$0xff] }
 0x636   :  { %11394 = vmatprep.subr.bf16.mxu1 %v15495_v12  ;;  %v15471_v25 = vcombine.high %v1432_v56, %v1436_v8  ;;  %v1296_v17 = vld [vmem:[#allocation5 + $0x2298] sm:$0xff]  ;;  %v15470_v60 = vcombine.low %v1432_v56, %v1436_v8 }
 0x637   :  { %11354 = vmatpush2.bf16.msra.mxu0 %v15366_v15  ;;  %v1300_v11 = vld [vmem:[#allocation5 + $0x22b8] sm:$0xff] }
 0x638   :  { %11355 = vmatprep.subr.bf16.mxu0 %v15359_v14  ;;  %v1424_v27 = vld [vmem:[#allocation5 + $0x2698] sm:$0xff]  ;;  %v15335_v55 = vcombine.high %v1296_v17, %v1300_v11  ;;  %v15334_v61 = vcombine.low %v1296_v17, %v1300_v11 }
 0x639   :  { %11395 = vmatpush2.bf16.msra.mxu1 %v15494_v30  ;;  %v1428_v33 = vld [vmem:[#allocation5 + $0x26b8] sm:$0xff] }
 0x63a   :  { %11396 = vmatprep.subr.bf16.mxu1 %v15487_v45  ;;  %v15463_v37 = vcombine.high %v1424_v27, %v1428_v33  ;;  %v1288_v1 = vld [vmem:[#allocation5 + $0x2258] sm:$0xff]  ;;  %v15462_v39 = vcombine.low %v1424_v27, %v1428_v33 }
 0x63b   :  { %11356 = vmatpush2.bf16.msra.mxu0 %v15358_v22  ;;  %v1292_v42 = vld [vmem:[#allocation5 + $0x2278] sm:$0xff] }
 0x63c   :  { %11357 = vmatprep.subr.bf16.mxu0 %v15351_v52  ;;  %v1416_v62 = vld [vmem:[#allocation5 + $0x2658] sm:$0xff]  ;;  %v15327_v58 = vcombine.high %v1288_v1, %v1292_v42  ;;  %v15326_v12 = vcombine.low %v1288_v1, %v1292_v42 }
 0x63d   :  { %11397 = vmatpush2.bf16.msra.mxu1 %v15486_v28  ;;  %v1420_v46 = vld [vmem:[#allocation5 + $0x2678] sm:$0xff] }
 0x63e   :  { %11398 = vmatprep.subr.bf16.mxu1 %v15479_v7  ;;  %v15455_v16 = vcombine.high %v1416_v62, %v1420_v46  ;;  %v1280_v18 = vld [vmem:[#allocation5 + $0x2218] sm:$0xff]  ;;  %v15454_v20 = vcombine.low %v1416_v62, %v1420_v46 }
 0x63f   :  { %11358 = vmatpush2.bf16.msra.mxu0 %v15350_v29  ;;  %v1284_v40 = vld [vmem:[#allocation5 + $0x2238] sm:$0xff] }
 0x640   :  { %11359 = vmatprep.subr.bf16.mxu0 %v15343_v57  ;;  %v1408_v6 = vld [vmem:[#allocation5 + $0x2618] sm:$0xff]  ;;  %v15319_v23 = vcombine.high %v1280_v18, %v1284_v40  ;;  %v15318_v45 = vcombine.low %v1280_v18, %v1284_v40 }
 0x641   :  { %11399 = vmatpush2.bf16.msra.mxu1 %v15478_v0  ;;  %v1412_v9 = vld [vmem:[#allocation5 + $0x2638] sm:$0xff] }
 0x642   :  { %11400 = vmatprep.subr.bf16.mxu1 %v15471_v25  ;;  %v15447_v13 = vcombine.high %v1408_v6, %v1412_v9  ;;  %v1528_v59 = vld [vmem:[#allocation5 + $0x29d8] sm:$0xff]  ;;  %v15446_v19 = vcombine.low %v1408_v6, %v1412_v9 }
 0x643   :  { %11360 = vmatpush2.bf16.msra.mxu0 %v15342_v38  ;;  %v1532_v15 = vld [vmem:[#allocation5 + $0x29f8] sm:$0xff] }
 0x644   :  { %11361 = vmatprep.subr.bf16.mxu0 %v15335_v55  ;;  %v1656_v30 = vld [vmem:[#allocation5 + $0x2dd8] sm:$0xff]  ;;  %v15567_v24 = vcombine.high %v1528_v59, %v1532_v15  ;;  %v15566_v7 = vcombine.low %v1528_v59, %v1532_v15 }
 0x645   :  { %11401 = vmatpush2.bf16.msra.mxu1 %v15470_v60  ;;  %v1660_v14 = vld [vmem:[#allocation5 + $0x2df8] sm:$0xff] }
 0x646   :  { %11402 = vmatprep.subr.bf16.mxu1 %v15463_v37  ;;  %v15695_v21 = vcombine.high %v1656_v30, %v1660_v14  ;;  %v1520_v63 = vld [vmem:[#allocation5 + $0x2998] sm:$0xff]  ;;  %v15694_v36 = vcombine.low %v1656_v30, %v1660_v14 }
 0x647   :  { %11362 = vmatpush2.bf16.msra.mxu0 %v15334_v61  ;;  %v1524_v22 = vld [vmem:[#allocation5 + $0x29b8] sm:$0xff] }
 0x648   :  { %11363 = vmatprep.subr.bf16.mxu0 %v15327_v58  ;;  %v1648_v28 = vld [vmem:[#allocation5 + $0x2d98] sm:$0xff]  ;;  %v15559_v44 = vcombine.high %v1520_v63, %v1524_v22  ;;  %v15558_v27 = vcombine.low %v1520_v63, %v1524_v22 }
 0x649   :  { %11403 = vmatpush2.bf16.msra.mxu1 %v15462_v39  ;;  %v1652_v52 = vld [vmem:[#allocation5 + $0x2db8] sm:$0xff] }
 0x64a   :  { %11404 = vmatprep.subr.bf16.mxu1 %v15455_v16  ;;  %v15687_v56 = vcombine.high %v1648_v28, %v1652_v52  ;;  %v1512_v8 = vld [vmem:[#allocation5 + $0x2958] sm:$0xff]  ;;  %v15686_v38 = vcombine.low %v1648_v28, %v1652_v52 }
 0x64b   :  { %11364 = vmatpush2.bf16.msra.mxu0 %v15326_v12  ;;  %v1516_v29 = vld [vmem:[#allocation5 + $0x2978] sm:$0xff] }
 0x64c   :  { %11365 = vmatprep.subr.bf16.mxu0 %v15319_v23  ;;  %v1640_v57 = vld [vmem:[#allocation5 + $0x2d58] sm:$0xff]  ;;  %v15551_v60 = vcombine.high %v1512_v8, %v1516_v29  ;;  %v15550_v58 = vcombine.low %v1512_v8, %v1516_v29 }
 0x64d   :  { %11405 = vmatpush2.bf16.msra.mxu1 %v15454_v20  ;;  %v1644_v25 = vld [vmem:[#allocation5 + $0x2d78] sm:$0xff] }
 0x64e   :  { %11406 = vmatprep.subr.bf16.mxu1 %v15447_v13  ;;  %v1504_v42 = vld [vmem:[#allocation5 + $0x2918] sm:$0xff] }
 0x64f   :  { %11366 = vmatpush2.bf16.msra.mxu0 %v15318_v45  ;;  %v1508_v62 = vld [vmem:[#allocation5 + $0x2938] sm:$0xff] }
 0x650   :  { %11417 = vmatprep.subr.bf16.mxu0 %v15567_v24  ;;  %v1636_v46 = vld [vmem:[#allocation5 + $0x2d38] sm:$0xff]  ;;  %v15543_v18 = vcombine.high %v1504_v42, %v1508_v62  ;;  %v15542_v23 = vcombine.low %v1504_v42, %v1508_v62 }
 0x651   :  { %11407 = vmatpush2.bf16.msra.mxu1 %v15446_v19  ;;  %v1496_v9 = vld [vmem:[#allocation5 + $0x28d8] sm:$0xff] }
 0x652   :  { %11458 = vmatprep.subr.bf16.mxu1 %v15695_v21  ;;  %v11123_v0 = vpop.f32.mrf.mxu0  ;;  %11368 = vmatmul.mubr.bf16.vlgmr.msra.gmra.mxu0 %v17205_v54  ;;  %v15679_v54 = vcombine.high %v1640_v57, %v1644_v25  ;;  %v1624_v12 = vld [vmem:[#allocation5 + $0x2cd8] sm:$0xff] }
 0x653   :  { %v11124_v17 = vadd.f32 %v11123_v0, %v17409_v48  ;;  %11418 = vmatpush1.bf16.msra.mxu0 %v15566_v7  ;;  %11449 = vmatprep.mubr.bf16.mxu0 %v17217_v47  ;;  %v1500_v47 = vld [vmem:[#allocation5 + $0x28f8] sm:$0xff] }
 0x654   :  { %v11164_v11 = vpop.f32.mrf.mxu1  ;;  %11409 = vmatmul.mubr.bf16.vlgmr.msra.gmra.mxu1 %v17211_v35  ;;  %v11125_v33 = vpop.f32.mrf.mxu0  ;;  %11419 = vmatprep.subr.bf16.mxu0 %v15559_v44  ;;  %v1632_v35 = vld [vmem:[#allocation5 + $0x2d18] sm:$0xff]  ;;  %v15535_v13 = vcombine.high %v1496_v9, %v1500_v47  ;;  %v15534_v19 = vcombine.low %v1496_v9, %v1500_v47 }
 0x655   :  { %11459 = vmatpush1.bf16.msra.mxu1 %v15694_v36  ;;  %v17418_v55 = vadd.f32 %v11164_v11, %v11124_v17  ;;  %v11126_v37 = vadd.f32 %v11125_v33, %v17413_v3  ;;  %11490 = vmatprep.mubr.bf16.mxu1 %v17222_v51  ;;  %v15678_v3 = vcombine.low %v1640_v57, %v1644_v25  ;;  %v1628_v20 = vld [vmem:[#allocation5 + $0x2cf8] sm:$0xff] }
 0x656   :  { %v11166_v1 = vpop.f32.mrf.mxu1  ;;  %11460 = vmatprep.subr.bf16.mxu1 %v15687_v56  ;;  %v11127_v48 = vpop.f32.mrf.mxu0  ;;  %v15671_v6 = vcombine.high %v1632_v35, %v1636_v46  ;;  %v15670_v51 = vcombine.low %v1632_v35, %v1636_v46  ;;  %v15663_v59 = vcombine.high %v1624_v12, %v1628_v20  ;;  %v1488_v15 = vld [vmem:[#allocation5 + $0x2898] sm:$0xff]  ;;  %v15662_v24 = vcombine.low %v1624_v12, %v1628_v20 }
 0x657   :  { %v17423_v61 = vadd.f32 %v11166_v1, %v11126_v37  ;;  %11420 = vmatpush1.bf16.msra.mxu0 %v15558_v27  ;;  %v1492_v30 = vld [vmem:[#allocation5 + $0x28b8] sm:$0xff] }
 0x658   :  { %v11168_v39 = vpop.f32.mrf.mxu1  ;;  %v11128_v16 = vpop.f32.mrf.mxu0  ;;  %11421 = vmatprep.subr.bf16.mxu0 %v15551_v60  ;;  %v1616_v14 = vld [vmem:[#allocation5 + $0x2c98] sm:$0xff]  ;;  %v15527_v21 = vcombine.high %v1488_v15, %v1492_v30  ;;  %v15526_v36 = vcombine.low %v1488_v15, %v1492_v30 }
 0x659   :  { %11461 = vmatpush1.bf16.msra.mxu1 %v15686_v38  ;;  %v1620_v45 = vld [vmem:[#allocation5 + $0x2cb8] sm:$0xff] }
 0x65a   :  { %v11169_v40 = vpop.f32.mrf.mxu1  ;;  %11462 = vmatprep.subr.bf16.mxu1 %v15679_v54  ;;  %v15655_v63 = vcombine.high %v1616_v14, %v1620_v45  ;;  %v1480_v22 = vld [vmem:[#allocation5 + $0x2858] sm:$0xff]  ;;  %v15654_v44 = vcombine.low %v1616_v14, %v1620_v45 }
 0x65b   :  { %11422 = vmatpush1.bf16.msra.mxu0 %v15550_v58  ;;  %v1484_v28 = vld [vmem:[#allocation5 + $0x2878] sm:$0xff] }
 0x65c   :  { %11423 = vmatprep.subr.bf16.mxu0 %v15543_v18  ;;  %v1608_v52 = vld [vmem:[#allocation5 + $0x2c58] sm:$0xff]  ;;  %v15519_v56 = vcombine.high %v1480_v22, %v1484_v28  ;;  %v15518_v17 = vcombine.low %v1480_v22, %v1484_v28 }
 0x65d   :  { %11463 = vmatpush1.bf16.msra.mxu1 %v15678_v3  ;;  %v1612_v7 = vld [vmem:[#allocation5 + $0x2c78] sm:$0xff] }
 0x65e   :  { %11464 = vmatprep.subr.bf16.mxu1 %v15671_v6  ;;  %v15647_v8 = vcombine.high %v1608_v52, %v1612_v7  ;;  %v1472_v29 = vld [vmem:[#allocation5 + $0x2818] sm:$0xff]  ;;  %v15646_v11 = vcombine.low %v1608_v52, %v1612_v7 }
 0x65f   :  { %11424 = vmatpush1.bf16.msra.mxu0 %v15542_v23  ;;  %v1476_v0 = vld [vmem:[#allocation5 + $0x2838] sm:$0xff] }
 0x660   :  { %11425 = vmatprep.subr.bf16.mxu0 %v15535_v13  ;;  %v1600_v57 = vld [vmem:[#allocation5 + $0x2c18] sm:$0xff]  ;;  %v15511_v27 = vcombine.high %v1472_v29, %v1476_v0  ;;  %v15510_v54 = vcombine.low %v1472_v29, %v1476_v0 }
 0x661   :  { %11465 = vmatpush1.bf16.msra.mxu1 %v15670_v51  ;;  %v1604_v25 = vld [vmem:[#allocation5 + $0x2c38] sm:$0xff] }
 0x662   :  { %11466 = vmatprep.subr.bf16.mxu1 %v15663_v59  ;;  %v15639_v33 = vcombine.high %v1600_v57, %v1604_v25  ;;  %v1592_v38 = vld [vmem:[#allocation5 + $0x2bd8] sm:$0xff]  ;;  %v15638_v42 = vcombine.low %v1600_v57, %v1604_v25 }
 0x663   :  { %11426 = vmatpush1.bf16.msra.mxu0 %v15534_v19  ;;  %v1596_v60 = vld [vmem:[#allocation5 + $0x2bf8] sm:$0xff] }
 0x664   :  { %11427 = vmatprep.subr.bf16.mxu0 %v15527_v21  ;;  %v1720_v37 = vld [vmem:[#allocation5 + $0x2fd8] sm:$0xff]  ;;  %v15631_v62 = vcombine.high %v1592_v38, %v1596_v60  ;;  %v15630_v16 = vcombine.low %v1592_v38, %v1596_v60 }
 0x665   :  { %11467 = vmatpush1.bf16.msra.mxu1 %v15662_v24  ;;  %v1724_v1 = vld [vmem:[#allocation5 + $0x2ff8] sm:$0xff] }
 0x666   :  { %11468 = vmatprep.subr.bf16.mxu1 %v15655_v63  ;;  %v15759_v48 = vcombine.high %v1720_v37, %v1724_v1  ;;  %v1584_v35 = vld [vmem:[#allocation5 + $0x2b98] sm:$0xff]  ;;  %v15758_v3 = vcombine.low %v1720_v37, %v1724_v1 }
 0x667   :  { %11428 = vmatpush1.bf16.msra.mxu0 %v15526_v36  ;;  %v1588_v46 = vld [vmem:[#allocation5 + $0x2bb8] sm:$0xff] }
 0x668   :  { %11429 = vmatprep.subr.bf16.mxu0 %v15519_v56  ;;  %v1712_v39 = vld [vmem:[#allocation5 + $0x2f98] sm:$0xff]  ;;  %v15623_v18 = vcombine.high %v1584_v35, %v1588_v46  ;;  %v15622_v20 = vcombine.low %v1584_v35, %v1588_v46 }
 0x669   :  { %11469 = vmatpush1.bf16.msra.mxu1 %v15654_v44  ;;  %v1716_v58 = vld [vmem:[#allocation5 + $0x2fb8] sm:$0xff] }
 0x66a   :  { %11470 = vmatprep.subr.bf16.mxu1 %v15647_v8  ;;  %v15751_v40 = vcombine.high %v1712_v39, %v1716_v58  ;;  %v1576_v6 = vld [vmem:[#allocation5 + $0x2b58] sm:$0xff]  ;;  %v15750_v23 = vcombine.low %v1712_v39, %v1716_v58 }
 0x66b   :  { %11430 = vmatpush1.bf16.msra.mxu0 %v15518_v17  ;;  %v1580_v9 = vld [vmem:[#allocation5 + $0x2b78] sm:$0xff] }
 0x66c   :  { %11431 = vmatprep.subr.bf16.mxu0 %v15511_v27  ;;  %v1704_v47 = vld [vmem:[#allocation5 + $0x2f58] sm:$0xff]  ;;  %v15615_v51 = vcombine.high %v1576_v6, %v1580_v9  ;;  %v15614_v45 = vcombine.low %v1576_v6, %v1580_v9 }
 0x66d   :  { %11471 = vmatpush1.bf16.msra.mxu1 %v15646_v11  ;;  %v1708_v12 = vld [vmem:[#allocation5 + $0x2f78] sm:$0xff] }
 0x66e   :  { %11472 = vmatprep.subr.bf16.mxu1 %v15639_v33  ;;  %v15743_v13 = vcombine.high %v1704_v47, %v1708_v12  ;;  %v1568_v59 = vld [vmem:[#allocation5 + $0x2b18] sm:$0xff]  ;;  %v15742_v19 = vcombine.low %v1704_v47, %v1708_v12  ;;  %v11500_v12 = vmax.f32 %v17279_v4, 0.0 }
 0x66f   :  { %11432 = vmatpush1.bf16.msra.mxu0 %v15510_v54  ;;  %v1572_v15 = vld [vmem:[#allocation5 + $0x2b38] sm:$0xff] }
 0x670   :  { %11433 = vmatprep.subr.bf16.mxu0 %v15631_v62  ;;  %v1696_v30 = vld [vmem:[#allocation5 + $0x2f18] sm:$0xff]  ;;  %v15607_v24 = vcombine.high %v1568_v59, %v1572_v15  ;;  %v15606_v7 = vcombine.low %v1568_v59, %v1572_v15  ;;  %v17427_v59 = vpack.c.bf16 %v11500_v12, %v11500_v12 }
 0x671   :  { %11473 = vmatpush1.bf16.msra.mxu1 %v15638_v42  ;;  %v1700_v14 = vld [vmem:[#allocation5 + $0x2f38] sm:$0xff] }
 0x672   :  { %11474 = vmatprep.subr.bf16.mxu1 %v15759_v48  ;;  %v15735_v21 = vcombine.high %v1696_v30, %v1700_v14  ;;  %v1560_v63 = vld [vmem:[#allocation5 + $0x2ad8] sm:$0xff]  ;;  %v15734_v36 = vcombine.low %v1696_v30, %v1700_v14 }
 0x673   :  { %11434 = vmatpush2.bf16.msra.mxu0 %v15630_v16  ;;  %v1564_v22 = vld [vmem:[#allocation5 + $0x2af8] sm:$0xff] }
 0x674   :  { %11435 = vmatprep.subr.bf16.mxu0 %v15623_v18  ;;  %v1688_v28 = vld [vmem:[#allocation5 + $0x2ed8] sm:$0xff]  ;;  %v15599_v44 = vcombine.high %v1560_v63, %v1564_v22  ;;  %v15598_v25 = vcombine.low %v1560_v63, %v1564_v22 }
 0x675   :  { %11475 = vmatpush2.bf16.msra.mxu1 %v15758_v3  ;;  %v1692_v52 = vld [vmem:[#allocation5 + $0x2ef8] sm:$0xff] }
 0x676   :  { %11476 = vmatprep.subr.bf16.mxu1 %v15751_v40  ;;  %v15727_v56 = vcombine.high %v1688_v28, %v1692_v52  ;;  %v1552_v8 = vld [vmem:[#allocation5 + $0x2a98] sm:$0xff]  ;;  %v15726_v17 = vcombine.low %v1688_v28, %v1692_v52 }
 0x677   :  { %11436 = vmatpush2.bf16.msra.mxu0 %v15622_v20  ;;  %v1556_v29 = vld [vmem:[#allocation5 + $0x2ab8] sm:$0xff]  ;;  %v11502_v20 = vmax.f32 %v17343_v53, 0.0 }
 0x678   :  { %11437 = vmatprep.subr.bf16.mxu0 %v15615_v51  ;;  %v1680_v0 = vld [vmem:[#allocation5 + $0x2e98] sm:$0xff]  ;;  %v15591_v11 = vcombine.high %v1552_v8, %v1556_v29  ;;  %v15590_v1 = vcombine.low %v1552_v8, %v1556_v29 }
 0x679   :  { %11477 = vmatpush2.bf16.msra.mxu1 %v15750_v23  ;;  %v1684_v57 = vld [vmem:[#allocation5 + $0x2eb8] sm:$0xff]  ;;  %v17430_v14 = vpack.c.bf16 %v11502_v20, %v11502_v20 }
 0x67a   :  { %11478 = vmatprep.subr.bf16.mxu1 %v15743_v13  ;;  %v15719_v27 = vcombine.high %v1680_v0, %v1684_v57  ;;  %v1544_v33 = vld [vmem:[#allocation5 + $0x2a58] sm:$0xff]  ;;  %v15718_v54 = vcombine.low %v1680_v0, %v1684_v57 }
 0x67b   :  { %11438 = vmatpush2.bf16.msra.mxu0 %v15614_v45  ;;  %v1548_v38 = vld [vmem:[#allocation5 + $0x2a78] sm:$0xff] }
 0x67c   :  { %11439 = vmatprep.subr.bf16.mxu0 %v15607_v24  ;;  %v1672_v60 = vld [vmem:[#allocation5 + $0x2e58] sm:$0xff]  ;;  %v15583_v42 = vcombine.high %v1544_v33, %v1548_v38  ;;  %v15582_v58 = vcombine.low %v1544_v33, %v1548_v38 }
 0x67d   :  { %11479 = vmatpush2.bf16.msra.mxu1 %v15742_v19  ;;  %v1676_v37 = vld [vmem:[#allocation5 + $0x2e78] sm:$0xff] }
 0x67e   :  { %11480 = vmatprep.subr.bf16.mxu1 %v15735_v21  ;;  %v15711_v62 = vcombine.high %v1672_v60, %v1676_v37  ;;  %v1536_v48 = vld [vmem:[#allocation5 + $0x2a18] sm:$0xff]  ;;  %v15710_v16 = vcombine.low %v1672_v60, %v1676_v37 }
 0x67f   :  { %11440 = vmatpush2.bf16.msra.mxu0 %v15606_v7  ;;  %v1540_v35 = vld [vmem:[#allocation5 + $0x2a38] sm:$0xff] }
 0x680   :  { %11441 = vmatprep.subr.bf16.mxu0 %v15599_v44  ;;  %v1664_v46 = vld [vmem:[#allocation5 + $0x2e18] sm:$0xff]  ;;  %v15575_v3 = vcombine.high %v1536_v48, %v1540_v35  ;;  %v15574_v40 = vcombine.low %v1536_v48, %v1540_v35 }
 0x681   :  { %11481 = vmatpush2.bf16.msra.mxu1 %v15734_v36  ;;  %v1668_v39 = vld [vmem:[#allocation5 + $0x2e38] sm:$0xff] }
 0x682   :  { %11482 = vmatprep.subr.bf16.mxu1 %v15727_v56  ;;  %v15703_v18 = vcombine.high %v1664_v46, %v1668_v39  ;;  %v15702_v6 = vcombine.low %v1664_v46, %v1668_v39  ;;  %v16205_v9 = vld [vmem:[#allocation8 + $0xe4] ss:$16 sps:$4 sm:$0xff]   ;;  %v16203_v23 = vld [vmem:[#allocation8 + $0xe0] ss:$16 sps:$4 sm:$0xff]  }
 0x683   :  { %11442 = vmatpush2.bf16.msra.mxu0 %v15598_v25  ;;  %v16208_v47 = vld [vmem:[#allocation8 + $0x2e4] ss:$16 sps:$4 sm:$0xff]   ;;  %v16206_v51 = vld [vmem:[#allocation8 + $0x2e0] ss:$16 sps:$4 sm:$0xff]  }
 0x684   :  { %11443 = vmatprep.subr.bf16.mxu0 %v15591_v11  ;;  %v16211_v13 = vld [vmem:[#allocation8 + $0xc4] ss:$16 sps:$4 sm:$0xff]   ;;  %v16209_v53 = vld [vmem:[#allocation8 + $0xc0] ss:$16 sps:$4 sm:$0xff]  }
 0x685   :  { %11483 = vmatpush2.bf16.msra.mxu1 %v15726_v17  ;;  %v16214_v30 = vld [vmem:[#allocation8 + $0x2c4] ss:$16 sps:$4 sm:$0xff]   ;;  %v16212_v24 = vld [vmem:[#allocation8 + $0x2c0] ss:$16 sps:$4 sm:$0xff]  }
 0x686   :  { %11484 = vmatprep.subr.bf16.mxu1 %v15719_v27  ;;  %v16217_v21 = vld [vmem:[#allocation8 + $0xa4] ss:$16 sps:$4 sm:$0xff]   ;;  %v16215_v7 = vld [vmem:[#allocation8 + $0xa0] ss:$16 sps:$4 sm:$0xff]  }
 0x687   :  { %11444 = vmatpush2.bf16.msra.mxu0 %v15590_v1  ;;  %v16218_v44 = vld [vmem:[#allocation8 + $0x2a0] ss:$16 sps:$4 sm:$0xff]   ;;  %v16223_v56 = vld [vmem:[#allocation8 + $0x84] ss:$16 sps:$4 sm:$0xff]  }
 0x688   :  { %11445 = vmatprep.subr.bf16.mxu0 %v15583_v42  ;;  %v16226_v29 = vld [vmem:[#allocation8 + $0x284] ss:$16 sps:$4 sm:$0xff]   ;;  %v16224_v0 = vld [vmem:[#allocation8 + $0x280] ss:$16 sps:$4 sm:$0xff]  }
 0x689   :  { %11485 = vmatpush2.bf16.msra.mxu1 %v15718_v54  ;;  %v16229_v57 = vld [vmem:[#allocation8 + $0x64] ss:$16 sps:$4 sm:$0xff]   ;;  %v16227_v17 = vld [vmem:[#allocation8 + $0x60] ss:$16 sps:$4 sm:$0xff]  }
 0x68a   :  { %11486 = vmatprep.subr.bf16.mxu1 %v15711_v62  ;;  %v16232_v25 = vld [vmem:[#allocation8 + $0x264] ss:$16 sps:$4 sm:$0xff]   ;;  %v16230_v11 = vld [vmem:[#allocation8 + $0x260] ss:$16 sps:$4 sm:$0xff]  }
 0x68b   :  { %11446 = vmatpush2.bf16.msra.mxu0 %v15582_v58  ;;  %v16235_v27 = vld [vmem:[#allocation8 + $0x44] ss:$16 sps:$4 sm:$0xff]   ;;  %v16233_v38 = vld [vmem:[#allocation8 + $0x40] ss:$16 sps:$4 sm:$0xff]  }
 0x68c   :  { %11447 = vmatprep.subr.bf16.mxu0 %v15575_v3  ;;  %v16238_v33 = vld [vmem:[#allocation8 + $0x244] ss:$16 sps:$4 sm:$0xff]   ;;  %v16236_v60 = vld [vmem:[#allocation8 + $0x240] ss:$16 sps:$4 sm:$0xff]  }
 0x68d   :  { %11487 = vmatpush2.bf16.msra.mxu1 %v15710_v16  ;;  %v16241_v37 = vld [vmem:[#allocation8 + $0x24] ss:$16 sps:$4 sm:$0xff]   ;;  %v16239_v54 = vld [vmem:[#allocation8 + $0x20] ss:$16 sps:$4 sm:$0xff]  }
 0x68e   :  { %11488 = vmatprep.subr.bf16.mxu1 %v15703_v18  ;;  %v16244_v1 = vld [vmem:[#allocation8 + $0x224] ss:$16 sps:$4 sm:$0xff]   ;;  %v16242_v42 = vld [vmem:[#allocation8 + $0x220] ss:$16 sps:$4 sm:$0xff]  }
 0x68f   :  { %11448 = vmatpush2.bf16.msra.mxu0 %v15574_v40  ;;  %v16247_v62 = vld [vmem:[#allocation8 + $0x4] ss:$16 sps:$4 sm:$0xff]   ;;  %v16245_v35 = vld [vmem:[#allocation8] ss:$16 sps:$4 sm:$0xff]  }
 0x690   :  { %13073 = vmatprep.subr.bf16.mxu0 %v16205_v9  ;;  %v16250_v48 = vld [vmem:[#allocation8 + $0x204] ss:$16 sps:$4 sm:$0xff]   ;;  %v16248_v46 = vld [vmem:[#allocation8 + $0x200] ss:$16 sps:$4 sm:$0xff]  }
 0x691   :  { %11489 = vmatpush2.bf16.msra.mxu1 %v15702_v6  ;;  %v16253_v39 = vld [vmem:[#allocation8 + $0x1e4] ss:$16 sps:$4 sm:$0xff]   ;;  %v16251_v16 = vld [vmem:[#allocation8 + $0x1e0] ss:$16 sps:$4 sm:$0xff]  }
 0x692   :  { %13114 = vmatprep.subr.bf16.mxu1 %v16208_v47  ;;  %v11205_v15 = vpop.f32.mrf.mxu0  ;;  %11450 = vmatmul.mubr.bf16.vlgmr.msra.gmra.mxu0 %v17235_v26  ;;  %v16256_v58 = vld [vmem:[#allocation8 + $0x3e4] ss:$16 sps:$4 sm:$0xff]   ;;  %v16254_v3 = vld [vmem:[#allocation8 + $0x3e0] ss:$16 sps:$4 sm:$0xff]  }
 0x693   :  { %v11206_v45 = vadd.f32 %v11205_v15, %v17418_v55  ;;  %13074 = vmatpush1.bf16.msra.mxu0 %v16203_v23  ;;  %13105 = vmatprep.mubr.bf16.mxu0 %v17427_v59  ;;  %v16220_v55 = vld [vmem:[#allocation8 + $0x2a4] ss:$16 sps:$4 sm:$0xff]   ;;  %v16257_v6 = vld [vmem:[#allocation8 + $0x1c0] ss:$16 sps:$4 sm:$0xff]  }
 0x694   :  { %v11246_v4 = vpop.f32.mrf.mxu1  ;;  %11491 = vmatmul.mubr.bf16.vlgmr.msra.gmra.mxu1 %v17239_v32  ;;  %v11207_v19 = vpop.f32.mrf.mxu0  ;;  %13075 = vmatprep.subr.bf16.mxu0 %v16211_v13  ;;  %v16259_v18 = vld [vmem:[#allocation8 + $0x1c4] ss:$16 sps:$4 sm:$0xff]   ;;  %v16260_v9 = vld [vmem:[#allocation8 + $0x3c0] ss:$16 sps:$4 sm:$0xff]  }
 0x695   :  { %13115 = vmatpush1.bf16.msra.mxu1 %v16206_v51  ;;  %v17435_v63 = vadd.f32 %v11246_v4, %v11206_v45  ;;  %13146 = vmatprep.mubr.bf16.mxu1 %v17430_v14  ;;  %v11208_v26 = vadd.f32 %v11207_v19, %v17423_v61  ;;  %v16221_v61 = vld [vmem:[#allocation8 + $0x80] ss:$16 sps:$4 sm:$0xff]   ;;  %v16262_v40 = vld [vmem:[#allocation8 + $0x3c4] ss:$16 sps:$4 sm:$0xff]  }
 0x696   :  { %v11248_v22 = vpop.f32.mrf.mxu1  ;;  %v11209_v28 = vpop.f32.mrf.mxu0  ;;  %13116 = vmatprep.subr.bf16.mxu1 %v16214_v30  ;;  %v16265_v47 = vld [vmem:[#allocation8 + $0x1a4] ss:$16 sps:$4 sm:$0xff]   ;;  %v16263_v20 = vld [vmem:[#allocation8 + $0x1a0] ss:$16 sps:$4 sm:$0xff]  }
 0x697   :  { %v17439_v32 = vadd.f32 %v11248_v22, %v11208_v26  ;;  %13076 = vmatpush1.bf16.msra.mxu0 %v16209_v53  ;;  %v16268_v12 = vld [vmem:[#allocation8 + $0x3a4] ss:$16 sps:$4 sm:$0xff]   ;;  %v16266_v23 = vld [vmem:[#allocation8 + $0x3a0] ss:$16 sps:$4 sm:$0xff]  }
 0x698   :  { %v11250_v52 = vpop.f32.mrf.mxu1  ;;  %v11210_v36 = vpop.f32.mrf.mxu0  ;;  %13077 = vmatprep.subr.bf16.mxu0 %v16217_v21  ;;  %v16271_v51 = vld [vmem:[#allocation8 + $0x184] ss:$16 sps:$4 sm:$0xff]   ;;  %v16269_v15 = vld [vmem:[#allocation8 + $0x180] ss:$16 sps:$4 sm:$0xff]  }
 0x699   :  { %13117 = vmatpush1.bf16.msra.mxu1 %v16212_v24  ;;  %v16274_v13 = vld [vmem:[#allocation8 + $0x384] ss:$16 sps:$4 sm:$0xff]   ;;  %v16272_v30 = vld [vmem:[#allocation8 + $0x380] ss:$16 sps:$4 sm:$0xff]  }
 0x69a   :  { %v11251_v8 = vpop.f32.mrf.mxu1  ;;  %13118 = vmatprep.subr.bf16.mxu1 %v16220_v55  ;;  %v16277_v45 = vld [vmem:[#allocation8 + $0x164] ss:$16 sps:$4 sm:$0xff]   ;;  %v16275_v53 = vld [vmem:[#allocation8 + $0x160] ss:$16 sps:$4 sm:$0xff]  }
 0x69b   :  { %13078 = vmatpush1.bf16.msra.mxu0 %v16215_v7  ;;  %v16280_v4 = vld [vmem:[#allocation8 + $0x364] ss:$16 sps:$4 sm:$0xff]   ;;  %v16278_v19 = vld [vmem:[#allocation8 + $0x360] ss:$16 sps:$4 sm:$0xff]   ;;  %v11499_v8 = vmax.f32 %v17274_v49, 0.0 }
 0x69c   :  { %13079 = vmatprep.subr.bf16.mxu0 %v16223_v56  ;;  %v16283_v24 = vld [vmem:[#allocation8 + $0x144] ss:$16 sps:$4 sm:$0xff]   ;;  %v16281_v26 = vld [vmem:[#allocation8 + $0x140] ss:$16 sps:$4 sm:$0xff]  }
 0x69d   :  { %13119 = vmatpush1.bf16.msra.mxu1 %v16218_v44  ;;  %v16286_v21 = vld [vmem:[#allocation8 + $0x344] ss:$16 sps:$4 sm:$0xff]   ;;  %v16284_v22 = vld [vmem:[#allocation8 + $0x340] ss:$16 sps:$4 sm:$0xff]  }
 0x69e   :  { %13120 = vmatprep.subr.bf16.mxu1 %v16226_v29  ;;  %v16289_v55 = vld [vmem:[#allocation8 + $0x124] ss:$16 sps:$4 sm:$0xff]   ;;  %v16287_v52 = vld [vmem:[#allocation8 + $0x120] ss:$16 sps:$4 sm:$0xff]  }
 0x69f   :  { %13080 = vmatpush1.bf16.msra.mxu0 %v16221_v61  ;;  %v16292_v28 = vld [vmem:[#allocation8 + $0x324] ss:$16 sps:$4 sm:$0xff]   ;;  %v16290_v7 = vld [vmem:[#allocation8 + $0x320] ss:$16 sps:$4 sm:$0xff]  }
 0x6a0   :  { %13081 = vmatprep.subr.bf16.mxu0 %v16229_v57  ;;  %v16295_v36 = vld [vmem:[#allocation8 + $0x104] ss:$16 sps:$4 sm:$0xff]   ;;  %v16293_v56 = vld [vmem:[#allocation8 + $0x100] ss:$16 sps:$4 sm:$0xff]  }
 0x6a1   :  { %13121 = vmatpush1.bf16.msra.mxu1 %v16224_v0  ;;  %v16298_v44 = vld [vmem:[#allocation8 + $0x304] ss:$16 sps:$4 sm:$0xff]   ;;  %v16296_v29 = vld [vmem:[#allocation8 + $0x300] ss:$16 sps:$4 sm:$0xff]   ;;  %v11501_v0 = vmax.f32 %v17338_v41, 0.0 }
 0x6a2   :  { %13122 = vmatprep.subr.bf16.mxu1 %v16232_v25  ;;  %v16301_v61 = vld [vmem:[#allocation8 + $0x4e4] ss:$16 sps:$4 sm:$0xff]   ;;  %v11504_v25 = vmax.f32 %v17403_v34, 0.0  ;;  %v16356_v49 = vld [vmem:[#allocation8 + $0x6e0] ss:$16 sps:$4 sm:$0xff]  }
 0x6a3   :  { %13082 = vmatpush1.bf16.msra.mxu0 %v16227_v17  ;;  %v16358_v57 = vld [vmem:[#allocation8 + $0x6e4] ss:$16 sps:$4 sm:$0xff]   ;;  %v16299_v17 = vld [vmem:[#allocation8 + $0x4e0] ss:$16 sps:$4 sm:$0xff]  }
 0x6a4   :  { %13083 = vmatprep.subr.bf16.mxu0 %v16235_v27  ;;  %v16304_v27 = vld [vmem:[#allocation8 + $0x4c4] ss:$16 sps:$4 sm:$0xff]  }
 0x6a5   :  { %13123 = vmatpush1.bf16.msra.mxu1 %v16230_v11  ;;  %v17444_v11 = vpack.c.bf16 %v11499_v8, %v11499_v8  ;;  %v16364_v41 = vld [vmem:[#allocation8 + $0x6c4] ss:$16 sps:$4 sm:$0xff]  }
 0x6a6   :  { %13124 = vmatprep.subr.bf16.mxu1 %v16238_v33  ;;  %v17446_v33 = vpack.c.bf16 %v11501_v0, %v11501_v0  ;;  %v16412_v8 = vld [vmem:[#allocation8 + $0x7c4] ss:$16 sps:$4 sm:$0xff]   ;;  %v16410_v0 = vld [vmem:[#allocation8 + $0x7c0] ss:$16 sps:$4 sm:$0xff]  }
 0x6a7   :  { %13084 = vmatpush1.bf16.msra.mxu0 %v16233_v38  ;;  %v17448_v38 = vpack.c.bf16 %v11504_v25, %v11504_v25  ;;  %v16329_v25 = vld [vmem:[#allocation8 + $0x5a0] ss:$16 sps:$4 sm:$0xff]  }
 0x6a8   :  { %13085 = vmatprep.subr.bf16.mxu0 %v16241_v37  ;;  %v16687_v31 = vld [vmem:[#allocation14 + $0x68] sm:$0xff]  }
 0x6a9   :  { %13125 = vmatpush1.bf16.msra.mxu1 %v16236_v60 }
 0x6aa   :  { %13126 = vmatprep.subr.bf16.mxu1 %v16244_v1  ;;  %v16302_v1 = vld [vmem:[#allocation8 + $0x4c0] ss:$16 sps:$4 sm:$0xff]  }
 0x6ab   :  { %13086 = vmatpush1.bf16.msra.mxu0 %v16239_v54 }
 0x6ac   :  { %13087 = vmatprep.subr.bf16.mxu0 %v16247_v62 }
 0x6ad   :  { %13127 = vmatpush1.bf16.msra.mxu1 %v16242_v42  ;;  %v16307_v42 = vld [vmem:[#allocation8 + $0x4a4] ss:$16 sps:$4 sm:$0xff]  }
 0x6ae   :  { %13128 = vmatprep.subr.bf16.mxu1 %v16250_v48 }
 0x6af   :  { %13088 = vmatpush1.bf16.msra.mxu0 %v16245_v35 }
 0x6b0   :  { %13089 = vmatprep.subr.bf16.mxu0 %v16253_v39 }
 0x6b1   :  { %13129 = vmatpush1.bf16.msra.mxu1 %v16248_v46  ;;  %v16362_v46 = vld [vmem:[#allocation8 + $0x6c0] ss:$16 sps:$4 sm:$0xff]  }
 0x6b2   :  { %13130 = vmatprep.subr.bf16.mxu1 %v16256_v58 }
 0x6b3   :  { %13090 = vmatpush2.bf16.msra.mxu0 %v16251_v16 }
 0x6b4   :  { %13091 = vmatprep.subr.bf16.mxu0 %v16259_v18 }
 0x6b5   :  { %13131 = vmatpush2.bf16.msra.mxu1 %v16254_v3  ;;  %v16305_v3 = vld [vmem:[#allocation8 + $0x4a0] ss:$16 sps:$4 sm:$0xff]  }
 0x6b6   :  { %13132 = vmatprep.subr.bf16.mxu1 %v16262_v40  ;;  %v16310_v40 = vld [vmem:[#allocation8 + $0x484] ss:$16 sps:$4 sm:$0xff]  }
 0x6b7   :  { %13092 = vmatpush2.bf16.msra.mxu0 %v16257_v6 }
 0x6b8   :  { %13093 = vmatprep.subr.bf16.mxu0 %v16265_v47  ;;  %v16376_v47 = vld [vmem:[#allocation8 + $0x684] ss:$16 sps:$4 sm:$0xff]  }
 0x6b9   :  { %13133 = vmatpush2.bf16.msra.mxu1 %v16260_v9  ;;  %v16368_v9 = vld [vmem:[#allocation8 + $0x6a0] ss:$16 sps:$4 sm:$0xff]  }
 0x6ba   :  { %13134 = vmatprep.subr.bf16.mxu1 %v16268_v12  ;;  %v16313_v12 = vld [vmem:[#allocation8 + $0x464] ss:$16 sps:$4 sm:$0xff]  }
 0x6bb   :  { %13094 = vmatpush2.bf16.msra.mxu0 %v16263_v20  ;;  %v16374_v20 = vld [vmem:[#allocation8 + $0x680] ss:$16 sps:$4 sm:$0xff]  }
 0x6bc   :  { %13095 = vmatprep.subr.bf16.mxu0 %v16271_v51  ;;  %v16311_v51 = vld [vmem:[#allocation8 + $0x460] ss:$16 sps:$4 sm:$0xff]  }
 0x6bd   :  { %13135 = vmatpush2.bf16.msra.mxu1 %v16266_v23  ;;  %v16382_v23 = vld [vmem:[#allocation8 + $0x664] ss:$16 sps:$4 sm:$0xff]  }
 0x6be   :  { %13136 = vmatprep.subr.bf16.mxu1 %v16274_v13  ;;  %v16316_v13 = vld [vmem:[#allocation8 + $0x444] ss:$16 sps:$4 sm:$0xff]  }
 0x6bf   :  { %13096 = vmatpush2.bf16.msra.mxu0 %v16269_v15  ;;  %v16380_v15 = vld [vmem:[#allocation8 + $0x660] ss:$16 sps:$4 sm:$0xff]  }
 0x6c0   :  { %13097 = vmatprep.subr.bf16.mxu0 %v16277_v45  ;;  %v16314_v45 = vld [vmem:[#allocation8 + $0x440] ss:$16 sps:$4 sm:$0xff]  }
 0x6c1   :  { %13137 = vmatpush2.bf16.msra.mxu1 %v16272_v30  ;;  %v16388_v30 = vld [vmem:[#allocation8 + $0x644] ss:$16 sps:$4 sm:$0xff]  }
 0x6c2   :  { %13138 = vmatprep.subr.bf16.mxu1 %v16280_v4  ;;  %v16319_v4 = vld [vmem:[#allocation8 + $0x424] ss:$16 sps:$4 sm:$0xff]  }
 0x6c3   :  { %13098 = vmatpush2.bf16.msra.mxu0 %v16275_v53  ;;  %v16386_v53 = vld [vmem:[#allocation8 + $0x640] ss:$16 sps:$4 sm:$0xff]  }
 0x6c4   :  { %13099 = vmatprep.subr.bf16.mxu0 %v16283_v24  ;;  %v16317_v24 = vld [vmem:[#allocation8 + $0x420] ss:$16 sps:$4 sm:$0xff]  }
 0x6c5   :  { %13139 = vmatpush2.bf16.msra.mxu1 %v16278_v19  ;;  %v16394_v19 = vld [vmem:[#allocation8 + $0x624] ss:$16 sps:$4 sm:$0xff]  }
 0x6c6   :  { %13140 = vmatprep.subr.bf16.mxu1 %v16286_v21  ;;  %v16322_v21 = vld [vmem:[#allocation8 + $0x404] ss:$16 sps:$4 sm:$0xff]  }
 0x6c7   :  { %13100 = vmatpush2.bf16.msra.mxu0 %v16281_v26  ;;  %v16392_v26 = vld [vmem:[#allocation8 + $0x620] ss:$16 sps:$4 sm:$0xff]  }
 0x6c8   :  { %13101 = vmatprep.subr.bf16.mxu0 %v16289_v55  ;;  %v16320_v55 = vld [vmem:[#allocation8 + $0x400] ss:$16 sps:$4 sm:$0xff]  }
 0x6c9   :  { %13141 = vmatpush2.bf16.msra.mxu1 %v16284_v22  ;;  %v16400_v22 = vld [vmem:[#allocation8 + $0x604] ss:$16 sps:$4 sm:$0xff]  }
 0x6ca   :  { %13142 = vmatprep.subr.bf16.mxu1 %v16292_v28  ;;  %v16325_v28 = vld [vmem:[#allocation8 + $0x5e4] ss:$16 sps:$4 sm:$0xff]  }
 0x6cb   :  { %13102 = vmatpush2.bf16.msra.mxu0 %v16287_v52  ;;  %v16398_v52 = vld [vmem:[#allocation8 + $0x600] ss:$16 sps:$4 sm:$0xff]  }
 0x6cc   :  { %13103 = vmatprep.subr.bf16.mxu0 %v16295_v36  ;;  %v16323_v36 = vld [vmem:[#allocation8 + $0x5e0] ss:$16 sps:$4 sm:$0xff]  }
 0x6cd   :  { %13143 = vmatpush2.bf16.msra.mxu1 %v16290_v7  ;;  %v16406_v7 = vld [vmem:[#allocation8 + $0x7e4] ss:$16 sps:$4 sm:$0xff]  }
 0x6ce   :  { %13144 = vmatprep.subr.bf16.mxu1 %v16298_v44  ;;  %v16328_v44 = vld [vmem:[#allocation8 + $0x5c4] ss:$16 sps:$4 sm:$0xff]  }
 0x6cf   :  { %13104 = vmatpush2.bf16.msra.mxu0 %v16293_v56  ;;  %v16404_v56 = vld [vmem:[#allocation8 + $0x7e0] ss:$16 sps:$4 sm:$0xff]  }
 0x6d0   :  { %13155 = vmatprep.subr.bf16.mxu0 %v16301_v61  ;;  %v16331_v61 = vld [vmem:[#allocation8 + $0x5a4] ss:$16 sps:$4 sm:$0xff]  }
 0x6d1   :  { %13145 = vmatpush2.bf16.msra.mxu1 %v16296_v29  ;;  %v16326_v29 = vld [vmem:[#allocation8 + $0x5c0] ss:$16 sps:$4 sm:$0xff]  }
 0x6d2   :  { %13196 = vmatprep.subr.bf16.mxu1 %v16358_v57  ;;  %v11287_v60 = vpop.f32.mrf.mxu0  ;;  %13106 = vmatmul.mubr.bf16.vlgmr.msra.gmra.mxu0 %v17444_v11  ;;  %v16418_v57 = vld [vmem:[#allocation8 + $0x7a4] ss:$16 sps:$4 sm:$0xff]  }
 0x6d3   :  { %v11288_v37 = vadd.f32 %v11287_v60, %v17435_v63  ;;  %13156 = vmatpush1.bf16.msra.mxu0 %v16299_v17  ;;  %13187 = vmatprep.mubr.bf16.mxu0 %v17448_v38  ;;  %v16370_v63 = vld [vmem:[#allocation8 + $0x6a4] ss:$16 sps:$4 sm:$0xff]   ;;  %v16332_v60 = vld [vmem:[#allocation8 + $0x580] ss:$16 sps:$4 sm:$0xff]  }
 0x6d4   :  { %v11328_v34 = vpop.f32.mrf.mxu1  ;;  %13147 = vmatmul.mubr.bf16.vlgmr.msra.gmra.mxu1 %v17446_v33  ;;  %v11289_v54 = vpop.f32.mrf.mxu0  ;;  %13157 = vmatprep.subr.bf16.mxu0 %v16304_v27  ;;  %v16334_v17 = vld [vmem:[#allocation8 + $0x584] ss:$16 sps:$4 sm:$0xff]   ;;  %v16416_v27 = vld [vmem:[#allocation8 + $0x7a0] ss:$16 sps:$4 sm:$0xff]  }
 0x6d5   :  { %v17454_v62 = vadd.f32 %v11328_v34, %v11288_v37  ;;  %v11290_v48 = vadd.f32 %v11289_v54, %v17439_v32  ;;  %13197 = vmatpush1.bf16.msra.mxu1 %v16356_v49  ;;  %v16308_v32 = vld [vmem:[#allocation8 + $0x480] ss:$16 sps:$4 sm:$0xff]   ;;  %v16424_v49 = vld [vmem:[#allocation8 + $0x784] ss:$16 sps:$4 sm:$0xff]  }
 0x6d6   :  { %v11330_v35 = vpop.f32.mrf.mxu1  ;;  %v11291_v39 = vpop.f32.mrf.mxu0  ;;  %13198 = vmatprep.subr.bf16.mxu1 %v16364_v41  ;;  %v16337_v41 = vld [vmem:[#allocation8 + $0x564] ss:$16 sps:$4 sm:$0xff]   ;;  %v16422_v37 = vld [vmem:[#allocation8 + $0x780] ss:$16 sps:$4 sm:$0xff]  }
 0x6d7   :  { %v17457_v58 = vadd.f32 %v11330_v35, %v11290_v48  ;;  %13158 = vmatpush1.bf16.msra.mxu0 %v16302_v1  ;;  %v16430_v34 = vld [vmem:[#allocation8 + $0x764] ss:$16 sps:$4 sm:$0xff]   ;;  %v16335_v1 = vld [vmem:[#allocation8 + $0x560] ss:$16 sps:$4 sm:$0xff]  }
 0x6d8   :  { %v11332_v16 = vpop.f32.mrf.mxu1  ;;  %v11292_v18 = vpop.f32.mrf.mxu0  ;;  %13159 = vmatprep.subr.bf16.mxu0 %v16307_v42  ;;  %v16340_v54 = vld [vmem:[#allocation8 + $0x544] ss:$16 sps:$4 sm:$0xff]   ;;  %v16428_v42 = vld [vmem:[#allocation8 + $0x760] ss:$16 sps:$4 sm:$0xff]  }
 0x6d9   :  { %13199 = vmatpush1.bf16.msra.mxu1 %v16362_v46  ;;  %v16436_v48 = vld [vmem:[#allocation8 + $0x744] ss:$16 sps:$4 sm:$0xff]   ;;  %v16338_v35 = vld [vmem:[#allocation8 + $0x540] ss:$16 sps:$4 sm:$0xff]  }
 0x6da   :  { %v11333_v6 = vpop.f32.mrf.mxu1  ;;  %13200 = vmatprep.subr.bf16.mxu1 %v16370_v63  ;;  %v16343_v46 = vld [vmem:[#allocation8 + $0x524] ss:$16 sps:$4 sm:$0xff]   ;;  %v16434_v39 = vld [vmem:[#allocation8 + $0x740] ss:$16 sps:$4 sm:$0xff]  }
 0x6db   :  { %13160 = vmatpush1.bf16.msra.mxu0 %v16305_v3  ;;  %v16442_v63 = vld [vmem:[#allocation8 + $0x724] ss:$16 sps:$4 sm:$0xff]   ;;  %v16341_v16 = vld [vmem:[#allocation8 + $0x520] ss:$16 sps:$4 sm:$0xff]  }
 0x6dc   :  { %13161 = vmatprep.subr.bf16.mxu0 %v16310_v40  ;;  %v16346_v3 = vld [vmem:[#allocation8 + $0x504] ss:$16 sps:$4 sm:$0xff]   ;;  %v16440_v18 = vld [vmem:[#allocation8 + $0x720] ss:$16 sps:$4 sm:$0xff]  }
 0x6dd   :  { %13201 = vmatpush1.bf16.msra.mxu1 %v16368_v9  ;;  %v16448_v40 = vld [vmem:[#allocation8 + $0x704] ss:$16 sps:$4 sm:$0xff]   ;;  %v16344_v6 = vld [vmem:[#allocation8 + $0x500] ss:$16 sps:$4 sm:$0xff]   ;;  %v11503_v9 = vmax.f32 %v17398_v2, 0.0 }
 0x6de   :  { %13202 = vmatprep.subr.bf16.mxu1 %v16376_v47  ;;  %v16349_v47 = vld [vmem:[#allocation8 + $0xec] ss:$16 sps:$4 sm:$0xff]  }
 0x6df   :  { %13162 = vmatpush1.bf16.msra.mxu0 %v16308_v32  ;;  %v16446_v32 = vld [vmem:[#allocation8 + $0x700] ss:$16 sps:$4 sm:$0xff]  }
 0x6e0   :  { %13163 = vmatprep.subr.bf16.mxu0 %v16313_v12  ;;  %v16454_v12 = vld [vmem:[#allocation8 + $0x2ec] ss:$16 sps:$4 sm:$0xff]  }
 0x6e1   :  { %13203 = vmatpush1.bf16.msra.mxu1 %v16374_v20  ;;  %v16347_v20 = vld [vmem:[#allocation8 + $0xe8] ss:$16 sps:$4 sm:$0xff]  }
 0x6e2   :  { %13204 = vmatprep.subr.bf16.mxu1 %v16382_v23  ;;  %v17460_v23 = vpack.c.bf16 %v11503_v9, %v11503_v9  ;;  %v16443_v9 = vld [vmem:[#allocation8 + $0x4c8] ss:$16 sps:$4 sm:$0xff]  }
 0x6e3   :  { %13164 = vmatpush1.bf16.msra.mxu0 %v16311_v51  ;;  %v16352_v51 = vld [vmem:[#allocation8 + $0xcc] ss:$16 sps:$4 sm:$0xff]  }
 0x6e4   :  { %13165 = vmatprep.subr.bf16.mxu0 %v16316_v13 }
 0x6e5   :  { %13205 = vmatpush1.bf16.msra.mxu1 %v16380_v15 }
 0x6e6   :  { %13206 = vmatprep.subr.bf16.mxu1 %v16388_v30  ;;  %v16350_v30 = vld [vmem:[#allocation8 + $0xc8] ss:$16 sps:$4 sm:$0xff]  }
 0x6e7   :  { %13166 = vmatpush1.bf16.msra.mxu0 %v16314_v45 }
 0x6e8   :  { %13167 = vmatprep.subr.bf16.mxu0 %v16319_v4  ;;  %v16355_v4 = vld [vmem:[#allocation8 + $0xac] ss:$16 sps:$4 sm:$0xff]  }
 0x6e9   :  { %13207 = vmatpush1.bf16.msra.mxu1 %v16386_v53 }
 0x6ea   :  { %13208 = vmatprep.subr.bf16.mxu1 %v16394_v19 }
 0x6eb   :  { %13168 = vmatpush1.bf16.msra.mxu0 %v16317_v24 }
 0x6ec   :  { %13169 = vmatprep.subr.bf16.mxu0 %v16322_v21 }
 0x6ed   :  { %13209 = vmatpush1.bf16.msra.mxu1 %v16392_v26  ;;  %v16353_v26 = vld [vmem:[#allocation8 + $0xa8] ss:$16 sps:$4 sm:$0xff]  }
 0x6ee   :  { %13210 = vmatprep.subr.bf16.mxu1 %v16400_v22 }
 0x6ef   :  { %13170 = vmatpush1.bf16.msra.mxu0 %v16320_v55 }
 0x6f0   :  { %13171 = vmatprep.subr.bf16.mxu0 %v16325_v28  ;;  %v16359_v28 = vld [vmem:[#allocation8 + $0x88] ss:$16 sps:$4 sm:$0xff]  }
 0x6f1   :  { %13211 = vmatpush1.bf16.msra.mxu1 %v16398_v52  ;;  %v16365_v52 = vld [vmem:[#allocation8 + $0x68] ss:$16 sps:$4 sm:$0xff]  }
 0x6f2   :  { %13212 = vmatprep.subr.bf16.mxu1 %v16406_v7  ;;  %v16373_v7 = vld [vmem:[#allocation8 + $0x4c] ss:$16 sps:$4 sm:$0xff]  }
 0x6f3   :  { %13172 = vmatpush2.bf16.msra.mxu0 %v16323_v36  ;;  %v16371_v36 = vld [vmem:[#allocation8 + $0x48] ss:$16 sps:$4 sm:$0xff]  }
 0x6f4   :  { %13173 = vmatprep.subr.bf16.mxu0 %v16328_v44  ;;  %v16379_v44 = vld [vmem:[#allocation8 + $0x2c] ss:$16 sps:$4 sm:$0xff]  }
 0x6f5   :  { %13213 = vmatpush2.bf16.msra.mxu1 %v16404_v56  ;;  %v16377_v56 = vld [vmem:[#allocation8 + $0x28] ss:$16 sps:$4 sm:$0xff]  }
 0x6f6   :  { %13214 = vmatprep.subr.bf16.mxu1 %v16412_v8  ;;  %v16385_v8 = vld [vmem:[#allocation8 + $0xc] ss:$16 sps:$4 sm:$0xff]  }
 0x6f7   :  { %13174 = vmatpush2.bf16.msra.mxu0 %v16326_v29  ;;  %v16383_v29 = vld [vmem:[#allocation8 + $0x8] ss:$16 sps:$4 sm:$0xff]  }
 0x6f8   :  { %13175 = vmatprep.subr.bf16.mxu0 %v16331_v61  ;;  %v16391_v61 = vld [vmem:[#allocation8 + $0x1ec] ss:$16 sps:$4 sm:$0xff]  }
 0x6f9   :  { %13215 = vmatpush2.bf16.msra.mxu1 %v16410_v0  ;;  %v16389_v0 = vld [vmem:[#allocation8 + $0x1e8] ss:$16 sps:$4 sm:$0xff]  }
 0x6fa   :  { %13216 = vmatprep.subr.bf16.mxu1 %v16418_v57  ;;  %v16397_v57 = vld [vmem:[#allocation8 + $0x1cc] ss:$16 sps:$4 sm:$0xff]  }
 0x6fb   :  { %13176 = vmatpush2.bf16.msra.mxu0 %v16329_v25  ;;  %v16395_v25 = vld [vmem:[#allocation8 + $0x1c8] ss:$16 sps:$4 sm:$0xff]  }
 0x6fc   :  { %13177 = vmatprep.subr.bf16.mxu0 %v16334_v17  ;;  %v16403_v17 = vld [vmem:[#allocation8 + $0x1ac] ss:$16 sps:$4 sm:$0xff]  }
 0x6fd   :  { %13217 = vmatpush2.bf16.msra.mxu1 %v16416_v27  ;;  %v16401_v27 = vld [vmem:[#allocation8 + $0x1a8] ss:$16 sps:$4 sm:$0xff]  }
 0x6fe   :  { %13218 = vmatprep.subr.bf16.mxu1 %v16424_v49  ;;  %v16409_v49 = vld [vmem:[#allocation8 + $0x18c] ss:$16 sps:$4 sm:$0xff]  }
 0x6ff   :  { %13178 = vmatpush2.bf16.msra.mxu0 %v16332_v60  ;;  %v16407_v60 = vld [vmem:[#allocation8 + $0x188] ss:$16 sps:$4 sm:$0xff]  }
 0x700   :  { %13179 = vmatprep.subr.bf16.mxu0 %v16337_v41  ;;  %v16415_v41 = vld [vmem:[#allocation8 + $0x16c] ss:$16 sps:$4 sm:$0xff]  }
 0x701   :  { %13219 = vmatpush2.bf16.msra.mxu1 %v16422_v37  ;;  %v16413_v37 = vld [vmem:[#allocation8 + $0x168] ss:$16 sps:$4 sm:$0xff]  }
 0x702   :  { %13220 = vmatprep.subr.bf16.mxu1 %v16430_v34  ;;  %v16421_v34 = vld [vmem:[#allocation8 + $0x14c] ss:$16 sps:$4 sm:$0xff]  }
 0x703   :  { %13180 = vmatpush2.bf16.msra.mxu0 %v16335_v1  ;;  %v16419_v1 = vld [vmem:[#allocation8 + $0x148] ss:$16 sps:$4 sm:$0xff]  }
 0x704   :  { %13181 = vmatprep.subr.bf16.mxu0 %v16340_v54  ;;  %v16427_v54 = vld [vmem:[#allocation8 + $0x12c] ss:$16 sps:$4 sm:$0xff]  }
 0x705   :  { %13221 = vmatpush2.bf16.msra.mxu1 %v16428_v42  ;;  %v16425_v42 = vld [vmem:[#allocation8 + $0x128] ss:$16 sps:$4 sm:$0xff]  }
 0x706   :  { %13222 = vmatprep.subr.bf16.mxu1 %v16436_v48  ;;  %v16433_v48 = vld [vmem:[#allocation8 + $0x10c] ss:$16 sps:$4 sm:$0xff]  }
 0x707   :  { %13182 = vmatpush2.bf16.msra.mxu0 %v16338_v35  ;;  %v16431_v35 = vld [vmem:[#allocation8 + $0x108] ss:$16 sps:$4 sm:$0xff]  }
 0x708   :  { %13183 = vmatprep.subr.bf16.mxu0 %v16343_v46  ;;  %v16439_v46 = vld [vmem:[#allocation8 + $0x4ec] ss:$16 sps:$4 sm:$0xff]  }
 0x709   :  { %13223 = vmatpush2.bf16.msra.mxu1 %v16434_v39 }
 0x70a   :  { %13224 = vmatprep.subr.bf16.mxu1 %v16442_v63  ;;  %v16437_v63 = vld [vmem:[#allocation8 + $0x4e8] ss:$16 sps:$4 sm:$0xff]  }
 0x70b   :  { %13184 = vmatpush2.bf16.msra.mxu0 %v16341_v16  ;;  %v16445_v16 = vld [vmem:[#allocation8 + $0x4cc] ss:$16 sps:$4 sm:$0xff]  }
 0x70c   :  { %13185 = vmatprep.subr.bf16.mxu0 %v16346_v3 }
 0x70d   :  { %13225 = vmatpush2.bf16.msra.mxu1 %v16440_v18 }
 0x70e   :  { %13226 = vmatprep.subr.bf16.mxu1 %v16448_v40 }
 0x70f   :  { %13186 = vmatpush2.bf16.msra.mxu0 %v16344_v6 }
 0x710   :  { %13237 = vmatprep.subr.bf16.mxu0 %v16349_v47 }
 0x711   :  { %13227 = vmatpush2.bf16.msra.mxu1 %v16446_v32  ;;  %v16451_v32 = vld [vmem:[#allocation8 + $0x4ac] ss:$16 sps:$4 sm:$0xff]  }
 0x712   :  { %v11369_v13 = vpop.f32.mrf.mxu0  ;;  %13188 = vmatmul.mubr.bf16.vlgmr.msra.gmra.mxu0 %v17460_v23  ;;  %13278 = vmatprep.subr.bf16.mxu1 %v16454_v12 }
 0x713   :  { %v11370_v15 = vadd.f32 %v11369_v13, %v17454_v62  ;;  %13238 = vmatpush1.bf16.msra.mxu0 %v16347_v20  ;;  %13269 = vmatprep.mubr.bf16.mxu0 %v17427_v59  ;;  %v16361_v62 = vld [vmem:[#allocation8 + $0x8c] ss:$16 sps:$4 sm:$0xff]  }
 0x714   :  { %v11410_v2 = vpop.f32.mrf.mxu1  ;;  %v17465_v45 = vpop.f32.mrf.mxu0  ;;  %13239 = vmatprep.subr.bf16.mxu0 %v16352_v51  ;;  %v16367_v59 = vld [vmem:[#allocation8 + $0x6c] ss:$16 sps:$4 sm:$0xff]  }
 0x715   :  { %v17467_v53 = vadd.f32 %v11410_v2, %v11370_v15  ;;  %v11372_v39 = vadd.f32 %v17465_v45, %v17457_v58  ;;  %v16457_v45 = vld [vmem:[#allocation8 + $0x48c] ss:$16 sps:$4 sm:$0xff]  }
 0x716   :  { %v17469_v19 = vpop.f32.mrf.mxu1  ;;  %v11373_v24 = vpop.f32.mrf.mxu0 }
 0x717   :  { %13240 = vmatpush1.bf16.msra.mxu0 %v16350_v30  ;;  %v11413_v18 = vadd.f32 %v17469_v19, %v11372_v39  ;;  %v16503_v39 = vld [vmem:[#allocation8 + $0x588] ss:$16 sps:$4 sm:$0xff]  }
 0x718   :  { %v11414_v21 = vpop.f32.mrf.mxu1  ;;  %v11374_v22 = vpop.f32.mrf.mxu0  ;;  %13241 = vmatprep.subr.bf16.mxu0 %v16355_v4 }
 0x719   :  { %v16455_v21 = vld [vmem:[#allocation8 + $0x488] ss:$16 sps:$4 sm:$0xff]   ;;  %v16463_v22 = vld [vmem:[#allocation8 + $0x46c] ss:$16 sps:$4 sm:$0xff]  }
 0x71a   :  { %v11415_v55 = vpop.f32.mrf.mxu1 }
 0x71b   :  { %13242 = vmatpush1.bf16.msra.mxu0 %v16353_v26  ;;  %v16460_v26 = vld [vmem:[#allocation8 + $0x2cc] ss:$16 sps:$4 sm:$0xff]   ;;  %v16461_v55 = vld [vmem:[#allocation8 + $0x468] ss:$16 sps:$4 sm:$0xff]  }
 0x71c   :  { %13243 = vmatprep.subr.bf16.mxu0 %v16361_v62  ;;  %v16458_v62 = vld [vmem:[#allocation8 + $0x2c8] ss:$16 sps:$4 sm:$0xff]  }
 0x71f   :  { %13244 = vmatpush1.bf16.msra.mxu0 %v16359_v28  ;;  %v16466_v28 = vld [vmem:[#allocation8 + $0x2ac] ss:$16 sps:$4 sm:$0xff]  }
 0x720   :  { %13245 = vmatprep.subr.bf16.mxu0 %v16367_v59  ;;  %v16469_v59 = vld [vmem:[#allocation8 + $0x44c] ss:$16 sps:$4 sm:$0xff]  }
 0x723   :  { %13246 = vmatpush1.bf16.msra.mxu0 %v16365_v52  ;;  %v16464_v52 = vld [vmem:[#allocation8 + $0x2a8] ss:$16 sps:$4 sm:$0xff]  }
 0x724   :  { %13247 = vmatprep.subr.bf16.mxu0 %v16373_v7  ;;  %v16467_v7 = vld [vmem:[#allocation8 + $0x448] ss:$16 sps:$4 sm:$0xff]  }
 0x727   :  { %13248 = vmatpush1.bf16.msra.mxu0 %v16371_v36  ;;  %v16472_v36 = vld [vmem:[#allocation8 + $0x28c] ss:$16 sps:$4 sm:$0xff]  }
 0x728   :  { %13249 = vmatprep.subr.bf16.mxu0 %v16379_v44  ;;  %v16475_v44 = vld [vmem:[#allocation8 + $0x42c] ss:$16 sps:$4 sm:$0xff]  }
 0x72b   :  { %13250 = vmatpush1.bf16.msra.mxu0 %v16377_v56  ;;  %v16470_v56 = vld [vmem:[#allocation8 + $0x288] ss:$16 sps:$4 sm:$0xff]  }
 0x72c   :  { %13251 = vmatprep.subr.bf16.mxu0 %v16385_v8  ;;  %v16478_v8 = vld [vmem:[#allocation8 + $0x26c] ss:$16 sps:$4 sm:$0xff]  }
 0x72f   :  { %13252 = vmatpush1.bf16.msra.mxu0 %v16383_v29  ;;  %v16481_v29 = vld [vmem:[#allocation8 + $0x40c] ss:$16 sps:$4 sm:$0xff]  }
 0x730   :  { %13253 = vmatprep.subr.bf16.mxu0 %v16391_v61  ;;  %v16476_v61 = vld [vmem:[#allocation8 + $0x268] ss:$16 sps:$4 sm:$0xff]  }
 0x733   :  { %13254 = vmatpush2.bf16.msra.mxu0 %v16389_v0  ;;  %v16479_v0 = vld [vmem:[#allocation8 + $0x408] ss:$16 sps:$4 sm:$0xff]  }
 0x734   :  { %13255 = vmatprep.subr.bf16.mxu0 %v16397_v57  ;;  %v16484_v57 = vld [vmem:[#allocation8 + $0x24c] ss:$16 sps:$4 sm:$0xff]  }
 0x737   :  { %13256 = vmatpush2.bf16.msra.mxu0 %v16395_v25  ;;  %v16487_v25 = vld [vmem:[#allocation8 + $0x5ec] ss:$16 sps:$4 sm:$0xff]  }
 0x738   :  { %13257 = vmatprep.subr.bf16.mxu0 %v16403_v17  ;;  %v16482_v17 = vld [vmem:[#allocation8 + $0x248] ss:$16 sps:$4 sm:$0xff]  }
 0x73b   :  { %13258 = vmatpush2.bf16.msra.mxu0 %v16401_v27  ;;  %v16485_v27 = vld [vmem:[#allocation8 + $0x5e8] ss:$16 sps:$4 sm:$0xff]  }
 0x73c   :  { %13259 = vmatprep.subr.bf16.mxu0 %v16409_v49  ;;  %v16490_v49 = vld [vmem:[#allocation8 + $0x22c] ss:$16 sps:$4 sm:$0xff]  }
 0x73f   :  { %13260 = vmatpush2.bf16.msra.mxu0 %v16407_v60  ;;  %v16493_v60 = vld [vmem:[#allocation8 + $0x5cc] ss:$16 sps:$4 sm:$0xff]  }
 0x740   :  { %13261 = vmatprep.subr.bf16.mxu0 %v16415_v41  ;;  %v16488_v41 = vld [vmem:[#allocation8 + $0x228] ss:$16 sps:$4 sm:$0xff]  }
 0x743   :  { %13262 = vmatpush2.bf16.msra.mxu0 %v16413_v37  ;;  %v16491_v37 = vld [vmem:[#allocation8 + $0x5c8] ss:$16 sps:$4 sm:$0xff]  }
 0x744   :  { %13263 = vmatprep.subr.bf16.mxu0 %v16421_v34  ;;  %v16496_v34 = vld [vmem:[#allocation8 + $0x20c] ss:$16 sps:$4 sm:$0xff]  }
 0x747   :  { %13264 = vmatpush2.bf16.msra.mxu0 %v16419_v1  ;;  %v16499_v1 = vld [vmem:[#allocation8 + $0x5ac] ss:$16 sps:$4 sm:$0xff]  }
 0x748   :  { %13265 = vmatprep.subr.bf16.mxu0 %v16427_v54  ;;  %v16494_v54 = vld [vmem:[#allocation8 + $0x208] ss:$16 sps:$4 sm:$0xff]  }
 0x74b   :  { %13266 = vmatpush2.bf16.msra.mxu0 %v16425_v42  ;;  %v16497_v42 = vld [vmem:[#allocation8 + $0x5a8] ss:$16 sps:$4 sm:$0xff]  }
 0x74c   :  { %13267 = vmatprep.subr.bf16.mxu0 %v16433_v48  ;;  %v16502_v48 = vld [vmem:[#allocation8 + $0x3ec] ss:$16 sps:$4 sm:$0xff]  }
 0x74f   :  { %13268 = vmatpush2.bf16.msra.mxu0 %v16431_v35  ;;  %v16505_v35 = vld [vmem:[#allocation8 + $0x58c] ss:$16 sps:$4 sm:$0xff]  }
 0x750   :  { %13319 = vmatprep.subr.bf16.mxu0 %v16439_v46  ;;  %v16500_v46 = vld [vmem:[#allocation8 + $0x3e8] ss:$16 sps:$4 sm:$0xff]  }
 0x752   :  { %v11451_v3 = vpop.f32.mrf.mxu0  ;;  %13270 = vmatmul.mubr.bf16.vlgmr.msra.gmra.mxu0 %v17444_v11  ;;  %v16449_v11 = vld [vmem:[#allocation8 + $0x4a8] ss:$16 sps:$4 sm:$0xff]  }
 0x753   :  { %v11452_v40 = vadd.f32 %v11451_v3, %v17467_v53  ;;  %13320 = vmatpush1.bf16.msra.mxu0 %v16437_v63  ;;  %13351 = vmatprep.mubr.bf16.mxu0 %v17448_v38  ;;  %v16452_v38 = vld [vmem:[#allocation8 + $0x2e8] ss:$16 sps:$4 sm:$0xff]   ;;  %v16508_v63 = vld [vmem:[#allocation8 + $0x3cc] ss:$16 sps:$4 sm:$0xff]  }
 0x754   :  { %v11492_v6 = vpop.f32.mrf.mxu1  ;;  %v11453_v47 = vpop.f32.mrf.mxu0  ;;  %13321 = vmatprep.subr.bf16.mxu0 %v16445_v16  ;;  %v16511_v16 = vld [vmem:[#allocation8 + $0x56c] ss:$16 sps:$4 sm:$0xff]   ;;  %v16506_v3 = vld [vmem:[#allocation8 + $0x3c8] ss:$16 sps:$4 sm:$0xff]  }
 0x755   :  { %v11493_v58 = vadd.f32 %v11492_v6, %v11452_v40  ;;  %v11454_v12 = vadd.f32 %v11453_v47, %v11413_v18  ;;  %v16509_v18 = vld [vmem:[#allocation8 + $0x568] ss:$16 sps:$4 sm:$0xff]   ;;  %v16514_v40 = vld [vmem:[#allocation8 + $0x3ac] ss:$16 sps:$4 sm:$0xff]  }
 0x756   :  { %v11494_v20 = vpop.f32.mrf.mxu1  ;;  %v11455_v51 = vpop.f32.mrf.mxu0  ;;  %v16517_v6 = vld [vmem:[#allocation8 + $0x54c] ss:$16 sps:$4 sm:$0xff]   ;;  %v16515_v47 = vld [vmem:[#allocation8 + $0x548] ss:$16 sps:$4 sm:$0xff]  }
 0x757   :  { %v11495_v13 = vadd.f32 %v11494_v20, %v11454_v12  ;;  %13322 = vmatpush1.bf16.msra.mxu0 %v16443_v9  ;;  %v11505_v2 = vmax.f32 %v11493_v58, 0.0  ;;  %v16512_v9 = vld [vmem:[#allocation8 + $0x3a8] ss:$16 sps:$4 sm:$0xff]   ;;  %v16523_v58 = vld [vmem:[#allocation8 + $0x52c] ss:$16 sps:$4 sm:$0xff]  }
 0x758   :  { %v11496_v15 = vpop.f32.mrf.mxu1  ;;  %v11456_v30 = vpop.f32.mrf.mxu0  ;;  %13323 = vmatprep.subr.bf16.mxu0 %v16451_v32  ;;  %v16520_v32 = vld [vmem:[#allocation8 + $0x38c] ss:$16 sps:$4 sm:$0xff]   ;;  %v16518_v12 = vld [vmem:[#allocation8 + $0x388] ss:$16 sps:$4 sm:$0xff]  }
 0x759   :  { %v11506_v4 = vmax.f32 %v11495_v13, 0.0  ;;  %v17479_v24 = vpack.c.bf16 %v11505_v2, %v11505_v2  ;;  %v16521_v20 = vld [vmem:[#allocation8 + $0x528] ss:$16 sps:$4 sm:$0xff]   ;;  %v16526_v51 = vld [vmem:[#allocation8 + $0x36c] ss:$16 sps:$4 sm:$0xff]  }
 0x75a   :  { %v11497_v53 = vpop.f32.mrf.mxu1  ;;  %v16529_v13 = vld [vmem:[#allocation8 + $0x50c] ss:$16 sps:$4 sm:$0xff]   ;;  %v16524_v15 = vld [vmem:[#allocation8 + $0x368] ss:$16 sps:$4 sm:$0xff]   ;;  %v17484_v30 = vld [vmem:[#allocation10] sm:$0xf] }
 0x75b   :  { %v17477_v19 = vpack.c.bf16 %v11506_v4, %v11506_v4  ;;  %13324 = vmatpush1.bf16.msra.mxu0 %v16449_v11  ;;  %v16527_v11 = vld [vmem:[#allocation8 + $0x508] ss:$16 sps:$4 sm:$0xff]   ;;  %v16532_v2 = vld [vmem:[#allocation8 + $0x34c] ss:$16 sps:$4 sm:$0xff]   ;;  %v11776_v53 = vrot.slane %v17484_v30, %v17168_v43 }
 0x75c   :  { %13325 = vmatprep.subr.bf16.mxu0 %v16457_v45  ;;  %v16589_v45 = vld [vmem:[#allocation11 + $0x74] ss:$8 sps:$4 sm:$0xff]  }
 0x75d   :  { %13228 = vmatprep.mubr.bf16.mxu1 %v17477_v19  ;;  %v16530_v4 = vld [vmem:[#allocation8 + $0x348] ss:$16 sps:$4 sm:$0xff]  }
 0x75e   :  { %13229 = vmatmul.mubr.bf16.vlgmr.msra.gmra.mxu1 %v17479_v24 }
 0x75f   :  { %13279 = vmatpush1.bf16.msra.mxu1 %v16452_v38  ;;  %13310 = vmatprep.mubr.bf16.mxu1 %v17430_v14  ;;  %v16473_v14 = vld [vmem:[#allocation8 + $0x428] ss:$16 sps:$4 sm:$0xff]   ;;  %v16535_v38 = vld [vmem:[#allocation8 + $0x32c] ss:$16 sps:$4 sm:$0xff]  }
 0x760   :  { %13326 = vmatpush1.bf16.msra.mxu0 %v16455_v21  ;;  %13280 = vmatprep.subr.bf16.mxu1 %v16460_v26  ;;  %v16587_v21 = vld [vmem:[#allocation11 + $0x70] ss:$8 sps:$4 sm:$0xff]   ;;  %v11780_v26 = vrot.slane %v17484_v30, %v17171_v50 }
 0x761   :  { %13327 = vmatprep.subr.bf16.mxu0 %v16463_v22  ;;  %v16592_v22 = vld [vmem:[#allocation11 + $0x64] ss:$8 sps:$4 sm:$0xff]  }
 0x763   :  { %13281 = vmatpush1.bf16.msra.mxu1 %v16458_v62 }
 0x764   :  { %13328 = vmatpush1.bf16.msra.mxu0 %v16461_v55  ;;  %13282 = vmatprep.subr.bf16.mxu1 %v16466_v28 }
 0x765   :  { %13329 = vmatprep.subr.bf16.mxu0 %v16469_v59  ;;  %v16533_v59 = vld [vmem:[#allocation8 + $0x328] ss:$16 sps:$4 sm:$0xff]  }
 0x767   :  { %13283 = vmatpush1.bf16.msra.mxu1 %v16464_v52 }
 0x768   :  { %13330 = vmatpush1.bf16.msra.mxu0 %v16467_v7  ;;  %13284 = vmatprep.subr.bf16.mxu1 %v16472_v36  ;;  %v16538_v7 = vld [vmem:[#allocation8 + $0x30c] ss:$16 sps:$4 sm:$0xff]  }
 0x769   :  { %13331 = vmatprep.subr.bf16.mxu0 %v16475_v44  ;;  %v16590_v36 = vld [vmem:[#allocation11 + $0x60] ss:$8 sps:$4 sm:$0xff]  }
 0x76b   :  { %13285 = vmatpush1.bf16.msra.mxu1 %v16470_v56 }
 0x76c   :  { %13332 = vmatpush1.bf16.msra.mxu0 %v16473_v14  ;;  %13286 = vmatprep.subr.bf16.mxu1 %v16478_v8  ;;  %v16595_v8 = vld [vmem:[#allocation11 + $0x54] ss:$8 sps:$4 sm:$0xff]  }
 0x76d   :  { %13333 = vmatprep.subr.bf16.mxu0 %v16481_v29 }
 0x76f   :  { %13287 = vmatpush1.bf16.msra.mxu1 %v16476_v61 }
 0x770   :  { %13334 = vmatpush1.bf16.msra.mxu0 %v16479_v0  ;;  %13288 = vmatprep.subr.bf16.mxu1 %v16484_v57  ;;  %v16536_v57 = vld [vmem:[#allocation8 + $0x308] ss:$16 sps:$4 sm:$0xff]  }
 0x771   :  { %13335 = vmatprep.subr.bf16.mxu0 %v16487_v25 }
 0x773   :  { %13289 = vmatpush1.bf16.msra.mxu1 %v16482_v17  ;;  %v16593_v17 = vld [vmem:[#allocation11 + $0x50] ss:$8 sps:$4 sm:$0xff]  }
 0x774   :  { %13336 = vmatpush2.bf16.msra.mxu0 %v16485_v27  ;;  %13290 = vmatprep.subr.bf16.mxu1 %v16490_v49  ;;  %v16598_v49 = vld [vmem:[#allocation11 + $0x44] ss:$8 sps:$4 sm:$0xff]  }
 0x775   :  { %13337 = vmatprep.subr.bf16.mxu0 %v16493_v60  ;;  %v16539_v60 = vld [vmem:[#allocation8 + $0x6e8] ss:$16 sps:$4 sm:$0xff]  }
 0x777   :  { %13291 = vmatpush1.bf16.msra.mxu1 %v16488_v41  ;;  %v16544_v41 = vld [vmem:[#allocation8 + $0x6cc] ss:$16 sps:$4 sm:$0xff]  }
 0x778   :  { %13338 = vmatpush2.bf16.msra.mxu0 %v16491_v37  ;;  %13292 = vmatprep.subr.bf16.mxu1 %v16496_v34  ;;  %v16596_v37 = vld [vmem:[#allocation11 + $0x40] ss:$8 sps:$4 sm:$0xff]   ;;  %v16601_v34 = vld [vmem:[#allocation11 + $0x34] ss:$8 sps:$4 sm:$0xff]  }
 0x779   :  { %13339 = vmatprep.subr.bf16.mxu0 %v16499_v1  ;;  %v16542_v1 = vld [vmem:[#allocation8 + $0x6c8] ss:$16 sps:$4 sm:$0xff]  }
 0x77b   :  { %13293 = vmatpush1.bf16.msra.mxu1 %v16494_v54  ;;  %v16547_v54 = vld [vmem:[#allocation8 + $0x6ac] ss:$16 sps:$4 sm:$0xff]  }
 0x77c   :  { %13340 = vmatpush2.bf16.msra.mxu0 %v16497_v42  ;;  %13294 = vmatprep.subr.bf16.mxu1 %v16502_v48  ;;  %v16599_v42 = vld [vmem:[#allocation11 + $0x30] ss:$8 sps:$4 sm:$0xff]   ;;  %v16604_v48 = vld [vmem:[#allocation11 + $0x24] ss:$8 sps:$4 sm:$0xff]  }
 0x77d   :  { %13341 = vmatprep.subr.bf16.mxu0 %v16505_v35  ;;  %v16545_v35 = vld [vmem:[#allocation8 + $0x6a8] ss:$16 sps:$4 sm:$0xff]  }
 0x77f   :  { %13295 = vmatpush2.bf16.msra.mxu1 %v16500_v46  ;;  %v16550_v46 = vld [vmem:[#allocation8 + $0x68c] ss:$16 sps:$4 sm:$0xff]  }
 0x780   :  { %13342 = vmatpush2.bf16.msra.mxu0 %v16503_v39  ;;  %13296 = vmatprep.subr.bf16.mxu1 %v16508_v63  ;;  %v16602_v39 = vld [vmem:[#allocation11 + $0x20] ss:$8 sps:$4 sm:$0xff]   ;;  %v16607_v63 = vld [vmem:[#allocation11 + $0x14] ss:$8 sps:$4 sm:$0xff]  }
 0x781   :  { %13343 = vmatprep.subr.bf16.mxu0 %v16511_v16  ;;  %v16553_v16 = vld [vmem:[#allocation8 + $0x66c] ss:$16 sps:$4 sm:$0xff]  }
 0x783   :  { %13297 = vmatpush2.bf16.msra.mxu1 %v16506_v3  ;;  %v16610_v3 = vld [vmem:[#allocation11 + $0x4] ss:$8 sps:$4 sm:$0xff]  }
 0x784   :  { %13344 = vmatpush2.bf16.msra.mxu0 %v16509_v18  ;;  %13298 = vmatprep.subr.bf16.mxu1 %v16514_v40  ;;  %v16551_v18 = vld [vmem:[#allocation8 + $0x668] ss:$16 sps:$4 sm:$0xff]   ;;  %v16556_v40 = vld [vmem:[#allocation8 + $0x64c] ss:$16 sps:$4 sm:$0xff]  }
 0x785   :  { %13345 = vmatprep.subr.bf16.mxu0 %v16517_v6  ;;  %v16608_v6 = vld [vmem:[#allocation11] ss:$8 sps:$4 sm:$0xff]  }
 0x787   :  { %13299 = vmatpush2.bf16.msra.mxu1 %v16512_v9  ;;  %v16613_v9 = vld [vmem:[#allocation11 + $0xf4] ss:$8 sps:$4 sm:$0xff]  }
 0x788   :  { %13346 = vmatpush2.bf16.msra.mxu0 %v16515_v47  ;;  %13300 = vmatprep.subr.bf16.mxu1 %v16520_v32  ;;  %v16554_v47 = vld [vmem:[#allocation8 + $0x648] ss:$16 sps:$4 sm:$0xff]   ;;  %v16559_v32 = vld [vmem:[#allocation8 + $0x62c] ss:$16 sps:$4 sm:$0xff]  }
 0x789   :  { %13347 = vmatprep.subr.bf16.mxu0 %v16523_v58  ;;  %v16611_v58 = vld [vmem:[#allocation11 + $0xf0] ss:$8 sps:$4 sm:$0xff]  }
 0x78b   :  { %13301 = vmatpush2.bf16.msra.mxu1 %v16518_v12  ;;  %v16616_v12 = vld [vmem:[#allocation11 + $0xe4] ss:$8 sps:$4 sm:$0xff]  }
 0x78c   :  { %13348 = vmatpush2.bf16.msra.mxu0 %v16521_v20  ;;  %13302 = vmatprep.subr.bf16.mxu1 %v16526_v51  ;;  %v16557_v20 = vld [vmem:[#allocation8 + $0x628] ss:$16 sps:$4 sm:$0xff]   ;;  %v16562_v51 = vld [vmem:[#allocation8 + $0x60c] ss:$16 sps:$4 sm:$0xff]  }
 0x78d   :  { %13349 = vmatprep.subr.bf16.mxu0 %v16529_v13  ;;  %v16614_v13 = vld [vmem:[#allocation11 + $0xe0] ss:$8 sps:$4 sm:$0xff]  }
 0x78f   :  { %13303 = vmatpush2.bf16.msra.mxu1 %v16524_v15  ;;  %v16619_v15 = vld [vmem:[#allocation11 + $0xd4] ss:$8 sps:$4 sm:$0xff]  }
 0x790   :  { %13350 = vmatpush2.bf16.msra.mxu0 %v16527_v11  ;;  %13304 = vmatprep.subr.bf16.mxu1 %v16532_v2  ;;  %v16560_v11 = vld [vmem:[#allocation8 + $0x608] ss:$16 sps:$4 sm:$0xff]   ;;  %v16565_v2 = vld [vmem:[#allocation8 + $0x7ec] ss:$16 sps:$4 sm:$0xff]  }
 0x791   :  { %13805 = vmatprep.subr.bf16.mxu0 %v16589_v45  ;;  %v16617_v45 = vld [vmem:[#allocation11 + $0xd0] ss:$8 sps:$4 sm:$0xff]  }
 0x792   :  { %v13107_v62 = vpop.f32.mrf.mxu0 }
 0x793   :  { %v13108_v55 = vadd.f32 %v13107_v62, %v11776_v53  ;;  %13305 = vmatpush2.bf16.msra.mxu1 %v16530_v4  ;;  %13352 = vmatmul.mubr.bf16.vlgmr.msra.gmra.mxu0 %v17460_v23  ;;  %v16541_v23 = vld [vmem:[#allocation8 + $0x6ec] ss:$16 sps:$4 sm:$0xff]   ;;  %v16622_v4 = vld [vmem:[#allocation11 + $0xc4] ss:$8 sps:$4 sm:$0xff]  }
 0x794   :  { %v13148_v28 = vpop.f32.mrf.mxu1  ;;  %v13109_v52 = vpop.f32.mrf.mxu0  ;;  %13306 = vmatprep.subr.bf16.mxu1 %v16535_v38  ;;  %13806 = vmatpush1.bf16.msra.mxu0 %v16587_v21  ;;  %v16563_v53 = vld [vmem:[#allocation8 + $0x7e8] ss:$16 sps:$4 sm:$0xff]   ;;  %v16568_v38 = vld [vmem:[#allocation8 + $0x7cc] ss:$16 sps:$4 sm:$0xff]  }
 0x795   :  { %v17491_v44 = vadd.f32 %v13148_v28, %v13108_v55  ;;  %v13110_v56 = vadd.f32 %v13109_v52, %v11780_v26  ;;  %13807 = vmatprep.subr.bf16.mxu0 %v16592_v22  ;;  %v16620_v21 = vld [vmem:[#allocation11 + $0xc0] ss:$8 sps:$4 sm:$0xff]   ;;  %v16625_v26 = vld [vmem:[#allocation11 + $0xb4] ss:$8 sps:$4 sm:$0xff]   ;;  %v16623_v55 = vld [vmem:[#allocation11 + $0xb0] ss:$8 sps:$4 sm:$0xff]  }
 0x796   :  { %v13150_v14 = vpop.f32.mrf.mxu1  ;;  %v13111_v29 = vpop.f32.mrf.mxu0  ;;  %v16566_v22 = vld [vmem:[#allocation8 + $0x7c8] ss:$16 sps:$4 sm:$0xff]   ;;  %v16571_v62 = vld [vmem:[#allocation8 + $0x7ac] ss:$16 sps:$4 sm:$0xff]  }
 0x797   :  { %v17493_v61 = vadd.f32 %v13150_v14, %v13110_v56  ;;  %13307 = vmatpush2.bf16.msra.mxu1 %v16533_v59  ;;  %v16628_v28 = vld [vmem:[#allocation11 + $0xa4] ss:$8 sps:$4 sm:$0xff]   ;;  %v16574_v52 = vld [vmem:[#allocation8 + $0x78c] ss:$16 sps:$4 sm:$0xff]  }
 0x798   :  { %v13152_v0 = vpop.f32.mrf.mxu1  ;;  %v13112_v25 = vpop.f32.mrf.mxu0  ;;  %13308 = vmatprep.subr.bf16.mxu1 %v16538_v7  ;;  %13808 = vmatpush1.bf16.msra.mxu0 %v16590_v36  ;;  %v16569_v59 = vld [vmem:[#allocation8 + $0x7a8] ss:$16 sps:$4 sm:$0xff]   ;;  %v16626_v7 = vld [vmem:[#allocation11 + $0xa0] ss:$8 sps:$4 sm:$0xff]  }
 0x799   :  { %13809 = vmatprep.subr.bf16.mxu0 %v16595_v8  ;;  %v16631_v36 = vld [vmem:[#allocation11 + $0x94] ss:$8 sps:$4 sm:$0xff]   ;;  %v16577_v14 = vld [vmem:[#allocation8 + $0x76c] ss:$16 sps:$4 sm:$0xff]   ;;  %v16634_v29 = vld [vmem:[#allocation11 + $0x84] ss:$8 sps:$4 sm:$0xff]  }
 0x79a   :  { %v13153_v27 = vpop.f32.mrf.mxu1  ;;  %v16572_v56 = vld [vmem:[#allocation8 + $0x788] ss:$16 sps:$4 sm:$0xff]   ;;  %v16629_v8 = vld [vmem:[#allocation11 + $0x90] ss:$8 sps:$4 sm:$0xff]   ;;  %v16632_v25 = vld [vmem:[#allocation11 + $0x80] ss:$8 sps:$4 sm:$0xff]  }
 0x79b   :  { %13309 = vmatpush2.bf16.msra.mxu1 %v16536_v57  ;;  %v16575_v0 = vld [vmem:[#allocation8 + $0x768] ss:$16 sps:$4 sm:$0xff]   ;;  %v16580_v57 = vld [vmem:[#allocation8 + $0x74c] ss:$16 sps:$4 sm:$0xff]  }
 0x79c   :  { %13360 = vmatprep.subr.bf16.mxu1 %v16541_v23  ;;  %13810 = vmatpush1.bf16.msra.mxu0 %v16593_v17  ;;  %v16578_v23 = vld [vmem:[#allocation8 + $0x748] ss:$16 sps:$4 sm:$0xff]   ;;  %v16583_v17 = vld [vmem:[#allocation8 + $0x72c] ss:$16 sps:$4 sm:$0xff]  }
 0x79d   :  { %13811 = vmatprep.subr.bf16.mxu0 %v16598_v49 }
 0x79e   :  { %13311 = vmatmul.mubr.bf16.vlgmr.msra.gmra.mxu1 %v17446_v33  ;;  %v16548_v33 = vld [vmem:[#allocation8 + $0x688] ss:$16 sps:$4 sm:$0xff]  }
 0x79f   :  { %13361 = vmatpush1.bf16.msra.mxu1 %v16539_v60  ;;  %13392 = vmatprep.mubr.bf16.mxu1 %v17477_v19  ;;  %v16605_v19 = vld [vmem:[#allocation11 + $0x10] ss:$8 sps:$4 sm:$0xff]   ;;  %v16581_v60 = vld [vmem:[#allocation8 + $0x728] ss:$16 sps:$4 sm:$0xff]  }
 0x7a0   :  { %13362 = vmatprep.subr.bf16.mxu1 %v16544_v41  ;;  %13812 = vmatpush1.bf16.msra.mxu0 %v16596_v37  ;;  %v16586_v37 = vld [vmem:[#allocation8 + $0x70c] ss:$16 sps:$4 sm:$0xff]  }
 0x7a1   :  { %13813 = vmatprep.subr.bf16.mxu0 %v16601_v34 }
 0x7a3   :  { %13363 = vmatpush1.bf16.msra.mxu1 %v16542_v1 }
 0x7a4   :  { %13364 = vmatprep.subr.bf16.mxu1 %v16547_v54  ;;  %13814 = vmatpush1.bf16.msra.mxu0 %v16599_v42  ;;  %v16584_v54 = vld [vmem:[#allocation8 + $0x708] ss:$16 sps:$4 sm:$0xff]  }
 0x7a5   :  { %13815 = vmatprep.subr.bf16.mxu0 %v16604_v48  ;;  %v16635_v48 = vld [vmem:[#allocation11 + $0x170] ss:$8 sps:$4 sm:$0xff]  }
 0x7a7   :  { %13365 = vmatpush1.bf16.msra.mxu1 %v16545_v35  ;;  %v16637_v35 = vld [vmem:[#allocation11 + $0x174] ss:$8 sps:$4 sm:$0xff]  }
 0x7a8   :  { %13366 = vmatprep.subr.bf16.mxu1 %v16550_v46  ;;  %13816 = vmatpush1.bf16.msra.mxu0 %v16602_v39  ;;  %v16638_v46 = vld [vmem:[#allocation11 + $0x160] ss:$8 sps:$4 sm:$0xff]   ;;  %v16643_v39 = vld [vmem:[#allocation11 + $0x154] ss:$8 sps:$4 sm:$0xff]  }
 0x7a9   :  { %13817 = vmatprep.subr.bf16.mxu0 %v16607_v63  ;;  %v16641_v63 = vld [vmem:[#allocation11 + $0x150] ss:$8 sps:$4 sm:$0xff]  }
 0x7ab   :  { %13367 = vmatpush1.bf16.msra.mxu1 %v16548_v33  ;;  %v16644_v33 = vld [vmem:[#allocation11 + $0x140] ss:$8 sps:$4 sm:$0xff]  }
 0x7ac   :  { %13368 = vmatprep.subr.bf16.mxu1 %v16553_v16  ;;  %13818 = vmatpush1.bf16.msra.mxu0 %v16605_v19  ;;  %v16649_v16 = vld [vmem:[#allocation11 + $0x134] ss:$8 sps:$4 sm:$0xff]   ;;  %v16647_v19 = vld [vmem:[#allocation11 + $0x130] ss:$8 sps:$4 sm:$0xff]  }
 0x7ad   :  { %13819 = vmatprep.subr.bf16.mxu0 %v16610_v3  ;;  %v16650_v3 = vld [vmem:[#allocation11 + $0x120] ss:$8 sps:$4 sm:$0xff]  }
 0x7af   :  { %13369 = vmatpush1.bf16.msra.mxu1 %v16551_v18  ;;  %v16655_v18 = vld [vmem:[#allocation11 + $0x114] ss:$8 sps:$4 sm:$0xff]  }
 0x7b0   :  { %13370 = vmatprep.subr.bf16.mxu1 %v16556_v40  ;;  %13820 = vmatpush1.bf16.msra.mxu0 %v16608_v6  ;;  %v16653_v40 = vld [vmem:[#allocation11 + $0x110] ss:$8 sps:$4 sm:$0xff]   ;;  %v16658_v6 = vld [vmem:[#allocation11 + $0x104] ss:$8 sps:$4 sm:$0xff]  }
 0x7b1   :  { %13821 = vmatprep.subr.bf16.mxu0 %v16613_v9  ;;  %v16656_v9 = vld [vmem:[#allocation11 + $0x100] ss:$8 sps:$4 sm:$0xff]  }
 0x7b3   :  { %13371 = vmatpush1.bf16.msra.mxu1 %v16554_v47  ;;  %v16661_v47 = vld [vmem:[#allocation11 + $0x1f4] ss:$8 sps:$4 sm:$0xff]  }
 0x7b4   :  { %13372 = vmatprep.subr.bf16.mxu1 %v16559_v32  ;;  %13822 = vmatpush2.bf16.msra.mxu0 %v16611_v58  ;;  %v16659_v32 = vld [vmem:[#allocation11 + $0x1f0] ss:$8 sps:$4 sm:$0xff]   ;;  %v16664_v58 = vld [vmem:[#allocation11 + $0x1e4] ss:$8 sps:$4 sm:$0xff]  }
 0x7b5   :  { %13823 = vmatprep.subr.bf16.mxu0 %v16616_v12  ;;  %v16662_v12 = vld [vmem:[#allocation11 + $0x1e0] ss:$8 sps:$4 sm:$0xff]  }
 0x7b7   :  { %13373 = vmatpush1.bf16.msra.mxu1 %v16557_v20  ;;  %v16667_v20 = vld [vmem:[#allocation11 + $0x1d4] ss:$8 sps:$4 sm:$0xff]  }
 0x7b8   :  { %13374 = vmatprep.subr.bf16.mxu1 %v16562_v51  ;;  %13824 = vmatpush2.bf16.msra.mxu0 %v16614_v13  ;;  %v16665_v51 = vld [vmem:[#allocation11 + $0x1d0] ss:$8 sps:$4 sm:$0xff]   ;;  %v16670_v13 = vld [vmem:[#allocation11 + $0x1c4] ss:$8 sps:$4 sm:$0xff]  }
 0x7b9   :  { %13825 = vmatprep.subr.bf16.mxu0 %v16619_v15  ;;  %v16668_v15 = vld [vmem:[#allocation11 + $0x1c0] ss:$8 sps:$4 sm:$0xff]  }
 0x7bb   :  { %13375 = vmatpush1.bf16.msra.mxu1 %v16560_v11  ;;  %v16673_v11 = vld [vmem:[#allocation11 + $0x1b4] ss:$8 sps:$4 sm:$0xff]  }
 0x7bc   :  { %13376 = vmatprep.subr.bf16.mxu1 %v16565_v2  ;;  %13826 = vmatpush2.bf16.msra.mxu0 %v16617_v45  ;;  %v16671_v45 = vld [vmem:[#allocation11 + $0x1b0] ss:$8 sps:$4 sm:$0xff]  }
 0x7bd   :  { %13827 = vmatprep.subr.bf16.mxu0 %v16622_v4 }
 0x7bf   :  { %13377 = vmatpush2.bf16.msra.mxu1 %v16563_v53  ;;  %v16676_v53 = vld [vmem:[#allocation11 + $0x1a4] ss:$8 sps:$4 sm:$0xff]  }
 0x7c0   :  { %13378 = vmatprep.subr.bf16.mxu1 %v16568_v38  ;;  %13828 = vmatpush2.bf16.msra.mxu0 %v16620_v21  ;;  %v16674_v21 = vld [vmem:[#allocation11 + $0x1a0] ss:$8 sps:$4 sm:$0xff]  }
 0x7c1   :  { %13829 = vmatprep.subr.bf16.mxu0 %v16625_v26 }
 0x7c3   :  { %13379 = vmatpush2.bf16.msra.mxu1 %v16566_v22 }
 0x7c4   :  { %13380 = vmatprep.subr.bf16.mxu1 %v16571_v62  ;;  %13830 = vmatpush2.bf16.msra.mxu0 %v16623_v55  ;;  %v16679_v55 = vld [vmem:[#allocation11 + $0x194] ss:$8 sps:$4 sm:$0xff]  }
 0x7c5   :  { %13831 = vmatprep.subr.bf16.mxu0 %v16628_v28 }
 0x7c7   :  { %13381 = vmatpush2.bf16.msra.mxu1 %v16569_v59  ;;  %v16677_v59 = vld [vmem:[#allocation11 + $0x190] ss:$8 sps:$4 sm:$0xff]  }
 0x7c8   :  { %13382 = vmatprep.subr.bf16.mxu1 %v16574_v52  ;;  %13832 = vmatpush2.bf16.msra.mxu0 %v16626_v7 }
 0x7c9   :  { %13833 = vmatprep.subr.bf16.mxu0 %v16631_v36 }
 0x7cb   :  { %13383 = vmatpush2.bf16.msra.mxu1 %v16572_v56 }
 0x7cc   :  { %13384 = vmatprep.subr.bf16.mxu1 %v16577_v14  ;;  %13834 = vmatpush2.bf16.msra.mxu0 %v16629_v8  ;;  %v16682_v14 = vld [vmem:[#allocation11 + $0x184] ss:$8 sps:$4 sm:$0xff]  }
 0x7cd   :  { %13835 = vmatprep.subr.bf16.mxu0 %v16634_v29  ;;  %v16680_v29 = vld [vmem:[#allocation11 + $0x180] ss:$8 sps:$4 sm:$0xff]  }
 0x7cf   :  { %13385 = vmatpush2.bf16.msra.mxu1 %v16575_v0 }
 0x7d0   :  { %13386 = vmatprep.subr.bf16.mxu1 %v16580_v57  ;;  %13836 = vmatpush2.bf16.msra.mxu0 %v16632_v25 }
 0x7d2   :  { %v13189_v27 = vpop.f32.mrf.mxu0 }
 0x7d3   :  { %v17498_v49 = vadd.f32 %v13189_v27, %v17491_v44  ;;  %13387 = vmatpush2.bf16.msra.mxu1 %v16578_v23  ;;  %v16640_v44 = vld [vmem:[#allocation11 + $0x164] ss:$8 sps:$4 sm:$0xff]   ;;  %v11784_v27 = vrot.slane %v17484_v30, %v1737_v5  ;;  %v16686_v5 = vld [vmem:[#allocation14 + $0x30] sm:$0xff]  }
 0x7d4   :  { %v13191_v41 = vpop.f32.mrf.mxu0  ;;  %13388 = vmatprep.subr.bf16.mxu1 %v16583_v17 }
 0x7d5   :  { %v17501_v34 = vadd.f32 %v13191_v41, %v17493_v61  ;;  %v16646_v61 = vld [vmem:[#allocation11 + $0x144] ss:$8 sps:$4 sm:$0xff]  }
 0x7d6   :  { %v13193_v1 = vpop.f32.mrf.mxu0 }
 0x7d7   :  { %13389 = vmatpush2.bf16.msra.mxu1 %v16581_v60  ;;  %v11788_v60 = vrot.slane %v17484_v30, %v1741_v10  ;;  %v16688_v10 = vld [vmem:[#allocation14 + $0x28] sm:$0xff]   ;;  %v16689_v30 = vld [vmem:[#allocation14 + $0x60] sm:$0xff]  }
 0x7d8   :  { %v13194_v42 = vpop.f32.mrf.mxu0  ;;  %13390 = vmatprep.subr.bf16.mxu1 %v16586_v37 }
 0x7db   :  { %13391 = vmatpush2.bf16.msra.mxu1 %v16584_v54 }
 0x7dc   :  { %13846 = vmatprep.subr.bf16.mxu1 %v16637_v35 }
 0x7de   :  { %13393 = vmatmul.mubr.bf16.vlgmr.msra.gmra.mxu1 %v17479_v24  ;;  %v16652_v24 = vld [vmem:[#allocation11 + $0x124] ss:$8 sps:$4 sm:$0xff]  }
 0x7df   :  { %13847 = vmatpush1.bf16.msra.mxu1 %v16635_v48 }
 0x7e0   :  { %13848 = vmatprep.subr.bf16.mxu1 %v16640_v44 }
 0x7e3   :  { %13849 = vmatpush1.bf16.msra.mxu1 %v16638_v46 }
 0x7e4   :  { %13850 = vmatprep.subr.bf16.mxu1 %v16643_v39  ;;  %v16683_v39 = vld [vmem:[#allocation14 + $0x78] sm:$0xff]  }
 0x7e5   :  { %16106 = vmatprep.subr.bf16.mxu0 %v16683_v39 }
 0x7e7   :  { %13851 = vmatpush1.bf16.msra.mxu1 %v16641_v63  ;;  %v16684_v63 = vld [vmem:[#allocation14 + $0x38] sm:$0xff]  }
 0x7e8   :  { %13852 = vmatprep.subr.bf16.mxu1 %v16646_v61  ;;  %v16685_v61 = vld [vmem:[#allocation14 + $0x70] sm:$0xff]  }
 0x7eb   :  { %13853 = vmatpush1.bf16.msra.mxu1 %v16644_v33  ;;  %v16690_v33 = vld [vmem:[#allocation14 + $0x20] sm:$0xff]  }
 0x7ec   :  { %13854 = vmatprep.subr.bf16.mxu1 %v16649_v16  ;;  %v16691_v16 = vld [vmem:[#allocation14 + $0x58] sm:$0xff]  }
 0x7ef   :  { %13855 = vmatpush1.bf16.msra.mxu1 %v16647_v19  ;;  %v16692_v19 = vld [vmem:[#allocation14 + $0x18] sm:$0xff]  }
 0x7f0   :  { %13856 = vmatprep.subr.bf16.mxu1 %v16652_v24  ;;  %v16693_v24 = vld [vmem:[#allocation14 + $0x50] sm:$0xff]  }
 0x7f3   :  { %13857 = vmatpush1.bf16.msra.mxu1 %v16650_v3  ;;  %v16694_v3 = vld [vmem:[#allocation14 + $0x10] sm:$0xff]  }
 0x7f4   :  { %13858 = vmatprep.subr.bf16.mxu1 %v16655_v18 }
 0x7f7   :  { %13859 = vmatpush1.bf16.msra.mxu1 %v16653_v40 }
 0x7f8   :  { %13860 = vmatprep.subr.bf16.mxu1 %v16658_v6 }
 0x7fb   :  { %13861 = vmatpush1.bf16.msra.mxu1 %v16656_v9 }
 0x7fc   :  { %13862 = vmatprep.subr.bf16.mxu1 %v16661_v47 }
 0x7ff   :  { %13863 = vmatpush2.bf16.msra.mxu1 %v16659_v32 }
 0x800   :  { %13864 = vmatprep.subr.bf16.mxu1 %v16664_v58 }
 0x803   :  { %13865 = vmatpush2.bf16.msra.mxu1 %v16662_v12 }
 0x804   :  { %13866 = vmatprep.subr.bf16.mxu1 %v16667_v20 }
 0x807   :  { %13867 = vmatpush2.bf16.msra.mxu1 %v16665_v51 }
 0x808   :  { %13868 = vmatprep.subr.bf16.mxu1 %v16670_v13 }
 0x80b   :  { %13869 = vmatpush2.bf16.msra.mxu1 %v16668_v15  ;;  %v16695_v15 = vld [vmem:[#allocation14 + $0x48] sm:$0xff]  }
 0x80c   :  { %13870 = vmatprep.subr.bf16.mxu1 %v16673_v11 }
 0x80f   :  { %13871 = vmatpush2.bf16.msra.mxu1 %v16671_v45 }
 0x810   :  { %13872 = vmatprep.subr.bf16.mxu1 %v16676_v53 }
 0x812   :  { %v13271_v2 = vpop.f32.mrf.mxu0 }
 0x813   :  { %13873 = vmatpush2.bf16.msra.mxu1 %v16674_v21  ;;  %v13272_v41 = vadd.f32 %v13271_v2, %v11784_v27  ;;  %v16696_v2 = vld [vmem:[#allocation14 + $0x8] sm:$0xff]   ;;  %v16699_v21 = vld [vmem:[#allocation17 + $0x38] sm:$0xff]  }
 0x814   :  { %v13273_v4 = vpop.f32.mrf.mxu0  ;;  %13874 = vmatprep.subr.bf16.mxu1 %v16679_v55  ;;  %v16702_v55 = vld [vmem:[#allocation17 + $0x20] sm:$0xff]  }
 0x816   :  { %v13275_v38 = vpop.f32.mrf.mxu0 }
 0x817   :  { %13875 = vmatpush2.bf16.msra.mxu1 %v16677_v59  ;;  %v16698_v38 = vld [vmem:[#allocation14] sm:$0xff]   ;;  %v13473_v59 = vld [vmem:[#allocation13] sm:$0x3] }
 0x818   :  { %v13276_v26 = vpop.f32.mrf.mxu0  ;;  %13876 = vmatprep.subr.bf16.mxu1 %v16682_v14 }
 0x819   :  { %v16983_v26 = vmov 0.0  }
 0x81b   :  { %13877 = vmatpush2.bf16.msra.mxu1 %v16680_v29 }
 0x81c   :  { %16137 = vmatprep.subr.bf16.mxu1 %v16983_v26 }
 0x81e   :  { %v13230_v22 = vpop.f32.mrf.mxu1 }
 0x81f   :  { %v13231_v62 = vadd.f32 %v13230_v22, %v17498_v49  ;;  %v16700_v22 = vld [vmem:[#allocation17 + $0x30] sm:$0xff]  }
 0x820   :  { %v13232_v28 = vpop.f32.mrf.mxu1 }
 0x821   :  { %v13233_v52 = vadd.f32 %v13232_v28, %v17501_v34  ;;  %v13401_v7 = vmax.f32 %v13231_v62, 0.0  ;;  %v13274_v34 = vadd.f32 %v13273_v4, %v11788_v60  ;;  %v16697_v4 = vld [vmem:[#allocation14 + $0x40] sm:$0xff]   ;;  %v16701_v62 = vld [vmem:[#allocation17 + $0x28] sm:$0xff]   ;;  %v16704_v60 = vld [vmem:[#allocation17 + $0x10] sm:$0xff]  }
 0x822   :  { %v13234_v36 = vpop.f32.mrf.mxu1  ;;  %v16703_v28 = vld [vmem:[#allocation17 + $0x18] sm:$0xff]  }
 0x823   :  { %v13402_v56 = vmax.f32 %v13233_v52, 0.0  ;;  %v13405_v57 = vpack.c.bf16 %v13401_v7, %v13401_v7  ;;  %v13478_v52 = vrot.slane %v13473_v59, %v17168_v43  ;;  %v13482_v7 = vrot.slane %v13473_v59, %v17171_v50  ;;  %v16705_v43 = vld [vmem:[#allocation17 + $0x8] sm:$0xff]   ;;  %v16706_v50 = vld [vmem:[#allocation17] sm:$0xff]  }
 0x824   :  { %v13235_v8 = vpop.f32.mrf.mxu1 }
 0x825   :  { %v13406_v0 = vpack.c.bf16 %v13402_v56, %v13402_v56 }
 0x827   :  { %13837 = vmatprep.mubr.bf16.mxu0 %v13406_v0 }
 0x828   :  { %13838 = vmatmul.mubr.bf16.vlgmr.msra.gmra.mxu0 %v13405_v57 }
 0x829   :  { %16107 = vmatpush3.bf16.msra.mxu0 %v16684_v63 }
 0x82a   :  { %16108 = vmatprep.subr.bf16.mxu0 %v16685_v61 }
 0x82d   :  { %16109 = vmatpush3.bf16.msra.mxu0 %v16686_v5 }
 0x82e   :  { %16110 = vmatprep.subr.bf16.mxu0 %v16687_v31 }
 0x831   :  { %16111 = vmatpush3.bf16.msra.mxu0 %v16688_v10 }
 0x832   :  { %16112 = vmatprep.subr.bf16.mxu0 %v16689_v30 }
 0x835   :  { %16113 = vmatpush3.bf16.msra.mxu0 %v16690_v33 }
 0x836   :  { %16114 = vmatprep.subr.bf16.mxu0 %v16691_v16 }
 0x839   :  { %16115 = vmatpush3.bf16.msra.mxu0 %v16692_v19 }
 0x83a   :  { %16116 = vmatprep.subr.bf16.mxu0 %v16693_v24 }
 0x83d   :  { %16117 = vmatpush3.bf16.msra.mxu0 %v16694_v3 }
 0x83e   :  { %16118 = vmatprep.subr.bf16.mxu0 %v16695_v15 }
 0x841   :  { %16119 = vmatpush3.bf16.msra.mxu0 %v16696_v2 }
 0x842   :  { %16120 = vmatprep.subr.bf16.mxu0 %v16697_v4 }
 0x845   :  { %16121 = vmatpush3.bf16.msra.mxu0 %v16698_v38 }
 0x853   :  { %v13353_v25 = vpop.f32.mrf.mxu0 }
 0x855   :  { %v13355_v23 = vpop.f32.mrf.mxu0 }
 0x857   :  { %v13357_v17 = vpop.f32.mrf.mxu0 }
 0x859   :  { %v13358_v49 = vpop.f32.mrf.mxu0 }
 0x85e   :  { %v13312_v37 = vpop.f32.mrf.mxu1 }
 0x85f   :  { %v13313_v1 = vadd.f32 %v13312_v37, %v13272_v41  ;;  %v16080_v37 = vld [vmem:[#allocation16] ss:$0 sm:$0xff] }
 0x860   :  { %v13314_v54 = vpop.f32.mrf.mxu1 }
 0x861   :  { %v13315_v42 = vadd.f32 %v13314_v54, %v13274_v34  ;;  %v13354_v48 = vadd.f32 %v13353_v25, %v13313_v1 }
 0x862   :  { %v13316_v35 = vpop.f32.mrf.mxu1 }
 0x863   :  { %v13356_v44 = vadd.f32 %v13355_v23, %v13315_v42 }
 0x864   :  { %v13317_v46 = vpop.f32.mrf.mxu1 }
 0x865   :  { %v16097_v46 = vld [vmem:[#allocation19] ss:$0 sm:$0xff] }
 0x89e   :  { %v13394_v18 = vpop.f32.mrf.mxu1 }
 0x89f   :  { %v13395_v40 = vadd.f32 %v13394_v18, %v13354_v48 }
 0x8a0   :  { %v13396_v6 = vpop.f32.mrf.mxu1 }
 0x8a1   :  { %v13397_v9 = vadd.f32 %v13396_v6, %v13356_v44  ;;  %v13403_v47 = vmax.f32 %v13395_v40, 0.0 }
 0x8a2   :  { %v13398_v32 = vpop.f32.mrf.mxu1 }
 0x8a3   :  { %v13404_v58 = vmax.f32 %v13397_v9, 0.0  ;;  %v13407_v51 = vpack.c.bf16 %v13403_v47, %v13403_v47 }
 0x8a4   :  { %v13399_v12 = vpop.f32.mrf.mxu1 }
 0x8a5   :  { %v13408_v20 = vpack.c.bf16 %v13404_v58, %v13404_v58 }
 0x8a7   :  { %13878 = vmatprep.mubr.bf16.mxu1 %v13408_v20 }
 0x8a8   :  { %13879 = vmatmul.mubr.bf16.vlgmr.msra.gmra.mxu1 %v13407_v51 }
 0x8a9   :  { %16138 = vmatpush3.bf16.msra.mxu1 %v16699_v21  ;;  %16153 = vmatprep.mubr.msk.bf16.mxu1 %vm16984_vm0, %v16983_v26 }
 0x8aa   :  { %16139 = vmatprep.subr.bf16.mxu1 %v16983_v26 }
 0x8ad   :  { %16140 = vmatpush3.bf16.msra.mxu1 %v16700_v22 }
 0x8ae   :  { %16141 = vmatprep.subr.bf16.mxu1 %v16983_v26 }
 0x8b1   :  { %16142 = vmatpush3.bf16.msra.mxu1 %v16701_v62 }
 0x8b2   :  { %16143 = vmatprep.subr.bf16.mxu1 %v16983_v26 }
 0x8b5   :  { %16144 = vmatpush3.bf16.msra.mxu1 %v16702_v55 }
 0x8b6   :  { %16145 = vmatprep.subr.bf16.mxu1 %v16983_v26 }
 0x8b9   :  { %16146 = vmatpush3.bf16.msra.mxu1 %v16703_v28 }
 0x8ba   :  { %16147 = vmatprep.subr.bf16.mxu1 %v16983_v26 }
 0x8bd   :  { %16148 = vmatpush3.bf16.msra.mxu1 %v16704_v60 }
 0x8be   :  { %16149 = vmatprep.subr.bf16.mxu1 %v16983_v26 }
 0x8c1   :  { %16150 = vmatpush3.bf16.msra.mxu1 %v16705_v43 }
 0x8c2   :  { %16151 = vmatprep.subr.bf16.mxu1 %v16983_v26 }
 0x8c5   :  { %16152 = vmatpush3.bf16.msra.mxu1 %v16706_v50 }
 0x8e8   :  { %v13839_v13 = vpop.f32.mrf.mxu0 }
 0x8e9   :  { %v13840_v36 = vadd.f32 %v13839_v13, %v13478_v52 }
 0x8ea   :  { %v13841_v11 = vpop.f32.mrf.mxu0 }
 0x8eb   :  { %v13842_v14 = vadd.f32 %v13841_v11, %v13482_v7 }
 0x8ec   :  { %v13843_v45 = vpop.f32.mrf.mxu0 }
 0x8ee   :  { %v13844_v53 = vpop.f32.mrf.mxu0 }
 0x968   :  { %v13880_v56 = vpop.f32.mrf.mxu1 }
 0x969   :  { %v13881_v8 = vadd.f32 %v13880_v56, %v13840_v36 }
 0x96a   :  { %v13882_v29 = vpop.f32.mrf.mxu1 }
 0x96b   :  { %v13883_v0 = vadd.f32 %v13882_v29, %v13842_v14  ;;  %v13887_v57 = vmax.f32 %v13881_v8, 0.0 }
 0x96c   :  { %v13884_v25 = vpop.f32.mrf.mxu1 }
 0x96d   :  { %v13888_v23 = vmax.f32 %v13883_v0, 0.0  ;;  %v13889_v49 = vpack.c.bf16 %v13887_v57, %v13887_v57 }
 0x96e   :  { %v13885_v17 = vpop.f32.mrf.mxu1 }
 0x96f   :  { %v13890_v27 = vpack.c.bf16 %v13888_v23, %v13888_v23 }
 0x971   :  { %14058 = vmatprep.mubr.bf16.mxu0 %v13890_v27 }
 0x972   :  { %14059 = vmatmul.mubr.bf16.vlgmr.msra.gmra.mxu0 %v13889_v49 }
 0xa32   :  { %v16122_v41 = vpop.f32.mrf.mxu0 }
 0xa34   :  { %v16123_v34 = vpop.f32.mrf.mxu0 }
 0xa35   :  { %v16124_v1 = vadd.f32 %v16123_v34, %v16122_v41 }
 0xa36   :  { %v16125_v54 = vpop.f32.mrf.mxu0 }
 0xa37   :  { %v14061_v42 = vadd.f32 %v16124_v1, %v16080_v37 }
 0xa38   :  { %v16126_v48 = vpop.f32.mrf.mxu0 }
 0xa39   :  { %v14066_v35 = vmax.f32 %v14061_v42, 0.0 }
 0xa3b   :  { %v14067_v44 = vpack.c.bf16 %v14066_v35, %v14066_v35 }
 0xa3d   :  { %16154 = vmatmul.mubr.bf16.vlgmr.msra.gmra.mxu1 %v14067_v44 }
 0xafd   :  { %v14173_v39 = vpop.f32.mrf.mxu1 }
 0xafe   :  { %v14174_v63 = vadd.f32 %v16097_v46, %v14173_v39 }
 0xaff   :  { %v16155_v61 = vpop.f32.mrf.mxu1 }
 0xb00   :  { %14179 = vst [vmem:[#allocation20] sm:$0xff] %v14174_v63 }
 0xb01   :  { %v14176_v5 = vpop.f32.mrf.mxu1 }
 0xb02   :  { %16941 = shalt.err (!%p16938_p3)
}
 0xb03   :  { %14189 = dma.vmem_to_hbm [thread:$0]  %s14187_s10, 128, %s17528_s11, [#allocation4]   ;;  %v16156_v31 = vpop.f32.mrf.mxu1 }
 0xb04   :  { %16962 = dma.done.wait [#allocation4], 128  }
 0xb05   :  { %16963 = vsyncadd [#allocation4], 4294967168 }
 0xb06   :  { %14193 = vsyncpa [#allocation3], 1 }
 0xb07   :  { %14194 = vsyncpa [#allocation6], 1 }
 0xb08   :  { %14195 = vsyncpa [#allocation9], 1 }
 0xb09   :  { %14196 = vsyncpa [#allocation12], 1 }
 0xb0a   :  { %14197 = vsyncpa [#allocation15], 1 }
 0xb0b   :  { %14198 = vsyncpa [#allocation18], 1 }
 0xb0c   :  { %14199 = vsyncpa [#allocation4], 1 }

</bundles_post_ra>
